<compile_context>
chip_gen: v6e
topology: v6e:2x2x1
jax: 0.10.0
libtpu: 0.0.40
codegen_flags: <defaults>
</compile_context>

<pallas_src>
import numpy as np
import jax
import jax.numpy as jnp
from jax.experimental import pallas as pl
from jax.experimental.pallas import tpu as pltpu

N_BLOCK = 5
INPUT_CHAN = 3
INPUT_DIM = 95
KERNEL_SZ = 3
LANES = 128
NEG_SLOPE = 0.01  # nn.LeakyReLU default negative_slope


# ----------------------------------------------------------------------------
# Fused kernel
# ----------------------------------------------------------------------------
def _decoder_kernel(wf_ref, b_ref, pw_ref, pb_ref, x_ref, out_ref, buf_a, buf_b):
    """Whole decoder in one kernel.

    wf_ref : (N_BLOCK*C*C*8,) SMEM  folded conv taps [ae,be,ce,ao,bo,co,w0,w2]
    b_ref  : (N_BLOCK*C,)     SMEM  conv biases
    pw_ref : (C,)             SMEM  post 1x1-conv weights
    pb_ref : (1,)             SMEM  post 1x1-conv bias
    x_ref  : (C*3*B, 128)     VMEM  input, per channel rows = [halo_lo | x | halo_hi]
    out_ref: (32*B, 128)      VMEM  rows = [even phases (p,b) | odd phases (p,b)]
    buf_a/buf_b : VMEM ping-pong scratch, per channel rows = [halo_lo | phases | halo_hi]
    """
    C, L0 = INPUT_CHAN, INPUT_DIM
    LN = x_ref.shape[1]
    B = x_ref.shape[0] // (3 * C)

    lane = jax.lax.broadcasted_iota(jnp.int32, (B, LN), 1)
    first_lane = lane == 0
    last_lane = lane == (L0 - 1)

    def leaky(v):
        return jnp.where(v > 0, v, NEG_SLOPE * v)

    bufs = (buf_a, buf_b)

    for k in range(N_BLOCK):
        P = 1 << k                                  # input phases of this block
        is_last = k == N_BLOCK - 1
        src = x_ref if k == 0 else bufs[(k - 1) % 2]
        dst = out_ref if is_last else bufs[k % 2]
        s_stride = (P + 2) * B                      # rows per channel in src (with halo)
        d_stride = (2 * P + 2) * B                  # rows per channel in dst (with halo)

        # Hoisted SMEM scalar reads for this block.
        taps = [[tuple(wf_ref[((k * C + o) * C + i) * 8 + t] for t in range(8))
                 for i in range(C)] for o in range(C)]
        biases = [b_ref[k * C + o] for o in range(C)]
        if is_last:
            pw = [pw_ref[o] for o in range(C)]
            pb0 = pb_ref[0]

        # Packed operands: rows are (input-phase, batch), phase-major.  The halo rows
        # make x[t-1]/x[t]/x[t+1] three plain contiguous row-shifted loads.
        XM, XS, XP, R0, RL = [], [], [], [], []
        for i in range(C):
            base = i * s_stride
            XM.append(src[base:base + P * B, :])
            XS.append(src[base + B:base + (P + 1) * B, :])
            XP.append(src[base + 2 * B:base + (P + 2) * B, :])
            R0.append(src[base + B:base + 2 * B, :])              # input phase 0
            RL.append(src[base + P * B:base + (P + 1) * B, :])    # input phase P-1

        if is_last:
            y_e = y_o = y_e0 = y_oL = None

        for o in range(C):
            acc_e = acc_o = None
            for i in range(C):
                ae, be, ce, ao, bo, co, _, _ = taps[o][i]
                te = ae * XM[i] + be * XS[i] + ce * XP[i]      # even output phase
                to = ao * XM[i] + bo * XS[i] + co * XP[i]      # odd output phase
                acc_e = te if acc_e is None else acc_e + te
                acc_o = to if acc_o is None else acc_o + to
            acc_e = acc_e + biases[o]
            acc_o = acc_o + biases[o]
            ze = leaky(acc_e)       # group p -> output phase 2p
            zo = leaky(acc_o)       # group p -> output phase 2p+1

            # Edge fixups: the conv zero-pads the UPSAMPLED signal, so the folded taps
            # over-count at exactly output t=0 (even, phase 0) and t=L-1 (odd, phase 2P-1).
            corr_e = corr_o = None
            for i in range(C):
                w0 = taps[o][i][6]
                w2 = taps[o][i][7]
                t0 = w0 * R0[i]
                tL = w2 * RL[i]
                corr_e = t0 if corr_e is None else corr_e + t0
                corr_o = tL if corr_o is None else corr_o + tL
            a_e0 = acc_e[0:B, :]                      # group p = 0
            a_oL = acc_o[(P - 1) * B:P * B, :]        # group p = P-1
            z_e0 = jnp.where(first_lane, leaky(a_e0 - corr_e), leaky(a_e0))
            z_oL = jnp.where(last_lane, leaky(a_oL - corr_o), leaky(a_oL))

            if not is_last:
                ob = o * d_stride
                # phase-value-ordered stores (consumed by the next block's dense loads)
                for p in range(P):
                    e_p = z_e0 if p == 0 else ze[p * B:(p + 1) * B, :]
                    o_p = z_oL if p == P - 1 else zo[p * B:(p + 1) * B, :]
                    dst[ob + (1 + 2 * p) * B:ob + (2 + 2 * p) * B, :] = e_p
                    dst[ob + (2 + 2 * p) * B:ob + (3 + 2 * p) * B, :] = o_p
                # Halo rows for the NEXT block (its edge phases shifted by one lane).
                halo_lo = jnp.concatenate(
                    [z_e0[:, 0:1], z_oL[:, 0:LN - 1]], axis=1)
                halo_hi = jnp.concatenate(
                    [z_e0[:, 1:L0], z_oL[:, L0 - 1:L0], z_oL[:, L0:]], axis=1)
                dst[ob:ob + B, :] = halo_lo
                dst[ob + (2 * P + 1) * B:ob + (2 * P + 2) * B, :] = halo_hi
            else:
                # Fused post_decoder: Conv1d(C -> 1, kernel_size=1) accumulation.
                t_e = pw[o] * ze
                t_o = pw[o] * zo
                y_e = t_e if y_e is None else y_e + t_e
                y_o = t_o if y_o is None else y_o + t_o
                f_e = pw[o] * z_e0
                f_o = pw[o] * z_oL
                y_e0 = f_e if y_e0 is None else y_e0 + f_e
                y_oL = f_o if y_oL is None else y_oL + f_o

        if is_last:
            # Dense parity-split output (+ Tanh); host glue de-interleaves the phases.
            out_ref[0:P * B, :] = jnp.tanh(y_e + pb0)
            out_ref[P * B:2 * P * B, :] = jnp.tanh(y_o + pb0)
            # Overwrite the two boundary groups with their edge-corrected values.
            out_ref[0:B, :] = jnp.tanh(y_e0 + pb0)
            out_ref[P * B + (P - 1) * B:2 * P * B, :] = jnp.tanh(y_oL + pb0)


# ----------------------------------------------------------------------------
# Weight preparation (hoisted out of the forward path)
# ----------------------------------------------------------------------------
def _fold_block_weights(w):
    """Fold Upsample(x2, linear, align_corners=False) into the 3-tap conv.

    w: (C_out, C_in, 3).  Returns (C_out, C_in, 8) = [ae,be,ce,ao,bo,co,w0,w2]:
      even: y[2t]   = ae*x[t-1] + be*x[t] + ce*x[t+1]
      odd : y[2t+1] = ao*x[t-1] + bo*x[t] + co*x[t+1]
    w0/w2 are kept for the two zero-pad boundary corrections.
    """
    w0, w1, w2 = w[..., 0], w[..., 1], w[..., 2]
    ae = 0.75 * w0 + 0.25 * w1
    be = 0.25 * w0 + 0.75 * w1 + 0.75 * w2
    ce = 0.25 * w2
    ao = 0.25 * w0
    bo = 0.75 * w0 + 0.75 * w1 + 0.25 * w2
    co = 0.25 * w1 + 0.75 * w2
    return jnp.stack([ae, be, ce, ao, bo, co, w0, w2], axis=-1)


def prepare_params(params):
    """One-time prep: fold the upsample into the conv taps and flatten for SMEM."""
    wf = jnp.stack([_fold_block_weights(w) for (w, _) in params["blocks"]]).reshape(-1)
    bb = jnp.stack([b for (_, b) in params["blocks"]]).reshape(-1)
    pw = params["post_w"].reshape(-1)
    pb = params["post_b"].reshape(-1)
    return {"wf": wf, "bb": bb, "pw": pw, "pb": pb}


# ----------------------------------------------------------------------------
# Wrapper
# ----------------------------------------------------------------------------
def vae_decoder_forward(x, prep):
    Bsz = x.shape[0]
    C, L0, LN = INPUT_CHAN, INPUT_DIM, LANES
    n_phase = 1 << N_BLOCK

    x = x.reshape(Bsz, C, L0)                       # == x.view(B, input_chan, input_dim)
    xr = jnp.transpose(x, (1, 0, 2))                # (C, B, L0)
    xr = jnp.pad(xr, ((0, 0), (0, 0), (0, LN - L0)))  # lane-pad to 128
    # halo rows for block 0 (edge-replicated neighbours of the block input)
    halo_lo = jnp.concatenate([xr[:, :, :1], xr[:, :, :LN - 1]], axis=2)
    halo_hi = jnp.concatenate(
        [xr[:, :, 1:L0], xr[:, :, L0 - 1:L0], xr[:, :, L0:]], axis=2)
    x_in = jnp.concatenate([halo_lo, xr, halo_hi], axis=1).reshape(C * 3 * Bsz, LN)

    out = pl.pallas_call(
        _decoder_kernel,
        out_shape=jax.ShapeDtypeStruct((n_phase * Bsz, LN), jnp.float32),
        in_specs=[
            pl.BlockSpec(memory_space=pltpu.MemorySpace.SMEM),   # folded conv taps
            pl.BlockSpec(memory_space=pltpu.MemorySpace.SMEM),   # conv biases
            pl.BlockSpec(memory_space=pltpu.MemorySpace.SMEM),   # post-conv weight
            pl.BlockSpec(memory_space=pltpu.MemorySpace.SMEM),   # post-conv bias
            pl.BlockSpec(memory_space=pltpu.MemorySpace.VMEM),   # activations (+halo)
        ],
        out_specs=pl.BlockSpec(memory_space=pltpu.MemorySpace.VMEM),
        scratch_shapes=[
            pltpu.VMEM((INPUT_CHAN * 10 * Bsz, LN), jnp.float32),  # blocks 0,2 out (<=8 ph + halo)
            pltpu.VMEM((INPUT_CHAN * 18 * Bsz, LN), jnp.float32),  # blocks 1,3 out (<=16 ph + halo)
        ],
    )(prep["wf"], prep["bb"], prep["pw"], prep["pb"], x_in)

    # out rows: [even phases 0,2,..,30 | odd phases 1,3,..,31], each as (p, b) groups.
    # Tiny XLA glue to recover natural order: y[b, 0, t*32 + 2p + parity].
    out = out[:, :L0].reshape(2, n_phase // 2, Bsz, L0)            # [parity, p, b, t]
    y = jnp.transpose(out, (2, 3, 1, 0)).reshape(Bsz, L0 * n_phase)
    return y[:, None, :]


# ----------------------------------------------------------------------------
# Deterministic parameter init (mirrors module __init__ shapes)
# ----------------------------------------------------------------------------
def init_params(key):
    blocks = []
    for _ in range(N_BLOCK):
        key, kw, kb = jax.random.split(key, 3)
        # conv.weight.data.normal_(0, 0.01); bias keeps default uniform init
        w = 0.01 * jax.random.normal(kw, (INPUT_CHAN, INPUT_CHAN, KERNEL_SZ), jnp.float32)
        bound = 1.0 / np.sqrt(INPUT_CHAN * KERNEL_SZ)
        b = jax.random.uniform(kb, (INPUT_CHAN,), jnp.float32, -bound, bound)
        blocks.append((w, b))
    key, kw, kb = jax.random.split(key, 3)
    bound = 1.0 / np.sqrt(INPUT_CHAN * 1)
    post_w = jax.random.uniform(kw, (1, INPUT_CHAN, 1), jnp.float32, -bound, bound)
    post_b = jax.random.uniform(kb, (1,), jnp.float32, -bound, bound)
    return {"blocks": blocks, "post_w": post_w, "post_b": post_b}


# ----------------------------------------------------------------------------
# Pure-JAX reference (correctness check of the Pallas path)
# ----------------------------------------------------------------------------
def _upsample_linear_x2_ref(x):
    B, C, L = x.shape
    xm = jnp.concatenate([x[:, :, :1], x[:, :, : L - 1]], axis=-1)
    xp = jnp.concatenate([x[:, :, 1:], x[:, :, L - 1:]], axis=-1)
    even = 0.25 * xm + 0.75 * x
    odd = 0.75 * x + 0.25 * xp
    return jnp.stack([even, odd], axis=-1).reshape(B, C, 2 * L)


def _conv1d_same_ref(x, w, b):
    B, C, L = x.shape
    xpad = jnp.pad(x, ((0, 0), (0, 0), (1, 1)))
    y = (jnp.einsum("oc,bcl->bol", w[:, :, 0], xpad[:, :, 0:L])
         + jnp.einsum("oc,bcl->bol", w[:, :, 1], xpad[:, :, 1:L + 1])
         + jnp.einsum("oc,bcl->bol", w[:, :, 2], xpad[:, :, 2:L + 2]))
    return y + b[None, :, None]


def reference_forward(x, params):
    B = x.shape[0]
    x = x.reshape(B, INPUT_CHAN, INPUT_DIM)
    for (w, b) in params["blocks"]:
        x = _upsample_linear_x2_ref(x)
        x = _conv1d_same_ref(x, w, b)
        x = jnp.where(x > 0, x, NEG_SLOPE * x)
    y = jnp.einsum("oc,bcl->bol", params["post_w"][:, :, 0], x) + params["post_b"][None, :, None]
    return jnp.tanh(y)


# ----------------------------------------------------------------------------
if __name__ == "__main__":
    key = jax.random.PRNGKey(0)
    kx, kp = jax.random.split(key)
    params = init_params(kp)
    prep = prepare_params(params)        # hoisted: computed once, not per forward

    B = 2
    x = jax.random.normal(kx, (B, INPUT_CHAN * INPUT_DIM), jnp.float32)  # (2, 285)

    fwd = jax.jit(vae_decoder_forward)
    out = jax.block_until_ready(fwd(x, prep))
    assert out.shape == (B, 1, INPUT_DIM * 2 ** N_BLOCK), out.shape  # (2, 1, 3040)

    ref = jax.block_until_ready(jax.jit(reference_forward)(x, params))
    np.testing.assert_allclose(np.asarray(out), np.asarray(ref), rtol=5e-4, atol=5e-5)

    print("KERNEL_OK")
</pallas_src>

<mosaic_0001>
module attributes {stable_mosaic.version = 11 : i64} {
  func.func @_decoder_kernel(%arg0: memref<360xf32, #tpu.memory_space<smem>>, %arg1: memref<15xf32, #tpu.memory_space<smem>>, %arg2: memref<3xf32, #tpu.memory_space<smem>>, %arg3: memref<1xf32, #tpu.memory_space<smem>>, %arg4: memref<18x128xf32, #tpu.memory_space<vmem>>, %arg5: memref<64x128xf32, #tpu.memory_space<vmem>>, %arg6: memref<60x128xf32, #tpu.memory_space<vmem>>, %arg7: memref<108x128xf32, #tpu.memory_space<vmem>>) attributes {dimension_semantics = [], scalar_prefetch = 0 : i64, scratch_operands = 2 : i64, tpu.core_type = #tpu.core_type<tc>} {
    %0 = tpu.iota {dimensions = array<i32: 1>} : vector<2x128xi32>
    %c0_i32 = arith.constant 0 : i32
    %1 = vector.broadcast %c0_i32 : i32 to vector<2x128xi32>
    %2 = arith.cmpi eq, %0, %1 : vector<2x128xi32>
    %c94_i32 = arith.constant 94 : i32
    %3 = vector.broadcast %c94_i32 : i32 to vector<2x128xi32>
    %4 = arith.cmpi eq, %0, %3 : vector<2x128xi32>
    %c0 = arith.constant 0 : index
    %5 = memref.load %arg0[%c0] : memref<360xf32, #tpu.memory_space<smem>>
    %c1 = arith.constant 1 : index
    %6 = memref.load %arg0[%c1] : memref<360xf32, #tpu.memory_space<smem>>
    %c2 = arith.constant 2 : index
    %7 = memref.load %arg0[%c2] : memref<360xf32, #tpu.memory_space<smem>>
    %c3 = arith.constant 3 : index
    %8 = memref.load %arg0[%c3] : memref<360xf32, #tpu.memory_space<smem>>
    %c4 = arith.constant 4 : index
    %9 = memref.load %arg0[%c4] : memref<360xf32, #tpu.memory_space<smem>>
    %c5 = arith.constant 5 : index
    %10 = memref.load %arg0[%c5] : memref<360xf32, #tpu.memory_space<smem>>
    %c6 = arith.constant 6 : index
    %11 = memref.load %arg0[%c6] : memref<360xf32, #tpu.memory_space<smem>>
    %c7 = arith.constant 7 : index
    %12 = memref.load %arg0[%c7] : memref<360xf32, #tpu.memory_space<smem>>
    %c8 = arith.constant 8 : index
    %13 = memref.load %arg0[%c8] : memref<360xf32, #tpu.memory_space<smem>>
    %c9 = arith.constant 9 : index
    %14 = memref.load %arg0[%c9] : memref<360xf32, #tpu.memory_space<smem>>
    %c10 = arith.constant 10 : index
    %15 = memref.load %arg0[%c10] : memref<360xf32, #tpu.memory_space<smem>>
    %c11 = arith.constant 11 : index
    %16 = memref.load %arg0[%c11] : memref<360xf32, #tpu.memory_space<smem>>
    %c12 = arith.constant 12 : index
    %17 = memref.load %arg0[%c12] : memref<360xf32, #tpu.memory_space<smem>>
    %c13 = arith.constant 13 : index
    %18 = memref.load %arg0[%c13] : memref<360xf32, #tpu.memory_space<smem>>
    %c14 = arith.constant 14 : index
    %19 = memref.load %arg0[%c14] : memref<360xf32, #tpu.memory_space<smem>>
    %c15 = arith.constant 15 : index
    %20 = memref.load %arg0[%c15] : memref<360xf32, #tpu.memory_space<smem>>
    %c16 = arith.constant 16 : index
    %21 = memref.load %arg0[%c16] : memref<360xf32, #tpu.memory_space<smem>>
    %c17 = arith.constant 17 : index
    %22 = memref.load %arg0[%c17] : memref<360xf32, #tpu.memory_space<smem>>
    %c18 = arith.constant 18 : index
    %23 = memref.load %arg0[%c18] : memref<360xf32, #tpu.memory_space<smem>>
    %c19 = arith.constant 19 : index
    %24 = memref.load %arg0[%c19] : memref<360xf32, #tpu.memory_space<smem>>
    %c20 = arith.constant 20 : index
    %25 = memref.load %arg0[%c20] : memref<360xf32, #tpu.memory_space<smem>>
    %c21 = arith.constant 21 : index
    %26 = memref.load %arg0[%c21] : memref<360xf32, #tpu.memory_space<smem>>
    %c22 = arith.constant 22 : index
    %27 = memref.load %arg0[%c22] : memref<360xf32, #tpu.memory_space<smem>>
    %c23 = arith.constant 23 : index
    %28 = memref.load %arg0[%c23] : memref<360xf32, #tpu.memory_space<smem>>
    %c24 = arith.constant 24 : index
    %29 = memref.load %arg0[%c24] : memref<360xf32, #tpu.memory_space<smem>>
    %c25 = arith.constant 25 : index
    %30 = memref.load %arg0[%c25] : memref<360xf32, #tpu.memory_space<smem>>
    %c26 = arith.constant 26 : index
    %31 = memref.load %arg0[%c26] : memref<360xf32, #tpu.memory_space<smem>>
    %c27 = arith.constant 27 : index
    %32 = memref.load %arg0[%c27] : memref<360xf32, #tpu.memory_space<smem>>
    %c28 = arith.constant 28 : index
    %33 = memref.load %arg0[%c28] : memref<360xf32, #tpu.memory_space<smem>>
    %c29 = arith.constant 29 : index
    %34 = memref.load %arg0[%c29] : memref<360xf32, #tpu.memory_space<smem>>
    %c30 = arith.constant 30 : index
    %35 = memref.load %arg0[%c30] : memref<360xf32, #tpu.memory_space<smem>>
    %c31 = arith.constant 31 : index
    %36 = memref.load %arg0[%c31] : memref<360xf32, #tpu.memory_space<smem>>
    %c32 = arith.constant 32 : index
    %37 = memref.load %arg0[%c32] : memref<360xf32, #tpu.memory_space<smem>>
    %c33 = arith.constant 33 : index
    %38 = memref.load %arg0[%c33] : memref<360xf32, #tpu.memory_space<smem>>
    %c34 = arith.constant 34 : index
    %39 = memref.load %arg0[%c34] : memref<360xf32, #tpu.memory_space<smem>>
    %c35 = arith.constant 35 : index
    %40 = memref.load %arg0[%c35] : memref<360xf32, #tpu.memory_space<smem>>
    %c36 = arith.constant 36 : index
    %41 = memref.load %arg0[%c36] : memref<360xf32, #tpu.memory_space<smem>>
    %c37 = arith.constant 37 : index
    %42 = memref.load %arg0[%c37] : memref<360xf32, #tpu.memory_space<smem>>
    %c38 = arith.constant 38 : index
    %43 = memref.load %arg0[%c38] : memref<360xf32, #tpu.memory_space<smem>>
    %c39 = arith.constant 39 : index
    %44 = memref.load %arg0[%c39] : memref<360xf32, #tpu.memory_space<smem>>
    %c40 = arith.constant 40 : index
    %45 = memref.load %arg0[%c40] : memref<360xf32, #tpu.memory_space<smem>>
    %c41 = arith.constant 41 : index
    %46 = memref.load %arg0[%c41] : memref<360xf32, #tpu.memory_space<smem>>
    %c42 = arith.constant 42 : index
    %47 = memref.load %arg0[%c42] : memref<360xf32, #tpu.memory_space<smem>>
    %c43 = arith.constant 43 : index
    %48 = memref.load %arg0[%c43] : memref<360xf32, #tpu.memory_space<smem>>
    %c44 = arith.constant 44 : index
    %49 = memref.load %arg0[%c44] : memref<360xf32, #tpu.memory_space<smem>>
    %c45 = arith.constant 45 : index
    %50 = memref.load %arg0[%c45] : memref<360xf32, #tpu.memory_space<smem>>
    %c46 = arith.constant 46 : index
    %51 = memref.load %arg0[%c46] : memref<360xf32, #tpu.memory_space<smem>>
    %c47 = arith.constant 47 : index
    %52 = memref.load %arg0[%c47] : memref<360xf32, #tpu.memory_space<smem>>
    %c48 = arith.constant 48 : index
    %53 = memref.load %arg0[%c48] : memref<360xf32, #tpu.memory_space<smem>>
    %c49 = arith.constant 49 : index
    %54 = memref.load %arg0[%c49] : memref<360xf32, #tpu.memory_space<smem>>
    %c50 = arith.constant 50 : index
    %55 = memref.load %arg0[%c50] : memref<360xf32, #tpu.memory_space<smem>>
    %c51 = arith.constant 51 : index
    %56 = memref.load %arg0[%c51] : memref<360xf32, #tpu.memory_space<smem>>
    %c52 = arith.constant 52 : index
    %57 = memref.load %arg0[%c52] : memref<360xf32, #tpu.memory_space<smem>>
    %c53 = arith.constant 53 : index
    %58 = memref.load %arg0[%c53] : memref<360xf32, #tpu.memory_space<smem>>
    %c54 = arith.constant 54 : index
    %59 = memref.load %arg0[%c54] : memref<360xf32, #tpu.memory_space<smem>>
    %c55 = arith.constant 55 : index
    %60 = memref.load %arg0[%c55] : memref<360xf32, #tpu.memory_space<smem>>
    %c56 = arith.constant 56 : index
    %61 = memref.load %arg0[%c56] : memref<360xf32, #tpu.memory_space<smem>>
    %c57 = arith.constant 57 : index
    %62 = memref.load %arg0[%c57] : memref<360xf32, #tpu.memory_space<smem>>
    %c58 = arith.constant 58 : index
    %63 = memref.load %arg0[%c58] : memref<360xf32, #tpu.memory_space<smem>>
    %c59 = arith.constant 59 : index
    %64 = memref.load %arg0[%c59] : memref<360xf32, #tpu.memory_space<smem>>
    %c60 = arith.constant 60 : index
    %65 = memref.load %arg0[%c60] : memref<360xf32, #tpu.memory_space<smem>>
    %c61 = arith.constant 61 : index
    %66 = memref.load %arg0[%c61] : memref<360xf32, #tpu.memory_space<smem>>
    %c62 = arith.constant 62 : index
    %67 = memref.load %arg0[%c62] : memref<360xf32, #tpu.memory_space<smem>>
    %c63 = arith.constant 63 : index
    %68 = memref.load %arg0[%c63] : memref<360xf32, #tpu.memory_space<smem>>
    %c64 = arith.constant 64 : index
    %69 = memref.load %arg0[%c64] : memref<360xf32, #tpu.memory_space<smem>>
    %c65 = arith.constant 65 : index
    %70 = memref.load %arg0[%c65] : memref<360xf32, #tpu.memory_space<smem>>
    %c66 = arith.constant 66 : index
    %71 = memref.load %arg0[%c66] : memref<360xf32, #tpu.memory_space<smem>>
    %c67 = arith.constant 67 : index
    %72 = memref.load %arg0[%c67] : memref<360xf32, #tpu.memory_space<smem>>
    %c68 = arith.constant 68 : index
    %73 = memref.load %arg0[%c68] : memref<360xf32, #tpu.memory_space<smem>>
    %c69 = arith.constant 69 : index
    %74 = memref.load %arg0[%c69] : memref<360xf32, #tpu.memory_space<smem>>
    %c70 = arith.constant 70 : index
    %75 = memref.load %arg0[%c70] : memref<360xf32, #tpu.memory_space<smem>>
    %c71 = arith.constant 71 : index
    %76 = memref.load %arg0[%c71] : memref<360xf32, #tpu.memory_space<smem>>
    %c0_0 = arith.constant 0 : index
    %77 = memref.load %arg1[%c0_0] : memref<15xf32, #tpu.memory_space<smem>>
    %c1_1 = arith.constant 1 : index
    %78 = memref.load %arg1[%c1_1] : memref<15xf32, #tpu.memory_space<smem>>
    %c2_2 = arith.constant 2 : index
    %79 = memref.load %arg1[%c2_2] : memref<15xf32, #tpu.memory_space<smem>>
    %c0_3 = arith.constant 0 : index
    %c0_4 = arith.constant 0 : index
    %80 = vector.load %arg4[%c0_3, %c0_4] : memref<18x128xf32, #tpu.memory_space<vmem>>, vector<2x128xf32>
    %c2_5 = arith.constant 2 : index
    %c0_6 = arith.constant 0 : index
    %81 = vector.load %arg4[%c2_5, %c0_6] : memref<18x128xf32, #tpu.memory_space<vmem>>, vector<2x128xf32>
    %c4_7 = arith.constant 4 : index
    %c0_8 = arith.constant 0 : index
    %82 = vector.load %arg4[%c4_7, %c0_8] : memref<18x128xf32, #tpu.memory_space<vmem>>, vector<2x128xf32>
    %c2_9 = arith.constant 2 : index
    %c0_10 = arith.constant 0 : index
    %83 = vector.load %arg4[%c2_9, %c0_10] : memref<18x128xf32, #tpu.memory_space<vmem>>, vector<2x128xf32>
    %c2_11 = arith.constant 2 : index
    %c0_12 = arith.constant 0 : index
    %84 = vector.load %arg4[%c2_11, %c0_12] : memref<18x128xf32, #tpu.memory_space<vmem>>, vector<2x128xf32>
    %c6_13 = arith.constant 6 : index
    %c0_14 = arith.constant 0 : index
    %85 = vector.load %arg4[%c6_13, %c0_14] : memref<18x128xf32, #tpu.memory_space<vmem>>, vector<2x128xf32>
    %c8_15 = arith.constant 8 : index
    %c0_16 = arith.constant 0 : index
    %86 = vector.load %arg4[%c8_15, %c0_16] : memref<18x128xf32, #tpu.memory_space<vmem>>, vector<2x128xf32>
    %c10_17 = arith.constant 10 : index
    %c0_18 = arith.constant 0 : index
    %87 = vector.load %arg4[%c10_17, %c0_18] : memref<18x128xf32, #tpu.memory_space<vmem>>, vector<2x128xf32>
    %c8_19 = arith.constant 8 : index
    %c0_20 = arith.constant 0 : index
    %88 = vector.load %arg4[%c8_19, %c0_20] : memref<18x128xf32, #tpu.memory_space<vmem>>, vector<2x128xf32>
    %c8_21 = arith.constant 8 : index
    %c0_22 = arith.constant 0 : index
    %89 = vector.load %arg4[%c8_21, %c0_22] : memref<18x128xf32, #tpu.memory_space<vmem>>, vector<2x128xf32>
    %c12_23 = arith.constant 12 : index
    %c0_24 = arith.constant 0 : index
    %90 = vector.load %arg4[%c12_23, %c0_24] : memref<18x128xf32, #tpu.memory_space<vmem>>, vector<2x128xf32>
    %c14_25 = arith.constant 14 : index
    %c0_26 = arith.constant 0 : index
    %91 = vector.load %arg4[%c14_25, %c0_26] : memref<18x128xf32, #tpu.memory_space<vmem>>, vector<2x128xf32>
    %c16_27 = arith.constant 16 : index
    %c0_28 = arith.constant 0 : index
    %92 = vector.load %arg4[%c16_27, %c0_28] : memref<18x128xf32, #tpu.memory_space<vmem>>, vector<2x128xf32>
    %c14_29 = arith.constant 14 : index
    %c0_30 = arith.constant 0 : index
    %93 = vector.load %arg4[%c14_29, %c0_30] : memref<18x128xf32, #tpu.memory_space<vmem>>, vector<2x128xf32>
    %c14_31 = arith.constant 14 : index
    %c0_32 = arith.constant 0 : index
    %94 = vector.load %arg4[%c14_31, %c0_32] : memref<18x128xf32, #tpu.memory_space<vmem>>, vector<2x128xf32>
    %95 = vector.broadcast %5 : f32 to vector<2x128xf32>
    %96 = arith.mulf %95, %80 : vector<2x128xf32>
    %97 = vector.broadcast %6 : f32 to vector<2x128xf32>
    %98 = arith.mulf %97, %81 : vector<2x128xf32>
    %99 = arith.addf %96, %98 : vector<2x128xf32>
    %100 = vector.broadcast %7 : f32 to vector<2x128xf32>
    %101 = arith.mulf %100, %82 : vector<2x128xf32>
    %102 = arith.addf %99, %101 : vector<2x128xf32>
    %103 = vector.broadcast %8 : f32 to vector<2x128xf32>
    %104 = arith.mulf %103, %80 : vector<2x128xf32>
    %105 = vector.broadcast %9 : f32 to vector<2x128xf32>
    %106 = arith.mulf %105, %81 : vector<2x128xf32>
    %107 = arith.addf %104, %106 : vector<2x128xf32>
    %108 = vector.broadcast %10 : f32 to vector<2x128xf32>
    %109 = arith.mulf %108, %82 : vector<2x128xf32>
    %110 = arith.addf %107, %109 : vector<2x128xf32>
    %111 = vector.broadcast %13 : f32 to vector<2x128xf32>
    %112 = arith.mulf %111, %85 : vector<2x128xf32>
    %113 = vector.broadcast %14 : f32 to vector<2x128xf32>
    %114 = arith.mulf %113, %86 : vector<2x128xf32>
    %115 = arith.addf %112, %114 : vector<2x128xf32>
    %116 = vector.broadcast %15 : f32 to vector<2x128xf32>
    %117 = arith.mulf %116, %87 : vector<2x128xf32>
    %118 = arith.addf %115, %117 : vector<2x128xf32>
    %119 = vector.broadcast %16 : f32 to vector<2x128xf32>
    %120 = arith.mulf %119, %85 : vector<2x128xf32>
    %121 = vector.broadcast %17 : f32 to vector<2x128xf32>
    %122 = arith.mulf %121, %86 : vector<2x128xf32>
    %123 = arith.addf %120, %122 : vector<2x128xf32>
    %124 = vector.broadcast %18 : f32 to vector<2x128xf32>
    %125 = arith.mulf %124, %87 : vector<2x128xf32>
    %126 = arith.addf %123, %125 : vector<2x128xf32>
    %127 = arith.addf %102, %118 : vector<2x128xf32>
    %128 = arith.addf %110, %126 : vector<2x128xf32>
    %129 = vector.broadcast %21 : f32 to vector<2x128xf32>
    %130 = arith.mulf %129, %90 : vector<2x128xf32>
    %131 = vector.broadcast %22 : f32 to vector<2x128xf32>
    %132 = arith.mulf %131, %91 : vector<2x128xf32>
    %133 = arith.addf %130, %132 : vector<2x128xf32>
    %134 = vector.broadcast %23 : f32 to vector<2x128xf32>
    %135 = arith.mulf %134, %92 : vector<2x128xf32>
    %136 = arith.addf %133, %135 : vector<2x128xf32>
    %137 = vector.broadcast %24 : f32 to vector<2x128xf32>
    %138 = arith.mulf %137, %90 : vector<2x128xf32>
    %139 = vector.broadcast %25 : f32 to vector<2x128xf32>
    %140 = arith.mulf %139, %91 : vector<2x128xf32>
    %141 = arith.addf %138, %140 : vector<2x128xf32>
    %142 = vector.broadcast %26 : f32 to vector<2x128xf32>
    %143 = arith.mulf %142, %92 : vector<2x128xf32>
    %144 = arith.addf %141, %143 : vector<2x128xf32>
    %145 = arith.addf %127, %136 : vector<2x128xf32>
    %146 = arith.addf %128, %144 : vector<2x128xf32>
    %147 = vector.broadcast %77 : f32 to vector<2x128xf32>
    %148 = arith.addf %145, %147 : vector<2x128xf32>
    %149 = vector.broadcast %77 : f32 to vector<2x128xf32>
    %150 = arith.addf %146, %149 : vector<2x128xf32>
    %151 = vector.broadcast %11 : f32 to vector<2x128xf32>
    %152 = arith.mulf %151, %83 : vector<2x128xf32>
    %153 = vector.broadcast %12 : f32 to vector<2x128xf32>
    %154 = arith.mulf %153, %84 : vector<2x128xf32>
    %155 = vector.broadcast %19 : f32 to vector<2x128xf32>
    %156 = arith.mulf %155, %88 : vector<2x128xf32>
    %157 = vector.broadcast %20 : f32 to vector<2x128xf32>
    %158 = arith.mulf %157, %89 : vector<2x128xf32>
    %159 = arith.addf %152, %156 : vector<2x128xf32>
    %160 = arith.addf %154, %158 : vector<2x128xf32>
    %161 = vector.broadcast %27 : f32 to vector<2x128xf32>
    %162 = arith.mulf %161, %93 : vector<2x128xf32>
    %163 = vector.broadcast %28 : f32 to vector<2x128xf32>
    %164 = arith.mulf %163, %94 : vector<2x128xf32>
    %165 = arith.addf %159, %162 : vector<2x128xf32>
    %166 = arith.addf %160, %164 : vector<2x128xf32>
    %167 = arith.subf %148, %165 : vector<2x128xf32>
    %cst = arith.constant 0.000000e+00 : f32
    %168 = vector.broadcast %cst : f32 to vector<2x128xf32>
    %169 = arith.cmpf ogt, %167, %168 : vector<2x128xf32>
    %cst_33 = arith.constant 0.00999999977 : f32
    %170 = vector.broadcast %cst_33 : f32 to vector<2x128xf32>
    %171 = arith.mulf %170, %167 : vector<2x128xf32>
    %172 = arith.select %169, %167, %171 : vector<2x128xi1>, vector<2x128xf32>
    %cst_34 = arith.constant 0.000000e+00 : f32
    %173 = vector.broadcast %cst_34 : f32 to vector<2x128xf32>
    %174 = arith.cmpf ogt, %148, %173 : vector<2x128xf32>
    %cst_35 = arith.constant 0.00999999977 : f32
    %175 = vector.broadcast %cst_35 : f32 to vector<2x128xf32>
    %176 = arith.mulf %175, %148 : vector<2x128xf32>
    %177 = arith.select %174, %148, %176 : vector<2x128xi1>, vector<2x128xf32>
    %178 = arith.select %2, %172, %177 : vector<2x128xi1>, vector<2x128xf32>
    %179 = arith.subf %150, %166 : vector<2x128xf32>
    %cst_36 = arith.constant 0.000000e+00 : f32
    %180 = vector.broadcast %cst_36 : f32 to vector<2x128xf32>
    %181 = arith.cmpf ogt, %179, %180 : vector<2x128xf32>
    %cst_37 = arith.constant 0.00999999977 : f32
    %182 = vector.broadcast %cst_37 : f32 to vector<2x128xf32>
    %183 = arith.mulf %182, %179 : vector<2x128xf32>
    %184 = arith.select %181, %179, %183 : vector<2x128xi1>, vector<2x128xf32>
    %cst_38 = arith.constant 0.000000e+00 : f32
    %185 = vector.broadcast %cst_38 : f32 to vector<2x128xf32>
    %186 = arith.cmpf ogt, %150, %185 : vector<2x128xf32>
    %cst_39 = arith.constant 0.00999999977 : f32
    %187 = vector.broadcast %cst_39 : f32 to vector<2x128xf32>
    %188 = arith.mulf %187, %150 : vector<2x128xf32>
    %189 = arith.select %186, %150, %188 : vector<2x128xi1>, vector<2x128xf32>
    %190 = arith.select %4, %184, %189 : vector<2x128xi1>, vector<2x128xf32>
    %c2_40 = arith.constant 2 : index
    %c0_41 = arith.constant 0 : index
    %191 = vector.load %arg6[%c2_40, %c0_41] : memref<60x128xf32, #tpu.memory_space<vmem>>, vector<2x128xf32>
    tpu.vector_store %arg6[%c2_40, %c0_41], %178 {strides = array<i32>} : memref<60x128xf32, #tpu.memory_space<vmem>>, vector<2x128xf32>,
    %c4_42 = arith.constant 4 : index
    %c0_43 = arith.constant 0 : index
    %192 = vector.load %arg6[%c4_42, %c0_43] : memref<60x128xf32, #tpu.memory_space<vmem>>, vector<2x128xf32>
    tpu.vector_store %arg6[%c4_42, %c0_43], %190 {strides = array<i32>} : memref<60x128xf32, #tpu.memory_space<vmem>>, vector<2x128xf32>,
    %193 = vector.extract_strided_slice %178 {offsets = [0, 0], sizes = [2, 1], strides = [1, 1]} : vector<2x128xf32> to vector<2x1xf32>
    %194 = vector.extract_strided_slice %190 {offsets = [0, 0], sizes = [2, 127], strides = [1, 1]} : vector<2x128xf32> to vector<2x127xf32>
    %195 = tpu.concatenate %193, %194 in 1 : vector<2x1xf32>, vector<2x127xf32> -> vector<2x128xf32>
    %196 = vector.extract_strided_slice %178 {offsets = [0, 1], sizes = [2, 94], strides = [1, 1]} : vector<2x128xf32> to vector<2x94xf32>
    %197 = vector.extract_strided_slice %190 {offsets = [0, 94], sizes = [2, 1], strides = [1, 1]} : vector<2x128xf32> to vector<2x1xf32>
    %198 = vector.extract_strided_slice %190 {offsets = [0, 95], sizes = [2, 33], strides = [1, 1]} : vector<2x128xf32> to vector<2x33xf32>
    %199 = tpu.concatenate %196, %197, %198 in 1 : vector<2x94xf32>, vector<2x1xf32>, vector<2x33xf32> -> vector<2x128xf32>
    %c0_44 = arith.constant 0 : index
    %c0_45 = arith.constant 0 : index
    %200 = vector.load %arg6[%c0_44, %c0_45] : memref<60x128xf32, #tpu.memory_space<vmem>>, vector<2x128xf32>
    tpu.vector_store %arg6[%c0_44, %c0_45], %195 {strides = array<i32>} : memref<60x128xf32, #tpu.memory_space<vmem>>, vector<2x128xf32>,
    %c6_46 = arith.constant 6 : index
    %c0_47 = arith.constant 0 : index
    %201 = vector.load %arg6[%c6_46, %c0_47] : memref<60x128xf32, #tpu.memory_space<vmem>>, vector<2x128xf32>
    tpu.vector_store %arg6[%c6_46, %c0_47], %199 {strides = array<i32>} : memref<60x128xf32, #tpu.memory_space<vmem>>, vector<2x128xf32>,
    %202 = vector.broadcast %29 : f32 to vector<2x128xf32>
    %203 = arith.mulf %202, %80 : vector<2x128xf32>
    %204 = vector.broadcast %30 : f32 to vector<2x128xf32>
    %205 = arith.mulf %204, %81 : vector<2x128xf32>
    %206 = arith.addf %203, %205 : vector<2x128xf32>
    %207 = vector.broadcast %31 : f32 to vector<2x128xf32>
    %208 = arith.mulf %207, %82 : vector<2x128xf32>
    %209 = arith.addf %206, %208 : vector<2x128xf32>
    %210 = vector.broadcast %32 : f32 to vector<2x128xf32>
    %211 = arith.mulf %210, %80 : vector<2x128xf32>
    %212 = vector.broadcast %33 : f32 to vector<2x128xf32>
    %213 = arith.mulf %212, %81 : vector<2x128xf32>
    %214 = arith.addf %211, %213 : vector<2x128xf32>
    %215 = vector.broadcast %34 : f32 to vector<2x128xf32>
    %216 = arith.mulf %215, %82 : vector<2x128xf32>
    %217 = arith.addf %214, %216 : vector<2x128xf32>
    %218 = vector.broadcast %37 : f32 to vector<2x128xf32>
    %219 = arith.mulf %218, %85 : vector<2x128xf32>
    %220 = vector.broadcast %38 : f32 to vector<2x128xf32>
    %221 = arith.mulf %220, %86 : vector<2x128xf32>
    %222 = arith.addf %219, %221 : vector<2x128xf32>
    %223 = vector.broadcast %39 : f32 to vector<2x128xf32>
    %224 = arith.mulf %223, %87 : vector<2x128xf32>
    %225 = arith.addf %222, %224 : vector<2x128xf32>
    %226 = vector.broadcast %40 : f32 to vector<2x128xf32>
    %227 = arith.mulf %226, %85 : vector<2x128xf32>
    %228 = vector.broadcast %41 : f32 to vector<2x128xf32>
    %229 = arith.mulf %228, %86 : vector<2x128xf32>
    %230 = arith.addf %227, %229 : vector<2x128xf32>
    %231 = vector.broadcast %42 : f32 to vector<2x128xf32>
    %232 = arith.mulf %231, %87 : vector<2x128xf32>
    %233 = arith.addf %230, %232 : vector<2x128xf32>
    %234 = arith.addf %209, %225 : vector<2x128xf32>
    %235 = arith.addf %217, %233 : vector<2x128xf32>
    %236 = vector.broadcast %45 : f32 to vector<2x128xf32>
    %237 = arith.mulf %236, %90 : vector<2x128xf32>
    %238 = vector.broadcast %46 : f32 to vector<2x128xf32>
    %239 = arith.mulf %238, %91 : vector<2x128xf32>
    %240 = arith.addf %237, %239 : vector<2x128xf32>
    %241 = vector.broadcast %47 : f32 to vector<2x128xf32>
    %242 = arith.mulf %241, %92 : vector<2x128xf32>
    %243 = arith.addf %240, %242 : vector<2x128xf32>
    %244 = vector.broadcast %48 : f32 to vector<2x128xf32>
    %245 = arith.mulf %244, %90 : vector<2x128xf32>
    %246 = vector.broadcast %49 : f32 to vector<2x128xf32>
    %247 = arith.mulf %246, %91 : vector<2x128xf32>
    %248 = arith.addf %245, %247 : vector<2x128xf32>
    %249 = vector.broadcast %50 : f32 to vector<2x128xf32>
    %250 = arith.mulf %249, %92 : vector<2x128xf32>
    %251 = arith.addf %248, %250 : vector<2x128xf32>
    %252 = arith.addf %234, %243 : vector<2x128xf32>
    %253 = arith.addf %235, %251 : vector<2x128xf32>
    %254 = vector.broadcast %78 : f32 to vector<2x128xf32>
    %255 = arith.addf %252, %254 : vector<2x128xf32>
    %256 = vector.broadcast %78 : f32 to vector<2x128xf32>
    %257 = arith.addf %253, %256 : vector<2x128xf32>
    %258 = vector.broadcast %35 : f32 to vector<2x128xf32>
    %259 = arith.mulf %258, %83 : vector<2x128xf32>
    %260 = vector.broadcast %36 : f32 to vector<2x128xf32>
    %261 = arith.mulf %260, %84 : vector<2x128xf32>
    %262 = vector.broadcast %43 : f32 to vector<2x128xf32>
    %263 = arith.mulf %262, %88 : vector<2x128xf32>
    %264 = vector.broadcast %44 : f32 to vector<2x128xf32>
    %265 = arith.mulf %264, %89 : vector<2x128xf32>
    %266 = arith.addf %259, %263 : vector<2x128xf32>
    %267 = arith.addf %261, %265 : vector<2x128xf32>
    %268 = vector.broadcast %51 : f32 to vector<2x128xf32>
    %269 = arith.mulf %268, %93 : vector<2x128xf32>
    %270 = vector.broadcast %52 : f32 to vector<2x128xf32>
    %271 = arith.mulf %270, %94 : vector<2x128xf32>
    %272 = arith.addf %266, %269 : vector<2x128xf32>
    %273 = arith.addf %267, %271 : vector<2x128xf32>
    %274 = arith.subf %255, %272 : vector<2x128xf32>
    %cst_48 = arith.constant 0.000000e+00 : f32
    %275 = vector.broadcast %cst_48 : f32 to vector<2x128xf32>
    %276 = arith.cmpf ogt, %274, %275 : vector<2x128xf32>
    %cst_49 = arith.constant 0.00999999977 : f32
    %277 = vector.broadcast %cst_49 : f32 to vector<2x128xf32>
    %278 = arith.mulf %277, %274 : vector<2x128xf32>
    %279 = arith.select %276, %274, %278 : vector<2x128xi1>, vector<2x128xf32>
    %cst_50 = arith.constant 0.000000e+00 : f32
    %280 = vector.broadcast %cst_50 : f32 to vector<2x128xf32>
    %281 = arith.cmpf ogt, %255, %280 : vector<2x128xf32>
    %cst_51 = arith.constant 0.00999999977 : f32
    %282 = vector.broadcast %cst_51 : f32 to vector<2x128xf32>
    %283 = arith.mulf %282, %255 : vector<2x128xf32>
    %284 = arith.select %281, %255, %283 : vector<2x128xi1>, vector<2x128xf32>
    %285 = arith.select %2, %279, %284 : vector<2x128xi1>, vector<2x128xf32>
    %286 = arith.subf %257, %273 : vector<2x128xf32>
    %cst_52 = arith.constant 0.000000e+00 : f32
    %287 = vector.broadcast %cst_52 : f32 to vector<2x128xf32>
    %288 = arith.cmpf ogt, %286, %287 : vector<2x128xf32>
    %cst_53 = arith.constant 0.00999999977 : f32
    %289 = vector.broadcast %cst_53 : f32 to vector<2x128xf32>
    %290 = arith.mulf %289, %286 : vector<2x128xf32>
    %291 = arith.select %288, %286, %290 : vector<2x128xi1>, vector<2x128xf32>
    %cst_54 = arith.constant 0.000000e+00 : f32
    %292 = vector.broadcast %cst_54 : f32 to vector<2x128xf32>
    %293 = arith.cmpf ogt, %257, %292 : vector<2x128xf32>
    %cst_55 = arith.constant 0.00999999977 : f32
    %294 = vector.broadcast %cst_55 : f32 to vector<2x128xf32>
    %295 = arith.mulf %294, %257 : vector<2x128xf32>
    %296 = arith.select %293, %257, %295 : vector<2x128xi1>, vector<2x128xf32>
    %297 = arith.select %4, %291, %296 : vector<2x128xi1>, vector<2x128xf32>
    %c10_56 = arith.constant 10 : index
    %c0_57 = arith.constant 0 : index
    %298 = vector.load %arg6[%c10_56, %c0_57] : memref<60x128xf32, #tpu.memory_space<vmem>>, vector<2x128xf32>
    tpu.vector_store %arg6[%c10_56, %c0_57], %285 {strides = array<i32>} : memref<60x128xf32, #tpu.memory_space<vmem>>, vector<2x128xf32>,
    %c12_58 = arith.constant 12 : index
    %c0_59 = arith.constant 0 : index
    %299 = vector.load %arg6[%c12_58, %c0_59] : memref<60x128xf32, #tpu.memory_space<vmem>>, vector<2x128xf32>
    tpu.vector_store %arg6[%c12_58, %c0_59], %297 {strides = array<i32>} : memref<60x128xf32, #tpu.memory_space<vmem>>, vector<2x128xf32>,
    %300 = vector.extract_strided_slice %285 {offsets = [0, 0], sizes = [2, 1], strides = [1, 1]} : vector<2x128xf32> to vector<2x1xf32>
    %301 = vector.extract_strided_slice %297 {offsets = [0, 0], sizes = [2, 127], strides = [1, 1]} : vector<2x128xf32> to vector<2x127xf32>
    %302 = tpu.concatenate %300, %301 in 1 : vector<2x1xf32>, vector<2x127xf32> -> vector<2x128xf32>
    %303 = vector.extract_strided_slice %285 {offsets = [0, 1], sizes = [2, 94], strides = [1, 1]} : vector<2x128xf32> to vector<2x94xf32>
    %304 = vector.extract_strided_slice %297 {offsets = [0, 94], sizes = [2, 1], strides = [1, 1]} : vector<2x128xf32> to vector<2x1xf32>
    %305 = vector.extract_strided_slice %297 {offsets = [0, 95], sizes = [2, 33], strides = [1, 1]} : vector<2x128xf32> to vector<2x33xf32>
    %306 = tpu.concatenate %303, %304, %305 in 1 : vector<2x94xf32>, vector<2x1xf32>, vector<2x33xf32> -> vector<2x128xf32>
    %c8_60 = arith.constant 8 : index
    %c0_61 = arith.constant 0 : index
    %307 = vector.load %arg6[%c8_60, %c0_61] : memref<60x128xf32, #tpu.memory_space<vmem>>, vector<2x128xf32>
    tpu.vector_store %arg6[%c8_60, %c0_61], %302 {strides = array<i32>} : memref<60x128xf32, #tpu.memory_space<vmem>>, vector<2x128xf32>,
    %c14_62 = arith.constant 14 : index
    %c0_63 = arith.constant 0 : index
    %308 = vector.load %arg6[%c14_62, %c0_63] : memref<60x128xf32, #tpu.memory_space<vmem>>, vector<2x128xf32>
    tpu.vector_store %arg6[%c14_62, %c0_63], %306 {strides = array<i32>} : memref<60x128xf32, #tpu.memory_space<vmem>>, vector<2x128xf32>,
    %309 = vector.broadcast %53 : f32 to vector<2x128xf32>
    %310 = arith.mulf %309, %80 : vector<2x128xf32>
    %311 = vector.broadcast %54 : f32 to vector<2x128xf32>
    %312 = arith.mulf %311, %81 : vector<2x128xf32>
    %313 = arith.addf %310, %312 : vector<2x128xf32>
    %314 = vector.broadcast %55 : f32 to vector<2x128xf32>
    %315 = arith.mulf %314, %82 : vector<2x128xf32>
    %316 = arith.addf %313, %315 : vector<2x128xf32>
    %317 = vector.broadcast %56 : f32 to vector<2x128xf32>
    %318 = arith.mulf %317, %80 : vector<2x128xf32>
    %319 = vector.broadcast %57 : f32 to vector<2x128xf32>
    %320 = arith.mulf %319, %81 : vector<2x128xf32>
    %321 = arith.addf %318, %320 : vector<2x128xf32>
    %322 = vector.broadcast %58 : f32 to vector<2x128xf32>
    %323 = arith.mulf %322, %82 : vector<2x128xf32>
    %324 = arith.addf %321, %323 : vector<2x128xf32>
    %325 = vector.broadcast %61 : f32 to vector<2x128xf32>
    %326 = arith.mulf %325, %85 : vector<2x128xf32>
    %327 = vector.broadcast %62 : f32 to vector<2x128xf32>
    %328 = arith.mulf %327, %86 : vector<2x128xf32>
    %329 = arith.addf %326, %328 : vector<2x128xf32>
    %330 = vector.broadcast %63 : f32 to vector<2x128xf32>
    %331 = arith.mulf %330, %87 : vector<2x128xf32>
    %332 = arith.addf %329, %331 : vector<2x128xf32>
    %333 = vector.broadcast %64 : f32 to vector<2x128xf32>
    %334 = arith.mulf %333, %85 : vector<2x128xf32>
    %335 = vector.broadcast %65 : f32 to vector<2x128xf32>
    %336 = arith.mulf %335, %86 : vector<2x128xf32>
    %337 = arith.addf %334, %336 : vector<2x128xf32>
    %338 = vector.broadcast %66 : f32 to vector<2x128xf32>
    %339 = arith.mulf %338, %87 : vector<2x128xf32>
    %340 = arith.addf %337, %339 : vector<2x128xf32>
    %341 = arith.addf %316, %332 : vector<2x128xf32>
    %342 = arith.addf %324, %340 : vector<2x128xf32>
    %343 = vector.broadcast %69 : f32 to vector<2x128xf32>
    %344 = arith.mulf %343, %90 : vector<2x128xf32>
    %345 = vector.broadcast %70 : f32 to vector<2x128xf32>
    %346 = arith.mulf %345, %91 : vector<2x128xf32>
    %347 = arith.addf %344, %346 : vector<2x128xf32>
    %348 = vector.broadcast %71 : f32 to vector<2x128xf32>
    %349 = arith.mulf %348, %92 : vector<2x128xf32>
    %350 = arith.addf %347, %349 : vector<2x128xf32>
    %351 = vector.broadcast %72 : f32 to vector<2x128xf32>
    %352 = arith.mulf %351, %90 : vector<2x128xf32>
    %353 = vector.broadcast %73 : f32 to vector<2x128xf32>
    %354 = arith.mulf %353, %91 : vector<2x128xf32>
    %355 = arith.addf %352, %354 : vector<2x128xf32>
    %356 = vector.broadcast %74 : f32 to vector<2x128xf32>
    %357 = arith.mulf %356, %92 : vector<2x128xf32>
    %358 = arith.addf %355, %357 : vector<2x128xf32>
    %359 = arith.addf %341, %350 : vector<2x128xf32>
    %360 = arith.addf %342, %358 : vector<2x128xf32>
    %361 = vector.broadcast %79 : f32 to vector<2x128xf32>
    %362 = arith.addf %359, %361 : vector<2x128xf32>
    %363 = vector.broadcast %79 : f32 to vector<2x128xf32>
    %364 = arith.addf %360, %363 : vector<2x128xf32>
    %365 = vector.broadcast %59 : f32 to vector<2x128xf32>
    %366 = arith.mulf %365, %83 : vector<2x128xf32>
    %367 = vector.broadcast %60 : f32 to vector<2x128xf32>
    %368 = arith.mulf %367, %84 : vector<2x128xf32>
    %369 = vector.broadcast %67 : f32 to vector<2x128xf32>
    %370 = arith.mulf %369, %88 : vector<2x128xf32>
    %371 = vector.broadcast %68 : f32 to vector<2x128xf32>
    %372 = arith.mulf %371, %89 : vector<2x128xf32>
    %373 = arith.addf %366, %370 : vector<2x128xf32>
    %374 = arith.addf %368, %372 : vector<2x128xf32>
    %375 = vector.broadcast %75 : f32 to vector<2x128xf32>
    %376 = arith.mulf %375, %93 : vector<2x128xf32>
    %377 = vector.broadcast %76 : f32 to vector<2x128xf32>
    %378 = arith.mulf %377, %94 : vector<2x128xf32>
    %379 = arith.addf %373, %376 : vector<2x128xf32>
    %380 = arith.addf %374, %378 : vector<2x128xf32>
    %381 = arith.subf %362, %379 : vector<2x128xf32>
    %cst_64 = arith.constant 0.000000e+00 : f32
    %382 = vector.broadcast %cst_64 : f32 to vector<2x128xf32>
    %383 = arith.cmpf ogt, %381, %382 : vector<2x128xf32>
    %cst_65 = arith.constant 0.00999999977 : f32
    %384 = vector.broadcast %cst_65 : f32 to vector<2x128xf32>
    %385 = arith.mulf %384, %381 : vector<2x128xf32>
    %386 = arith.select %383, %381, %385 : vector<2x128xi1>, vector<2x128xf32>
    %cst_66 = arith.constant 0.000000e+00 : f32
    %387 = vector.broadcast %cst_66 : f32 to vector<2x128xf32>
    %388 = arith.cmpf ogt, %362, %387 : vector<2x128xf32>
    %cst_67 = arith.constant 0.00999999977 : f32
    %389 = vector.broadcast %cst_67 : f32 to vector<2x128xf32>
    %390 = arith.mulf %389, %362 : vector<2x128xf32>
    %391 = arith.select %388, %362, %390 : vector<2x128xi1>, vector<2x128xf32>
    %392 = arith.select %2, %386, %391 : vector<2x128xi1>, vector<2x128xf32>
    %393 = arith.subf %364, %380 : vector<2x128xf32>
    %cst_68 = arith.constant 0.000000e+00 : f32
    %394 = vector.broadcast %cst_68 : f32 to vector<2x128xf32>
    %395 = arith.cmpf ogt, %393, %394 : vector<2x128xf32>
    %cst_69 = arith.constant 0.00999999977 : f32
    %396 = vector.broadcast %cst_69 : f32 to vector<2x128xf32>
    %397 = arith.mulf %396, %393 : vector<2x128xf32>
    %398 = arith.select %395, %393, %397 : vector<2x128xi1>, vector<2x128xf32>
    %cst_70 = arith.constant 0.000000e+00 : f32
    %399 = vector.broadcast %cst_70 : f32 to vector<2x128xf32>
    %400 = arith.cmpf ogt, %364, %399 : vector<2x128xf32>
    %cst_71 = arith.constant 0.00999999977 : f32
    %401 = vector.broadcast %cst_71 : f32 to vector<2x128xf32>
    %402 = arith.mulf %401, %364 : vector<2x128xf32>
    %403 = arith.select %400, %364, %402 : vector<2x128xi1>, vector<2x128xf32>
    %404 = arith.select %4, %398, %403 : vector<2x128xi1>, vector<2x128xf32>
    %c18_72 = arith.constant 18 : index
    %c0_73 = arith.constant 0 : index
    %405 = vector.load %arg6[%c18_72, %c0_73] : memref<60x128xf32, #tpu.memory_space<vmem>>, vector<2x128xf32>
    tpu.vector_store %arg6[%c18_72, %c0_73], %392 {strides = array<i32>} : memref<60x128xf32, #tpu.memory_space<vmem>>, vector<2x128xf32>,
    %c20_74 = arith.constant 20 : index
    %c0_75 = arith.constant 0 : index
    %406 = vector.load %arg6[%c20_74, %c0_75] : memref<60x128xf32, #tpu.memory_space<vmem>>, vector<2x128xf32>
    tpu.vector_store %arg6[%c20_74, %c0_75], %404 {strides = array<i32>} : memref<60x128xf32, #tpu.memory_space<vmem>>, vector<2x128xf32>,
    %407 = vector.extract_strided_slice %392 {offsets = [0, 0], sizes = [2, 1], strides = [1, 1]} : vector<2x128xf32> to vector<2x1xf32>
    %408 = vector.extract_strided_slice %404 {offsets = [0, 0], sizes = [2, 127], strides = [1, 1]} : vector<2x128xf32> to vector<2x127xf32>
    %409 = tpu.concatenate %407, %408 in 1 : vector<2x1xf32>, vector<2x127xf32> -> vector<2x128xf32>
    %410 = vector.extract_strided_slice %392 {offsets = [0, 1], sizes = [2, 94], strides = [1, 1]} : vector<2x128xf32> to vector<2x94xf32>
    %411 = vector.extract_strided_slice %404 {offsets = [0, 94], sizes = [2, 1], strides = [1, 1]} : vector<2x128xf32> to vector<2x1xf32>
    %412 = vector.extract_strided_slice %404 {offsets = [0, 95], sizes = [2, 33], strides = [1, 1]} : vector<2x128xf32> to vector<2x33xf32>
    %413 = tpu.concatenate %410, %411, %412 in 1 : vector<2x94xf32>, vector<2x1xf32>, vector<2x33xf32> -> vector<2x128xf32>
    %c16_76 = arith.constant 16 : index
    %c0_77 = arith.constant 0 : index
    %414 = vector.load %arg6[%c16_76, %c0_77] : memref<60x128xf32, #tpu.memory_space<vmem>>, vector<2x128xf32>
    tpu.vector_store %arg6[%c16_76, %c0_77], %409 {strides = array<i32>} : memref<60x128xf32, #tpu.memory_space<vmem>>, vector<2x128xf32>,
    %c22_78 = arith.constant 22 : index
    %c0_79 = arith.constant 0 : index
    %415 = vector.load %arg6[%c22_78, %c0_79] : memref<60x128xf32, #tpu.memory_space<vmem>>, vector<2x128xf32>
    tpu.vector_store %arg6[%c22_78, %c0_79], %413 {strides = array<i32>} : memref<60x128xf32, #tpu.memory_space<vmem>>, vector<2x128xf32>,
    %c72 = arith.constant 72 : index
    %416 = memref.load %arg0[%c72] : memref<360xf32, #tpu.memory_space<smem>>
    %c73 = arith.constant 73 : index
    %417 = memref.load %arg0[%c73] : memref<360xf32, #tpu.memory_space<smem>>
    %c74 = arith.constant 74 : index
    %418 = memref.load %arg0[%c74] : memref<360xf32, #tpu.memory_space<smem>>
    %c75 = arith.constant 75 : index
    %419 = memref.load %arg0[%c75] : memref<360xf32, #tpu.memory_space<smem>>
    %c76 = arith.constant 76 : index
    %420 = memref.load %arg0[%c76] : memref<360xf32, #tpu.memory_space<smem>>
    %c77 = arith.constant 77 : index
    %421 = memref.load %arg0[%c77] : memref<360xf32, #tpu.memory_space<smem>>
    %c78 = arith.constant 78 : index
    %422 = memref.load %arg0[%c78] : memref<360xf32, #tpu.memory_space<smem>>
    %c79 = arith.constant 79 : index
    %423 = memref.load %arg0[%c79] : memref<360xf32, #tpu.memory_space<smem>>
    %c80 = arith.constant 80 : index
    %424 = memref.load %arg0[%c80] : memref<360xf32, #tpu.memory_space<smem>>
    %c81 = arith.constant 81 : index
    %425 = memref.load %arg0[%c81] : memref<360xf32, #tpu.memory_space<smem>>
    %c82 = arith.constant 82 : index
    %426 = memref.load %arg0[%c82] : memref<360xf32, #tpu.memory_space<smem>>
    %c83 = arith.constant 83 : index
    %427 = memref.load %arg0[%c83] : memref<360xf32, #tpu.memory_space<smem>>
    %c84 = arith.constant 84 : index
    %428 = memref.load %arg0[%c84] : memref<360xf32, #tpu.memory_space<smem>>
    %c85 = arith.constant 85 : index
    %429 = memref.load %arg0[%c85] : memref<360xf32, #tpu.memory_space<smem>>
    %c86 = arith.constant 86 : index
    %430 = memref.load %arg0[%c86] : memref<360xf32, #tpu.memory_space<smem>>
    %c87 = arith.constant 87 : index
    %431 = memref.load %arg0[%c87] : memref<360xf32, #tpu.memory_space<smem>>
    %c88 = arith.constant 88 : index
    %432 = memref.load %arg0[%c88] : memref<360xf32, #tpu.memory_space<smem>>
    %c89 = arith.constant 89 : index
    %433 = memref.load %arg0[%c89] : memref<360xf32, #tpu.memory_space<smem>>
    %c90 = arith.constant 90 : index
    %434 = memref.load %arg0[%c90] : memref<360xf32, #tpu.memory_space<smem>>
    %c91 = arith.constant 91 : index
    %435 = memref.load %arg0[%c91] : memref<360xf32, #tpu.memory_space<smem>>
    %c92 = arith.constant 92 : index
    %436 = memref.load %arg0[%c92] : memref<360xf32, #tpu.memory_space<smem>>
    %c93 = arith.constant 93 : index
    %437 = memref.load %arg0[%c93] : memref<360xf32, #tpu.memory_space<smem>>
    %c94 = arith.constant 94 : index
    %438 = memref.load %arg0[%c94] : memref<360xf32, #tpu.memory_space<smem>>
    %c95 = arith.constant 95 : index
    %439 = memref.load %arg0[%c95] : memref<360xf32, #tpu.memory_space<smem>>
    %c96 = arith.constant 96 : index
    %440 = memref.load %arg0[%c96] : memref<360xf32, #tpu.memory_space<smem>>
    %c97 = arith.constant 97 : index
    %441 = memref.load %arg0[%c97] : memref<360xf32, #tpu.memory_space<smem>>
    %c98 = arith.constant 98 : index
    %442 = memref.load %arg0[%c98] : memref<360xf32, #tpu.memory_space<smem>>
    %c99 = arith.constant 99 : index
    %443 = memref.load %arg0[%c99] : memref<360xf32, #tpu.memory_space<smem>>
    %c100 = arith.constant 100 : index
    %444 = memref.load %arg0[%c100] : memref<360xf32, #tpu.memory_space<smem>>
    %c101 = arith.constant 101 : index
    %445 = memref.load %arg0[%c101] : memref<360xf32, #tpu.memory_space<smem>>
    %c102 = arith.constant 102 : index
    %446 = memref.load %arg0[%c102] : memref<360xf32, #tpu.memory_space<smem>>
    %c103 = arith.constant 103 : index
    %447 = memref.load %arg0[%c103] : memref<360xf32, #tpu.memory_space<smem>>
    %c104 = arith.constant 104 : index
    %448 = memref.load %arg0[%c104] : memref<360xf32, #tpu.memory_space<smem>>
    %c105 = arith.constant 105 : index
    %449 = memref.load %arg0[%c105] : memref<360xf32, #tpu.memory_space<smem>>
    %c106 = arith.constant 106 : index
    %450 = memref.load %arg0[%c106] : memref<360xf32, #tpu.memory_space<smem>>
    %c107 = arith.constant 107 : index
    %451 = memref.load %arg0[%c107] : memref<360xf32, #tpu.memory_space<smem>>
    %c108 = arith.constant 108 : index
    %452 = memref.load %arg0[%c108] : memref<360xf32, #tpu.memory_space<smem>>
    %c109 = arith.constant 109 : index
    %453 = memref.load %arg0[%c109] : memref<360xf32, #tpu.memory_space<smem>>
    %c110 = arith.constant 110 : index
    %454 = memref.load %arg0[%c110] : memref<360xf32, #tpu.memory_space<smem>>
    %c111 = arith.constant 111 : index
    %455 = memref.load %arg0[%c111] : memref<360xf32, #tpu.memory_space<smem>>
    %c112 = arith.constant 112 : index
    %456 = memref.load %arg0[%c112] : memref<360xf32, #tpu.memory_space<smem>>
    %c113 = arith.constant 113 : index
    %457 = memref.load %arg0[%c113] : memref<360xf32, #tpu.memory_space<smem>>
    %c114 = arith.constant 114 : index
    %458 = memref.load %arg0[%c114] : memref<360xf32, #tpu.memory_space<smem>>
    %c115 = arith.constant 115 : index
    %459 = memref.load %arg0[%c115] : memref<360xf32, #tpu.memory_space<smem>>
    %c116 = arith.constant 116 : index
    %460 = memref.load %arg0[%c116] : memref<360xf32, #tpu.memory_space<smem>>
    %c117 = arith.constant 117 : index
    %461 = memref.load %arg0[%c117] : memref<360xf32, #tpu.memory_space<smem>>
    %c118 = arith.constant 118 : index
    %462 = memref.load %arg0[%c118] : memref<360xf32, #tpu.memory_space<smem>>
    %c119 = arith.constant 119 : index
    %463 = memref.load %arg0[%c119] : memref<360xf32, #tpu.memory_space<smem>>
    %c120 = arith.constant 120 : index
    %464 = memref.load %arg0[%c120] : memref<360xf32, #tpu.memory_space<smem>>
    %c121 = arith.constant 121 : index
    %465 = memref.load %arg0[%c121] : memref<360xf32, #tpu.memory_space<smem>>
    %c122 = arith.constant 122 : index
    %466 = memref.load %arg0[%c122] : memref<360xf32, #tpu.memory_space<smem>>
    %c123 = arith.constant 123 : index
    %467 = memref.load %arg0[%c123] : memref<360xf32, #tpu.memory_space<smem>>
    %c124 = arith.constant 124 : index
    %468 = memref.load %arg0[%c124] : memref<360xf32, #tpu.memory_space<smem>>
    %c125 = arith.constant 125 : index
    %469 = memref.load %arg0[%c125] : memref<360xf32, #tpu.memory_space<smem>>
    %c126 = arith.constant 126 : index
    %470 = memref.load %arg0[%c126] : memref<360xf32, #tpu.memory_space<smem>>
    %c127 = arith.constant 127 : index
    %471 = memref.load %arg0[%c127] : memref<360xf32, #tpu.memory_space<smem>>
    %c128 = arith.constant 128 : index
    %472 = memref.load %arg0[%c128] : memref<360xf32, #tpu.memory_space<smem>>
    %c129 = arith.constant 129 : index
    %473 = memref.load %arg0[%c129] : memref<360xf32, #tpu.memory_space<smem>>
    %c130 = arith.constant 130 : index
    %474 = memref.load %arg0[%c130] : memref<360xf32, #tpu.memory_space<smem>>
    %c131 = arith.constant 131 : index
    %475 = memref.load %arg0[%c131] : memref<360xf32, #tpu.memory_space<smem>>
    %c132 = arith.constant 132 : index
    %476 = memref.load %arg0[%c132] : memref<360xf32, #tpu.memory_space<smem>>
    %c133 = arith.constant 133 : index
    %477 = memref.load %arg0[%c133] : memref<360xf32, #tpu.memory_space<smem>>
    %c134 = arith.constant 134 : index
    %478 = memref.load %arg0[%c134] : memref<360xf32, #tpu.memory_space<smem>>
    %c135 = arith.constant 135 : index
    %479 = memref.load %arg0[%c135] : memref<360xf32, #tpu.memory_space<smem>>
    %c136 = arith.constant 136 : index
    %480 = memref.load %arg0[%c136] : memref<360xf32, #tpu.memory_space<smem>>
    %c137 = arith.constant 137 : index
    %481 = memref.load %arg0[%c137] : memref<360xf32, #tpu.memory_space<smem>>
    %c138 = arith.constant 138 : index
    %482 = memref.load %arg0[%c138] : memref<360xf32, #tpu.memory_space<smem>>
    %c139 = arith.constant 139 : index
    %483 = memref.load %arg0[%c139] : memref<360xf32, #tpu.memory_space<smem>>
    %c140 = arith.constant 140 : index
    %484 = memref.load %arg0[%c140] : memref<360xf32, #tpu.memory_space<smem>>
    %c141 = arith.constant 141 : index
    %485 = memref.load %arg0[%c141] : memref<360xf32, #tpu.memory_space<smem>>
    %c142 = arith.constant 142 : index
    %486 = memref.load %arg0[%c142] : memref<360xf32, #tpu.memory_space<smem>>
    %c143 = arith.constant 143 : index
    %487 = memref.load %arg0[%c143] : memref<360xf32, #tpu.memory_space<smem>>
    %c3_80 = arith.constant 3 : index
    %488 = memref.load %arg1[%c3_80] : memref<15xf32, #tpu.memory_space<smem>>
    %c4_81 = arith.constant 4 : index
    %489 = memref.load %arg1[%c4_81] : memref<15xf32, #tpu.memory_space<smem>>
    %c5_82 = arith.constant 5 : index
    %490 = memref.load %arg1[%c5_82] : memref<15xf32, #tpu.memory_space<smem>>
    %c0_83 = arith.constant 0 : index
    %c0_84 = arith.constant 0 : index
    %491 = vector.load %arg6[%c0_83, %c0_84] : memref<60x128xf32, #tpu.memory_space<vmem>>, vector<4x128xf32>
    %c2_85 = arith.constant 2 : index
    %c0_86 = arith.constant 0 : index
    %492 = vector.load %arg6[%c2_85, %c0_86] : memref<60x128xf32, #tpu.memory_space<vmem>>, vector<4x128xf32>
    %c4_87 = arith.constant 4 : index
    %c0_88 = arith.constant 0 : index
    %493 = vector.load %arg6[%c4_87, %c0_88] : memref<60x128xf32, #tpu.memory_space<vmem>>, vector<4x128xf32>
    %c2_89 = arith.constant 2 : index
    %c0_90 = arith.constant 0 : index
    %494 = vector.load %arg6[%c2_89, %c0_90] : memref<60x128xf32, #tpu.memory_space<vmem>>, vector<2x128xf32>
    %c4_91 = arith.constant 4 : index
    %c0_92 = arith.constant 0 : index
    %495 = vector.load %arg6[%c4_91, %c0_92] : memref<60x128xf32, #tpu.memory_space<vmem>>, vector<2x128xf32>
    %c8_93 = arith.constant 8 : index
    %c0_94 = arith.constant 0 : index
    %496 = vector.load %arg6[%c8_93, %c0_94] : memref<60x128xf32, #tpu.memory_space<vmem>>, vector<4x128xf32>
    %c10_95 = arith.constant 10 : index
    %c0_96 = arith.constant 0 : index
    %497 = vector.load %arg6[%c10_95, %c0_96] : memref<60x128xf32, #tpu.memory_space<vmem>>, vector<4x128xf32>
    %c12_97 = arith.constant 12 : index
    %c0_98 = arith.constant 0 : index
    %498 = vector.load %arg6[%c12_97, %c0_98] : memref<60x128xf32, #tpu.memory_space<vmem>>, vector<4x128xf32>
    %c10_99 = arith.constant 10 : index
    %c0_100 = arith.constant 0 : index
    %499 = vector.load %arg6[%c10_99, %c0_100] : memref<60x128xf32, #tpu.memory_space<vmem>>, vector<2x128xf32>
    %c12_101 = arith.constant 12 : index
    %c0_102 = arith.constant 0 : index
    %500 = vector.load %arg6[%c12_101, %c0_102] : memref<60x128xf32, #tpu.memory_space<vmem>>, vector<2x128xf32>
    %c16_103 = arith.constant 16 : index
    %c0_104 = arith.constant 0 : index
    %501 = vector.load %arg6[%c16_103, %c0_104] : memref<60x128xf32, #tpu.memory_space<vmem>>, vector<4x128xf32>
    %c18_105 = arith.constant 18 : index
    %c0_106 = arith.constant 0 : index
    %502 = vector.load %arg6[%c18_105, %c0_106] : memref<60x128xf32, #tpu.memory_space<vmem>>, vector<4x128xf32>
    %c20_107 = arith.constant 20 : index
    %c0_108 = arith.constant 0 : index
    %503 = vector.load %arg6[%c20_107, %c0_108] : memref<60x128xf32, #tpu.memory_space<vmem>>, vector<4x128xf32>
    %c18_109 = arith.constant 18 : index
    %c0_110 = arith.constant 0 : index
    %504 = vector.load %arg6[%c18_109, %c0_110] : memref<60x128xf32, #tpu.memory_space<vmem>>, vector<2x128xf32>
    %c20_111 = arith.constant 20 : index
    %c0_112 = arith.constant 0 : index
    %505 = vector.load %arg6[%c20_111, %c0_112] : memref<60x128xf32, #tpu.memory_space<vmem>>, vector<2x128xf32>
    %506 = vector.broadcast %416 : f32 to vector<4x128xf32>
    %507 = arith.mulf %506, %491 : vector<4x128xf32>
    %508 = vector.broadcast %417 : f32 to vector<4x128xf32>
    %509 = arith.mulf %508, %492 : vector<4x128xf32>
    %510 = arith.addf %507, %509 : vector<4x128xf32>
    %511 = vector.broadcast %418 : f32 to vector<4x128xf32>
    %512 = arith.mulf %511, %493 : vector<4x128xf32>
    %513 = arith.addf %510, %512 : vector<4x128xf32>
    %514 = vector.broadcast %419 : f32 to vector<4x128xf32>
    %515 = arith.mulf %514, %491 : vector<4x128xf32>
    %516 = vector.broadcast %420 : f32 to vector<4x128xf32>
    %517 = arith.mulf %516, %492 : vector<4x128xf32>
    %518 = arith.addf %515, %517 : vector<4x128xf32>
    %519 = vector.broadcast %421 : f32 to vector<4x128xf32>
    %520 = arith.mulf %519, %493 : vector<4x128xf32>
    %521 = arith.addf %518, %520 : vector<4x128xf32>
    %522 = vector.broadcast %424 : f32 to vector<4x128xf32>
    %523 = arith.mulf %522, %496 : vector<4x128xf32>
    %524 = vector.broadcast %425 : f32 to vector<4x128xf32>
    %525 = arith.mulf %524, %497 : vector<4x128xf32>
    %526 = arith.addf %523, %525 : vector<4x128xf32>
    %527 = vector.broadcast %426 : f32 to vector<4x128xf32>
    %528 = arith.mulf %527, %498 : vector<4x128xf32>
    %529 = arith.addf %526, %528 : vector<4x128xf32>
    %530 = vector.broadcast %427 : f32 to vector<4x128xf32>
    %531 = arith.mulf %530, %496 : vector<4x128xf32>
    %532 = vector.broadcast %428 : f32 to vector<4x128xf32>
    %533 = arith.mulf %532, %497 : vector<4x128xf32>
    %534 = arith.addf %531, %533 : vector<4x128xf32>
    %535 = vector.broadcast %429 : f32 to vector<4x128xf32>
    %536 = arith.mulf %535, %498 : vector<4x128xf32>
    %537 = arith.addf %534, %536 : vector<4x128xf32>
    %538 = arith.addf %513, %529 : vector<4x128xf32>
    %539 = arith.addf %521, %537 : vector<4x128xf32>
    %540 = vector.broadcast %432 : f32 to vector<4x128xf32>
    %541 = arith.mulf %540, %501 : vector<4x128xf32>
    %542 = vector.broadcast %433 : f32 to vector<4x128xf32>
    %543 = arith.mulf %542, %502 : vector<4x128xf32>
    %544 = arith.addf %541, %543 : vector<4x128xf32>
    %545 = vector.broadcast %434 : f32 to vector<4x128xf32>
    %546 = arith.mulf %545, %503 : vector<4x128xf32>
    %547 = arith.addf %544, %546 : vector<4x128xf32>
    %548 = vector.broadcast %435 : f32 to vector<4x128xf32>
    %549 = arith.mulf %548, %501 : vector<4x128xf32>
    %550 = vector.broadcast %436 : f32 to vector<4x128xf32>
    %551 = arith.mulf %550, %502 : vector<4x128xf32>
    %552 = arith.addf %549, %551 : vector<4x128xf32>
    %553 = vector.broadcast %437 : f32 to vector<4x128xf32>
    %554 = arith.mulf %553, %503 : vector<4x128xf32>
    %555 = arith.addf %552, %554 : vector<4x128xf32>
    %556 = arith.addf %538, %547 : vector<4x128xf32>
    %557 = arith.addf %539, %555 : vector<4x128xf32>
    %558 = vector.broadcast %488 : f32 to vector<4x128xf32>
    %559 = arith.addf %556, %558 : vector<4x128xf32>
    %560 = vector.broadcast %488 : f32 to vector<4x128xf32>
    %561 = arith.addf %557, %560 : vector<4x128xf32>
    %cst_113 = arith.constant 0.000000e+00 : f32
    %562 = vector.broadcast %cst_113 : f32 to vector<4x128xf32>
    %563 = arith.cmpf ogt, %559, %562 : vector<4x128xf32>
    %cst_114 = arith.constant 0.00999999977 : f32
    %564 = vector.broadcast %cst_114 : f32 to vector<4x128xf32>
    %565 = arith.mulf %564, %559 : vector<4x128xf32>
    %566 = arith.select %563, %559, %565 : vector<4x128xi1>, vector<4x128xf32>
    %cst_115 = arith.constant 0.000000e+00 : f32
    %567 = vector.broadcast %cst_115 : f32 to vector<4x128xf32>
    %568 = arith.cmpf ogt, %561, %567 : vector<4x128xf32>
    %cst_116 = arith.constant 0.00999999977 : f32
    %569 = vector.broadcast %cst_116 : f32 to vector<4x128xf32>
    %570 = arith.mulf %569, %561 : vector<4x128xf32>
    %571 = arith.select %568, %561, %570 : vector<4x128xi1>, vector<4x128xf32>
    %572 = vector.broadcast %422 : f32 to vector<2x128xf32>
    %573 = arith.mulf %572, %494 : vector<2x128xf32>
    %574 = vector.broadcast %423 : f32 to vector<2x128xf32>
    %575 = arith.mulf %574, %495 : vector<2x128xf32>
    %576 = vector.broadcast %430 : f32 to vector<2x128xf32>
    %577 = arith.mulf %576, %499 : vector<2x128xf32>
    %578 = vector.broadcast %431 : f32 to vector<2x128xf32>
    %579 = arith.mulf %578, %500 : vector<2x128xf32>
    %580 = arith.addf %573, %577 : vector<2x128xf32>
    %581 = arith.addf %575, %579 : vector<2x128xf32>
    %582 = vector.broadcast %438 : f32 to vector<2x128xf32>
    %583 = arith.mulf %582, %504 : vector<2x128xf32>
    %584 = vector.broadcast %439 : f32 to vector<2x128xf32>
    %585 = arith.mulf %584, %505 : vector<2x128xf32>
    %586 = arith.addf %580, %583 : vector<2x128xf32>
    %587 = arith.addf %581, %585 : vector<2x128xf32>
    %588 = vector.extract_strided_slice %559 {offsets = [0, 0], sizes = [2, 128], strides = [1, 1]} : vector<4x128xf32> to vector<2x128xf32>
    %589 = vector.extract_strided_slice %561 {offsets = [2, 0], sizes = [2, 128], strides = [1, 1]} : vector<4x128xf32> to vector<2x128xf32>
    %590 = arith.subf %588, %586 : vector<2x128xf32>
    %cst_117 = arith.constant 0.000000e+00 : f32
    %591 = vector.broadcast %cst_117 : f32 to vector<2x128xf32>
    %592 = arith.cmpf ogt, %590, %591 : vector<2x128xf32>
    %cst_118 = arith.constant 0.00999999977 : f32
    %593 = vector.broadcast %cst_118 : f32 to vector<2x128xf32>
    %594 = arith.mulf %593, %590 : vector<2x128xf32>
    %595 = arith.select %592, %590, %594 : vector<2x128xi1>, vector<2x128xf32>
    %cst_119 = arith.constant 0.000000e+00 : f32
    %596 = vector.broadcast %cst_119 : f32 to vector<2x128xf32>
    %597 = arith.cmpf ogt, %588, %596 : vector<2x128xf32>
    %cst_120 = arith.constant 0.00999999977 : f32
    %598 = vector.broadcast %cst_120 : f32 to vector<2x128xf32>
    %599 = arith.mulf %598, %588 : vector<2x128xf32>
    %600 = arith.select %597, %588, %599 : vector<2x128xi1>, vector<2x128xf32>
    %601 = arith.select %2, %595, %600 : vector<2x128xi1>, vector<2x128xf32>
    %602 = arith.subf %589, %587 : vector<2x128xf32>
    %cst_121 = arith.constant 0.000000e+00 : f32
    %603 = vector.broadcast %cst_121 : f32 to vector<2x128xf32>
    %604 = arith.cmpf ogt, %602, %603 : vector<2x128xf32>
    %cst_122 = arith.constant 0.00999999977 : f32
    %605 = vector.broadcast %cst_122 : f32 to vector<2x128xf32>
    %606 = arith.mulf %605, %602 : vector<2x128xf32>
    %607 = arith.select %604, %602, %606 : vector<2x128xi1>, vector<2x128xf32>
    %cst_123 = arith.constant 0.000000e+00 : f32
    %608 = vector.broadcast %cst_123 : f32 to vector<2x128xf32>
    %609 = arith.cmpf ogt, %589, %608 : vector<2x128xf32>
    %cst_124 = arith.constant 0.00999999977 : f32
    %610 = vector.broadcast %cst_124 : f32 to vector<2x128xf32>
    %611 = arith.mulf %610, %589 : vector<2x128xf32>
    %612 = arith.select %609, %589, %611 : vector<2x128xi1>, vector<2x128xf32>
    %613 = arith.select %4, %607, %612 : vector<2x128xi1>, vector<2x128xf32>
    %614 = vector.extract_strided_slice %571 {offsets = [0, 0], sizes = [2, 128], strides = [1, 1]} : vector<4x128xf32> to vector<2x128xf32>
    %c2_125 = arith.constant 2 : index
    %c0_126 = arith.constant 0 : index
    %615 = vector.load %arg7[%c2_125, %c0_126] : memref<108x128xf32, #tpu.memory_space<vmem>>, vector<2x128xf32>
    tpu.vector_store %arg7[%c2_125, %c0_126], %601 {strides = array<i32>} : memref<108x128xf32, #tpu.memory_space<vmem>>, vector<2x128xf32>,
    %c4_127 = arith.constant 4 : index
    %c0_128 = arith.constant 0 : index
    %616 = vector.load %arg7[%c4_127, %c0_128] : memref<108x128xf32, #tpu.memory_space<vmem>>, vector<2x128xf32>
    tpu.vector_store %arg7[%c4_127, %c0_128], %614 {strides = array<i32>} : memref<108x128xf32, #tpu.memory_space<vmem>>, vector<2x128xf32>,
    %617 = vector.extract_strided_slice %566 {offsets = [2, 0], sizes = [2, 128], strides = [1, 1]} : vector<4x128xf32> to vector<2x128xf32>
    %c6_129 = arith.constant 6 : index
    %c0_130 = arith.constant 0 : index
    %618 = vector.load %arg7[%c6_129, %c0_130] : memref<108x128xf32, #tpu.memory_space<vmem>>, vector<2x128xf32>
    tpu.vector_store %arg7[%c6_129, %c0_130], %617 {strides = array<i32>} : memref<108x128xf32, #tpu.memory_space<vmem>>, vector<2x128xf32>,
    %c8_131 = arith.constant 8 : index
    %c0_132 = arith.constant 0 : index
    %619 = vector.load %arg7[%c8_131, %c0_132] : memref<108x128xf32, #tpu.memory_space<vmem>>, vector<2x128xf32>
    tpu.vector_store %arg7[%c8_131, %c0_132], %613 {strides = array<i32>} : memref<108x128xf32, #tpu.memory_space<vmem>>, vector<2x128xf32>,
    %620 = vector.extract_strided_slice %601 {offsets = [0, 0], sizes = [2, 1], strides = [1, 1]} : vector<2x128xf32> to vector<2x1xf32>
    %621 = vector.extract_strided_slice %613 {offsets = [0, 0], sizes = [2, 127], strides = [1, 1]} : vector<2x128xf32> to vector<2x127xf32>
    %622 = tpu.concatenate %620, %621 in 1 : vector<2x1xf32>, vector<2x127xf32> -> vector<2x128xf32>
    %623 = vector.extract_strided_slice %601 {offsets = [0, 1], sizes = [2, 94], strides = [1, 1]} : vector<2x128xf32> to vector<2x94xf32>
    %624 = vector.extract_strided_slice %613 {offsets = [0, 94], sizes = [2, 1], strides = [1, 1]} : vector<2x128xf32> to vector<2x1xf32>
    %625 = vector.extract_strided_slice %613 {offsets = [0, 95], sizes = [2, 33], strides = [1, 1]} : vector<2x128xf32> to vector<2x33xf32>
    %626 = tpu.concatenate %623, %624, %625 in 1 : vector<2x94xf32>, vector<2x1xf32>, vector<2x33xf32> -> vector<2x128xf32>
    %c0_133 = arith.constant 0 : index
    %c0_134 = arith.constant 0 : index
    %627 = vector.load %arg7[%c0_133, %c0_134] : memref<108x128xf32, #tpu.memory_space<vmem>>, vector<2x128xf32>
    tpu.vector_store %arg7[%c0_133, %c0_134], %622 {strides = array<i32>} : memref<108x128xf32, #tpu.memory_space<vmem>>, vector<2x128xf32>,
    %c10_135 = arith.constant 10 : index
    %c0_136 = arith.constant 0 : index
    %628 = vector.load %arg7[%c10_135, %c0_136] : memref<108x128xf32, #tpu.memory_space<vmem>>, vector<2x128xf32>
    tpu.vector_store %arg7[%c10_135, %c0_136], %626 {strides = array<i32>} : memref<108x128xf32, #tpu.memory_space<vmem>>, vector<2x128xf32>,
    %629 = vector.broadcast %440 : f32 to vector<4x128xf32>
    %630 = arith.mulf %629, %491 : vector<4x128xf32>
    %631 = vector.broadcast %441 : f32 to vector<4x128xf32>
    %632 = arith.mulf %631, %492 : vector<4x128xf32>
    %633 = arith.addf %630, %632 : vector<4x128xf32>
    %634 = vector.broadcast %442 : f32 to vector<4x128xf32>
    %635 = arith.mulf %634, %493 : vector<4x128xf32>
    %636 = arith.addf %633, %635 : vector<4x128xf32>
    %637 = vector.broadcast %443 : f32 to vector<4x128xf32>
    %638 = arith.mulf %637, %491 : vector<4x128xf32>
    %639 = vector.broadcast %444 : f32 to vector<4x128xf32>
    %640 = arith.mulf %639, %492 : vector<4x128xf32>
    %641 = arith.addf %638, %640 : vector<4x128xf32>
    %642 = vector.broadcast %445 : f32 to vector<4x128xf32>
    %643 = arith.mulf %642, %493 : vector<4x128xf32>
    %644 = arith.addf %641, %643 : vector<4x128xf32>
    %645 = vector.broadcast %448 : f32 to vector<4x128xf32>
    %646 = arith.mulf %645, %496 : vector<4x128xf32>
    %647 = vector.broadcast %449 : f32 to vector<4x128xf32>
    %648 = arith.mulf %647, %497 : vector<4x128xf32>
    %649 = arith.addf %646, %648 : vector<4x128xf32>
    %650 = vector.broadcast %450 : f32 to vector<4x128xf32>
    %651 = arith.mulf %650, %498 : vector<4x128xf32>
    %652 = arith.addf %649, %651 : vector<4x128xf32>
    %653 = vector.broadcast %451 : f32 to vector<4x128xf32>
    %654 = arith.mulf %653, %496 : vector<4x128xf32>
    %655 = vector.broadcast %452 : f32 to vector<4x128xf32>
    %656 = arith.mulf %655, %497 : vector<4x128xf32>
    %657 = arith.addf %654, %656 : vector<4x128xf32>
    %658 = vector.broadcast %453 : f32 to vector<4x128xf32>
    %659 = arith.mulf %658, %498 : vector<4x128xf32>
    %660 = arith.addf %657, %659 : vector<4x128xf32>
    %661 = arith.addf %636, %652 : vector<4x128xf32>
    %662 = arith.addf %644, %660 : vector<4x128xf32>
    %663 = vector.broadcast %456 : f32 to vector<4x128xf32>
    %664 = arith.mulf %663, %501 : vector<4x128xf32>
    %665 = vector.broadcast %457 : f32 to vector<4x128xf32>
    %666 = arith.mulf %665, %502 : vector<4x128xf32>
    %667 = arith.addf %664, %666 : vector<4x128xf32>
    %668 = vector.broadcast %458 : f32 to vector<4x128xf32>
    %669 = arith.mulf %668, %503 : vector<4x128xf32>
    %670 = arith.addf %667, %669 : vector<4x128xf32>
    %671 = vector.broadcast %459 : f32 to vector<4x128xf32>
    %672 = arith.mulf %671, %501 : vector<4x128xf32>
    %673 = vector.broadcast %460 : f32 to vector<4x128xf32>
    %674 = arith.mulf %673, %502 : vector<4x128xf32>
    %675 = arith.addf %672, %674 : vector<4x128xf32>
    %676 = vector.broadcast %461 : f32 to vector<4x128xf32>
    %677 = arith.mulf %676, %503 : vector<4x128xf32>
    %678 = arith.addf %675, %677 : vector<4x128xf32>
    %679 = arith.addf %661, %670 : vector<4x128xf32>
    %680 = arith.addf %662, %678 : vector<4x128xf32>
    %681 = vector.broadcast %489 : f32 to vector<4x128xf32>
    %682 = arith.addf %679, %681 : vector<4x128xf32>
    %683 = vector.broadcast %489 : f32 to vector<4x128xf32>
    %684 = arith.addf %680, %683 : vector<4x128xf32>
    %cst_137 = arith.constant 0.000000e+00 : f32
    %685 = vector.broadcast %cst_137 : f32 to vector<4x128xf32>
    %686 = arith.cmpf ogt, %682, %685 : vector<4x128xf32>
    %cst_138 = arith.constant 0.00999999977 : f32
    %687 = vector.broadcast %cst_138 : f32 to vector<4x128xf32>
    %688 = arith.mulf %687, %682 : vector<4x128xf32>
    %689 = arith.select %686, %682, %688 : vector<4x128xi1>, vector<4x128xf32>
    %cst_139 = arith.constant 0.000000e+00 : f32
    %690 = vector.broadcast %cst_139 : f32 to vector<4x128xf32>
    %691 = arith.cmpf ogt, %684, %690 : vector<4x128xf32>
    %cst_140 = arith.constant 0.00999999977 : f32
    %692 = vector.broadcast %cst_140 : f32 to vector<4x128xf32>
    %693 = arith.mulf %692, %684 : vector<4x128xf32>
    %694 = arith.select %691, %684, %693 : vector<4x128xi1>, vector<4x128xf32>
    %695 = vector.broadcast %446 : f32 to vector<2x128xf32>
    %696 = arith.mulf %695, %494 : vector<2x128xf32>
    %697 = vector.broadcast %447 : f32 to vector<2x128xf32>
    %698 = arith.mulf %697, %495 : vector<2x128xf32>
    %699 = vector.broadcast %454 : f32 to vector<2x128xf32>
    %700 = arith.mulf %699, %499 : vector<2x128xf32>
    %701 = vector.broadcast %455 : f32 to vector<2x128xf32>
    %702 = arith.mulf %701, %500 : vector<2x128xf32>
    %703 = arith.addf %696, %700 : vector<2x128xf32>
    %704 = arith.addf %698, %702 : vector<2x128xf32>
    %705 = vector.broadcast %462 : f32 to vector<2x128xf32>
    %706 = arith.mulf %705, %504 : vector<2x128xf32>
    %707 = vector.broadcast %463 : f32 to vector<2x128xf32>
    %708 = arith.mulf %707, %505 : vector<2x128xf32>
    %709 = arith.addf %703, %706 : vector<2x128xf32>
    %710 = arith.addf %704, %708 : vector<2x128xf32>
    %711 = vector.extract_strided_slice %682 {offsets = [0, 0], sizes = [2, 128], strides = [1, 1]} : vector<4x128xf32> to vector<2x128xf32>
    %712 = vector.extract_strided_slice %684 {offsets = [2, 0], sizes = [2, 128], strides = [1, 1]} : vector<4x128xf32> to vector<2x128xf32>
    %713 = arith.subf %711, %709 : vector<2x128xf32>
    %cst_141 = arith.constant 0.000000e+00 : f32
    %714 = vector.broadcast %cst_141 : f32 to vector<2x128xf32>
    %715 = arith.cmpf ogt, %713, %714 : vector<2x128xf32>
    %cst_142 = arith.constant 0.00999999977 : f32
    %716 = vector.broadcast %cst_142 : f32 to vector<2x128xf32>
    %717 = arith.mulf %716, %713 : vector<2x128xf32>
    %718 = arith.select %715, %713, %717 : vector<2x128xi1>, vector<2x128xf32>
    %cst_143 = arith.constant 0.000000e+00 : f32
    %719 = vector.broadcast %cst_143 : f32 to vector<2x128xf32>
    %720 = arith.cmpf ogt, %711, %719 : vector<2x128xf32>
    %cst_144 = arith.constant 0.00999999977 : f32
    %721 = vector.broadcast %cst_144 : f32 to vector<2x128xf32>
    %722 = arith.mulf %721, %711 : vector<2x128xf32>
    %723 = arith.select %720, %711, %722 : vector<2x128xi1>, vector<2x128xf32>
    %724 = arith.select %2, %718, %723 : vector<2x128xi1>, vector<2x128xf32>
    %725 = arith.subf %712, %710 : vector<2x128xf32>
    %cst_145 = arith.constant 0.000000e+00 : f32
    %726 = vector.broadcast %cst_145 : f32 to vector<2x128xf32>
    %727 = arith.cmpf ogt, %725, %726 : vector<2x128xf32>
    %cst_146 = arith.constant 0.00999999977 : f32
    %728 = vector.broadcast %cst_146 : f32 to vector<2x128xf32>
    %729 = arith.mulf %728, %725 : vector<2x128xf32>
    %730 = arith.select %727, %725, %729 : vector<2x128xi1>, vector<2x128xf32>
    %cst_147 = arith.constant 0.000000e+00 : f32
    %731 = vector.broadcast %cst_147 : f32 to vector<2x128xf32>
    %732 = arith.cmpf ogt, %712, %731 : vector<2x128xf32>
    %cst_148 = arith.constant 0.00999999977 : f32
    %733 = vector.broadcast %cst_148 : f32 to vector<2x128xf32>
    %734 = arith.mulf %733, %712 : vector<2x128xf32>
    %735 = arith.select %732, %712, %734 : vector<2x128xi1>, vector<2x128xf32>
    %736 = arith.select %4, %730, %735 : vector<2x128xi1>, vector<2x128xf32>
    %737 = vector.extract_strided_slice %694 {offsets = [0, 0], sizes = [2, 128], strides = [1, 1]} : vector<4x128xf32> to vector<2x128xf32>
    %c14_149 = arith.constant 14 : index
    %c0_150 = arith.constant 0 : index
    %738 = vector.load %arg7[%c14_149, %c0_150] : memref<108x128xf32, #tpu.memory_space<vmem>>, vector<2x128xf32>
    tpu.vector_store %arg7[%c14_149, %c0_150], %724 {strides = array<i32>} : memref<108x128xf32, #tpu.memory_space<vmem>>, vector<2x128xf32>,
    %c16_151 = arith.constant 16 : index
    %c0_152 = arith.constant 0 : index
    %739 = vector.load %arg7[%c16_151, %c0_152] : memref<108x128xf32, #tpu.memory_space<vmem>>, vector<2x128xf32>
    tpu.vector_store %arg7[%c16_151, %c0_152], %737 {strides = array<i32>} : memref<108x128xf32, #tpu.memory_space<vmem>>, vector<2x128xf32>,
    %740 = vector.extract_strided_slice %689 {offsets = [2, 0], sizes = [2, 128], strides = [1, 1]} : vector<4x128xf32> to vector<2x128xf32>
    %c18_153 = arith.constant 18 : index
    %c0_154 = arith.constant 0 : index
    %741 = vector.load %arg7[%c18_153, %c0_154] : memref<108x128xf32, #tpu.memory_space<vmem>>, vector<2x128xf32>
    tpu.vector_store %arg7[%c18_153, %c0_154], %740 {strides = array<i32>} : memref<108x128xf32, #tpu.memory_space<vmem>>, vector<2x128xf32>,
    %c20_155 = arith.constant 20 : index
    %c0_156 = arith.constant 0 : index
    %742 = vector.load %arg7[%c20_155, %c0_156] : memref<108x128xf32, #tpu.memory_space<vmem>>, vector<2x128xf32>
    tpu.vector_store %arg7[%c20_155, %c0_156], %736 {strides = array<i32>} : memref<108x128xf32, #tpu.memory_space<vmem>>, vector<2x128xf32>,
    %743 = vector.extract_strided_slice %724 {offsets = [0, 0], sizes = [2, 1], strides = [1, 1]} : vector<2x128xf32> to vector<2x1xf32>
    %744 = vector.extract_strided_slice %736 {offsets = [0, 0], sizes = [2, 127], strides = [1, 1]} : vector<2x128xf32> to vector<2x127xf32>
    %745 = tpu.concatenate %743, %744 in 1 : vector<2x1xf32>, vector<2x127xf32> -> vector<2x128xf32>
    %746 = vector.extract_strided_slice %724 {offsets = [0, 1], sizes = [2, 94], strides = [1, 1]} : vector<2x128xf32> to vector<2x94xf32>
    %747 = vector.extract_strided_slice %736 {offsets = [0, 94], sizes = [2, 1], strides = [1, 1]} : vector<2x128xf32> to vector<2x1xf32>
    %748 = vector.extract_strided_slice %736 {offsets = [0, 95], sizes = [2, 33], strides = [1, 1]} : vector<2x128xf32> to vector<2x33xf32>
    %749 = tpu.concatenate %746, %747, %748 in 1 : vector<2x94xf32>, vector<2x1xf32>, vector<2x33xf32> -> vector<2x128xf32>
    %c12_157 = arith.constant 12 : index
    %c0_158 = arith.constant 0 : index
    %750 = vector.load %arg7[%c12_157, %c0_158] : memref<108x128xf32, #tpu.memory_space<vmem>>, vector<2x128xf32>
    tpu.vector_store %arg7[%c12_157, %c0_158], %745 {strides = array<i32>} : memref<108x128xf32, #tpu.memory_space<vmem>>, vector<2x128xf32>,
    %c22_159 = arith.constant 22 : index
    %c0_160 = arith.constant 0 : index
    %751 = vector.load %arg7[%c22_159, %c0_160] : memref<108x128xf32, #tpu.memory_space<vmem>>, vector<2x128xf32>
    tpu.vector_store %arg7[%c22_159, %c0_160], %749 {strides = array<i32>} : memref<108x128xf32, #tpu.memory_space<vmem>>, vector<2x128xf32>,
    %752 = vector.broadcast %464 : f32 to vector<4x128xf32>
    %753 = arith.mulf %752, %491 : vector<4x128xf32>
    %754 = vector.broadcast %465 : f32 to vector<4x128xf32>
    %755 = arith.mulf %754, %492 : vector<4x128xf32>
    %756 = arith.addf %753, %755 : vector<4x128xf32>
    %757 = vector.broadcast %466 : f32 to vector<4x128xf32>
    %758 = arith.mulf %757, %493 : vector<4x128xf32>
    %759 = arith.addf %756, %758 : vector<4x128xf32>
    %760 = vector.broadcast %467 : f32 to vector<4x128xf32>
    %761 = arith.mulf %760, %491 : vector<4x128xf32>
    %762 = vector.broadcast %468 : f32 to vector<4x128xf32>
    %763 = arith.mulf %762, %492 : vector<4x128xf32>
    %764 = arith.addf %761, %763 : vector<4x128xf32>
    %765 = vector.broadcast %469 : f32 to vector<4x128xf32>
    %766 = arith.mulf %765, %493 : vector<4x128xf32>
    %767 = arith.addf %764, %766 : vector<4x128xf32>
    %768 = vector.broadcast %472 : f32 to vector<4x128xf32>
    %769 = arith.mulf %768, %496 : vector<4x128xf32>
    %770 = vector.broadcast %473 : f32 to vector<4x128xf32>
    %771 = arith.mulf %770, %497 : vector<4x128xf32>
    %772 = arith.addf %769, %771 : vector<4x128xf32>
    %773 = vector.broadcast %474 : f32 to vector<4x128xf32>
    %774 = arith.mulf %773, %498 : vector<4x128xf32>
    %775 = arith.addf %772, %774 : vector<4x128xf32>
    %776 = vector.broadcast %475 : f32 to vector<4x128xf32>
    %777 = arith.mulf %776, %496 : vector<4x128xf32>
    %778 = vector.broadcast %476 : f32 to vector<4x128xf32>
    %779 = arith.mulf %778, %497 : vector<4x128xf32>
    %780 = arith.addf %777, %779 : vector<4x128xf32>
    %781 = vector.broadcast %477 : f32 to vector<4x128xf32>
    %782 = arith.mulf %781, %498 : vector<4x128xf32>
    %783 = arith.addf %780, %782 : vector<4x128xf32>
    %784 = arith.addf %759, %775 : vector<4x128xf32>
    %785 = arith.addf %767, %783 : vector<4x128xf32>
    %786 = vector.broadcast %480 : f32 to vector<4x128xf32>
    %787 = arith.mulf %786, %501 : vector<4x128xf32>
    %788 = vector.broadcast %481 : f32 to vector<4x128xf32>
    %789 = arith.mulf %788, %502 : vector<4x128xf32>
    %790 = arith.addf %787, %789 : vector<4x128xf32>
    %791 = vector.broadcast %482 : f32 to vector<4x128xf32>
    %792 = arith.mulf %791, %503 : vector<4x128xf32>
    %793 = arith.addf %790, %792 : vector<4x128xf32>
    %794 = vector.broadcast %483 : f32 to vector<4x128xf32>
    %795 = arith.mulf %794, %501 : vector<4x128xf32>
    %796 = vector.broadcast %484 : f32 to vector<4x128xf32>
    %797 = arith.mulf %796, %502 : vector<4x128xf32>
    %798 = arith.addf %795, %797 : vector<4x128xf32>
    %799 = vector.broadcast %485 : f32 to vector<4x128xf32>
    %800 = arith.mulf %799, %503 : vector<4x128xf32>
    %801 = arith.addf %798, %800 : vector<4x128xf32>
    %802 = arith.addf %784, %793 : vector<4x128xf32>
    %803 = arith.addf %785, %801 : vector<4x128xf32>
    %804 = vector.broadcast %490 : f32 to vector<4x128xf32>
    %805 = arith.addf %802, %804 : vector<4x128xf32>
    %806 = vector.broadcast %490 : f32 to vector<4x128xf32>
    %807 = arith.addf %803, %806 : vector<4x128xf32>
    %cst_161 = arith.constant 0.000000e+00 : f32
    %808 = vector.broadcast %cst_161 : f32 to vector<4x128xf32>
    %809 = arith.cmpf ogt, %805, %808 : vector<4x128xf32>
    %cst_162 = arith.constant 0.00999999977 : f32
    %810 = vector.broadcast %cst_162 : f32 to vector<4x128xf32>
    %811 = arith.mulf %810, %805 : vector<4x128xf32>
    %812 = arith.select %809, %805, %811 : vector<4x128xi1>, vector<4x128xf32>
    %cst_163 = arith.constant 0.000000e+00 : f32
    %813 = vector.broadcast %cst_163 : f32 to vector<4x128xf32>
    %814 = arith.cmpf ogt, %807, %813 : vector<4x128xf32>
    %cst_164 = arith.constant 0.00999999977 : f32
    %815 = vector.broadcast %cst_164 : f32 to vector<4x128xf32>
    %816 = arith.mulf %815, %807 : vector<4x128xf32>
    %817 = arith.select %814, %807, %816 : vector<4x128xi1>, vector<4x128xf32>
    %818 = vector.broadcast %470 : f32 to vector<2x128xf32>
    %819 = arith.mulf %818, %494 : vector<2x128xf32>
    %820 = vector.broadcast %471 : f32 to vector<2x128xf32>
    %821 = arith.mulf %820, %495 : vector<2x128xf32>
    %822 = vector.broadcast %478 : f32 to vector<2x128xf32>
    %823 = arith.mulf %822, %499 : vector<2x128xf32>
    %824 = vector.broadcast %479 : f32 to vector<2x128xf32>
    %825 = arith.mulf %824, %500 : vector<2x128xf32>
    %826 = arith.addf %819, %823 : vector<2x128xf32>
    %827 = arith.addf %821, %825 : vector<2x128xf32>
    %828 = vector.broadcast %486 : f32 to vector<2x128xf32>
    %829 = arith.mulf %828, %504 : vector<2x128xf32>
    %830 = vector.broadcast %487 : f32 to vector<2x128xf32>
    %831 = arith.mulf %830, %505 : vector<2x128xf32>
    %832 = arith.addf %826, %829 : vector<2x128xf32>
    %833 = arith.addf %827, %831 : vector<2x128xf32>
    %834 = vector.extract_strided_slice %805 {offsets = [0, 0], sizes = [2, 128], strides = [1, 1]} : vector<4x128xf32> to vector<2x128xf32>
    %835 = vector.extract_strided_slice %807 {offsets = [2, 0], sizes = [2, 128], strides = [1, 1]} : vector<4x128xf32> to vector<2x128xf32>
    %836 = arith.subf %834, %832 : vector<2x128xf32>
    %cst_165 = arith.constant 0.000000e+00 : f32
    %837 = vector.broadcast %cst_165 : f32 to vector<2x128xf32>
    %838 = arith.cmpf ogt, %836, %837 : vector<2x128xf32>
    %cst_166 = arith.constant 0.00999999977 : f32
    %839 = vector.broadcast %cst_166 : f32 to vector<2x128xf32>
    %840 = arith.mulf %839, %836 : vector<2x128xf32>
    %841 = arith.select %838, %836, %840 : vector<2x128xi1>, vector<2x128xf32>
    %cst_167 = arith.constant 0.000000e+00 : f32
    %842 = vector.broadcast %cst_167 : f32 to vector<2x128xf32>
    %843 = arith.cmpf ogt, %834, %842 : vector<2x128xf32>
    %cst_168 = arith.constant 0.00999999977 : f32
    %844 = vector.broadcast %cst_168 : f32 to vector<2x128xf32>
    %845 = arith.mulf %844, %834 : vector<2x128xf32>
    %846 = arith.select %843, %834, %845 : vector<2x128xi1>, vector<2x128xf32>
    %847 = arith.select %2, %841, %846 : vector<2x128xi1>, vector<2x128xf32>
    %848 = arith.subf %835, %833 : vector<2x128xf32>
    %cst_169 = arith.constant 0.000000e+00 : f32
    %849 = vector.broadcast %cst_169 : f32 to vector<2x128xf32>
    %850 = arith.cmpf ogt, %848, %849 : vector<2x128xf32>
    %cst_170 = arith.constant 0.00999999977 : f32
    %851 = vector.broadcast %cst_170 : f32 to vector<2x128xf32>
    %852 = arith.mulf %851, %848 : vector<2x128xf32>
    %853 = arith.select %850, %848, %852 : vector<2x128xi1>, vector<2x128xf32>
    %cst_171 = arith.constant 0.000000e+00 : f32
    %854 = vector.broadcast %cst_171 : f32 to vector<2x128xf32>
    %855 = arith.cmpf ogt, %835, %854 : vector<2x128xf32>
    %cst_172 = arith.constant 0.00999999977 : f32
    %856 = vector.broadcast %cst_172 : f32 to vector<2x128xf32>
    %857 = arith.mulf %856, %835 : vector<2x128xf32>
    %858 = arith.select %855, %835, %857 : vector<2x128xi1>, vector<2x128xf32>
    %859 = arith.select %4, %853, %858 : vector<2x128xi1>, vector<2x128xf32>
    %860 = vector.extract_strided_slice %817 {offsets = [0, 0], sizes = [2, 128], strides = [1, 1]} : vector<4x128xf32> to vector<2x128xf32>
    %c26_173 = arith.constant 26 : index
    %c0_174 = arith.constant 0 : index
    %861 = vector.load %arg7[%c26_173, %c0_174] : memref<108x128xf32, #tpu.memory_space<vmem>>, vector<2x128xf32>
    tpu.vector_store %arg7[%c26_173, %c0_174], %847 {strides = array<i32>} : memref<108x128xf32, #tpu.memory_space<vmem>>, vector<2x128xf32>,
    %c28_175 = arith.constant 28 : index
    %c0_176 = arith.constant 0 : index
    %862 = vector.load %arg7[%c28_175, %c0_176] : memref<108x128xf32, #tpu.memory_space<vmem>>, vector<2x128xf32>
    tpu.vector_store %arg7[%c28_175, %c0_176], %860 {strides = array<i32>} : memref<108x128xf32, #tpu.memory_space<vmem>>, vector<2x128xf32>,
    %863 = vector.extract_strided_slice %812 {offsets = [2, 0], sizes = [2, 128], strides = [1, 1]} : vector<4x128xf32> to vector<2x128xf32>
    %c30_177 = arith.constant 30 : index
    %c0_178 = arith.constant 0 : index
    %864 = vector.load %arg7[%c30_177, %c0_178] : memref<108x128xf32, #tpu.memory_space<vmem>>, vector<2x128xf32>
    tpu.vector_store %arg7[%c30_177, %c0_178], %863 {strides = array<i32>} : memref<108x128xf32, #tpu.memory_space<vmem>>, vector<2x128xf32>,
    %c32_179 = arith.constant 32 : index
    %c0_180 = arith.constant 0 : index
    %865 = vector.load %arg7[%c32_179, %c0_180] : memref<108x128xf32, #tpu.memory_space<vmem>>, vector<2x128xf32>
    tpu.vector_store %arg7[%c32_179, %c0_180], %859 {strides = array<i32>} : memref<108x128xf32, #tpu.memory_space<vmem>>, vector<2x128xf32>,
    %866 = vector.extract_strided_slice %847 {offsets = [0, 0], sizes = [2, 1], strides = [1, 1]} : vector<2x128xf32> to vector<2x1xf32>
    %867 = vector.extract_strided_slice %859 {offsets = [0, 0], sizes = [2, 127], strides = [1, 1]} : vector<2x128xf32> to vector<2x127xf32>
    %868 = tpu.concatenate %866, %867 in 1 : vector<2x1xf32>, vector<2x127xf32> -> vector<2x128xf32>
    %869 = vector.extract_strided_slice %847 {offsets = [0, 1], sizes = [2, 94], strides = [1, 1]} : vector<2x128xf32> to vector<2x94xf32>
    %870 = vector.extract_strided_slice %859 {offsets = [0, 94], sizes = [2, 1], strides = [1, 1]} : vector<2x128xf32> to vector<2x1xf32>
    %871 = vector.extract_strided_slice %859 {offsets = [0, 95], sizes = [2, 33], strides = [1, 1]} : vector<2x128xf32> to vector<2x33xf32>
    %872 = tpu.concatenate %869, %870, %871 in 1 : vector<2x94xf32>, vector<2x1xf32>, vector<2x33xf32> -> vector<2x128xf32>
    %c24_181 = arith.constant 24 : index
    %c0_182 = arith.constant 0 : index
    %873 = vector.load %arg7[%c24_181, %c0_182] : memref<108x128xf32, #tpu.memory_space<vmem>>, vector<2x128xf32>
    tpu.vector_store %arg7[%c24_181, %c0_182], %868 {strides = array<i32>} : memref<108x128xf32, #tpu.memory_space<vmem>>, vector<2x128xf32>,
    %c34_183 = arith.constant 34 : index
    %c0_184 = arith.constant 0 : index
    %874 = vector.load %arg7[%c34_183, %c0_184] : memref<108x128xf32, #tpu.memory_space<vmem>>, vector<2x128xf32>
    tpu.vector_store %arg7[%c34_183, %c0_184], %872 {strides = array<i32>} : memref<108x128xf32, #tpu.memory_space<vmem>>, vector<2x128xf32>,
    %c144 = arith.constant 144 : index
    %875 = memref.load %arg0[%c144] : memref<360xf32, #tpu.memory_space<smem>>
    %c145 = arith.constant 145 : index
    %876 = memref.load %arg0[%c145] : memref<360xf32, #tpu.memory_space<smem>>
    %c146 = arith.constant 146 : index
    %877 = memref.load %arg0[%c146] : memref<360xf32, #tpu.memory_space<smem>>
    %c147 = arith.constant 147 : index
    %878 = memref.load %arg0[%c147] : memref<360xf32, #tpu.memory_space<smem>>
    %c148 = arith.constant 148 : index
    %879 = memref.load %arg0[%c148] : memref<360xf32, #tpu.memory_space<smem>>
    %c149 = arith.constant 149 : index
    %880 = memref.load %arg0[%c149] : memref<360xf32, #tpu.memory_space<smem>>
    %c150 = arith.constant 150 : index
    %881 = memref.load %arg0[%c150] : memref<360xf32, #tpu.memory_space<smem>>
    %c151 = arith.constant 151 : index
    %882 = memref.load %arg0[%c151] : memref<360xf32, #tpu.memory_space<smem>>
    %c152 = arith.constant 152 : index
    %883 = memref.load %arg0[%c152] : memref<360xf32, #tpu.memory_space<smem>>
    %c153 = arith.constant 153 : index
    %884 = memref.load %arg0[%c153] : memref<360xf32, #tpu.memory_space<smem>>
    %c154 = arith.constant 154 : index
    %885 = memref.load %arg0[%c154] : memref<360xf32, #tpu.memory_space<smem>>
    %c155 = arith.constant 155 : index
    %886 = memref.load %arg0[%c155] : memref<360xf32, #tpu.memory_space<smem>>
    %c156 = arith.constant 156 : index
    %887 = memref.load %arg0[%c156] : memref<360xf32, #tpu.memory_space<smem>>
    %c157 = arith.constant 157 : index
    %888 = memref.load %arg0[%c157] : memref<360xf32, #tpu.memory_space<smem>>
    %c158 = arith.constant 158 : index
    %889 = memref.load %arg0[%c158] : memref<360xf32, #tpu.memory_space<smem>>
    %c159 = arith.constant 159 : index
    %890 = memref.load %arg0[%c159] : memref<360xf32, #tpu.memory_space<smem>>
    %c160 = arith.constant 160 : index
    %891 = memref.load %arg0[%c160] : memref<360xf32, #tpu.memory_space<smem>>
    %c161 = arith.constant 161 : index
    %892 = memref.load %arg0[%c161] : memref<360xf32, #tpu.memory_space<smem>>
    %c162 = arith.constant 162 : index
    %893 = memref.load %arg0[%c162] : memref<360xf32, #tpu.memory_space<smem>>
    %c163 = arith.constant 163 : index
    %894 = memref.load %arg0[%c163] : memref<360xf32, #tpu.memory_space<smem>>
    %c164 = arith.constant 164 : index
    %895 = memref.load %arg0[%c164] : memref<360xf32, #tpu.memory_space<smem>>
    %c165 = arith.constant 165 : index
    %896 = memref.load %arg0[%c165] : memref<360xf32, #tpu.memory_space<smem>>
    %c166 = arith.constant 166 : index
    %897 = memref.load %arg0[%c166] : memref<360xf32, #tpu.memory_space<smem>>
    %c167 = arith.constant 167 : index
    %898 = memref.load %arg0[%c167] : memref<360xf32, #tpu.memory_space<smem>>
    %c168 = arith.constant 168 : index
    %899 = memref.load %arg0[%c168] : memref<360xf32, #tpu.memory_space<smem>>
    %c169 = arith.constant 169 : index
    %900 = memref.load %arg0[%c169] : memref<360xf32, #tpu.memory_space<smem>>
    %c170 = arith.constant 170 : index
    %901 = memref.load %arg0[%c170] : memref<360xf32, #tpu.memory_space<smem>>
    %c171 = arith.constant 171 : index
    %902 = memref.load %arg0[%c171] : memref<360xf32, #tpu.memory_space<smem>>
    %c172 = arith.constant 172 : index
    %903 = memref.load %arg0[%c172] : memref<360xf32, #tpu.memory_space<smem>>
    %c173 = arith.constant 173 : index
    %904 = memref.load %arg0[%c173] : memref<360xf32, #tpu.memory_space<smem>>
    %c174 = arith.constant 174 : index
    %905 = memref.load %arg0[%c174] : memref<360xf32, #tpu.memory_space<smem>>
    %c175 = arith.constant 175 : index
    %906 = memref.load %arg0[%c175] : memref<360xf32, #tpu.memory_space<smem>>
    %c176 = arith.constant 176 : index
    %907 = memref.load %arg0[%c176] : memref<360xf32, #tpu.memory_space<smem>>
    %c177 = arith.constant 177 : index
    %908 = memref.load %arg0[%c177] : memref<360xf32, #tpu.memory_space<smem>>
    %c178 = arith.constant 178 : index
    %909 = memref.load %arg0[%c178] : memref<360xf32, #tpu.memory_space<smem>>
    %c179 = arith.constant 179 : index
    %910 = memref.load %arg0[%c179] : memref<360xf32, #tpu.memory_space<smem>>
    %c180 = arith.constant 180 : index
    %911 = memref.load %arg0[%c180] : memref<360xf32, #tpu.memory_space<smem>>
    %c181 = arith.constant 181 : index
    %912 = memref.load %arg0[%c181] : memref<360xf32, #tpu.memory_space<smem>>
    %c182 = arith.constant 182 : index
    %913 = memref.load %arg0[%c182] : memref<360xf32, #tpu.memory_space<smem>>
    %c183 = arith.constant 183 : index
    %914 = memref.load %arg0[%c183] : memref<360xf32, #tpu.memory_space<smem>>
    %c184 = arith.constant 184 : index
    %915 = memref.load %arg0[%c184] : memref<360xf32, #tpu.memory_space<smem>>
    %c185 = arith.constant 185 : index
    %916 = memref.load %arg0[%c185] : memref<360xf32, #tpu.memory_space<smem>>
    %c186 = arith.constant 186 : index
    %917 = memref.load %arg0[%c186] : memref<360xf32, #tpu.memory_space<smem>>
    %c187 = arith.constant 187 : index
    %918 = memref.load %arg0[%c187] : memref<360xf32, #tpu.memory_space<smem>>
    %c188 = arith.constant 188 : index
    %919 = memref.load %arg0[%c188] : memref<360xf32, #tpu.memory_space<smem>>
    %c189 = arith.constant 189 : index
    %920 = memref.load %arg0[%c189] : memref<360xf32, #tpu.memory_space<smem>>
    %c190 = arith.constant 190 : index
    %921 = memref.load %arg0[%c190] : memref<360xf32, #tpu.memory_space<smem>>
    %c191 = arith.constant 191 : index
    %922 = memref.load %arg0[%c191] : memref<360xf32, #tpu.memory_space<smem>>
    %c192 = arith.constant 192 : index
    %923 = memref.load %arg0[%c192] : memref<360xf32, #tpu.memory_space<smem>>
    %c193 = arith.constant 193 : index
    %924 = memref.load %arg0[%c193] : memref<360xf32, #tpu.memory_space<smem>>
    %c194 = arith.constant 194 : index
    %925 = memref.load %arg0[%c194] : memref<360xf32, #tpu.memory_space<smem>>
    %c195 = arith.constant 195 : index
    %926 = memref.load %arg0[%c195] : memref<360xf32, #tpu.memory_space<smem>>
    %c196 = arith.constant 196 : index
    %927 = memref.load %arg0[%c196] : memref<360xf32, #tpu.memory_space<smem>>
    %c197 = arith.constant 197 : index
    %928 = memref.load %arg0[%c197] : memref<360xf32, #tpu.memory_space<smem>>
    %c198 = arith.constant 198 : index
    %929 = memref.load %arg0[%c198] : memref<360xf32, #tpu.memory_space<smem>>
    %c199 = arith.constant 199 : index
    %930 = memref.load %arg0[%c199] : memref<360xf32, #tpu.memory_space<smem>>
    %c200 = arith.constant 200 : index
    %931 = memref.load %arg0[%c200] : memref<360xf32, #tpu.memory_space<smem>>
    %c201 = arith.constant 201 : index
    %932 = memref.load %arg0[%c201] : memref<360xf32, #tpu.memory_space<smem>>
    %c202 = arith.constant 202 : index
    %933 = memref.load %arg0[%c202] : memref<360xf32, #tpu.memory_space<smem>>
    %c203 = arith.constant 203 : index
    %934 = memref.load %arg0[%c203] : memref<360xf32, #tpu.memory_space<smem>>
    %c204 = arith.constant 204 : index
    %935 = memref.load %arg0[%c204] : memref<360xf32, #tpu.memory_space<smem>>
    %c205 = arith.constant 205 : index
    %936 = memref.load %arg0[%c205] : memref<360xf32, #tpu.memory_space<smem>>
    %c206 = arith.constant 206 : index
    %937 = memref.load %arg0[%c206] : memref<360xf32, #tpu.memory_space<smem>>
    %c207 = arith.constant 207 : index
    %938 = memref.load %arg0[%c207] : memref<360xf32, #tpu.memory_space<smem>>
    %c208 = arith.constant 208 : index
    %939 = memref.load %arg0[%c208] : memref<360xf32, #tpu.memory_space<smem>>
    %c209 = arith.constant 209 : index
    %940 = memref.load %arg0[%c209] : memref<360xf32, #tpu.memory_space<smem>>
    %c210 = arith.constant 210 : index
    %941 = memref.load %arg0[%c210] : memref<360xf32, #tpu.memory_space<smem>>
    %c211 = arith.constant 211 : index
    %942 = memref.load %arg0[%c211] : memref<360xf32, #tpu.memory_space<smem>>
    %c212 = arith.constant 212 : index
    %943 = memref.load %arg0[%c212] : memref<360xf32, #tpu.memory_space<smem>>
    %c213 = arith.constant 213 : index
    %944 = memref.load %arg0[%c213] : memref<360xf32, #tpu.memory_space<smem>>
    %c214 = arith.constant 214 : index
    %945 = memref.load %arg0[%c214] : memref<360xf32, #tpu.memory_space<smem>>
    %c215 = arith.constant 215 : index
    %946 = memref.load %arg0[%c215] : memref<360xf32, #tpu.memory_space<smem>>
    %c6_185 = arith.constant 6 : index
    %947 = memref.load %arg1[%c6_185] : memref<15xf32, #tpu.memory_space<smem>>
    %c7_186 = arith.constant 7 : index
    %948 = memref.load %arg1[%c7_186] : memref<15xf32, #tpu.memory_space<smem>>
    %c8_187 = arith.constant 8 : index
    %949 = memref.load %arg1[%c8_187] : memref<15xf32, #tpu.memory_space<smem>>
    %c0_188 = arith.constant 0 : index
    %c0_189 = arith.constant 0 : index
    %950 = vector.load %arg7[%c0_188, %c0_189] : memref<108x128xf32, #tpu.memory_space<vmem>>, vector<8x128xf32>
    %c2_190 = arith.constant 2 : index
    %c0_191 = arith.constant 0 : index
    %951 = vector.load %arg7[%c2_190, %c0_191] : memref<108x128xf32, #tpu.memory_space<vmem>>, vector<8x128xf32>
    %c4_192 = arith.constant 4 : index
    %c0_193 = arith.constant 0 : index
    %952 = vector.load %arg7[%c4_192, %c0_193] : memref<108x128xf32, #tpu.memory_space<vmem>>, vector<8x128xf32>
    %c2_194 = arith.constant 2 : index
    %c0_195 = arith.constant 0 : index
    %953 = vector.load %arg7[%c2_194, %c0_195] : memref<108x128xf32, #tpu.memory_space<vmem>>, vector<2x128xf32>
    %c8_196 = arith.constant 8 : index
    %c0_197 = arith.constant 0 : index
    %954 = vector.load %arg7[%c8_196, %c0_197] : memref<108x128xf32, #tpu.memory_space<vmem>>, vector<2x128xf32>
    %c12_198 = arith.constant 12 : index
    %c0_199 = arith.constant 0 : index
    %955 = vector.load %arg7[%c12_198, %c0_199] : memref<108x128xf32, #tpu.memory_space<vmem>>, vector<8x128xf32>
    %c14_200 = arith.constant 14 : index
    %c0_201 = arith.constant 0 : index
    %956 = vector.load %arg7[%c14_200, %c0_201] : memref<108x128xf32, #tpu.memory_space<vmem>>, vector<8x128xf32>
    %c16_202 = arith.constant 16 : index
    %c0_203 = arith.constant 0 : index
    %957 = vector.load %arg7[%c16_202, %c0_203] : memref<108x128xf32, #tpu.memory_space<vmem>>, vector<8x128xf32>
    %c14_204 = arith.constant 14 : index
    %c0_205 = arith.constant 0 : index
    %958 = vector.load %arg7[%c14_204, %c0_205] : memref<108x128xf32, #tpu.memory_space<vmem>>, vector<2x128xf32>
    %c20_206 = arith.constant 20 : index
    %c0_207 = arith.constant 0 : index
    %959 = vector.load %arg7[%c20_206, %c0_207] : memref<108x128xf32, #tpu.memory_space<vmem>>, vector<2x128xf32>
    %c24_208 = arith.constant 24 : index
    %c0_209 = arith.constant 0 : index
    %960 = vector.load %arg7[%c24_208, %c0_209] : memref<108x128xf32, #tpu.memory_space<vmem>>, vector<8x128xf32>
    %c26_210 = arith.constant 26 : index
    %c0_211 = arith.constant 0 : index
    %961 = vector.load %arg7[%c26_210, %c0_211] : memref<108x128xf32, #tpu.memory_space<vmem>>, vector<8x128xf32>
    %c28_212 = arith.constant 28 : index
    %c0_213 = arith.constant 0 : index
    %962 = vector.load %arg7[%c28_212, %c0_213] : memref<108x128xf32, #tpu.memory_space<vmem>>, vector<8x128xf32>
    %c26_214 = arith.constant 26 : index
    %c0_215 = arith.constant 0 : index
    %963 = vector.load %arg7[%c26_214, %c0_215] : memref<108x128xf32, #tpu.memory_space<vmem>>, vector<2x128xf32>
    %c32_216 = arith.constant 32 : index
    %c0_217 = arith.constant 0 : index
    %964 = vector.load %arg7[%c32_216, %c0_217] : memref<108x128xf32, #tpu.memory_space<vmem>>, vector<2x128xf32>
    %965 = vector.broadcast %875 : f32 to vector<8x128xf32>
    %966 = arith.mulf %965, %950 : vector<8x128xf32>
    %967 = vector.broadcast %876 : f32 to vector<8x128xf32>
    %968 = arith.mulf %967, %951 : vector<8x128xf32>
    %969 = arith.addf %966, %968 : vector<8x128xf32>
    %970 = vector.broadcast %877 : f32 to vector<8x128xf32>
    %971 = arith.mulf %970, %952 : vector<8x128xf32>
    %972 = arith.addf %969, %971 : vector<8x128xf32>
    %973 = vector.broadcast %878 : f32 to vector<8x128xf32>
    %974 = arith.mulf %973, %950 : vector<8x128xf32>
    %975 = vector.broadcast %879 : f32 to vector<8x128xf32>
    %976 = arith.mulf %975, %951 : vector<8x128xf32>
    %977 = arith.addf %974, %976 : vector<8x128xf32>
    %978 = vector.broadcast %880 : f32 to vector<8x128xf32>
    %979 = arith.mulf %978, %952 : vector<8x128xf32>
    %980 = arith.addf %977, %979 : vector<8x128xf32>
    %981 = vector.broadcast %883 : f32 to vector<8x128xf32>
    %982 = arith.mulf %981, %955 : vector<8x128xf32>
    %983 = vector.broadcast %884 : f32 to vector<8x128xf32>
    %984 = arith.mulf %983, %956 : vector<8x128xf32>
    %985 = arith.addf %982, %984 : vector<8x128xf32>
    %986 = vector.broadcast %885 : f32 to vector<8x128xf32>
    %987 = arith.mulf %986, %957 : vector<8x128xf32>
    %988 = arith.addf %985, %987 : vector<8x128xf32>
    %989 = vector.broadcast %886 : f32 to vector<8x128xf32>
    %990 = arith.mulf %989, %955 : vector<8x128xf32>
    %991 = vector.broadcast %887 : f32 to vector<8x128xf32>
    %992 = arith.mulf %991, %956 : vector<8x128xf32>
    %993 = arith.addf %990, %992 : vector<8x128xf32>
    %994 = vector.broadcast %888 : f32 to vector<8x128xf32>
    %995 = arith.mulf %994, %957 : vector<8x128xf32>
    %996 = arith.addf %993, %995 : vector<8x128xf32>
    %997 = arith.addf %972, %988 : vector<8x128xf32>
    %998 = arith.addf %980, %996 : vector<8x128xf32>
    %999 = vector.broadcast %891 : f32 to vector<8x128xf32>
    %1000 = arith.mulf %999, %960 : vector<8x128xf32>
    %1001 = vector.broadcast %892 : f32 to vector<8x128xf32>
    %1002 = arith.mulf %1001, %961 : vector<8x128xf32>
    %1003 = arith.addf %1000, %1002 : vector<8x128xf32>
    %1004 = vector.broadcast %893 : f32 to vector<8x128xf32>
    %1005 = arith.mulf %1004, %962 : vector<8x128xf32>
    %1006 = arith.addf %1003, %1005 : vector<8x128xf32>
    %1007 = vector.broadcast %894 : f32 to vector<8x128xf32>
    %1008 = arith.mulf %1007, %960 : vector<8x128xf32>
    %1009 = vector.broadcast %895 : f32 to vector<8x128xf32>
    %1010 = arith.mulf %1009, %961 : vector<8x128xf32>
    %1011 = arith.addf %1008, %1010 : vector<8x128xf32>
    %1012 = vector.broadcast %896 : f32 to vector<8x128xf32>
    %1013 = arith.mulf %1012, %962 : vector<8x128xf32>
    %1014 = arith.addf %1011, %1013 : vector<8x128xf32>
    %1015 = arith.addf %997, %1006 : vector<8x128xf32>
    %1016 = arith.addf %998, %1014 : vector<8x128xf32>
    %1017 = vector.broadcast %947 : f32 to vector<8x128xf32>
    %1018 = arith.addf %1015, %1017 : vector<8x128xf32>
    %1019 = vector.broadcast %947 : f32 to vector<8x128xf32>
    %1020 = arith.addf %1016, %1019 : vector<8x128xf32>
    %cst_218 = arith.constant 0.000000e+00 : f32
    %1021 = vector.broadcast %cst_218 : f32 to vector<8x128xf32>
    %1022 = arith.cmpf ogt, %1018, %1021 : vector<8x128xf32>
    %cst_219 = arith.constant 0.00999999977 : f32
    %1023 = vector.broadcast %cst_219 : f32 to vector<8x128xf32>
    %1024 = arith.mulf %1023, %1018 : vector<8x128xf32>
    %1025 = arith.select %1022, %1018, %1024 : vector<8x128xi1>, vector<8x128xf32>
    %cst_220 = arith.constant 0.000000e+00 : f32
    %1026 = vector.broadcast %cst_220 : f32 to vector<8x128xf32>
    %1027 = arith.cmpf ogt, %1020, %1026 : vector<8x128xf32>
    %cst_221 = arith.constant 0.00999999977 : f32
    %1028 = vector.broadcast %cst_221 : f32 to vector<8x128xf32>
    %1029 = arith.mulf %1028, %1020 : vector<8x128xf32>
    %1030 = arith.select %1027, %1020, %1029 : vector<8x128xi1>, vector<8x128xf32>
    %1031 = vector.broadcast %881 : f32 to vector<2x128xf32>
    %1032 = arith.mulf %1031, %953 : vector<2x128xf32>
    %1033 = vector.broadcast %882 : f32 to vector<2x128xf32>
    %1034 = arith.mulf %1033, %954 : vector<2x128xf32>
    %1035 = vector.broadcast %889 : f32 to vector<2x128xf32>
    %1036 = arith.mulf %1035, %958 : vector<2x128xf32>
    %1037 = vector.broadcast %890 : f32 to vector<2x128xf32>
    %1038 = arith.mulf %1037, %959 : vector<2x128xf32>
    %1039 = arith.addf %1032, %1036 : vector<2x128xf32>
    %1040 = arith.addf %1034, %1038 : vector<2x128xf32>
    %1041 = vector.broadcast %897 : f32 to vector<2x128xf32>
    %1042 = arith.mulf %1041, %963 : vector<2x128xf32>
    %1043 = vector.broadcast %898 : f32 to vector<2x128xf32>
    %1044 = arith.mulf %1043, %964 : vector<2x128xf32>
    %1045 = arith.addf %1039, %1042 : vector<2x128xf32>
    %1046 = arith.addf %1040, %1044 : vector<2x128xf32>
    %1047 = vector.extract_strided_slice %1018 {offsets = [0, 0], sizes = [2, 128], strides = [1, 1]} : vector<8x128xf32> to vector<2x128xf32>
    %1048 = vector.extract_strided_slice %1020 {offsets = [6, 0], sizes = [2, 128], strides = [1, 1]} : vector<8x128xf32> to vector<2x128xf32>
    %1049 = arith.subf %1047, %1045 : vector<2x128xf32>
    %cst_222 = arith.constant 0.000000e+00 : f32
    %1050 = vector.broadcast %cst_222 : f32 to vector<2x128xf32>
    %1051 = arith.cmpf ogt, %1049, %1050 : vector<2x128xf32>
    %cst_223 = arith.constant 0.00999999977 : f32
    %1052 = vector.broadcast %cst_223 : f32 to vector<2x128xf32>
    %1053 = arith.mulf %1052, %1049 : vector<2x128xf32>
    %1054 = arith.select %1051, %1049, %1053 : vector<2x128xi1>, vector<2x128xf32>
    %cst_224 = arith.constant 0.000000e+00 : f32
    %1055 = vector.broadcast %cst_224 : f32 to vector<2x128xf32>
    %1056 = arith.cmpf ogt, %1047, %1055 : vector<2x128xf32>
    %cst_225 = arith.constant 0.00999999977 : f32
    %1057 = vector.broadcast %cst_225 : f32 to vector<2x128xf32>
    %1058 = arith.mulf %1057, %1047 : vector<2x128xf32>
    %1059 = arith.select %1056, %1047, %1058 : vector<2x128xi1>, vector<2x128xf32>
    %1060 = arith.select %2, %1054, %1059 : vector<2x128xi1>, vector<2x128xf32>
    %1061 = arith.subf %1048, %1046 : vector<2x128xf32>
    %cst_226 = arith.constant 0.000000e+00 : f32
    %1062 = vector.broadcast %cst_226 : f32 to vector<2x128xf32>
    %1063 = arith.cmpf ogt, %1061, %1062 : vector<2x128xf32>
    %cst_227 = arith.constant 0.00999999977 : f32
    %1064 = vector.broadcast %cst_227 : f32 to vector<2x128xf32>
    %1065 = arith.mulf %1064, %1061 : vector<2x128xf32>
    %1066 = arith.select %1063, %1061, %1065 : vector<2x128xi1>, vector<2x128xf32>
    %cst_228 = arith.constant 0.000000e+00 : f32
    %1067 = vector.broadcast %cst_228 : f32 to vector<2x128xf32>
    %1068 = arith.cmpf ogt, %1048, %1067 : vector<2x128xf32>
    %cst_229 = arith.constant 0.00999999977 : f32
    %1069 = vector.broadcast %cst_229 : f32 to vector<2x128xf32>
    %1070 = arith.mulf %1069, %1048 : vector<2x128xf32>
    %1071 = arith.select %1068, %1048, %1070 : vector<2x128xi1>, vector<2x128xf32>
    %1072 = arith.select %4, %1066, %1071 : vector<2x128xi1>, vector<2x128xf32>
    %1073 = vector.extract_strided_slice %1030 {offsets = [0, 0], sizes = [2, 128], strides = [1, 1]} : vector<8x128xf32> to vector<2x128xf32>
    %c2_230 = arith.constant 2 : index
    %c0_231 = arith.constant 0 : index
    %1074 = vector.load %arg6[%c2_230, %c0_231] : memref<60x128xf32, #tpu.memory_space<vmem>>, vector<2x128xf32>
    tpu.vector_store %arg6[%c2_230, %c0_231], %1060 {strides = array<i32>} : memref<60x128xf32, #tpu.memory_space<vmem>>, vector<2x128xf32>,
    %c4_232 = arith.constant 4 : index
    %c0_233 = arith.constant 0 : index
    %1075 = vector.load %arg6[%c4_232, %c0_233] : memref<60x128xf32, #tpu.memory_space<vmem>>, vector<2x128xf32>
    tpu.vector_store %arg6[%c4_232, %c0_233], %1073 {strides = array<i32>} : memref<60x128xf32, #tpu.memory_space<vmem>>, vector<2x128xf32>,
    %1076 = vector.extract_strided_slice %1025 {offsets = [2, 0], sizes = [2, 128], strides = [1, 1]} : vector<8x128xf32> to vector<2x128xf32>
    %1077 = vector.extract_strided_slice %1030 {offsets = [2, 0], sizes = [2, 128], strides = [1, 1]} : vector<8x128xf32> to vector<2x128xf32>
    %c6_234 = arith.constant 6 : index
    %c0_235 = arith.constant 0 : index
    %1078 = vector.load %arg6[%c6_234, %c0_235] : memref<60x128xf32, #tpu.memory_space<vmem>>, vector<2x128xf32>
    tpu.vector_store %arg6[%c6_234, %c0_235], %1076 {strides = array<i32>} : memref<60x128xf32, #tpu.memory_space<vmem>>, vector<2x128xf32>,
    %c8_236 = arith.constant 8 : index
    %c0_237 = arith.constant 0 : index
    %1079 = vector.load %arg6[%c8_236, %c0_237] : memref<60x128xf32, #tpu.memory_space<vmem>>, vector<2x128xf32>
    tpu.vector_store %arg6[%c8_236, %c0_237], %1077 {strides = array<i32>} : memref<60x128xf32, #tpu.memory_space<vmem>>, vector<2x128xf32>,
    %1080 = vector.extract_strided_slice %1025 {offsets = [4, 0], sizes = [2, 128], strides = [1, 1]} : vector<8x128xf32> to vector<2x128xf32>
    %1081 = vector.extract_strided_slice %1030 {offsets = [4, 0], sizes = [2, 128], strides = [1, 1]} : vector<8x128xf32> to vector<2x128xf32>
    %c10_238 = arith.constant 10 : index
    %c0_239 = arith.constant 0 : index
    %1082 = vector.load %arg6[%c10_238, %c0_239] : memref<60x128xf32, #tpu.memory_space<vmem>>, vector<2x128xf32>
    tpu.vector_store %arg6[%c10_238, %c0_239], %1080 {strides = array<i32>} : memref<60x128xf32, #tpu.memory_space<vmem>>, vector<2x128xf32>,
    %c12_240 = arith.constant 12 : index
    %c0_241 = arith.constant 0 : index
    %1083 = vector.load %arg6[%c12_240, %c0_241] : memref<60x128xf32, #tpu.memory_space<vmem>>, vector<2x128xf32>
    tpu.vector_store %arg6[%c12_240, %c0_241], %1081 {strides = array<i32>} : memref<60x128xf32, #tpu.memory_space<vmem>>, vector<2x128xf32>,
    %1084 = vector.extract_strided_slice %1025 {offsets = [6, 0], sizes = [2, 128], strides = [1, 1]} : vector<8x128xf32> to vector<2x128xf32>
    %c14_242 = arith.constant 14 : index
    %c0_243 = arith.constant 0 : index
    %1085 = vector.load %arg6[%c14_242, %c0_243] : memref<60x128xf32, #tpu.memory_space<vmem>>, vector<2x128xf32>
    tpu.vector_store %arg6[%c14_242, %c0_243], %1084 {strides = array<i32>} : memref<60x128xf32, #tpu.memory_space<vmem>>, vector<2x128xf32>,
    %c16_244 = arith.constant 16 : index
    %c0_245 = arith.constant 0 : index
    %1086 = vector.load %arg6[%c16_244, %c0_245] : memref<60x128xf32, #tpu.memory_space<vmem>>, vector<2x128xf32>
    tpu.vector_store %arg6[%c16_244, %c0_245], %1072 {strides = array<i32>} : memref<60x128xf32, #tpu.memory_space<vmem>>, vector<2x128xf32>,
    %1087 = vector.extract_strided_slice %1060 {offsets = [0, 0], sizes = [2, 1], strides = [1, 1]} : vector<2x128xf32> to vector<2x1xf32>
    %1088 = vector.extract_strided_slice %1072 {offsets = [0, 0], sizes = [2, 127], strides = [1, 1]} : vector<2x128xf32> to vector<2x127xf32>
    %1089 = tpu.concatenate %1087, %1088 in 1 : vector<2x1xf32>, vector<2x127xf32> -> vector<2x128xf32>
    %1090 = vector.extract_strided_slice %1060 {offsets = [0, 1], sizes = [2, 94], strides = [1, 1]} : vector<2x128xf32> to vector<2x94xf32>
    %1091 = vector.extract_strided_slice %1072 {offsets = [0, 94], sizes = [2, 1], strides = [1, 1]} : vector<2x128xf32> to vector<2x1xf32>
    %1092 = vector.extract_strided_slice %1072 {offsets = [0, 95], sizes = [2, 33], strides = [1, 1]} : vector<2x128xf32> to vector<2x33xf32>
    %1093 = tpu.concatenate %1090, %1091, %1092 in 1 : vector<2x94xf32>, vector<2x1xf32>, vector<2x33xf32> -> vector<2x128xf32>
    %c0_246 = arith.constant 0 : index
    %c0_247 = arith.constant 0 : index
    %1094 = vector.load %arg6[%c0_246, %c0_247] : memref<60x128xf32, #tpu.memory_space<vmem>>, vector<2x128xf32>
    tpu.vector_store %arg6[%c0_246, %c0_247], %1089 {strides = array<i32>} : memref<60x128xf32, #tpu.memory_space<vmem>>, vector<2x128xf32>,
    %c18_248 = arith.constant 18 : index
    %c0_249 = arith.constant 0 : index
    %1095 = vector.load %arg6[%c18_248, %c0_249] : memref<60x128xf32, #tpu.memory_space<vmem>>, vector<2x128xf32>
    tpu.vector_store %arg6[%c18_248, %c0_249], %1093 {strides = array<i32>} : memref<60x128xf32, #tpu.memory_space<vmem>>, vector<2x128xf32>,
    %1096 = vector.broadcast %899 : f32 to vector<8x128xf32>
    %1097 = arith.mulf %1096, %950 : vector<8x128xf32>
    %1098 = vector.broadcast %900 : f32 to vector<8x128xf32>
    %1099 = arith.mulf %1098, %951 : vector<8x128xf32>
    %1100 = arith.addf %1097, %1099 : vector<8x128xf32>
    %1101 = vector.broadcast %901 : f32 to vector<8x128xf32>
    %1102 = arith.mulf %1101, %952 : vector<8x128xf32>
    %1103 = arith.addf %1100, %1102 : vector<8x128xf32>
    %1104 = vector.broadcast %902 : f32 to vector<8x128xf32>
    %1105 = arith.mulf %1104, %950 : vector<8x128xf32>
    %1106 = vector.broadcast %903 : f32 to vector<8x128xf32>
    %1107 = arith.mulf %1106, %951 : vector<8x128xf32>
    %1108 = arith.addf %1105, %1107 : vector<8x128xf32>
    %1109 = vector.broadcast %904 : f32 to vector<8x128xf32>
    %1110 = arith.mulf %1109, %952 : vector<8x128xf32>
    %1111 = arith.addf %1108, %1110 : vector<8x128xf32>
    %1112 = vector.broadcast %907 : f32 to vector<8x128xf32>
    %1113 = arith.mulf %1112, %955 : vector<8x128xf32>
    %1114 = vector.broadcast %908 : f32 to vector<8x128xf32>
    %1115 = arith.mulf %1114, %956 : vector<8x128xf32>
    %1116 = arith.addf %1113, %1115 : vector<8x128xf32>
    %1117 = vector.broadcast %909 : f32 to vector<8x128xf32>
    %1118 = arith.mulf %1117, %957 : vector<8x128xf32>
    %1119 = arith.addf %1116, %1118 : vector<8x128xf32>
    %1120 = vector.broadcast %910 : f32 to vector<8x128xf32>
    %1121 = arith.mulf %1120, %955 : vector<8x128xf32>
    %1122 = vector.broadcast %911 : f32 to vector<8x128xf32>
    %1123 = arith.mulf %1122, %956 : vector<8x128xf32>
    %1124 = arith.addf %1121, %1123 : vector<8x128xf32>
    %1125 = vector.broadcast %912 : f32 to vector<8x128xf32>
    %1126 = arith.mulf %1125, %957 : vector<8x128xf32>
    %1127 = arith.addf %1124, %1126 : vector<8x128xf32>
    %1128 = arith.addf %1103, %1119 : vector<8x128xf32>
    %1129 = arith.addf %1111, %1127 : vector<8x128xf32>
    %1130 = vector.broadcast %915 : f32 to vector<8x128xf32>
    %1131 = arith.mulf %1130, %960 : vector<8x128xf32>
    %1132 = vector.broadcast %916 : f32 to vector<8x128xf32>
    %1133 = arith.mulf %1132, %961 : vector<8x128xf32>
    %1134 = arith.addf %1131, %1133 : vector<8x128xf32>
    %1135 = vector.broadcast %917 : f32 to vector<8x128xf32>
    %1136 = arith.mulf %1135, %962 : vector<8x128xf32>
    %1137 = arith.addf %1134, %1136 : vector<8x128xf32>
    %1138 = vector.broadcast %918 : f32 to vector<8x128xf32>
    %1139 = arith.mulf %1138, %960 : vector<8x128xf32>
    %1140 = vector.broadcast %919 : f32 to vector<8x128xf32>
    %1141 = arith.mulf %1140, %961 : vector<8x128xf32>
    %1142 = arith.addf %1139, %1141 : vector<8x128xf32>
    %1143 = vector.broadcast %920 : f32 to vector<8x128xf32>
    %1144 = arith.mulf %1143, %962 : vector<8x128xf32>
    %1145 = arith.addf %1142, %1144 : vector<8x128xf32>
    %1146 = arith.addf %1128, %1137 : vector<8x128xf32>
    %1147 = arith.addf %1129, %1145 : vector<8x128xf32>
    %1148 = vector.broadcast %948 : f32 to vector<8x128xf32>
    %1149 = arith.addf %1146, %1148 : vector<8x128xf32>
    %1150 = vector.broadcast %948 : f32 to vector<8x128xf32>
    %1151 = arith.addf %1147, %1150 : vector<8x128xf32>
    %cst_250 = arith.constant 0.000000e+00 : f32
    %1152 = vector.broadcast %cst_250 : f32 to vector<8x128xf32>
    %1153 = arith.cmpf ogt, %1149, %1152 : vector<8x128xf32>
    %cst_251 = arith.constant 0.00999999977 : f32
    %1154 = vector.broadcast %cst_251 : f32 to vector<8x128xf32>
    %1155 = arith.mulf %1154, %1149 : vector<8x128xf32>
    %1156 = arith.select %1153, %1149, %1155 : vector<8x128xi1>, vector<8x128xf32>
    %cst_252 = arith.constant 0.000000e+00 : f32
    %1157 = vector.broadcast %cst_252 : f32 to vector<8x128xf32>
    %1158 = arith.cmpf ogt, %1151, %1157 : vector<8x128xf32>
    %cst_253 = arith.constant 0.00999999977 : f32
    %1159 = vector.broadcast %cst_253 : f32 to vector<8x128xf32>
    %1160 = arith.mulf %1159, %1151 : vector<8x128xf32>
    %1161 = arith.select %1158, %1151, %1160 : vector<8x128xi1>, vector<8x128xf32>
    %1162 = vector.broadcast %905 : f32 to vector<2x128xf32>
    %1163 = arith.mulf %1162, %953 : vector<2x128xf32>
    %1164 = vector.broadcast %906 : f32 to vector<2x128xf32>
    %1165 = arith.mulf %1164, %954 : vector<2x128xf32>
    %1166 = vector.broadcast %913 : f32 to vector<2x128xf32>
    %1167 = arith.mulf %1166, %958 : vector<2x128xf32>
    %1168 = vector.broadcast %914 : f32 to vector<2x128xf32>
    %1169 = arith.mulf %1168, %959 : vector<2x128xf32>
    %1170 = arith.addf %1163, %1167 : vector<2x128xf32>
    %1171 = arith.addf %1165, %1169 : vector<2x128xf32>
    %1172 = vector.broadcast %921 : f32 to vector<2x128xf32>
    %1173 = arith.mulf %1172, %963 : vector<2x128xf32>
    %1174 = vector.broadcast %922 : f32 to vector<2x128xf32>
    %1175 = arith.mulf %1174, %964 : vector<2x128xf32>
    %1176 = arith.addf %1170, %1173 : vector<2x128xf32>
    %1177 = arith.addf %1171, %1175 : vector<2x128xf32>
    %1178 = vector.extract_strided_slice %1149 {offsets = [0, 0], sizes = [2, 128], strides = [1, 1]} : vector<8x128xf32> to vector<2x128xf32>
    %1179 = vector.extract_strided_slice %1151 {offsets = [6, 0], sizes = [2, 128], strides = [1, 1]} : vector<8x128xf32> to vector<2x128xf32>
    %1180 = arith.subf %1178, %1176 : vector<2x128xf32>
    %cst_254 = arith.constant 0.000000e+00 : f32
    %1181 = vector.broadcast %cst_254 : f32 to vector<2x128xf32>
    %1182 = arith.cmpf ogt, %1180, %1181 : vector<2x128xf32>
    %cst_255 = arith.constant 0.00999999977 : f32
    %1183 = vector.broadcast %cst_255 : f32 to vector<2x128xf32>
    %1184 = arith.mulf %1183, %1180 : vector<2x128xf32>
    %1185 = arith.select %1182, %1180, %1184 : vector<2x128xi1>, vector<2x128xf32>
    %cst_256 = arith.constant 0.000000e+00 : f32
    %1186 = vector.broadcast %cst_256 : f32 to vector<2x128xf32>
    %1187 = arith.cmpf ogt, %1178, %1186 : vector<2x128xf32>
    %cst_257 = arith.constant 0.00999999977 : f32
    %1188 = vector.broadcast %cst_257 : f32 to vector<2x128xf32>
    %1189 = arith.mulf %1188, %1178 : vector<2x128xf32>
    %1190 = arith.select %1187, %1178, %1189 : vector<2x128xi1>, vector<2x128xf32>
    %1191 = arith.select %2, %1185, %1190 : vector<2x128xi1>, vector<2x128xf32>
    %1192 = arith.subf %1179, %1177 : vector<2x128xf32>
    %cst_258 = arith.constant 0.000000e+00 : f32
    %1193 = vector.broadcast %cst_258 : f32 to vector<2x128xf32>
    %1194 = arith.cmpf ogt, %1192, %1193 : vector<2x128xf32>
    %cst_259 = arith.constant 0.00999999977 : f32
    %1195 = vector.broadcast %cst_259 : f32 to vector<2x128xf32>
    %1196 = arith.mulf %1195, %1192 : vector<2x128xf32>
    %1197 = arith.select %1194, %1192, %1196 : vector<2x128xi1>, vector<2x128xf32>
    %cst_260 = arith.constant 0.000000e+00 : f32
    %1198 = vector.broadcast %cst_260 : f32 to vector<2x128xf32>
    %1199 = arith.cmpf ogt, %1179, %1198 : vector<2x128xf32>
    %cst_261 = arith.constant 0.00999999977 : f32
    %1200 = vector.broadcast %cst_261 : f32 to vector<2x128xf32>
    %1201 = arith.mulf %1200, %1179 : vector<2x128xf32>
    %1202 = arith.select %1199, %1179, %1201 : vector<2x128xi1>, vector<2x128xf32>
    %1203 = arith.select %4, %1197, %1202 : vector<2x128xi1>, vector<2x128xf32>
    %1204 = vector.extract_strided_slice %1161 {offsets = [0, 0], sizes = [2, 128], strides = [1, 1]} : vector<8x128xf32> to vector<2x128xf32>
    %c22_262 = arith.constant 22 : index
    %c0_263 = arith.constant 0 : index
    %1205 = vector.load %arg6[%c22_262, %c0_263] : memref<60x128xf32, #tpu.memory_space<vmem>>, vector<2x128xf32>
    tpu.vector_store %arg6[%c22_262, %c0_263], %1191 {strides = array<i32>} : memref<60x128xf32, #tpu.memory_space<vmem>>, vector<2x128xf32>,
    %c24_264 = arith.constant 24 : index
    %c0_265 = arith.constant 0 : index
    %1206 = vector.load %arg6[%c24_264, %c0_265] : memref<60x128xf32, #tpu.memory_space<vmem>>, vector<2x128xf32>
    tpu.vector_store %arg6[%c24_264, %c0_265], %1204 {strides = array<i32>} : memref<60x128xf32, #tpu.memory_space<vmem>>, vector<2x128xf32>,
    %1207 = vector.extract_strided_slice %1156 {offsets = [2, 0], sizes = [2, 128], strides = [1, 1]} : vector<8x128xf32> to vector<2x128xf32>
    %1208 = vector.extract_strided_slice %1161 {offsets = [2, 0], sizes = [2, 128], strides = [1, 1]} : vector<8x128xf32> to vector<2x128xf32>
    %c26_266 = arith.constant 26 : index
    %c0_267 = arith.constant 0 : index
    %1209 = vector.load %arg6[%c26_266, %c0_267] : memref<60x128xf32, #tpu.memory_space<vmem>>, vector<2x128xf32>
    tpu.vector_store %arg6[%c26_266, %c0_267], %1207 {strides = array<i32>} : memref<60x128xf32, #tpu.memory_space<vmem>>, vector<2x128xf32>,
    %c28_268 = arith.constant 28 : index
    %c0_269 = arith.constant 0 : index
    %1210 = vector.load %arg6[%c28_268, %c0_269] : memref<60x128xf32, #tpu.memory_space<vmem>>, vector<2x128xf32>
    tpu.vector_store %arg6[%c28_268, %c0_269], %1208 {strides = array<i32>} : memref<60x128xf32, #tpu.memory_space<vmem>>, vector<2x128xf32>,
    %1211 = vector.extract_strided_slice %1156 {offsets = [4, 0], sizes = [2, 128], strides = [1, 1]} : vector<8x128xf32> to vector<2x128xf32>
    %1212 = vector.extract_strided_slice %1161 {offsets = [4, 0], sizes = [2, 128], strides = [1, 1]} : vector<8x128xf32> to vector<2x128xf32>
    %c30_270 = arith.constant 30 : index
    %c0_271 = arith.constant 0 : index
    %1213 = vector.load %arg6[%c30_270, %c0_271] : memref<60x128xf32, #tpu.memory_space<vmem>>, vector<2x128xf32>
    tpu.vector_store %arg6[%c30_270, %c0_271], %1211 {strides = array<i32>} : memref<60x128xf32, #tpu.memory_space<vmem>>, vector<2x128xf32>,
    %c32_272 = arith.constant 32 : index
    %c0_273 = arith.constant 0 : index
    %1214 = vector.load %arg6[%c32_272, %c0_273] : memref<60x128xf32, #tpu.memory_space<vmem>>, vector<2x128xf32>
    tpu.vector_store %arg6[%c32_272, %c0_273], %1212 {strides = array<i32>} : memref<60x128xf32, #tpu.memory_space<vmem>>, vector<2x128xf32>,
    %1215 = vector.extract_strided_slice %1156 {offsets = [6, 0], sizes = [2, 128], strides = [1, 1]} : vector<8x128xf32> to vector<2x128xf32>
    %c34_274 = arith.constant 34 : index
    %c0_275 = arith.constant 0 : index
    %1216 = vector.load %arg6[%c34_274, %c0_275] : memref<60x128xf32, #tpu.memory_space<vmem>>, vector<2x128xf32>
    tpu.vector_store %arg6[%c34_274, %c0_275], %1215 {strides = array<i32>} : memref<60x128xf32, #tpu.memory_space<vmem>>, vector<2x128xf32>,
    %c36_276 = arith.constant 36 : index
    %c0_277 = arith.constant 0 : index
    %1217 = vector.load %arg6[%c36_276, %c0_277] : memref<60x128xf32, #tpu.memory_space<vmem>>, vector<2x128xf32>
    tpu.vector_store %arg6[%c36_276, %c0_277], %1203 {strides = array<i32>} : memref<60x128xf32, #tpu.memory_space<vmem>>, vector<2x128xf32>,
    %1218 = vector.extract_strided_slice %1191 {offsets = [0, 0], sizes = [2, 1], strides = [1, 1]} : vector<2x128xf32> to vector<2x1xf32>
    %1219 = vector.extract_strided_slice %1203 {offsets = [0, 0], sizes = [2, 127], strides = [1, 1]} : vector<2x128xf32> to vector<2x127xf32>
    %1220 = tpu.concatenate %1218, %1219 in 1 : vector<2x1xf32>, vector<2x127xf32> -> vector<2x128xf32>
    %1221 = vector.extract_strided_slice %1191 {offsets = [0, 1], sizes = [2, 94], strides = [1, 1]} : vector<2x128xf32> to vector<2x94xf32>
    %1222 = vector.extract_strided_slice %1203 {offsets = [0, 94], sizes = [2, 1], strides = [1, 1]} : vector<2x128xf32> to vector<2x1xf32>
    %1223 = vector.extract_strided_slice %1203 {offsets = [0, 95], sizes = [2, 33], strides = [1, 1]} : vector<2x128xf32> to vector<2x33xf32>
    %1224 = tpu.concatenate %1221, %1222, %1223 in 1 : vector<2x94xf32>, vector<2x1xf32>, vector<2x33xf32> -> vector<2x128xf32>
    %c20_278 = arith.constant 20 : index
    %c0_279 = arith.constant 0 : index
    %1225 = vector.load %arg6[%c20_278, %c0_279] : memref<60x128xf32, #tpu.memory_space<vmem>>, vector<2x128xf32>
    tpu.vector_store %arg6[%c20_278, %c0_279], %1220 {strides = array<i32>} : memref<60x128xf32, #tpu.memory_space<vmem>>, vector<2x128xf32>,
    %c38_280 = arith.constant 38 : index
    %c0_281 = arith.constant 0 : index
    %1226 = vector.load %arg6[%c38_280, %c0_281] : memref<60x128xf32, #tpu.memory_space<vmem>>, vector<2x128xf32>
    tpu.vector_store %arg6[%c38_280, %c0_281], %1224 {strides = array<i32>} : memref<60x128xf32, #tpu.memory_space<vmem>>, vector<2x128xf32>,
    %1227 = vector.broadcast %923 : f32 to vector<8x128xf32>
    %1228 = arith.mulf %1227, %950 : vector<8x128xf32>
    %1229 = vector.broadcast %924 : f32 to vector<8x128xf32>
    %1230 = arith.mulf %1229, %951 : vector<8x128xf32>
    %1231 = arith.addf %1228, %1230 : vector<8x128xf32>
    %1232 = vector.broadcast %925 : f32 to vector<8x128xf32>
    %1233 = arith.mulf %1232, %952 : vector<8x128xf32>
    %1234 = arith.addf %1231, %1233 : vector<8x128xf32>
    %1235 = vector.broadcast %926 : f32 to vector<8x128xf32>
    %1236 = arith.mulf %1235, %950 : vector<8x128xf32>
    %1237 = vector.broadcast %927 : f32 to vector<8x128xf32>
    %1238 = arith.mulf %1237, %951 : vector<8x128xf32>
    %1239 = arith.addf %1236, %1238 : vector<8x128xf32>
    %1240 = vector.broadcast %928 : f32 to vector<8x128xf32>
    %1241 = arith.mulf %1240, %952 : vector<8x128xf32>
    %1242 = arith.addf %1239, %1241 : vector<8x128xf32>
    %1243 = vector.broadcast %931 : f32 to vector<8x128xf32>
    %1244 = arith.mulf %1243, %955 : vector<8x128xf32>
    %1245 = vector.broadcast %932 : f32 to vector<8x128xf32>
    %1246 = arith.mulf %1245, %956 : vector<8x128xf32>
    %1247 = arith.addf %1244, %1246 : vector<8x128xf32>
    %1248 = vector.broadcast %933 : f32 to vector<8x128xf32>
    %1249 = arith.mulf %1248, %957 : vector<8x128xf32>
    %1250 = arith.addf %1247, %1249 : vector<8x128xf32>
    %1251 = vector.broadcast %934 : f32 to vector<8x128xf32>
    %1252 = arith.mulf %1251, %955 : vector<8x128xf32>
    %1253 = vector.broadcast %935 : f32 to vector<8x128xf32>
    %1254 = arith.mulf %1253, %956 : vector<8x128xf32>
    %1255 = arith.addf %1252, %1254 : vector<8x128xf32>
    %1256 = vector.broadcast %936 : f32 to vector<8x128xf32>
    %1257 = arith.mulf %1256, %957 : vector<8x128xf32>
    %1258 = arith.addf %1255, %1257 : vector<8x128xf32>
    %1259 = arith.addf %1234, %1250 : vector<8x128xf32>
    %1260 = arith.addf %1242, %1258 : vector<8x128xf32>
    %1261 = vector.broadcast %939 : f32 to vector<8x128xf32>
    %1262 = arith.mulf %1261, %960 : vector<8x128xf32>
    %1263 = vector.broadcast %940 : f32 to vector<8x128xf32>
    %1264 = arith.mulf %1263, %961 : vector<8x128xf32>
    %1265 = arith.addf %1262, %1264 : vector<8x128xf32>
    %1266 = vector.broadcast %941 : f32 to vector<8x128xf32>
    %1267 = arith.mulf %1266, %962 : vector<8x128xf32>
    %1268 = arith.addf %1265, %1267 : vector<8x128xf32>
    %1269 = vector.broadcast %942 : f32 to vector<8x128xf32>
    %1270 = arith.mulf %1269, %960 : vector<8x128xf32>
    %1271 = vector.broadcast %943 : f32 to vector<8x128xf32>
    %1272 = arith.mulf %1271, %961 : vector<8x128xf32>
    %1273 = arith.addf %1270, %1272 : vector<8x128xf32>
    %1274 = vector.broadcast %944 : f32 to vector<8x128xf32>
    %1275 = arith.mulf %1274, %962 : vector<8x128xf32>
    %1276 = arith.addf %1273, %1275 : vector<8x128xf32>
    %1277 = arith.addf %1259, %1268 : vector<8x128xf32>
    %1278 = arith.addf %1260, %1276 : vector<8x128xf32>
    %1279 = vector.broadcast %949 : f32 to vector<8x128xf32>
    %1280 = arith.addf %1277, %1279 : vector<8x128xf32>
    %1281 = vector.broadcast %949 : f32 to vector<8x128xf32>
    %1282 = arith.addf %1278, %1281 : vector<8x128xf32>
    %cst_282 = arith.constant 0.000000e+00 : f32
    %1283 = vector.broadcast %cst_282 : f32 to vector<8x128xf32>
    %1284 = arith.cmpf ogt, %1280, %1283 : vector<8x128xf32>
    %cst_283 = arith.constant 0.00999999977 : f32
    %1285 = vector.broadcast %cst_283 : f32 to vector<8x128xf32>
    %1286 = arith.mulf %1285, %1280 : vector<8x128xf32>
    %1287 = arith.select %1284, %1280, %1286 : vector<8x128xi1>, vector<8x128xf32>
    %cst_284 = arith.constant 0.000000e+00 : f32
    %1288 = vector.broadcast %cst_284 : f32 to vector<8x128xf32>
    %1289 = arith.cmpf ogt, %1282, %1288 : vector<8x128xf32>
    %cst_285 = arith.constant 0.00999999977 : f32
    %1290 = vector.broadcast %cst_285 : f32 to vector<8x128xf32>
    %1291 = arith.mulf %1290, %1282 : vector<8x128xf32>
    %1292 = arith.select %1289, %1282, %1291 : vector<8x128xi1>, vector<8x128xf32>
    %1293 = vector.broadcast %929 : f32 to vector<2x128xf32>
    %1294 = arith.mulf %1293, %953 : vector<2x128xf32>
    %1295 = vector.broadcast %930 : f32 to vector<2x128xf32>
    %1296 = arith.mulf %1295, %954 : vector<2x128xf32>
    %1297 = vector.broadcast %937 : f32 to vector<2x128xf32>
    %1298 = arith.mulf %1297, %958 : vector<2x128xf32>
    %1299 = vector.broadcast %938 : f32 to vector<2x128xf32>
    %1300 = arith.mulf %1299, %959 : vector<2x128xf32>
    %1301 = arith.addf %1294, %1298 : vector<2x128xf32>
    %1302 = arith.addf %1296, %1300 : vector<2x128xf32>
    %1303 = vector.broadcast %945 : f32 to vector<2x128xf32>
    %1304 = arith.mulf %1303, %963 : vector<2x128xf32>
    %1305 = vector.broadcast %946 : f32 to vector<2x128xf32>
    %1306 = arith.mulf %1305, %964 : vector<2x128xf32>
    %1307 = arith.addf %1301, %1304 : vector<2x128xf32>
    %1308 = arith.addf %1302, %1306 : vector<2x128xf32>
    %1309 = vector.extract_strided_slice %1280 {offsets = [0, 0], sizes = [2, 128], strides = [1, 1]} : vector<8x128xf32> to vector<2x128xf32>
    %1310 = vector.extract_strided_slice %1282 {offsets = [6, 0], sizes = [2, 128], strides = [1, 1]} : vector<8x128xf32> to vector<2x128xf32>
    %1311 = arith.subf %1309, %1307 : vector<2x128xf32>
    %cst_286 = arith.constant 0.000000e+00 : f32
    %1312 = vector.broadcast %cst_286 : f32 to vector<2x128xf32>
    %1313 = arith.cmpf ogt, %1311, %1312 : vector<2x128xf32>
    %cst_287 = arith.constant 0.00999999977 : f32
    %1314 = vector.broadcast %cst_287 : f32 to vector<2x128xf32>
    %1315 = arith.mulf %1314, %1311 : vector<2x128xf32>
    %1316 = arith.select %1313, %1311, %1315 : vector<2x128xi1>, vector<2x128xf32>
    %cst_288 = arith.constant 0.000000e+00 : f32
    %1317 = vector.broadcast %cst_288 : f32 to vector<2x128xf32>
    %1318 = arith.cmpf ogt, %1309, %1317 : vector<2x128xf32>
    %cst_289 = arith.constant 0.00999999977 : f32
    %1319 = vector.broadcast %cst_289 : f32 to vector<2x128xf32>
    %1320 = arith.mulf %1319, %1309 : vector<2x128xf32>
    %1321 = arith.select %1318, %1309, %1320 : vector<2x128xi1>, vector<2x128xf32>
    %1322 = arith.select %2, %1316, %1321 : vector<2x128xi1>, vector<2x128xf32>
    %1323 = arith.subf %1310, %1308 : vector<2x128xf32>
    %cst_290 = arith.constant 0.000000e+00 : f32
    %1324 = vector.broadcast %cst_290 : f32 to vector<2x128xf32>
    %1325 = arith.cmpf ogt, %1323, %1324 : vector<2x128xf32>
    %cst_291 = arith.constant 0.00999999977 : f32
    %1326 = vector.broadcast %cst_291 : f32 to vector<2x128xf32>
    %1327 = arith.mulf %1326, %1323 : vector<2x128xf32>
    %1328 = arith.select %1325, %1323, %1327 : vector<2x128xi1>, vector<2x128xf32>
    %cst_292 = arith.constant 0.000000e+00 : f32
    %1329 = vector.broadcast %cst_292 : f32 to vector<2x128xf32>
    %1330 = arith.cmpf ogt, %1310, %1329 : vector<2x128xf32>
    %cst_293 = arith.constant 0.00999999977 : f32
    %1331 = vector.broadcast %cst_293 : f32 to vector<2x128xf32>
    %1332 = arith.mulf %1331, %1310 : vector<2x128xf32>
    %1333 = arith.select %1330, %1310, %1332 : vector<2x128xi1>, vector<2x128xf32>
    %1334 = arith.select %4, %1328, %1333 : vector<2x128xi1>, vector<2x128xf32>
    %1335 = vector.extract_strided_slice %1292 {offsets = [0, 0], sizes = [2, 128], strides = [1, 1]} : vector<8x128xf32> to vector<2x128xf32>
    %c42_294 = arith.constant 42 : index
    %c0_295 = arith.constant 0 : index
    %1336 = vector.load %arg6[%c42_294, %c0_295] : memref<60x128xf32, #tpu.memory_space<vmem>>, vector<2x128xf32>
    tpu.vector_store %arg6[%c42_294, %c0_295], %1322 {strides = array<i32>} : memref<60x128xf32, #tpu.memory_space<vmem>>, vector<2x128xf32>,
    %c44_296 = arith.constant 44 : index
    %c0_297 = arith.constant 0 : index
    %1337 = vector.load %arg6[%c44_296, %c0_297] : memref<60x128xf32, #tpu.memory_space<vmem>>, vector<2x128xf32>
    tpu.vector_store %arg6[%c44_296, %c0_297], %1335 {strides = array<i32>} : memref<60x128xf32, #tpu.memory_space<vmem>>, vector<2x128xf32>,
    %1338 = vector.extract_strided_slice %1287 {offsets = [2, 0], sizes = [2, 128], strides = [1, 1]} : vector<8x128xf32> to vector<2x128xf32>
    %1339 = vector.extract_strided_slice %1292 {offsets = [2, 0], sizes = [2, 128], strides = [1, 1]} : vector<8x128xf32> to vector<2x128xf32>
    %c46_298 = arith.constant 46 : index
    %c0_299 = arith.constant 0 : index
    %1340 = vector.load %arg6[%c46_298, %c0_299] : memref<60x128xf32, #tpu.memory_space<vmem>>, vector<2x128xf32>
    tpu.vector_store %arg6[%c46_298, %c0_299], %1338 {strides = array<i32>} : memref<60x128xf32, #tpu.memory_space<vmem>>, vector<2x128xf32>,
    %c48_300 = arith.constant 48 : index
    %c0_301 = arith.constant 0 : index
    %1341 = vector.load %arg6[%c48_300, %c0_301] : memref<60x128xf32, #tpu.memory_space<vmem>>, vector<2x128xf32>
    tpu.vector_store %arg6[%c48_300, %c0_301], %1339 {strides = array<i32>} : memref<60x128xf32, #tpu.memory_space<vmem>>, vector<2x128xf32>,
    %1342 = vector.extract_strided_slice %1287 {offsets = [4, 0], sizes = [2, 128], strides = [1, 1]} : vector<8x128xf32> to vector<2x128xf32>
    %1343 = vector.extract_strided_slice %1292 {offsets = [4, 0], sizes = [2, 128], strides = [1, 1]} : vector<8x128xf32> to vector<2x128xf32>
    %c50_302 = arith.constant 50 : index
    %c0_303 = arith.constant 0 : index
    %1344 = vector.load %arg6[%c50_302, %c0_303] : memref<60x128xf32, #tpu.memory_space<vmem>>, vector<2x128xf32>
    tpu.vector_store %arg6[%c50_302, %c0_303], %1342 {strides = array<i32>} : memref<60x128xf32, #tpu.memory_space<vmem>>, vector<2x128xf32>,
    %c52_304 = arith.constant 52 : index
    %c0_305 = arith.constant 0 : index
    %1345 = vector.load %arg6[%c52_304, %c0_305] : memref<60x128xf32, #tpu.memory_space<vmem>>, vector<2x128xf32>
    tpu.vector_store %arg6[%c52_304, %c0_305], %1343 {strides = array<i32>} : memref<60x128xf32, #tpu.memory_space<vmem>>, vector<2x128xf32>,
    %1346 = vector.extract_strided_slice %1287 {offsets = [6, 0], sizes = [2, 128], strides = [1, 1]} : vector<8x128xf32> to vector<2x128xf32>
    %c54_306 = arith.constant 54 : index
    %c0_307 = arith.constant 0 : index
    %1347 = vector.load %arg6[%c54_306, %c0_307] : memref<60x128xf32, #tpu.memory_space<vmem>>, vector<2x128xf32>
    tpu.vector_store %arg6[%c54_306, %c0_307], %1346 {strides = array<i32>} : memref<60x128xf32, #tpu.memory_space<vmem>>, vector<2x128xf32>,
    %c56_308 = arith.constant 56 : index
    %c0_309 = arith.constant 0 : index
    %1348 = vector.load %arg6[%c56_308, %c0_309] : memref<60x128xf32, #tpu.memory_space<vmem>>, vector<2x128xf32>
    tpu.vector_store %arg6[%c56_308, %c0_309], %1334 {strides = array<i32>} : memref<60x128xf32, #tpu.memory_space<vmem>>, vector<2x128xf32>,
    %1349 = vector.extract_strided_slice %1322 {offsets = [0, 0], sizes = [2, 1], strides = [1, 1]} : vector<2x128xf32> to vector<2x1xf32>
    %1350 = vector.extract_strided_slice %1334 {offsets = [0, 0], sizes = [2, 127], strides = [1, 1]} : vector<2x128xf32> to vector<2x127xf32>
    %1351 = tpu.concatenate %1349, %1350 in 1 : vector<2x1xf32>, vector<2x127xf32> -> vector<2x128xf32>
    %1352 = vector.extract_strided_slice %1322 {offsets = [0, 1], sizes = [2, 94], strides = [1, 1]} : vector<2x128xf32> to vector<2x94xf32>
    %1353 = vector.extract_strided_slice %1334 {offsets = [0, 94], sizes = [2, 1], strides = [1, 1]} : vector<2x128xf32> to vector<2x1xf32>
    %1354 = vector.extract_strided_slice %1334 {offsets = [0, 95], sizes = [2, 33], strides = [1, 1]} : vector<2x128xf32> to vector<2x33xf32>
    %1355 = tpu.concatenate %1352, %1353, %1354 in 1 : vector<2x94xf32>, vector<2x1xf32>, vector<2x33xf32> -> vector<2x128xf32>
    %c40_310 = arith.constant 40 : index
    %c0_311 = arith.constant 0 : index
    %1356 = vector.load %arg6[%c40_310, %c0_311] : memref<60x128xf32, #tpu.memory_space<vmem>>, vector<2x128xf32>
    tpu.vector_store %arg6[%c40_310, %c0_311], %1351 {strides = array<i32>} : memref<60x128xf32, #tpu.memory_space<vmem>>, vector<2x128xf32>,
    %c58_312 = arith.constant 58 : index
    %c0_313 = arith.constant 0 : index
    %1357 = vector.load %arg6[%c58_312, %c0_313] : memref<60x128xf32, #tpu.memory_space<vmem>>, vector<2x128xf32>
    tpu.vector_store %arg6[%c58_312, %c0_313], %1355 {strides = array<i32>} : memref<60x128xf32, #tpu.memory_space<vmem>>, vector<2x128xf32>,
    %c216 = arith.constant 216 : index
    %1358 = memref.load %arg0[%c216] : memref<360xf32, #tpu.memory_space<smem>>
    %c217 = arith.constant 217 : index
    %1359 = memref.load %arg0[%c217] : memref<360xf32, #tpu.memory_space<smem>>
    %c218 = arith.constant 218 : index
    %1360 = memref.load %arg0[%c218] : memref<360xf32, #tpu.memory_space<smem>>
    %c219 = arith.constant 219 : index
    %1361 = memref.load %arg0[%c219] : memref<360xf32, #tpu.memory_space<smem>>
    %c220 = arith.constant 220 : index
    %1362 = memref.load %arg0[%c220] : memref<360xf32, #tpu.memory_space<smem>>
    %c221 = arith.constant 221 : index
    %1363 = memref.load %arg0[%c221] : memref<360xf32, #tpu.memory_space<smem>>
    %c222 = arith.constant 222 : index
    %1364 = memref.load %arg0[%c222] : memref<360xf32, #tpu.memory_space<smem>>
    %c223 = arith.constant 223 : index
    %1365 = memref.load %arg0[%c223] : memref<360xf32, #tpu.memory_space<smem>>
    %c224 = arith.constant 224 : index
    %1366 = memref.load %arg0[%c224] : memref<360xf32, #tpu.memory_space<smem>>
    %c225 = arith.constant 225 : index
    %1367 = memref.load %arg0[%c225] : memref<360xf32, #tpu.memory_space<smem>>
    %c226 = arith.constant 226 : index
    %1368 = memref.load %arg0[%c226] : memref<360xf32, #tpu.memory_space<smem>>
    %c227 = arith.constant 227 : index
    %1369 = memref.load %arg0[%c227] : memref<360xf32, #tpu.memory_space<smem>>
    %c228 = arith.constant 228 : index
    %1370 = memref.load %arg0[%c228] : memref<360xf32, #tpu.memory_space<smem>>
    %c229 = arith.constant 229 : index
    %1371 = memref.load %arg0[%c229] : memref<360xf32, #tpu.memory_space<smem>>
    %c230 = arith.constant 230 : index
    %1372 = memref.load %arg0[%c230] : memref<360xf32, #tpu.memory_space<smem>>
    %c231 = arith.constant 231 : index
    %1373 = memref.load %arg0[%c231] : memref<360xf32, #tpu.memory_space<smem>>
    %c232 = arith.constant 232 : index
    %1374 = memref.load %arg0[%c232] : memref<360xf32, #tpu.memory_space<smem>>
    %c233 = arith.constant 233 : index
    %1375 = memref.load %arg0[%c233] : memref<360xf32, #tpu.memory_space<smem>>
    %c234 = arith.constant 234 : index
    %1376 = memref.load %arg0[%c234] : memref<360xf32, #tpu.memory_space<smem>>
    %c235 = arith.constant 235 : index
    %1377 = memref.load %arg0[%c235] : memref<360xf32, #tpu.memory_space<smem>>
    %c236 = arith.constant 236 : index
    %1378 = memref.load %arg0[%c236] : memref<360xf32, #tpu.memory_space<smem>>
    %c237 = arith.constant 237 : index
    %1379 = memref.load %arg0[%c237] : memref<360xf32, #tpu.memory_space<smem>>
    %c238 = arith.constant 238 : index
    %1380 = memref.load %arg0[%c238] : memref<360xf32, #tpu.memory_space<smem>>
    %c239 = arith.constant 239 : index
    %1381 = memref.load %arg0[%c239] : memref<360xf32, #tpu.memory_space<smem>>
    %c240 = arith.constant 240 : index
    %1382 = memref.load %arg0[%c240] : memref<360xf32, #tpu.memory_space<smem>>
    %c241 = arith.constant 241 : index
    %1383 = memref.load %arg0[%c241] : memref<360xf32, #tpu.memory_space<smem>>
    %c242 = arith.constant 242 : index
    %1384 = memref.load %arg0[%c242] : memref<360xf32, #tpu.memory_space<smem>>
    %c243 = arith.constant 243 : index
    %1385 = memref.load %arg0[%c243] : memref<360xf32, #tpu.memory_space<smem>>
    %c244 = arith.constant 244 : index
    %1386 = memref.load %arg0[%c244] : memref<360xf32, #tpu.memory_space<smem>>
    %c245 = arith.constant 245 : index
    %1387 = memref.load %arg0[%c245] : memref<360xf32, #tpu.memory_space<smem>>
    %c246 = arith.constant 246 : index
    %1388 = memref.load %arg0[%c246] : memref<360xf32, #tpu.memory_space<smem>>
    %c247 = arith.constant 247 : index
    %1389 = memref.load %arg0[%c247] : memref<360xf32, #tpu.memory_space<smem>>
    %c248 = arith.constant 248 : index
    %1390 = memref.load %arg0[%c248] : memref<360xf32, #tpu.memory_space<smem>>
    %c249 = arith.constant 249 : index
    %1391 = memref.load %arg0[%c249] : memref<360xf32, #tpu.memory_space<smem>>
    %c250 = arith.constant 250 : index
    %1392 = memref.load %arg0[%c250] : memref<360xf32, #tpu.memory_space<smem>>
    %c251 = arith.constant 251 : index
    %1393 = memref.load %arg0[%c251] : memref<360xf32, #tpu.memory_space<smem>>
    %c252 = arith.constant 252 : index
    %1394 = memref.load %arg0[%c252] : memref<360xf32, #tpu.memory_space<smem>>
    %c253 = arith.constant 253 : index
    %1395 = memref.load %arg0[%c253] : memref<360xf32, #tpu.memory_space<smem>>
    %c254 = arith.constant 254 : index
    %1396 = memref.load %arg0[%c254] : memref<360xf32, #tpu.memory_space<smem>>
    %c255 = arith.constant 255 : index
    %1397 = memref.load %arg0[%c255] : memref<360xf32, #tpu.memory_space<smem>>
    %c256 = arith.constant 256 : index
    %1398 = memref.load %arg0[%c256] : memref<360xf32, #tpu.memory_space<smem>>
    %c257 = arith.constant 257 : index
    %1399 = memref.load %arg0[%c257] : memref<360xf32, #tpu.memory_space<smem>>
    %c258 = arith.constant 258 : index
    %1400 = memref.load %arg0[%c258] : memref<360xf32, #tpu.memory_space<smem>>
    %c259 = arith.constant 259 : index
    %1401 = memref.load %arg0[%c259] : memref<360xf32, #tpu.memory_space<smem>>
    %c260 = arith.constant 260 : index
    %1402 = memref.load %arg0[%c260] : memref<360xf32, #tpu.memory_space<smem>>
    %c261 = arith.constant 261 : index
    %1403 = memref.load %arg0[%c261] : memref<360xf32, #tpu.memory_space<smem>>
    %c262 = arith.constant 262 : index
    %1404 = memref.load %arg0[%c262] : memref<360xf32, #tpu.memory_space<smem>>
    %c263 = arith.constant 263 : index
    %1405 = memref.load %arg0[%c263] : memref<360xf32, #tpu.memory_space<smem>>
    %c264 = arith.constant 264 : index
    %1406 = memref.load %arg0[%c264] : memref<360xf32, #tpu.memory_space<smem>>
    %c265 = arith.constant 265 : index
    %1407 = memref.load %arg0[%c265] : memref<360xf32, #tpu.memory_space<smem>>
    %c266 = arith.constant 266 : index
    %1408 = memref.load %arg0[%c266] : memref<360xf32, #tpu.memory_space<smem>>
    %c267 = arith.constant 267 : index
    %1409 = memref.load %arg0[%c267] : memref<360xf32, #tpu.memory_space<smem>>
    %c268 = arith.constant 268 : index
    %1410 = memref.load %arg0[%c268] : memref<360xf32, #tpu.memory_space<smem>>
    %c269 = arith.constant 269 : index
    %1411 = memref.load %arg0[%c269] : memref<360xf32, #tpu.memory_space<smem>>
    %c270 = arith.constant 270 : index
    %1412 = memref.load %arg0[%c270] : memref<360xf32, #tpu.memory_space<smem>>
    %c271 = arith.constant 271 : index
    %1413 = memref.load %arg0[%c271] : memref<360xf32, #tpu.memory_space<smem>>
    %c272 = arith.constant 272 : index
    %1414 = memref.load %arg0[%c272] : memref<360xf32, #tpu.memory_space<smem>>
    %c273 = arith.constant 273 : index
    %1415 = memref.load %arg0[%c273] : memref<360xf32, #tpu.memory_space<smem>>
    %c274 = arith.constant 274 : index
    %1416 = memref.load %arg0[%c274] : memref<360xf32, #tpu.memory_space<smem>>
    %c275 = arith.constant 275 : index
    %1417 = memref.load %arg0[%c275] : memref<360xf32, #tpu.memory_space<smem>>
    %c276 = arith.constant 276 : index
    %1418 = memref.load %arg0[%c276] : memref<360xf32, #tpu.memory_space<smem>>
    %c277 = arith.constant 277 : index
    %1419 = memref.load %arg0[%c277] : memref<360xf32, #tpu.memory_space<smem>>
    %c278 = arith.constant 278 : index
    %1420 = memref.load %arg0[%c278] : memref<360xf32, #tpu.memory_space<smem>>
    %c279 = arith.constant 279 : index
    %1421 = memref.load %arg0[%c279] : memref<360xf32, #tpu.memory_space<smem>>
    %c280 = arith.constant 280 : index
    %1422 = memref.load %arg0[%c280] : memref<360xf32, #tpu.memory_space<smem>>
    %c281 = arith.constant 281 : index
    %1423 = memref.load %arg0[%c281] : memref<360xf32, #tpu.memory_space<smem>>
    %c282 = arith.constant 282 : index
    %1424 = memref.load %arg0[%c282] : memref<360xf32, #tpu.memory_space<smem>>
    %c283 = arith.constant 283 : index
    %1425 = memref.load %arg0[%c283] : memref<360xf32, #tpu.memory_space<smem>>
    %c284 = arith.constant 284 : index
    %1426 = memref.load %arg0[%c284] : memref<360xf32, #tpu.memory_space<smem>>
    %c285 = arith.constant 285 : index
    %1427 = memref.load %arg0[%c285] : memref<360xf32, #tpu.memory_space<smem>>
    %c286 = arith.constant 286 : index
    %1428 = memref.load %arg0[%c286] : memref<360xf32, #tpu.memory_space<smem>>
    %c287 = arith.constant 287 : index
    %1429 = memref.load %arg0[%c287] : memref<360xf32, #tpu.memory_space<smem>>
    %c9_314 = arith.constant 9 : index
    %1430 = memref.load %arg1[%c9_314] : memref<15xf32, #tpu.memory_space<smem>>
    %c10_315 = arith.constant 10 : index
    %1431 = memref.load %arg1[%c10_315] : memref<15xf32, #tpu.memory_space<smem>>
    %c11_316 = arith.constant 11 : index
    %1432 = memref.load %arg1[%c11_316] : memref<15xf32, #tpu.memory_space<smem>>
    %c0_317 = arith.constant 0 : index
    %c0_318 = arith.constant 0 : index
    %1433 = vector.load %arg6[%c0_317, %c0_318] : memref<60x128xf32, #tpu.memory_space<vmem>>, vector<16x128xf32>
    %c2_319 = arith.constant 2 : index
    %c0_320 = arith.constant 0 : index
    %1434 = vector.load %arg6[%c2_319, %c0_320] : memref<60x128xf32, #tpu.memory_space<vmem>>, vector<16x128xf32>
    %c4_321 = arith.constant 4 : index
    %c0_322 = arith.constant 0 : index
    %1435 = vector.load %arg6[%c4_321, %c0_322] : memref<60x128xf32, #tpu.memory_space<vmem>>, vector<16x128xf32>
    %c2_323 = arith.constant 2 : index
    %c0_324 = arith.constant 0 : index
    %1436 = vector.load %arg6[%c2_323, %c0_324] : memref<60x128xf32, #tpu.memory_space<vmem>>, vector<2x128xf32>
    %c16_325 = arith.constant 16 : index
    %c0_326 = arith.constant 0 : index
    %1437 = vector.load %arg6[%c16_325, %c0_326] : memref<60x128xf32, #tpu.memory_space<vmem>>, vector<2x128xf32>
    %c20_327 = arith.constant 20 : index
    %c0_328 = arith.constant 0 : index
    %1438 = vector.load %arg6[%c20_327, %c0_328] : memref<60x128xf32, #tpu.memory_space<vmem>>, vector<16x128xf32>
    %c22_329 = arith.constant 22 : index
    %c0_330 = arith.constant 0 : index
    %1439 = vector.load %arg6[%c22_329, %c0_330] : memref<60x128xf32, #tpu.memory_space<vmem>>, vector<16x128xf32>
    %c24_331 = arith.constant 24 : index
    %c0_332 = arith.constant 0 : index
    %1440 = vector.load %arg6[%c24_331, %c0_332] : memref<60x128xf32, #tpu.memory_space<vmem>>, vector<16x128xf32>
    %c22_333 = arith.constant 22 : index
    %c0_334 = arith.constant 0 : index
    %1441 = vector.load %arg6[%c22_333, %c0_334] : memref<60x128xf32, #tpu.memory_space<vmem>>, vector<2x128xf32>
    %c36_335 = arith.constant 36 : index
    %c0_336 = arith.constant 0 : index
    %1442 = vector.load %arg6[%c36_335, %c0_336] : memref<60x128xf32, #tpu.memory_space<vmem>>, vector<2x128xf32>
    %c40_337 = arith.constant 40 : index
    %c0_338 = arith.constant 0 : index
    %1443 = vector.load %arg6[%c40_337, %c0_338] : memref<60x128xf32, #tpu.memory_space<vmem>>, vector<16x128xf32>
    %c42_339 = arith.constant 42 : index
    %c0_340 = arith.constant 0 : index
    %1444 = vector.load %arg6[%c42_339, %c0_340] : memref<60x128xf32, #tpu.memory_space<vmem>>, vector<16x128xf32>
    %c44_341 = arith.constant 44 : index
    %c0_342 = arith.constant 0 : index
    %1445 = vector.load %arg6[%c44_341, %c0_342] : memref<60x128xf32, #tpu.memory_space<vmem>>, vector<16x128xf32>
    %c42_343 = arith.constant 42 : index
    %c0_344 = arith.constant 0 : index
    %1446 = vector.load %arg6[%c42_343, %c0_344] : memref<60x128xf32, #tpu.memory_space<vmem>>, vector<2x128xf32>
    %c56_345 = arith.constant 56 : index
    %c0_346 = arith.constant 0 : index
    %1447 = vector.load %arg6[%c56_345, %c0_346] : memref<60x128xf32, #tpu.memory_space<vmem>>, vector<2x128xf32>
    %1448 = vector.broadcast %1358 : f32 to vector<16x128xf32>
    %1449 = arith.mulf %1448, %1433 : vector<16x128xf32>
    %1450 = vector.broadcast %1359 : f32 to vector<16x128xf32>
    %1451 = arith.mulf %1450, %1434 : vector<16x128xf32>
    %1452 = arith.addf %1449, %1451 : vector<16x128xf32>
    %1453 = vector.broadcast %1360 : f32 to vector<16x128xf32>
    %1454 = arith.mulf %1453, %1435 : vector<16x128xf32>
    %1455 = arith.addf %1452, %1454 : vector<16x128xf32>
    %1456 = vector.broadcast %1361 : f32 to vector<16x128xf32>
    %1457 = arith.mulf %1456, %1433 : vector<16x128xf32>
    %1458 = vector.broadcast %1362 : f32 to vector<16x128xf32>
    %1459 = arith.mulf %1458, %1434 : vector<16x128xf32>
    %1460 = arith.addf %1457, %1459 : vector<16x128xf32>
    %1461 = vector.broadcast %1363 : f32 to vector<16x128xf32>
    %1462 = arith.mulf %1461, %1435 : vector<16x128xf32>
    %1463 = arith.addf %1460, %1462 : vector<16x128xf32>
    %1464 = vector.broadcast %1366 : f32 to vector<16x128xf32>
    %1465 = arith.mulf %1464, %1438 : vector<16x128xf32>
    %1466 = vector.broadcast %1367 : f32 to vector<16x128xf32>
    %1467 = arith.mulf %1466, %1439 : vector<16x128xf32>
    %1468 = arith.addf %1465, %1467 : vector<16x128xf32>
    %1469 = vector.broadcast %1368 : f32 to vector<16x128xf32>
    %1470 = arith.mulf %1469, %1440 : vector<16x128xf32>
    %1471 = arith.addf %1468, %1470 : vector<16x128xf32>
    %1472 = vector.broadcast %1369 : f32 to vector<16x128xf32>
    %1473 = arith.mulf %1472, %1438 : vector<16x128xf32>
    %1474 = vector.broadcast %1370 : f32 to vector<16x128xf32>
    %1475 = arith.mulf %1474, %1439 : vector<16x128xf32>
    %1476 = arith.addf %1473, %1475 : vector<16x128xf32>
    %1477 = vector.broadcast %1371 : f32 to vector<16x128xf32>
    %1478 = arith.mulf %1477, %1440 : vector<16x128xf32>
    %1479 = arith.addf %1476, %1478 : vector<16x128xf32>
    %1480 = arith.addf %1455, %1471 : vector<16x128xf32>
    %1481 = arith.addf %1463, %1479 : vector<16x128xf32>
    %1482 = vector.broadcast %1374 : f32 to vector<16x128xf32>
    %1483 = arith.mulf %1482, %1443 : vector<16x128xf32>
    %1484 = vector.broadcast %1375 : f32 to vector<16x128xf32>
    %1485 = arith.mulf %1484, %1444 : vector<16x128xf32>
    %1486 = arith.addf %1483, %1485 : vector<16x128xf32>
    %1487 = vector.broadcast %1376 : f32 to vector<16x128xf32>
    %1488 = arith.mulf %1487, %1445 : vector<16x128xf32>
    %1489 = arith.addf %1486, %1488 : vector<16x128xf32>
    %1490 = vector.broadcast %1377 : f32 to vector<16x128xf32>
    %1491 = arith.mulf %1490, %1443 : vector<16x128xf32>
    %1492 = vector.broadcast %1378 : f32 to vector<16x128xf32>
    %1493 = arith.mulf %1492, %1444 : vector<16x128xf32>
    %1494 = arith.addf %1491, %1493 : vector<16x128xf32>
    %1495 = vector.broadcast %1379 : f32 to vector<16x128xf32>
    %1496 = arith.mulf %1495, %1445 : vector<16x128xf32>
    %1497 = arith.addf %1494, %1496 : vector<16x128xf32>
    %1498 = arith.addf %1480, %1489 : vector<16x128xf32>
    %1499 = arith.addf %1481, %1497 : vector<16x128xf32>
    %1500 = vector.broadcast %1430 : f32 to vector<16x128xf32>
    %1501 = arith.addf %1498, %1500 : vector<16x128xf32>
    %1502 = vector.broadcast %1430 : f32 to vector<16x128xf32>
    %1503 = arith.addf %1499, %1502 : vector<16x128xf32>
    %cst_347 = arith.constant 0.000000e+00 : f32
    %1504 = vector.broadcast %cst_347 : f32 to vector<16x128xf32>
    %1505 = arith.cmpf ogt, %1501, %1504 : vector<16x128xf32>
    %cst_348 = arith.constant 0.00999999977 : f32
    %1506 = vector.broadcast %cst_348 : f32 to vector<16x128xf32>
    %1507 = arith.mulf %1506, %1501 : vector<16x128xf32>
    %1508 = arith.select %1505, %1501, %1507 : vector<16x128xi1>, vector<16x128xf32>
    %cst_349 = arith.constant 0.000000e+00 : f32
    %1509 = vector.broadcast %cst_349 : f32 to vector<16x128xf32>
    %1510 = arith.cmpf ogt, %1503, %1509 : vector<16x128xf32>
    %cst_350 = arith.constant 0.00999999977 : f32
    %1511 = vector.broadcast %cst_350 : f32 to vector<16x128xf32>
    %1512 = arith.mulf %1511, %1503 : vector<16x128xf32>
    %1513 = arith.select %1510, %1503, %1512 : vector<16x128xi1>, vector<16x128xf32>
    %1514 = vector.broadcast %1364 : f32 to vector<2x128xf32>
    %1515 = arith.mulf %1514, %1436 : vector<2x128xf32>
    %1516 = vector.broadcast %1365 : f32 to vector<2x128xf32>
    %1517 = arith.mulf %1516, %1437 : vector<2x128xf32>
    %1518 = vector.broadcast %1372 : f32 to vector<2x128xf32>
    %1519 = arith.mulf %1518, %1441 : vector<2x128xf32>
    %1520 = vector.broadcast %1373 : f32 to vector<2x128xf32>
    %1521 = arith.mulf %1520, %1442 : vector<2x128xf32>
    %1522 = arith.addf %1515, %1519 : vector<2x128xf32>
    %1523 = arith.addf %1517, %1521 : vector<2x128xf32>
    %1524 = vector.broadcast %1380 : f32 to vector<2x128xf32>
    %1525 = arith.mulf %1524, %1446 : vector<2x128xf32>
    %1526 = vector.broadcast %1381 : f32 to vector<2x128xf32>
    %1527 = arith.mulf %1526, %1447 : vector<2x128xf32>
    %1528 = arith.addf %1522, %1525 : vector<2x128xf32>
    %1529 = arith.addf %1523, %1527 : vector<2x128xf32>
    %1530 = vector.extract_strided_slice %1501 {offsets = [0, 0], sizes = [2, 128], strides = [1, 1]} : vector<16x128xf32> to vector<2x128xf32>
    %1531 = vector.extract_strided_slice %1503 {offsets = [14, 0], sizes = [2, 128], strides = [1, 1]} : vector<16x128xf32> to vector<2x128xf32>
    %1532 = arith.subf %1530, %1528 : vector<2x128xf32>
    %cst_351 = arith.constant 0.000000e+00 : f32
    %1533 = vector.broadcast %cst_351 : f32 to vector<2x128xf32>
    %1534 = arith.cmpf ogt, %1532, %1533 : vector<2x128xf32>
    %cst_352 = arith.constant 0.00999999977 : f32
    %1535 = vector.broadcast %cst_352 : f32 to vector<2x128xf32>
    %1536 = arith.mulf %1535, %1532 : vector<2x128xf32>
    %1537 = arith.select %1534, %1532, %1536 : vector<2x128xi1>, vector<2x128xf32>
    %cst_353 = arith.constant 0.000000e+00 : f32
    %1538 = vector.broadcast %cst_353 : f32 to vector<2x128xf32>
    %1539 = arith.cmpf ogt, %1530, %1538 : vector<2x128xf32>
    %cst_354 = arith.constant 0.00999999977 : f32
    %1540 = vector.broadcast %cst_354 : f32 to vector<2x128xf32>
    %1541 = arith.mulf %1540, %1530 : vector<2x128xf32>
    %1542 = arith.select %1539, %1530, %1541 : vector<2x128xi1>, vector<2x128xf32>
    %1543 = arith.select %2, %1537, %1542 : vector<2x128xi1>, vector<2x128xf32>
    %1544 = arith.subf %1531, %1529 : vector<2x128xf32>
    %cst_355 = arith.constant 0.000000e+00 : f32
    %1545 = vector.broadcast %cst_355 : f32 to vector<2x128xf32>
    %1546 = arith.cmpf ogt, %1544, %1545 : vector<2x128xf32>
    %cst_356 = arith.constant 0.00999999977 : f32
    %1547 = vector.broadcast %cst_356 : f32 to vector<2x128xf32>
    %1548 = arith.mulf %1547, %1544 : vector<2x128xf32>
    %1549 = arith.select %1546, %1544, %1548 : vector<2x128xi1>, vector<2x128xf32>
    %cst_357 = arith.constant 0.000000e+00 : f32
    %1550 = vector.broadcast %cst_357 : f32 to vector<2x128xf32>
    %1551 = arith.cmpf ogt, %1531, %1550 : vector<2x128xf32>
    %cst_358 = arith.constant 0.00999999977 : f32
    %1552 = vector.broadcast %cst_358 : f32 to vector<2x128xf32>
    %1553 = arith.mulf %1552, %1531 : vector<2x128xf32>
    %1554 = arith.select %1551, %1531, %1553 : vector<2x128xi1>, vector<2x128xf32>
    %1555 = arith.select %4, %1549, %1554 : vector<2x128xi1>, vector<2x128xf32>
    %1556 = vector.extract_strided_slice %1513 {offsets = [0, 0], sizes = [2, 128], strides = [1, 1]} : vector<16x128xf32> to vector<2x128xf32>
    %c2_359 = arith.constant 2 : index
    %c0_360 = arith.constant 0 : index
    %1557 = vector.load %arg7[%c2_359, %c0_360] : memref<108x128xf32, #tpu.memory_space<vmem>>, vector<2x128xf32>
    tpu.vector_store %arg7[%c2_359, %c0_360], %1543 {strides = array<i32>} : memref<108x128xf32, #tpu.memory_space<vmem>>, vector<2x128xf32>,
    %c4_361 = arith.constant 4 : index
    %c0_362 = arith.constant 0 : index
    %1558 = vector.load %arg7[%c4_361, %c0_362] : memref<108x128xf32, #tpu.memory_space<vmem>>, vector<2x128xf32>
    tpu.vector_store %arg7[%c4_361, %c0_362], %1556 {strides = array<i32>} : memref<108x128xf32, #tpu.memory_space<vmem>>, vector<2x128xf32>,
    %1559 = vector.extract_strided_slice %1508 {offsets = [2, 0], sizes = [2, 128], strides = [1, 1]} : vector<16x128xf32> to vector<2x128xf32>
    %1560 = vector.extract_strided_slice %1513 {offsets = [2, 0], sizes = [2, 128], strides = [1, 1]} : vector<16x128xf32> to vector<2x128xf32>
    %c6_363 = arith.constant 6 : index
    %c0_364 = arith.constant 0 : index
    %1561 = vector.load %arg7[%c6_363, %c0_364] : memref<108x128xf32, #tpu.memory_space<vmem>>, vector<2x128xf32>
    tpu.vector_store %arg7[%c6_363, %c0_364], %1559 {strides = array<i32>} : memref<108x128xf32, #tpu.memory_space<vmem>>, vector<2x128xf32>,
    %c8_365 = arith.constant 8 : index
    %c0_366 = arith.constant 0 : index
    %1562 = vector.load %arg7[%c8_365, %c0_366] : memref<108x128xf32, #tpu.memory_space<vmem>>, vector<2x128xf32>
    tpu.vector_store %arg7[%c8_365, %c0_366], %1560 {strides = array<i32>} : memref<108x128xf32, #tpu.memory_space<vmem>>, vector<2x128xf32>,
    %1563 = vector.extract_strided_slice %1508 {offsets = [4, 0], sizes = [2, 128], strides = [1, 1]} : vector<16x128xf32> to vector<2x128xf32>
    %1564 = vector.extract_strided_slice %1513 {offsets = [4, 0], sizes = [2, 128], strides = [1, 1]} : vector<16x128xf32> to vector<2x128xf32>
    %c10_367 = arith.constant 10 : index
    %c0_368 = arith.constant 0 : index
    %1565 = vector.load %arg7[%c10_367, %c0_368] : memref<108x128xf32, #tpu.memory_space<vmem>>, vector<2x128xf32>
    tpu.vector_store %arg7[%c10_367, %c0_368], %1563 {strides = array<i32>} : memref<108x128xf32, #tpu.memory_space<vmem>>, vector<2x128xf32>,
    %c12_369 = arith.constant 12 : index
    %c0_370 = arith.constant 0 : index
    %1566 = vector.load %arg7[%c12_369, %c0_370] : memref<108x128xf32, #tpu.memory_space<vmem>>, vector<2x128xf32>
    tpu.vector_store %arg7[%c12_369, %c0_370], %1564 {strides = array<i32>} : memref<108x128xf32, #tpu.memory_space<vmem>>, vector<2x128xf32>,
    %1567 = vector.extract_strided_slice %1508 {offsets = [6, 0], sizes = [2, 128], strides = [1, 1]} : vector<16x128xf32> to vector<2x128xf32>
    %1568 = vector.extract_strided_slice %1513 {offsets = [6, 0], sizes = [2, 128], strides = [1, 1]} : vector<16x128xf32> to vector<2x128xf32>
    %c14_371 = arith.constant 14 : index
    %c0_372 = arith.constant 0 : index
    %1569 = vector.load %arg7[%c14_371, %c0_372] : memref<108x128xf32, #tpu.memory_space<vmem>>, vector<2x128xf32>
    tpu.vector_store %arg7[%c14_371, %c0_372], %1567 {strides = array<i32>} : memref<108x128xf32, #tpu.memory_space<vmem>>, vector<2x128xf32>,
    %c16_373 = arith.constant 16 : index
    %c0_374 = arith.constant 0 : index
    %1570 = vector.load %arg7[%c16_373, %c0_374] : memref<108x128xf32, #tpu.memory_space<vmem>>, vector<2x128xf32>
    tpu.vector_store %arg7[%c16_373, %c0_374], %1568 {strides = array<i32>} : memref<108x128xf32, #tpu.memory_space<vmem>>, vector<2x128xf32>,
    %1571 = vector.extract_strided_slice %1508 {offsets = [8, 0], sizes = [2, 128], strides = [1, 1]} : vector<16x128xf32> to vector<2x128xf32>
    %1572 = vector.extract_strided_slice %1513 {offsets = [8, 0], sizes = [2, 128], strides = [1, 1]} : vector<16x128xf32> to vector<2x128xf32>
    %c18_375 = arith.constant 18 : index
    %c0_376 = arith.constant 0 : index
    %1573 = vector.load %arg7[%c18_375, %c0_376] : memref<108x128xf32, #tpu.memory_space<vmem>>, vector<2x128xf32>
    tpu.vector_store %arg7[%c18_375, %c0_376], %1571 {strides = array<i32>} : memref<108x128xf32, #tpu.memory_space<vmem>>, vector<2x128xf32>,
    %c20_377 = arith.constant 20 : index
    %c0_378 = arith.constant 0 : index
    %1574 = vector.load %arg7[%c20_377, %c0_378] : memref<108x128xf32, #tpu.memory_space<vmem>>, vector<2x128xf32>
    tpu.vector_store %arg7[%c20_377, %c0_378], %1572 {strides = array<i32>} : memref<108x128xf32, #tpu.memory_space<vmem>>, vector<2x128xf32>,
    %1575 = vector.extract_strided_slice %1508 {offsets = [10, 0], sizes = [2, 128], strides = [1, 1]} : vector<16x128xf32> to vector<2x128xf32>
    %1576 = vector.extract_strided_slice %1513 {offsets = [10, 0], sizes = [2, 128], strides = [1, 1]} : vector<16x128xf32> to vector<2x128xf32>
    %c22_379 = arith.constant 22 : index
    %c0_380 = arith.constant 0 : index
    %1577 = vector.load %arg7[%c22_379, %c0_380] : memref<108x128xf32, #tpu.memory_space<vmem>>, vector<2x128xf32>
    tpu.vector_store %arg7[%c22_379, %c0_380], %1575 {strides = array<i32>} : memref<108x128xf32, #tpu.memory_space<vmem>>, vector<2x128xf32>,
    %c24_381 = arith.constant 24 : index
    %c0_382 = arith.constant 0 : index
    %1578 = vector.load %arg7[%c24_381, %c0_382] : memref<108x128xf32, #tpu.memory_space<vmem>>, vector<2x128xf32>
    tpu.vector_store %arg7[%c24_381, %c0_382], %1576 {strides = array<i32>} : memref<108x128xf32, #tpu.memory_space<vmem>>, vector<2x128xf32>,
    %1579 = vector.extract_strided_slice %1508 {offsets = [12, 0], sizes = [2, 128], strides = [1, 1]} : vector<16x128xf32> to vector<2x128xf32>
    %1580 = vector.extract_strided_slice %1513 {offsets = [12, 0], sizes = [2, 128], strides = [1, 1]} : vector<16x128xf32> to vector<2x128xf32>
    %c26_383 = arith.constant 26 : index
    %c0_384 = arith.constant 0 : index
    %1581 = vector.load %arg7[%c26_383, %c0_384] : memref<108x128xf32, #tpu.memory_space<vmem>>, vector<2x128xf32>
    tpu.vector_store %arg7[%c26_383, %c0_384], %1579 {strides = array<i32>} : memref<108x128xf32, #tpu.memory_space<vmem>>, vector<2x128xf32>,
    %c28_385 = arith.constant 28 : index
    %c0_386 = arith.constant 0 : index
    %1582 = vector.load %arg7[%c28_385, %c0_386] : memref<108x128xf32, #tpu.memory_space<vmem>>, vector<2x128xf32>
    tpu.vector_store %arg7[%c28_385, %c0_386], %1580 {strides = array<i32>} : memref<108x128xf32, #tpu.memory_space<vmem>>, vector<2x128xf32>,
    %1583 = vector.extract_strided_slice %1508 {offsets = [14, 0], sizes = [2, 128], strides = [1, 1]} : vector<16x128xf32> to vector<2x128xf32>
    %c30_387 = arith.constant 30 : index
    %c0_388 = arith.constant 0 : index
    %1584 = vector.load %arg7[%c30_387, %c0_388] : memref<108x128xf32, #tpu.memory_space<vmem>>, vector<2x128xf32>
    tpu.vector_store %arg7[%c30_387, %c0_388], %1583 {strides = array<i32>} : memref<108x128xf32, #tpu.memory_space<vmem>>, vector<2x128xf32>,
    %c32_389 = arith.constant 32 : index
    %c0_390 = arith.constant 0 : index
    %1585 = vector.load %arg7[%c32_389, %c0_390] : memref<108x128xf32, #tpu.memory_space<vmem>>, vector<2x128xf32>
    tpu.vector_store %arg7[%c32_389, %c0_390], %1555 {strides = array<i32>} : memref<108x128xf32, #tpu.memory_space<vmem>>, vector<2x128xf32>,
    %1586 = vector.extract_strided_slice %1543 {offsets = [0, 0], sizes = [2, 1], strides = [1, 1]} : vector<2x128xf32> to vector<2x1xf32>
    %1587 = vector.extract_strided_slice %1555 {offsets = [0, 0], sizes = [2, 127], strides = [1, 1]} : vector<2x128xf32> to vector<2x127xf32>
    %1588 = tpu.concatenate %1586, %1587 in 1 : vector<2x1xf32>, vector<2x127xf32> -> vector<2x128xf32>
    %1589 = vector.extract_strided_slice %1543 {offsets = [0, 1], sizes = [2, 94], strides = [1, 1]} : vector<2x128xf32> to vector<2x94xf32>
    %1590 = vector.extract_strided_slice %1555 {offsets = [0, 94], sizes = [2, 1], strides = [1, 1]} : vector<2x128xf32> to vector<2x1xf32>
    %1591 = vector.extract_strided_slice %1555 {offsets = [0, 95], sizes = [2, 33], strides = [1, 1]} : vector<2x128xf32> to vector<2x33xf32>
    %1592 = tpu.concatenate %1589, %1590, %1591 in 1 : vector<2x94xf32>, vector<2x1xf32>, vector<2x33xf32> -> vector<2x128xf32>
    %c0_391 = arith.constant 0 : index
    %c0_392 = arith.constant 0 : index
    %1593 = vector.load %arg7[%c0_391, %c0_392] : memref<108x128xf32, #tpu.memory_space<vmem>>, vector<2x128xf32>
    tpu.vector_store %arg7[%c0_391, %c0_392], %1588 {strides = array<i32>} : memref<108x128xf32, #tpu.memory_space<vmem>>, vector<2x128xf32>,
    %c34_393 = arith.constant 34 : index
    %c0_394 = arith.constant 0 : index
    %1594 = vector.load %arg7[%c34_393, %c0_394] : memref<108x128xf32, #tpu.memory_space<vmem>>, vector<2x128xf32>
    tpu.vector_store %arg7[%c34_393, %c0_394], %1592 {strides = array<i32>} : memref<108x128xf32, #tpu.memory_space<vmem>>, vector<2x128xf32>,
    %1595 = vector.broadcast %1382 : f32 to vector<16x128xf32>
    %1596 = arith.mulf %1595, %1433 : vector<16x128xf32>
    %1597 = vector.broadcast %1383 : f32 to vector<16x128xf32>
    %1598 = arith.mulf %1597, %1434 : vector<16x128xf32>
    %1599 = arith.addf %1596, %1598 : vector<16x128xf32>
    %1600 = vector.broadcast %1384 : f32 to vector<16x128xf32>
    %1601 = arith.mulf %1600, %1435 : vector<16x128xf32>
    %1602 = arith.addf %1599, %1601 : vector<16x128xf32>
    %1603 = vector.broadcast %1385 : f32 to vector<16x128xf32>
    %1604 = arith.mulf %1603, %1433 : vector<16x128xf32>
    %1605 = vector.broadcast %1386 : f32 to vector<16x128xf32>
    %1606 = arith.mulf %1605, %1434 : vector<16x128xf32>
    %1607 = arith.addf %1604, %1606 : vector<16x128xf32>
    %1608 = vector.broadcast %1387 : f32 to vector<16x128xf32>
    %1609 = arith.mulf %1608, %1435 : vector<16x128xf32>
    %1610 = arith.addf %1607, %1609 : vector<16x128xf32>
    %1611 = vector.broadcast %1390 : f32 to vector<16x128xf32>
    %1612 = arith.mulf %1611, %1438 : vector<16x128xf32>
    %1613 = vector.broadcast %1391 : f32 to vector<16x128xf32>
    %1614 = arith.mulf %1613, %1439 : vector<16x128xf32>
    %1615 = arith.addf %1612, %1614 : vector<16x128xf32>
    %1616 = vector.broadcast %1392 : f32 to vector<16x128xf32>
    %1617 = arith.mulf %1616, %1440 : vector<16x128xf32>
    %1618 = arith.addf %1615, %1617 : vector<16x128xf32>
    %1619 = vector.broadcast %1393 : f32 to vector<16x128xf32>
    %1620 = arith.mulf %1619, %1438 : vector<16x128xf32>
    %1621 = vector.broadcast %1394 : f32 to vector<16x128xf32>
    %1622 = arith.mulf %1621, %1439 : vector<16x128xf32>
    %1623 = arith.addf %1620, %1622 : vector<16x128xf32>
    %1624 = vector.broadcast %1395 : f32 to vector<16x128xf32>
    %1625 = arith.mulf %1624, %1440 : vector<16x128xf32>
    %1626 = arith.addf %1623, %1625 : vector<16x128xf32>
    %1627 = arith.addf %1602, %1618 : vector<16x128xf32>
    %1628 = arith.addf %1610, %1626 : vector<16x128xf32>
    %1629 = vector.broadcast %1398 : f32 to vector<16x128xf32>
    %1630 = arith.mulf %1629, %1443 : vector<16x128xf32>
    %1631 = vector.broadcast %1399 : f32 to vector<16x128xf32>
    %1632 = arith.mulf %1631, %1444 : vector<16x128xf32>
    %1633 = arith.addf %1630, %1632 : vector<16x128xf32>
    %1634 = vector.broadcast %1400 : f32 to vector<16x128xf32>
    %1635 = arith.mulf %1634, %1445 : vector<16x128xf32>
    %1636 = arith.addf %1633, %1635 : vector<16x128xf32>
    %1637 = vector.broadcast %1401 : f32 to vector<16x128xf32>
    %1638 = arith.mulf %1637, %1443 : vector<16x128xf32>
    %1639 = vector.broadcast %1402 : f32 to vector<16x128xf32>
    %1640 = arith.mulf %1639, %1444 : vector<16x128xf32>
    %1641 = arith.addf %1638, %1640 : vector<16x128xf32>
    %1642 = vector.broadcast %1403 : f32 to vector<16x128xf32>
    %1643 = arith.mulf %1642, %1445 : vector<16x128xf32>
    %1644 = arith.addf %1641, %1643 : vector<16x128xf32>
    %1645 = arith.addf %1627, %1636 : vector<16x128xf32>
    %1646 = arith.addf %1628, %1644 : vector<16x128xf32>
    %1647 = vector.broadcast %1431 : f32 to vector<16x128xf32>
    %1648 = arith.addf %1645, %1647 : vector<16x128xf32>
    %1649 = vector.broadcast %1431 : f32 to vector<16x128xf32>
    %1650 = arith.addf %1646, %1649 : vector<16x128xf32>
    %cst_395 = arith.constant 0.000000e+00 : f32
    %1651 = vector.broadcast %cst_395 : f32 to vector<16x128xf32>
    %1652 = arith.cmpf ogt, %1648, %1651 : vector<16x128xf32>
    %cst_396 = arith.constant 0.00999999977 : f32
    %1653 = vector.broadcast %cst_396 : f32 to vector<16x128xf32>
    %1654 = arith.mulf %1653, %1648 : vector<16x128xf32>
    %1655 = arith.select %1652, %1648, %1654 : vector<16x128xi1>, vector<16x128xf32>
    %cst_397 = arith.constant 0.000000e+00 : f32
    %1656 = vector.broadcast %cst_397 : f32 to vector<16x128xf32>
    %1657 = arith.cmpf ogt, %1650, %1656 : vector<16x128xf32>
    %cst_398 = arith.constant 0.00999999977 : f32
    %1658 = vector.broadcast %cst_398 : f32 to vector<16x128xf32>
    %1659 = arith.mulf %1658, %1650 : vector<16x128xf32>
    %1660 = arith.select %1657, %1650, %1659 : vector<16x128xi1>, vector<16x128xf32>
    %1661 = vector.broadcast %1388 : f32 to vector<2x128xf32>
    %1662 = arith.mulf %1661, %1436 : vector<2x128xf32>
    %1663 = vector.broadcast %1389 : f32 to vector<2x128xf32>
    %1664 = arith.mulf %1663, %1437 : vector<2x128xf32>
    %1665 = vector.broadcast %1396 : f32 to vector<2x128xf32>
    %1666 = arith.mulf %1665, %1441 : vector<2x128xf32>
    %1667 = vector.broadcast %1397 : f32 to vector<2x128xf32>
    %1668 = arith.mulf %1667, %1442 : vector<2x128xf32>
    %1669 = arith.addf %1662, %1666 : vector<2x128xf32>
    %1670 = arith.addf %1664, %1668 : vector<2x128xf32>
    %1671 = vector.broadcast %1404 : f32 to vector<2x128xf32>
    %1672 = arith.mulf %1671, %1446 : vector<2x128xf32>
    %1673 = vector.broadcast %1405 : f32 to vector<2x128xf32>
    %1674 = arith.mulf %1673, %1447 : vector<2x128xf32>
    %1675 = arith.addf %1669, %1672 : vector<2x128xf32>
    %1676 = arith.addf %1670, %1674 : vector<2x128xf32>
    %1677 = vector.extract_strided_slice %1648 {offsets = [0, 0], sizes = [2, 128], strides = [1, 1]} : vector<16x128xf32> to vector<2x128xf32>
    %1678 = vector.extract_strided_slice %1650 {offsets = [14, 0], sizes = [2, 128], strides = [1, 1]} : vector<16x128xf32> to vector<2x128xf32>
    %1679 = arith.subf %1677, %1675 : vector<2x128xf32>
    %cst_399 = arith.constant 0.000000e+00 : f32
    %1680 = vector.broadcast %cst_399 : f32 to vector<2x128xf32>
    %1681 = arith.cmpf ogt, %1679, %1680 : vector<2x128xf32>
    %cst_400 = arith.constant 0.00999999977 : f32
    %1682 = vector.broadcast %cst_400 : f32 to vector<2x128xf32>
    %1683 = arith.mulf %1682, %1679 : vector<2x128xf32>
    %1684 = arith.select %1681, %1679, %1683 : vector<2x128xi1>, vector<2x128xf32>
    %cst_401 = arith.constant 0.000000e+00 : f32
    %1685 = vector.broadcast %cst_401 : f32 to vector<2x128xf32>
    %1686 = arith.cmpf ogt, %1677, %1685 : vector<2x128xf32>
    %cst_402 = arith.constant 0.00999999977 : f32
    %1687 = vector.broadcast %cst_402 : f32 to vector<2x128xf32>
    %1688 = arith.mulf %1687, %1677 : vector<2x128xf32>
    %1689 = arith.select %1686, %1677, %1688 : vector<2x128xi1>, vector<2x128xf32>
    %1690 = arith.select %2, %1684, %1689 : vector<2x128xi1>, vector<2x128xf32>
    %1691 = arith.subf %1678, %1676 : vector<2x128xf32>
    %cst_403 = arith.constant 0.000000e+00 : f32
    %1692 = vector.broadcast %cst_403 : f32 to vector<2x128xf32>
    %1693 = arith.cmpf ogt, %1691, %1692 : vector<2x128xf32>
    %cst_404 = arith.constant 0.00999999977 : f32
    %1694 = vector.broadcast %cst_404 : f32 to vector<2x128xf32>
    %1695 = arith.mulf %1694, %1691 : vector<2x128xf32>
    %1696 = arith.select %1693, %1691, %1695 : vector<2x128xi1>, vector<2x128xf32>
    %cst_405 = arith.constant 0.000000e+00 : f32
    %1697 = vector.broadcast %cst_405 : f32 to vector<2x128xf32>
    %1698 = arith.cmpf ogt, %1678, %1697 : vector<2x128xf32>
    %cst_406 = arith.constant 0.00999999977 : f32
    %1699 = vector.broadcast %cst_406 : f32 to vector<2x128xf32>
    %1700 = arith.mulf %1699, %1678 : vector<2x128xf32>
    %1701 = arith.select %1698, %1678, %1700 : vector<2x128xi1>, vector<2x128xf32>
    %1702 = arith.select %4, %1696, %1701 : vector<2x128xi1>, vector<2x128xf32>
    %1703 = vector.extract_strided_slice %1660 {offsets = [0, 0], sizes = [2, 128], strides = [1, 1]} : vector<16x128xf32> to vector<2x128xf32>
    %c38_407 = arith.constant 38 : index
    %c0_408 = arith.constant 0 : index
    %1704 = vector.load %arg7[%c38_407, %c0_408] : memref<108x128xf32, #tpu.memory_space<vmem>>, vector<2x128xf32>
    tpu.vector_store %arg7[%c38_407, %c0_408], %1690 {strides = array<i32>} : memref<108x128xf32, #tpu.memory_space<vmem>>, vector<2x128xf32>,
    %c40_409 = arith.constant 40 : index
    %c0_410 = arith.constant 0 : index
    %1705 = vector.load %arg7[%c40_409, %c0_410] : memref<108x128xf32, #tpu.memory_space<vmem>>, vector<2x128xf32>
    tpu.vector_store %arg7[%c40_409, %c0_410], %1703 {strides = array<i32>} : memref<108x128xf32, #tpu.memory_space<vmem>>, vector<2x128xf32>,
    %1706 = vector.extract_strided_slice %1655 {offsets = [2, 0], sizes = [2, 128], strides = [1, 1]} : vector<16x128xf32> to vector<2x128xf32>
    %1707 = vector.extract_strided_slice %1660 {offsets = [2, 0], sizes = [2, 128], strides = [1, 1]} : vector<16x128xf32> to vector<2x128xf32>
    %c42_411 = arith.constant 42 : index
    %c0_412 = arith.constant 0 : index
    %1708 = vector.load %arg7[%c42_411, %c0_412] : memref<108x128xf32, #tpu.memory_space<vmem>>, vector<2x128xf32>
    tpu.vector_store %arg7[%c42_411, %c0_412], %1706 {strides = array<i32>} : memref<108x128xf32, #tpu.memory_space<vmem>>, vector<2x128xf32>,
    %c44_413 = arith.constant 44 : index
    %c0_414 = arith.constant 0 : index
    %1709 = vector.load %arg7[%c44_413, %c0_414] : memref<108x128xf32, #tpu.memory_space<vmem>>, vector<2x128xf32>
    tpu.vector_store %arg7[%c44_413, %c0_414], %1707 {strides = array<i32>} : memref<108x128xf32, #tpu.memory_space<vmem>>, vector<2x128xf32>,
    %1710 = vector.extract_strided_slice %1655 {offsets = [4, 0], sizes = [2, 128], strides = [1, 1]} : vector<16x128xf32> to vector<2x128xf32>
    %1711 = vector.extract_strided_slice %1660 {offsets = [4, 0], sizes = [2, 128], strides = [1, 1]} : vector<16x128xf32> to vector<2x128xf32>
    %c46_415 = arith.constant 46 : index
    %c0_416 = arith.constant 0 : index
    %1712 = vector.load %arg7[%c46_415, %c0_416] : memref<108x128xf32, #tpu.memory_space<vmem>>, vector<2x128xf32>
    tpu.vector_store %arg7[%c46_415, %c0_416], %1710 {strides = array<i32>} : memref<108x128xf32, #tpu.memory_space<vmem>>, vector<2x128xf32>,
    %c48_417 = arith.constant 48 : index
    %c0_418 = arith.constant 0 : index
    %1713 = vector.load %arg7[%c48_417, %c0_418] : memref<108x128xf32, #tpu.memory_space<vmem>>, vector<2x128xf32>
    tpu.vector_store %arg7[%c48_417, %c0_418], %1711 {strides = array<i32>} : memref<108x128xf32, #tpu.memory_space<vmem>>, vector<2x128xf32>,
    %1714 = vector.extract_strided_slice %1655 {offsets = [6, 0], sizes = [2, 128], strides = [1, 1]} : vector<16x128xf32> to vector<2x128xf32>
    %1715 = vector.extract_strided_slice %1660 {offsets = [6, 0], sizes = [2, 128], strides = [1, 1]} : vector<16x128xf32> to vector<2x128xf32>
    %c50_419 = arith.constant 50 : index
    %c0_420 = arith.constant 0 : index
    %1716 = vector.load %arg7[%c50_419, %c0_420] : memref<108x128xf32, #tpu.memory_space<vmem>>, vector<2x128xf32>
    tpu.vector_store %arg7[%c50_419, %c0_420], %1714 {strides = array<i32>} : memref<108x128xf32, #tpu.memory_space<vmem>>, vector<2x128xf32>,
    %c52_421 = arith.constant 52 : index
    %c0_422 = arith.constant 0 : index
    %1717 = vector.load %arg7[%c52_421, %c0_422] : memref<108x128xf32, #tpu.memory_space<vmem>>, vector<2x128xf32>
    tpu.vector_store %arg7[%c52_421, %c0_422], %1715 {strides = array<i32>} : memref<108x128xf32, #tpu.memory_space<vmem>>, vector<2x128xf32>,
    %1718 = vector.extract_strided_slice %1655 {offsets = [8, 0], sizes = [2, 128], strides = [1, 1]} : vector<16x128xf32> to vector<2x128xf32>
    %1719 = vector.extract_strided_slice %1660 {offsets = [8, 0], sizes = [2, 128], strides = [1, 1]} : vector<16x128xf32> to vector<2x128xf32>
    %c54_423 = arith.constant 54 : index
    %c0_424 = arith.constant 0 : index
    %1720 = vector.load %arg7[%c54_423, %c0_424] : memref<108x128xf32, #tpu.memory_space<vmem>>, vector<2x128xf32>
    tpu.vector_store %arg7[%c54_423, %c0_424], %1718 {strides = array<i32>} : memref<108x128xf32, #tpu.memory_space<vmem>>, vector<2x128xf32>,
    %c56_425 = arith.constant 56 : index
    %c0_426 = arith.constant 0 : index
    %1721 = vector.load %arg7[%c56_425, %c0_426] : memref<108x128xf32, #tpu.memory_space<vmem>>, vector<2x128xf32>
    tpu.vector_store %arg7[%c56_425, %c0_426], %1719 {strides = array<i32>} : memref<108x128xf32, #tpu.memory_space<vmem>>, vector<2x128xf32>,
    %1722 = vector.extract_strided_slice %1655 {offsets = [10, 0], sizes = [2, 128], strides = [1, 1]} : vector<16x128xf32> to vector<2x128xf32>
    %1723 = vector.extract_strided_slice %1660 {offsets = [10, 0], sizes = [2, 128], strides = [1, 1]} : vector<16x128xf32> to vector<2x128xf32>
    %c58_427 = arith.constant 58 : index
    %c0_428 = arith.constant 0 : index
    %1724 = vector.load %arg7[%c58_427, %c0_428] : memref<108x128xf32, #tpu.memory_space<vmem>>, vector<2x128xf32>
    tpu.vector_store %arg7[%c58_427, %c0_428], %1722 {strides = array<i32>} : memref<108x128xf32, #tpu.memory_space<vmem>>, vector<2x128xf32>,
    %c60_429 = arith.constant 60 : index
    %c0_430 = arith.constant 0 : index
    %1725 = vector.load %arg7[%c60_429, %c0_430] : memref<108x128xf32, #tpu.memory_space<vmem>>, vector<2x128xf32>
    tpu.vector_store %arg7[%c60_429, %c0_430], %1723 {strides = array<i32>} : memref<108x128xf32, #tpu.memory_space<vmem>>, vector<2x128xf32>,
    %1726 = vector.extract_strided_slice %1655 {offsets = [12, 0], sizes = [2, 128], strides = [1, 1]} : vector<16x128xf32> to vector<2x128xf32>
    %1727 = vector.extract_strided_slice %1660 {offsets = [12, 0], sizes = [2, 128], strides = [1, 1]} : vector<16x128xf32> to vector<2x128xf32>
    %c62_431 = arith.constant 62 : index
    %c0_432 = arith.constant 0 : index
    %1728 = vector.load %arg7[%c62_431, %c0_432] : memref<108x128xf32, #tpu.memory_space<vmem>>, vector<2x128xf32>
    tpu.vector_store %arg7[%c62_431, %c0_432], %1726 {strides = array<i32>} : memref<108x128xf32, #tpu.memory_space<vmem>>, vector<2x128xf32>,
    %c64_433 = arith.constant 64 : index
    %c0_434 = arith.constant 0 : index
    %1729 = vector.load %arg7[%c64_433, %c0_434] : memref<108x128xf32, #tpu.memory_space<vmem>>, vector<2x128xf32>
    tpu.vector_store %arg7[%c64_433, %c0_434], %1727 {strides = array<i32>} : memref<108x128xf32, #tpu.memory_space<vmem>>, vector<2x128xf32>,
    %1730 = vector.extract_strided_slice %1655 {offsets = [14, 0], sizes = [2, 128], strides = [1, 1]} : vector<16x128xf32> to vector<2x128xf32>
    %c66_435 = arith.constant 66 : index
    %c0_436 = arith.constant 0 : index
    %1731 = vector.load %arg7[%c66_435, %c0_436] : memref<108x128xf32, #tpu.memory_space<vmem>>, vector<2x128xf32>
    tpu.vector_store %arg7[%c66_435, %c0_436], %1730 {strides = array<i32>} : memref<108x128xf32, #tpu.memory_space<vmem>>, vector<2x128xf32>,
    %c68_437 = arith.constant 68 : index
    %c0_438 = arith.constant 0 : index
    %1732 = vector.load %arg7[%c68_437, %c0_438] : memref<108x128xf32, #tpu.memory_space<vmem>>, vector<2x128xf32>
    tpu.vector_store %arg7[%c68_437, %c0_438], %1702 {strides = array<i32>} : memref<108x128xf32, #tpu.memory_space<vmem>>, vector<2x128xf32>,
    %1733 = vector.extract_strided_slice %1690 {offsets = [0, 0], sizes = [2, 1], strides = [1, 1]} : vector<2x128xf32> to vector<2x1xf32>
    %1734 = vector.extract_strided_slice %1702 {offsets = [0, 0], sizes = [2, 127], strides = [1, 1]} : vector<2x128xf32> to vector<2x127xf32>
    %1735 = tpu.concatenate %1733, %1734 in 1 : vector<2x1xf32>, vector<2x127xf32> -> vector<2x128xf32>
    %1736 = vector.extract_strided_slice %1690 {offsets = [0, 1], sizes = [2, 94], strides = [1, 1]} : vector<2x128xf32> to vector<2x94xf32>
    %1737 = vector.extract_strided_slice %1702 {offsets = [0, 94], sizes = [2, 1], strides = [1, 1]} : vector<2x128xf32> to vector<2x1xf32>
    %1738 = vector.extract_strided_slice %1702 {offsets = [0, 95], sizes = [2, 33], strides = [1, 1]} : vector<2x128xf32> to vector<2x33xf32>
    %1739 = tpu.concatenate %1736, %1737, %1738 in 1 : vector<2x94xf32>, vector<2x1xf32>, vector<2x33xf32> -> vector<2x128xf32>
    %c36_439 = arith.constant 36 : index
    %c0_440 = arith.constant 0 : index
    %1740 = vector.load %arg7[%c36_439, %c0_440] : memref<108x128xf32, #tpu.memory_space<vmem>>, vector<2x128xf32>
    tpu.vector_store %arg7[%c36_439, %c0_440], %1735 {strides = array<i32>} : memref<108x128xf32, #tpu.memory_space<vmem>>, vector<2x128xf32>,
    %c70_441 = arith.constant 70 : index
    %c0_442 = arith.constant 0 : index
    %1741 = vector.load %arg7[%c70_441, %c0_442] : memref<108x128xf32, #tpu.memory_space<vmem>>, vector<2x128xf32>
    tpu.vector_store %arg7[%c70_441, %c0_442], %1739 {strides = array<i32>} : memref<108x128xf32, #tpu.memory_space<vmem>>, vector<2x128xf32>,
    %1742 = vector.broadcast %1406 : f32 to vector<16x128xf32>
    %1743 = arith.mulf %1742, %1433 : vector<16x128xf32>
    %1744 = vector.broadcast %1407 : f32 to vector<16x128xf32>
    %1745 = arith.mulf %1744, %1434 : vector<16x128xf32>
    %1746 = arith.addf %1743, %1745 : vector<16x128xf32>
    %1747 = vector.broadcast %1408 : f32 to vector<16x128xf32>
    %1748 = arith.mulf %1747, %1435 : vector<16x128xf32>
    %1749 = arith.addf %1746, %1748 : vector<16x128xf32>
    %1750 = vector.broadcast %1409 : f32 to vector<16x128xf32>
    %1751 = arith.mulf %1750, %1433 : vector<16x128xf32>
    %1752 = vector.broadcast %1410 : f32 to vector<16x128xf32>
    %1753 = arith.mulf %1752, %1434 : vector<16x128xf32>
    %1754 = arith.addf %1751, %1753 : vector<16x128xf32>
    %1755 = vector.broadcast %1411 : f32 to vector<16x128xf32>
    %1756 = arith.mulf %1755, %1435 : vector<16x128xf32>
    %1757 = arith.addf %1754, %1756 : vector<16x128xf32>
    %1758 = vector.broadcast %1414 : f32 to vector<16x128xf32>
    %1759 = arith.mulf %1758, %1438 : vector<16x128xf32>
    %1760 = vector.broadcast %1415 : f32 to vector<16x128xf32>
    %1761 = arith.mulf %1760, %1439 : vector<16x128xf32>
    %1762 = arith.addf %1759, %1761 : vector<16x128xf32>
    %1763 = vector.broadcast %1416 : f32 to vector<16x128xf32>
    %1764 = arith.mulf %1763, %1440 : vector<16x128xf32>
    %1765 = arith.addf %1762, %1764 : vector<16x128xf32>
    %1766 = vector.broadcast %1417 : f32 to vector<16x128xf32>
    %1767 = arith.mulf %1766, %1438 : vector<16x128xf32>
    %1768 = vector.broadcast %1418 : f32 to vector<16x128xf32>
    %1769 = arith.mulf %1768, %1439 : vector<16x128xf32>
    %1770 = arith.addf %1767, %1769 : vector<16x128xf32>
    %1771 = vector.broadcast %1419 : f32 to vector<16x128xf32>
    %1772 = arith.mulf %1771, %1440 : vector<16x128xf32>
    %1773 = arith.addf %1770, %1772 : vector<16x128xf32>
    %1774 = arith.addf %1749, %1765 : vector<16x128xf32>
    %1775 = arith.addf %1757, %1773 : vector<16x128xf32>
    %1776 = vector.broadcast %1422 : f32 to vector<16x128xf32>
    %1777 = arith.mulf %1776, %1443 : vector<16x128xf32>
    %1778 = vector.broadcast %1423 : f32 to vector<16x128xf32>
    %1779 = arith.mulf %1778, %1444 : vector<16x128xf32>
    %1780 = arith.addf %1777, %1779 : vector<16x128xf32>
    %1781 = vector.broadcast %1424 : f32 to vector<16x128xf32>
    %1782 = arith.mulf %1781, %1445 : vector<16x128xf32>
    %1783 = arith.addf %1780, %1782 : vector<16x128xf32>
    %1784 = vector.broadcast %1425 : f32 to vector<16x128xf32>
    %1785 = arith.mulf %1784, %1443 : vector<16x128xf32>
    %1786 = vector.broadcast %1426 : f32 to vector<16x128xf32>
    %1787 = arith.mulf %1786, %1444 : vector<16x128xf32>
    %1788 = arith.addf %1785, %1787 : vector<16x128xf32>
    %1789 = vector.broadcast %1427 : f32 to vector<16x128xf32>
    %1790 = arith.mulf %1789, %1445 : vector<16x128xf32>
    %1791 = arith.addf %1788, %1790 : vector<16x128xf32>
    %1792 = arith.addf %1774, %1783 : vector<16x128xf32>
    %1793 = arith.addf %1775, %1791 : vector<16x128xf32>
    %1794 = vector.broadcast %1432 : f32 to vector<16x128xf32>
    %1795 = arith.addf %1792, %1794 : vector<16x128xf32>
    %1796 = vector.broadcast %1432 : f32 to vector<16x128xf32>
    %1797 = arith.addf %1793, %1796 : vector<16x128xf32>
    %cst_443 = arith.constant 0.000000e+00 : f32
    %1798 = vector.broadcast %cst_443 : f32 to vector<16x128xf32>
    %1799 = arith.cmpf ogt, %1795, %1798 : vector<16x128xf32>
    %cst_444 = arith.constant 0.00999999977 : f32
    %1800 = vector.broadcast %cst_444 : f32 to vector<16x128xf32>
    %1801 = arith.mulf %1800, %1795 : vector<16x128xf32>
    %1802 = arith.select %1799, %1795, %1801 : vector<16x128xi1>, vector<16x128xf32>
    %cst_445 = arith.constant 0.000000e+00 : f32
    %1803 = vector.broadcast %cst_445 : f32 to vector<16x128xf32>
    %1804 = arith.cmpf ogt, %1797, %1803 : vector<16x128xf32>
    %cst_446 = arith.constant 0.00999999977 : f32
    %1805 = vector.broadcast %cst_446 : f32 to vector<16x128xf32>
    %1806 = arith.mulf %1805, %1797 : vector<16x128xf32>
    %1807 = arith.select %1804, %1797, %1806 : vector<16x128xi1>, vector<16x128xf32>
    %1808 = vector.broadcast %1412 : f32 to vector<2x128xf32>
    %1809 = arith.mulf %1808, %1436 : vector<2x128xf32>
    %1810 = vector.broadcast %1413 : f32 to vector<2x128xf32>
    %1811 = arith.mulf %1810, %1437 : vector<2x128xf32>
    %1812 = vector.broadcast %1420 : f32 to vector<2x128xf32>
    %1813 = arith.mulf %1812, %1441 : vector<2x128xf32>
    %1814 = vector.broadcast %1421 : f32 to vector<2x128xf32>
    %1815 = arith.mulf %1814, %1442 : vector<2x128xf32>
    %1816 = arith.addf %1809, %1813 : vector<2x128xf32>
    %1817 = arith.addf %1811, %1815 : vector<2x128xf32>
    %1818 = vector.broadcast %1428 : f32 to vector<2x128xf32>
    %1819 = arith.mulf %1818, %1446 : vector<2x128xf32>
    %1820 = vector.broadcast %1429 : f32 to vector<2x128xf32>
    %1821 = arith.mulf %1820, %1447 : vector<2x128xf32>
    %1822 = arith.addf %1816, %1819 : vector<2x128xf32>
    %1823 = arith.addf %1817, %1821 : vector<2x128xf32>
    %1824 = vector.extract_strided_slice %1795 {offsets = [0, 0], sizes = [2, 128], strides = [1, 1]} : vector<16x128xf32> to vector<2x128xf32>
    %1825 = vector.extract_strided_slice %1797 {offsets = [14, 0], sizes = [2, 128], strides = [1, 1]} : vector<16x128xf32> to vector<2x128xf32>
    %1826 = arith.subf %1824, %1822 : vector<2x128xf32>
    %cst_447 = arith.constant 0.000000e+00 : f32
    %1827 = vector.broadcast %cst_447 : f32 to vector<2x128xf32>
    %1828 = arith.cmpf ogt, %1826, %1827 : vector<2x128xf32>
    %cst_448 = arith.constant 0.00999999977 : f32
    %1829 = vector.broadcast %cst_448 : f32 to vector<2x128xf32>
    %1830 = arith.mulf %1829, %1826 : vector<2x128xf32>
    %1831 = arith.select %1828, %1826, %1830 : vector<2x128xi1>, vector<2x128xf32>
    %cst_449 = arith.constant 0.000000e+00 : f32
    %1832 = vector.broadcast %cst_449 : f32 to vector<2x128xf32>
    %1833 = arith.cmpf ogt, %1824, %1832 : vector<2x128xf32>
    %cst_450 = arith.constant 0.00999999977 : f32
    %1834 = vector.broadcast %cst_450 : f32 to vector<2x128xf32>
    %1835 = arith.mulf %1834, %1824 : vector<2x128xf32>
    %1836 = arith.select %1833, %1824, %1835 : vector<2x128xi1>, vector<2x128xf32>
    %1837 = arith.select %2, %1831, %1836 : vector<2x128xi1>, vector<2x128xf32>
    %1838 = arith.subf %1825, %1823 : vector<2x128xf32>
    %cst_451 = arith.constant 0.000000e+00 : f32
    %1839 = vector.broadcast %cst_451 : f32 to vector<2x128xf32>
    %1840 = arith.cmpf ogt, %1838, %1839 : vector<2x128xf32>
    %cst_452 = arith.constant 0.00999999977 : f32
    %1841 = vector.broadcast %cst_452 : f32 to vector<2x128xf32>
    %1842 = arith.mulf %1841, %1838 : vector<2x128xf32>
    %1843 = arith.select %1840, %1838, %1842 : vector<2x128xi1>, vector<2x128xf32>
    %cst_453 = arith.constant 0.000000e+00 : f32
    %1844 = vector.broadcast %cst_453 : f32 to vector<2x128xf32>
    %1845 = arith.cmpf ogt, %1825, %1844 : vector<2x128xf32>
    %cst_454 = arith.constant 0.00999999977 : f32
    %1846 = vector.broadcast %cst_454 : f32 to vector<2x128xf32>
    %1847 = arith.mulf %1846, %1825 : vector<2x128xf32>
    %1848 = arith.select %1845, %1825, %1847 : vector<2x128xi1>, vector<2x128xf32>
    %1849 = arith.select %4, %1843, %1848 : vector<2x128xi1>, vector<2x128xf32>
    %1850 = vector.extract_strided_slice %1807 {offsets = [0, 0], sizes = [2, 128], strides = [1, 1]} : vector<16x128xf32> to vector<2x128xf32>
    %c74_455 = arith.constant 74 : index
    %c0_456 = arith.constant 0 : index
    %1851 = vector.load %arg7[%c74_455, %c0_456] : memref<108x128xf32, #tpu.memory_space<vmem>>, vector<2x128xf32>
    tpu.vector_store %arg7[%c74_455, %c0_456], %1837 {strides = array<i32>} : memref<108x128xf32, #tpu.memory_space<vmem>>, vector<2x128xf32>,
    %c76_457 = arith.constant 76 : index
    %c0_458 = arith.constant 0 : index
    %1852 = vector.load %arg7[%c76_457, %c0_458] : memref<108x128xf32, #tpu.memory_space<vmem>>, vector<2x128xf32>
    tpu.vector_store %arg7[%c76_457, %c0_458], %1850 {strides = array<i32>} : memref<108x128xf32, #tpu.memory_space<vmem>>, vector<2x128xf32>,
    %1853 = vector.extract_strided_slice %1802 {offsets = [2, 0], sizes = [2, 128], strides = [1, 1]} : vector<16x128xf32> to vector<2x128xf32>
    %1854 = vector.extract_strided_slice %1807 {offsets = [2, 0], sizes = [2, 128], strides = [1, 1]} : vector<16x128xf32> to vector<2x128xf32>
    %c78_459 = arith.constant 78 : index
    %c0_460 = arith.constant 0 : index
    %1855 = vector.load %arg7[%c78_459, %c0_460] : memref<108x128xf32, #tpu.memory_space<vmem>>, vector<2x128xf32>
    tpu.vector_store %arg7[%c78_459, %c0_460], %1853 {strides = array<i32>} : memref<108x128xf32, #tpu.memory_space<vmem>>, vector<2x128xf32>,
    %c80_461 = arith.constant 80 : index
    %c0_462 = arith.constant 0 : index
    %1856 = vector.load %arg7[%c80_461, %c0_462] : memref<108x128xf32, #tpu.memory_space<vmem>>, vector<2x128xf32>
    tpu.vector_store %arg7[%c80_461, %c0_462], %1854 {strides = array<i32>} : memref<108x128xf32, #tpu.memory_space<vmem>>, vector<2x128xf32>,
    %1857 = vector.extract_strided_slice %1802 {offsets = [4, 0], sizes = [2, 128], strides = [1, 1]} : vector<16x128xf32> to vector<2x128xf32>
    %1858 = vector.extract_strided_slice %1807 {offsets = [4, 0], sizes = [2, 128], strides = [1, 1]} : vector<16x128xf32> to vector<2x128xf32>
    %c82_463 = arith.constant 82 : index
    %c0_464 = arith.constant 0 : index
    %1859 = vector.load %arg7[%c82_463, %c0_464] : memref<108x128xf32, #tpu.memory_space<vmem>>, vector<2x128xf32>
    tpu.vector_store %arg7[%c82_463, %c0_464], %1857 {strides = array<i32>} : memref<108x128xf32, #tpu.memory_space<vmem>>, vector<2x128xf32>,
    %c84_465 = arith.constant 84 : index
    %c0_466 = arith.constant 0 : index
    %1860 = vector.load %arg7[%c84_465, %c0_466] : memref<108x128xf32, #tpu.memory_space<vmem>>, vector<2x128xf32>
    tpu.vector_store %arg7[%c84_465, %c0_466], %1858 {strides = array<i32>} : memref<108x128xf32, #tpu.memory_space<vmem>>, vector<2x128xf32>,
    %1861 = vector.extract_strided_slice %1802 {offsets = [6, 0], sizes = [2, 128], strides = [1, 1]} : vector<16x128xf32> to vector<2x128xf32>
    %1862 = vector.extract_strided_slice %1807 {offsets = [6, 0], sizes = [2, 128], strides = [1, 1]} : vector<16x128xf32> to vector<2x128xf32>
    %c86_467 = arith.constant 86 : index
    %c0_468 = arith.constant 0 : index
    %1863 = vector.load %arg7[%c86_467, %c0_468] : memref<108x128xf32, #tpu.memory_space<vmem>>, vector<2x128xf32>
    tpu.vector_store %arg7[%c86_467, %c0_468], %1861 {strides = array<i32>} : memref<108x128xf32, #tpu.memory_space<vmem>>, vector<2x128xf32>,
    %c88_469 = arith.constant 88 : index
    %c0_470 = arith.constant 0 : index
    %1864 = vector.load %arg7[%c88_469, %c0_470] : memref<108x128xf32, #tpu.memory_space<vmem>>, vector<2x128xf32>
    tpu.vector_store %arg7[%c88_469, %c0_470], %1862 {strides = array<i32>} : memref<108x128xf32, #tpu.memory_space<vmem>>, vector<2x128xf32>,
    %1865 = vector.extract_strided_slice %1802 {offsets = [8, 0], sizes = [2, 128], strides = [1, 1]} : vector<16x128xf32> to vector<2x128xf32>
    %1866 = vector.extract_strided_slice %1807 {offsets = [8, 0], sizes = [2, 128], strides = [1, 1]} : vector<16x128xf32> to vector<2x128xf32>
    %c90_471 = arith.constant 90 : index
    %c0_472 = arith.constant 0 : index
    %1867 = vector.load %arg7[%c90_471, %c0_472] : memref<108x128xf32, #tpu.memory_space<vmem>>, vector<2x128xf32>
    tpu.vector_store %arg7[%c90_471, %c0_472], %1865 {strides = array<i32>} : memref<108x128xf32, #tpu.memory_space<vmem>>, vector<2x128xf32>,
    %c92_473 = arith.constant 92 : index
    %c0_474 = arith.constant 0 : index
    %1868 = vector.load %arg7[%c92_473, %c0_474] : memref<108x128xf32, #tpu.memory_space<vmem>>, vector<2x128xf32>
    tpu.vector_store %arg7[%c92_473, %c0_474], %1866 {strides = array<i32>} : memref<108x128xf32, #tpu.memory_space<vmem>>, vector<2x128xf32>,
    %1869 = vector.extract_strided_slice %1802 {offsets = [10, 0], sizes = [2, 128], strides = [1, 1]} : vector<16x128xf32> to vector<2x128xf32>
    %1870 = vector.extract_strided_slice %1807 {offsets = [10, 0], sizes = [2, 128], strides = [1, 1]} : vector<16x128xf32> to vector<2x128xf32>
    %c94_475 = arith.constant 94 : index
    %c0_476 = arith.constant 0 : index
    %1871 = vector.load %arg7[%c94_475, %c0_476] : memref<108x128xf32, #tpu.memory_space<vmem>>, vector<2x128xf32>
    tpu.vector_store %arg7[%c94_475, %c0_476], %1869 {strides = array<i32>} : memref<108x128xf32, #tpu.memory_space<vmem>>, vector<2x128xf32>,
    %c96_477 = arith.constant 96 : index
    %c0_478 = arith.constant 0 : index
    %1872 = vector.load %arg7[%c96_477, %c0_478] : memref<108x128xf32, #tpu.memory_space<vmem>>, vector<2x128xf32>
    tpu.vector_store %arg7[%c96_477, %c0_478], %1870 {strides = array<i32>} : memref<108x128xf32, #tpu.memory_space<vmem>>, vector<2x128xf32>,
    %1873 = vector.extract_strided_slice %1802 {offsets = [12, 0], sizes = [2, 128], strides = [1, 1]} : vector<16x128xf32> to vector<2x128xf32>
    %1874 = vector.extract_strided_slice %1807 {offsets = [12, 0], sizes = [2, 128], strides = [1, 1]} : vector<16x128xf32> to vector<2x128xf32>
    %c98_479 = arith.constant 98 : index
    %c0_480 = arith.constant 0 : index
    %1875 = vector.load %arg7[%c98_479, %c0_480] : memref<108x128xf32, #tpu.memory_space<vmem>>, vector<2x128xf32>
    tpu.vector_store %arg7[%c98_479, %c0_480], %1873 {strides = array<i32>} : memref<108x128xf32, #tpu.memory_space<vmem>>, vector<2x128xf32>,
    %c100_481 = arith.constant 100 : index
    %c0_482 = arith.constant 0 : index
    %1876 = vector.load %arg7[%c100_481, %c0_482] : memref<108x128xf32, #tpu.memory_space<vmem>>, vector<2x128xf32>
    tpu.vector_store %arg7[%c100_481, %c0_482], %1874 {strides = array<i32>} : memref<108x128xf32, #tpu.memory_space<vmem>>, vector<2x128xf32>,
    %1877 = vector.extract_strided_slice %1802 {offsets = [14, 0], sizes = [2, 128], strides = [1, 1]} : vector<16x128xf32> to vector<2x128xf32>
    %c102_483 = arith.constant 102 : index
    %c0_484 = arith.constant 0 : index
    %1878 = vector.load %arg7[%c102_483, %c0_484] : memref<108x128xf32, #tpu.memory_space<vmem>>, vector<2x128xf32>
    tpu.vector_store %arg7[%c102_483, %c0_484], %1877 {strides = array<i32>} : memref<108x128xf32, #tpu.memory_space<vmem>>, vector<2x128xf32>,
    %c104_485 = arith.constant 104 : index
    %c0_486 = arith.constant 0 : index
    %1879 = vector.load %arg7[%c104_485, %c0_486] : memref<108x128xf32, #tpu.memory_space<vmem>>, vector<2x128xf32>
    tpu.vector_store %arg7[%c104_485, %c0_486], %1849 {strides = array<i32>} : memref<108x128xf32, #tpu.memory_space<vmem>>, vector<2x128xf32>,
    %1880 = vector.extract_strided_slice %1837 {offsets = [0, 0], sizes = [2, 1], strides = [1, 1]} : vector<2x128xf32> to vector<2x1xf32>
    %1881 = vector.extract_strided_slice %1849 {offsets = [0, 0], sizes = [2, 127], strides = [1, 1]} : vector<2x128xf32> to vector<2x127xf32>
    %1882 = tpu.concatenate %1880, %1881 in 1 : vector<2x1xf32>, vector<2x127xf32> -> vector<2x128xf32>
    %1883 = vector.extract_strided_slice %1837 {offsets = [0, 1], sizes = [2, 94], strides = [1, 1]} : vector<2x128xf32> to vector<2x94xf32>
    %1884 = vector.extract_strided_slice %1849 {offsets = [0, 94], sizes = [2, 1], strides = [1, 1]} : vector<2x128xf32> to vector<2x1xf32>
    %1885 = vector.extract_strided_slice %1849 {offsets = [0, 95], sizes = [2, 33], strides = [1, 1]} : vector<2x128xf32> to vector<2x33xf32>
    %1886 = tpu.concatenate %1883, %1884, %1885 in 1 : vector<2x94xf32>, vector<2x1xf32>, vector<2x33xf32> -> vector<2x128xf32>
    %c72_487 = arith.constant 72 : index
    %c0_488 = arith.constant 0 : index
    %1887 = vector.load %arg7[%c72_487, %c0_488] : memref<108x128xf32, #tpu.memory_space<vmem>>, vector<2x128xf32>
    tpu.vector_store %arg7[%c72_487, %c0_488], %1882 {strides = array<i32>} : memref<108x128xf32, #tpu.memory_space<vmem>>, vector<2x128xf32>,
    %c106_489 = arith.constant 106 : index
    %c0_490 = arith.constant 0 : index
    %1888 = vector.load %arg7[%c106_489, %c0_490] : memref<108x128xf32, #tpu.memory_space<vmem>>, vector<2x128xf32>
    tpu.vector_store %arg7[%c106_489, %c0_490], %1886 {strides = array<i32>} : memref<108x128xf32, #tpu.memory_space<vmem>>, vector<2x128xf32>,
    %c288 = arith.constant 288 : index
    %1889 = memref.load %arg0[%c288] : memref<360xf32, #tpu.memory_space<smem>>
    %c289 = arith.constant 289 : index
    %1890 = memref.load %arg0[%c289] : memref<360xf32, #tpu.memory_space<smem>>
    %c290 = arith.constant 290 : index
    %1891 = memref.load %arg0[%c290] : memref<360xf32, #tpu.memory_space<smem>>
    %c291 = arith.constant 291 : index
    %1892 = memref.load %arg0[%c291] : memref<360xf32, #tpu.memory_space<smem>>
    %c292 = arith.constant 292 : index
    %1893 = memref.load %arg0[%c292] : memref<360xf32, #tpu.memory_space<smem>>
    %c293 = arith.constant 293 : index
    %1894 = memref.load %arg0[%c293] : memref<360xf32, #tpu.memory_space<smem>>
    %c294 = arith.constant 294 : index
    %1895 = memref.load %arg0[%c294] : memref<360xf32, #tpu.memory_space<smem>>
    %c295 = arith.constant 295 : index
    %1896 = memref.load %arg0[%c295] : memref<360xf32, #tpu.memory_space<smem>>
    %c296 = arith.constant 296 : index
    %1897 = memref.load %arg0[%c296] : memref<360xf32, #tpu.memory_space<smem>>
    %c297 = arith.constant 297 : index
    %1898 = memref.load %arg0[%c297] : memref<360xf32, #tpu.memory_space<smem>>
    %c298 = arith.constant 298 : index
    %1899 = memref.load %arg0[%c298] : memref<360xf32, #tpu.memory_space<smem>>
    %c299 = arith.constant 299 : index
    %1900 = memref.load %arg0[%c299] : memref<360xf32, #tpu.memory_space<smem>>
    %c300 = arith.constant 300 : index
    %1901 = memref.load %arg0[%c300] : memref<360xf32, #tpu.memory_space<smem>>
    %c301 = arith.constant 301 : index
    %1902 = memref.load %arg0[%c301] : memref<360xf32, #tpu.memory_space<smem>>
    %c302 = arith.constant 302 : index
    %1903 = memref.load %arg0[%c302] : memref<360xf32, #tpu.memory_space<smem>>
    %c303 = arith.constant 303 : index
    %1904 = memref.load %arg0[%c303] : memref<360xf32, #tpu.memory_space<smem>>
    %c304 = arith.constant 304 : index
    %1905 = memref.load %arg0[%c304] : memref<360xf32, #tpu.memory_space<smem>>
    %c305 = arith.constant 305 : index
    %1906 = memref.load %arg0[%c305] : memref<360xf32, #tpu.memory_space<smem>>
    %c306 = arith.constant 306 : index
    %1907 = memref.load %arg0[%c306] : memref<360xf32, #tpu.memory_space<smem>>
    %c307 = arith.constant 307 : index
    %1908 = memref.load %arg0[%c307] : memref<360xf32, #tpu.memory_space<smem>>
    %c308 = arith.constant 308 : index
    %1909 = memref.load %arg0[%c308] : memref<360xf32, #tpu.memory_space<smem>>
    %c309 = arith.constant 309 : index
    %1910 = memref.load %arg0[%c309] : memref<360xf32, #tpu.memory_space<smem>>
    %c310 = arith.constant 310 : index
    %1911 = memref.load %arg0[%c310] : memref<360xf32, #tpu.memory_space<smem>>
    %c311 = arith.constant 311 : index
    %1912 = memref.load %arg0[%c311] : memref<360xf32, #tpu.memory_space<smem>>
    %c312 = arith.constant 312 : index
    %1913 = memref.load %arg0[%c312] : memref<360xf32, #tpu.memory_space<smem>>
    %c313 = arith.constant 313 : index
    %1914 = memref.load %arg0[%c313] : memref<360xf32, #tpu.memory_space<smem>>
    %c314 = arith.constant 314 : index
    %1915 = memref.load %arg0[%c314] : memref<360xf32, #tpu.memory_space<smem>>
    %c315 = arith.constant 315 : index
    %1916 = memref.load %arg0[%c315] : memref<360xf32, #tpu.memory_space<smem>>
    %c316 = arith.constant 316 : index
    %1917 = memref.load %arg0[%c316] : memref<360xf32, #tpu.memory_space<smem>>
    %c317 = arith.constant 317 : index
    %1918 = memref.load %arg0[%c317] : memref<360xf32, #tpu.memory_space<smem>>
    %c318 = arith.constant 318 : index
    %1919 = memref.load %arg0[%c318] : memref<360xf32, #tpu.memory_space<smem>>
    %c319 = arith.constant 319 : index
    %1920 = memref.load %arg0[%c319] : memref<360xf32, #tpu.memory_space<smem>>
    %c320 = arith.constant 320 : index
    %1921 = memref.load %arg0[%c320] : memref<360xf32, #tpu.memory_space<smem>>
    %c321 = arith.constant 321 : index
    %1922 = memref.load %arg0[%c321] : memref<360xf32, #tpu.memory_space<smem>>
    %c322 = arith.constant 322 : index
    %1923 = memref.load %arg0[%c322] : memref<360xf32, #tpu.memory_space<smem>>
    %c323 = arith.constant 323 : index
    %1924 = memref.load %arg0[%c323] : memref<360xf32, #tpu.memory_space<smem>>
    %c324 = arith.constant 324 : index
    %1925 = memref.load %arg0[%c324] : memref<360xf32, #tpu.memory_space<smem>>
    %c325 = arith.constant 325 : index
    %1926 = memref.load %arg0[%c325] : memref<360xf32, #tpu.memory_space<smem>>
    %c326 = arith.constant 326 : index
    %1927 = memref.load %arg0[%c326] : memref<360xf32, #tpu.memory_space<smem>>
    %c327 = arith.constant 327 : index
    %1928 = memref.load %arg0[%c327] : memref<360xf32, #tpu.memory_space<smem>>
    %c328 = arith.constant 328 : index
    %1929 = memref.load %arg0[%c328] : memref<360xf32, #tpu.memory_space<smem>>
    %c329 = arith.constant 329 : index
    %1930 = memref.load %arg0[%c329] : memref<360xf32, #tpu.memory_space<smem>>
    %c330 = arith.constant 330 : index
    %1931 = memref.load %arg0[%c330] : memref<360xf32, #tpu.memory_space<smem>>
    %c331 = arith.constant 331 : index
    %1932 = memref.load %arg0[%c331] : memref<360xf32, #tpu.memory_space<smem>>
    %c332 = arith.constant 332 : index
    %1933 = memref.load %arg0[%c332] : memref<360xf32, #tpu.memory_space<smem>>
    %c333 = arith.constant 333 : index
    %1934 = memref.load %arg0[%c333] : memref<360xf32, #tpu.memory_space<smem>>
    %c334 = arith.constant 334 : index
    %1935 = memref.load %arg0[%c334] : memref<360xf32, #tpu.memory_space<smem>>
    %c335 = arith.constant 335 : index
    %1936 = memref.load %arg0[%c335] : memref<360xf32, #tpu.memory_space<smem>>
    %c336 = arith.constant 336 : index
    %1937 = memref.load %arg0[%c336] : memref<360xf32, #tpu.memory_space<smem>>
    %c337 = arith.constant 337 : index
    %1938 = memref.load %arg0[%c337] : memref<360xf32, #tpu.memory_space<smem>>
    %c338 = arith.constant 338 : index
    %1939 = memref.load %arg0[%c338] : memref<360xf32, #tpu.memory_space<smem>>
    %c339 = arith.constant 339 : index
    %1940 = memref.load %arg0[%c339] : memref<360xf32, #tpu.memory_space<smem>>
    %c340 = arith.constant 340 : index
    %1941 = memref.load %arg0[%c340] : memref<360xf32, #tpu.memory_space<smem>>
    %c341 = arith.constant 341 : index
    %1942 = memref.load %arg0[%c341] : memref<360xf32, #tpu.memory_space<smem>>
    %c342 = arith.constant 342 : index
    %1943 = memref.load %arg0[%c342] : memref<360xf32, #tpu.memory_space<smem>>
    %c343 = arith.constant 343 : index
    %1944 = memref.load %arg0[%c343] : memref<360xf32, #tpu.memory_space<smem>>
    %c344 = arith.constant 344 : index
    %1945 = memref.load %arg0[%c344] : memref<360xf32, #tpu.memory_space<smem>>
    %c345 = arith.constant 345 : index
    %1946 = memref.load %arg0[%c345] : memref<360xf32, #tpu.memory_space<smem>>
    %c346 = arith.constant 346 : index
    %1947 = memref.load %arg0[%c346] : memref<360xf32, #tpu.memory_space<smem>>
    %c347 = arith.constant 347 : index
    %1948 = memref.load %arg0[%c347] : memref<360xf32, #tpu.memory_space<smem>>
    %c348 = arith.constant 348 : index
    %1949 = memref.load %arg0[%c348] : memref<360xf32, #tpu.memory_space<smem>>
    %c349 = arith.constant 349 : index
    %1950 = memref.load %arg0[%c349] : memref<360xf32, #tpu.memory_space<smem>>
    %c350 = arith.constant 350 : index
    %1951 = memref.load %arg0[%c350] : memref<360xf32, #tpu.memory_space<smem>>
    %c351 = arith.constant 351 : index
    %1952 = memref.load %arg0[%c351] : memref<360xf32, #tpu.memory_space<smem>>
    %c352 = arith.constant 352 : index
    %1953 = memref.load %arg0[%c352] : memref<360xf32, #tpu.memory_space<smem>>
    %c353 = arith.constant 353 : index
    %1954 = memref.load %arg0[%c353] : memref<360xf32, #tpu.memory_space<smem>>
    %c354 = arith.constant 354 : index
    %1955 = memref.load %arg0[%c354] : memref<360xf32, #tpu.memory_space<smem>>
    %c355 = arith.constant 355 : index
    %1956 = memref.load %arg0[%c355] : memref<360xf32, #tpu.memory_space<smem>>
    %c356 = arith.constant 356 : index
    %1957 = memref.load %arg0[%c356] : memref<360xf32, #tpu.memory_space<smem>>
    %c357 = arith.constant 357 : index
    %1958 = memref.load %arg0[%c357] : memref<360xf32, #tpu.memory_space<smem>>
    %c358 = arith.constant 358 : index
    %1959 = memref.load %arg0[%c358] : memref<360xf32, #tpu.memory_space<smem>>
    %c359 = arith.constant 359 : index
    %1960 = memref.load %arg0[%c359] : memref<360xf32, #tpu.memory_space<smem>>
    %c12_491 = arith.constant 12 : index
    %1961 = memref.load %arg1[%c12_491] : memref<15xf32, #tpu.memory_space<smem>>
    %c13_492 = arith.constant 13 : index
    %1962 = memref.load %arg1[%c13_492] : memref<15xf32, #tpu.memory_space<smem>>
    %c14_493 = arith.constant 14 : index
    %1963 = memref.load %arg1[%c14_493] : memref<15xf32, #tpu.memory_space<smem>>
    %c0_494 = arith.constant 0 : index
    %1964 = memref.load %arg2[%c0_494] : memref<3xf32, #tpu.memory_space<smem>>
    %c1_495 = arith.constant 1 : index
    %1965 = memref.load %arg2[%c1_495] : memref<3xf32, #tpu.memory_space<smem>>
    %c2_496 = arith.constant 2 : index
    %1966 = memref.load %arg2[%c2_496] : memref<3xf32, #tpu.memory_space<smem>>
    %c0_497 = arith.constant 0 : index
    %1967 = memref.load %arg3[%c0_497] : memref<1xf32, #tpu.memory_space<smem>>
    %c0_498 = arith.constant 0 : index
    %c0_499 = arith.constant 0 : index
    %1968 = vector.load %arg7[%c0_498, %c0_499] : memref<108x128xf32, #tpu.memory_space<vmem>>, vector<32x128xf32>
    %c2_500 = arith.constant 2 : index
    %c0_501 = arith.constant 0 : index
    %1969 = vector.load %arg7[%c2_500, %c0_501] : memref<108x128xf32, #tpu.memory_space<vmem>>, vector<32x128xf32>
    %c4_502 = arith.constant 4 : index
    %c0_503 = arith.constant 0 : index
    %1970 = vector.load %arg7[%c4_502, %c0_503] : memref<108x128xf32, #tpu.memory_space<vmem>>, vector<32x128xf32>
    %c2_504 = arith.constant 2 : index
    %c0_505 = arith.constant 0 : index
    %1971 = vector.load %arg7[%c2_504, %c0_505] : memref<108x128xf32, #tpu.memory_space<vmem>>, vector<2x128xf32>
    %c32_506 = arith.constant 32 : index
    %c0_507 = arith.constant 0 : index
    %1972 = vector.load %arg7[%c32_506, %c0_507] : memref<108x128xf32, #tpu.memory_space<vmem>>, vector<2x128xf32>
    %c36_508 = arith.constant 36 : index
    %c0_509 = arith.constant 0 : index
    %1973 = vector.load %arg7[%c36_508, %c0_509] : memref<108x128xf32, #tpu.memory_space<vmem>>, vector<32x128xf32>
    %c38_510 = arith.constant 38 : index
    %c0_511 = arith.constant 0 : index
    %1974 = vector.load %arg7[%c38_510, %c0_511] : memref<108x128xf32, #tpu.memory_space<vmem>>, vector<32x128xf32>
    %c40_512 = arith.constant 40 : index
    %c0_513 = arith.constant 0 : index
    %1975 = vector.load %arg7[%c40_512, %c0_513] : memref<108x128xf32, #tpu.memory_space<vmem>>, vector<32x128xf32>
    %c38_514 = arith.constant 38 : index
    %c0_515 = arith.constant 0 : index
    %1976 = vector.load %arg7[%c38_514, %c0_515] : memref<108x128xf32, #tpu.memory_space<vmem>>, vector<2x128xf32>
    %c68_516 = arith.constant 68 : index
    %c0_517 = arith.constant 0 : index
    %1977 = vector.load %arg7[%c68_516, %c0_517] : memref<108x128xf32, #tpu.memory_space<vmem>>, vector<2x128xf32>
    %c72_518 = arith.constant 72 : index
    %c0_519 = arith.constant 0 : index
    %1978 = vector.load %arg7[%c72_518, %c0_519] : memref<108x128xf32, #tpu.memory_space<vmem>>, vector<32x128xf32>
    %c74_520 = arith.constant 74 : index
    %c0_521 = arith.constant 0 : index
    %1979 = vector.load %arg7[%c74_520, %c0_521] : memref<108x128xf32, #tpu.memory_space<vmem>>, vector<32x128xf32>
    %c76_522 = arith.constant 76 : index
    %c0_523 = arith.constant 0 : index
    %1980 = vector.load %arg7[%c76_522, %c0_523] : memref<108x128xf32, #tpu.memory_space<vmem>>, vector<32x128xf32>
    %c74_524 = arith.constant 74 : index
    %c0_525 = arith.constant 0 : index
    %1981 = vector.load %arg7[%c74_524, %c0_525] : memref<108x128xf32, #tpu.memory_space<vmem>>, vector<2x128xf32>
    %c104_526 = arith.constant 104 : index
    %c0_527 = arith.constant 0 : index
    %1982 = vector.load %arg7[%c104_526, %c0_527] : memref<108x128xf32, #tpu.memory_space<vmem>>, vector<2x128xf32>
    %1983 = vector.broadcast %1889 : f32 to vector<32x128xf32>
    %1984 = arith.mulf %1983, %1968 : vector<32x128xf32>
    %1985 = vector.broadcast %1890 : f32 to vector<32x128xf32>
    %1986 = arith.mulf %1985, %1969 : vector<32x128xf32>
    %1987 = arith.addf %1984, %1986 : vector<32x128xf32>
    %1988 = vector.broadcast %1891 : f32 to vector<32x128xf32>
    %1989 = arith.mulf %1988, %1970 : vector<32x128xf32>
    %1990 = arith.addf %1987, %1989 : vector<32x128xf32>
    %1991 = vector.broadcast %1892 : f32 to vector<32x128xf32>
    %1992 = arith.mulf %1991, %1968 : vector<32x128xf32>
    %1993 = vector.broadcast %1893 : f32 to vector<32x128xf32>
    %1994 = arith.mulf %1993, %1969 : vector<32x128xf32>
    %1995 = arith.addf %1992, %1994 : vector<32x128xf32>
    %1996 = vector.broadcast %1894 : f32 to vector<32x128xf32>
    %1997 = arith.mulf %1996, %1970 : vector<32x128xf32>
    %1998 = arith.addf %1995, %1997 : vector<32x128xf32>
    %1999 = vector.broadcast %1897 : f32 to vector<32x128xf32>
    %2000 = arith.mulf %1999, %1973 : vector<32x128xf32>
    %2001 = vector.broadcast %1898 : f32 to vector<32x128xf32>
    %2002 = arith.mulf %2001, %1974 : vector<32x128xf32>
    %2003 = arith.addf %2000, %2002 : vector<32x128xf32>
    %2004 = vector.broadcast %1899 : f32 to vector<32x128xf32>
    %2005 = arith.mulf %2004, %1975 : vector<32x128xf32>
    %2006 = arith.addf %2003, %2005 : vector<32x128xf32>
    %2007 = vector.broadcast %1900 : f32 to vector<32x128xf32>
    %2008 = arith.mulf %2007, %1973 : vector<32x128xf32>
    %2009 = vector.broadcast %1901 : f32 to vector<32x128xf32>
    %2010 = arith.mulf %2009, %1974 : vector<32x128xf32>
    %2011 = arith.addf %2008, %2010 : vector<32x128xf32>
    %2012 = vector.broadcast %1902 : f32 to vector<32x128xf32>
    %2013 = arith.mulf %2012, %1975 : vector<32x128xf32>
    %2014 = arith.addf %2011, %2013 : vector<32x128xf32>
    %2015 = arith.addf %1990, %2006 : vector<32x128xf32>
    %2016 = arith.addf %1998, %2014 : vector<32x128xf32>
    %2017 = vector.broadcast %1905 : f32 to vector<32x128xf32>
    %2018 = arith.mulf %2017, %1978 : vector<32x128xf32>
    %2019 = vector.broadcast %1906 : f32 to vector<32x128xf32>
    %2020 = arith.mulf %2019, %1979 : vector<32x128xf32>
    %2021 = arith.addf %2018, %2020 : vector<32x128xf32>
    %2022 = vector.broadcast %1907 : f32 to vector<32x128xf32>
    %2023 = arith.mulf %2022, %1980 : vector<32x128xf32>
    %2024 = arith.addf %2021, %2023 : vector<32x128xf32>
    %2025 = vector.broadcast %1908 : f32 to vector<32x128xf32>
    %2026 = arith.mulf %2025, %1978 : vector<32x128xf32>
    %2027 = vector.broadcast %1909 : f32 to vector<32x128xf32>
    %2028 = arith.mulf %2027, %1979 : vector<32x128xf32>
    %2029 = arith.addf %2026, %2028 : vector<32x128xf32>
    %2030 = vector.broadcast %1910 : f32 to vector<32x128xf32>
    %2031 = arith.mulf %2030, %1980 : vector<32x128xf32>
    %2032 = arith.addf %2029, %2031 : vector<32x128xf32>
    %2033 = arith.addf %2015, %2024 : vector<32x128xf32>
    %2034 = arith.addf %2016, %2032 : vector<32x128xf32>
    %2035 = vector.broadcast %1961 : f32 to vector<32x128xf32>
    %2036 = arith.addf %2033, %2035 : vector<32x128xf32>
    %2037 = vector.broadcast %1961 : f32 to vector<32x128xf32>
    %2038 = arith.addf %2034, %2037 : vector<32x128xf32>
    %cst_528 = arith.constant 0.000000e+00 : f32
    %2039 = vector.broadcast %cst_528 : f32 to vector<32x128xf32>
    %2040 = arith.cmpf ogt, %2036, %2039 : vector<32x128xf32>
    %cst_529 = arith.constant 0.00999999977 : f32
    %2041 = vector.broadcast %cst_529 : f32 to vector<32x128xf32>
    %2042 = arith.mulf %2041, %2036 : vector<32x128xf32>
    %2043 = arith.select %2040, %2036, %2042 : vector<32x128xi1>, vector<32x128xf32>
    %cst_530 = arith.constant 0.000000e+00 : f32
    %2044 = vector.broadcast %cst_530 : f32 to vector<32x128xf32>
    %2045 = arith.cmpf ogt, %2038, %2044 : vector<32x128xf32>
    %cst_531 = arith.constant 0.00999999977 : f32
    %2046 = vector.broadcast %cst_531 : f32 to vector<32x128xf32>
    %2047 = arith.mulf %2046, %2038 : vector<32x128xf32>
    %2048 = arith.select %2045, %2038, %2047 : vector<32x128xi1>, vector<32x128xf32>
    %2049 = vector.broadcast %1895 : f32 to vector<2x128xf32>
    %2050 = arith.mulf %2049, %1971 : vector<2x128xf32>
    %2051 = vector.broadcast %1896 : f32 to vector<2x128xf32>
    %2052 = arith.mulf %2051, %1972 : vector<2x128xf32>
    %2053 = vector.broadcast %1903 : f32 to vector<2x128xf32>
    %2054 = arith.mulf %2053, %1976 : vector<2x128xf32>
    %2055 = vector.broadcast %1904 : f32 to vector<2x128xf32>
    %2056 = arith.mulf %2055, %1977 : vector<2x128xf32>
    %2057 = arith.addf %2050, %2054 : vector<2x128xf32>
    %2058 = arith.addf %2052, %2056 : vector<2x128xf32>
    %2059 = vector.broadcast %1911 : f32 to vector<2x128xf32>
    %2060 = arith.mulf %2059, %1981 : vector<2x128xf32>
    %2061 = vector.broadcast %1912 : f32 to vector<2x128xf32>
    %2062 = arith.mulf %2061, %1982 : vector<2x128xf32>
    %2063 = arith.addf %2057, %2060 : vector<2x128xf32>
    %2064 = arith.addf %2058, %2062 : vector<2x128xf32>
    %2065 = vector.extract_strided_slice %2036 {offsets = [0, 0], sizes = [2, 128], strides = [1, 1]} : vector<32x128xf32> to vector<2x128xf32>
    %2066 = vector.extract_strided_slice %2038 {offsets = [30, 0], sizes = [2, 128], strides = [1, 1]} : vector<32x128xf32> to vector<2x128xf32>
    %2067 = arith.subf %2065, %2063 : vector<2x128xf32>
    %cst_532 = arith.constant 0.000000e+00 : f32
    %2068 = vector.broadcast %cst_532 : f32 to vector<2x128xf32>
    %2069 = arith.cmpf ogt, %2067, %2068 : vector<2x128xf32>
    %cst_533 = arith.constant 0.00999999977 : f32
    %2070 = vector.broadcast %cst_533 : f32 to vector<2x128xf32>
    %2071 = arith.mulf %2070, %2067 : vector<2x128xf32>
    %2072 = arith.select %2069, %2067, %2071 : vector<2x128xi1>, vector<2x128xf32>
    %cst_534 = arith.constant 0.000000e+00 : f32
    %2073 = vector.broadcast %cst_534 : f32 to vector<2x128xf32>
    %2074 = arith.cmpf ogt, %2065, %2073 : vector<2x128xf32>
    %cst_535 = arith.constant 0.00999999977 : f32
    %2075 = vector.broadcast %cst_535 : f32 to vector<2x128xf32>
    %2076 = arith.mulf %2075, %2065 : vector<2x128xf32>
    %2077 = arith.select %2074, %2065, %2076 : vector<2x128xi1>, vector<2x128xf32>
    %2078 = arith.select %2, %2072, %2077 : vector<2x128xi1>, vector<2x128xf32>
    %2079 = arith.subf %2066, %2064 : vector<2x128xf32>
    %cst_536 = arith.constant 0.000000e+00 : f32
    %2080 = vector.broadcast %cst_536 : f32 to vector<2x128xf32>
    %2081 = arith.cmpf ogt, %2079, %2080 : vector<2x128xf32>
    %cst_537 = arith.constant 0.00999999977 : f32
    %2082 = vector.broadcast %cst_537 : f32 to vector<2x128xf32>
    %2083 = arith.mulf %2082, %2079 : vector<2x128xf32>
    %2084 = arith.select %2081, %2079, %2083 : vector<2x128xi1>, vector<2x128xf32>
    %cst_538 = arith.constant 0.000000e+00 : f32
    %2085 = vector.broadcast %cst_538 : f32 to vector<2x128xf32>
    %2086 = arith.cmpf ogt, %2066, %2085 : vector<2x128xf32>
    %cst_539 = arith.constant 0.00999999977 : f32
    %2087 = vector.broadcast %cst_539 : f32 to vector<2x128xf32>
    %2088 = arith.mulf %2087, %2066 : vector<2x128xf32>
    %2089 = arith.select %2086, %2066, %2088 : vector<2x128xi1>, vector<2x128xf32>
    %2090 = arith.select %4, %2084, %2089 : vector<2x128xi1>, vector<2x128xf32>
    %2091 = vector.broadcast %1964 : f32 to vector<32x128xf32>
    %2092 = arith.mulf %2091, %2043 : vector<32x128xf32>
    %2093 = vector.broadcast %1964 : f32 to vector<32x128xf32>
    %2094 = arith.mulf %2093, %2048 : vector<32x128xf32>
    %2095 = vector.broadcast %1964 : f32 to vector<2x128xf32>
    %2096 = arith.mulf %2095, %2078 : vector<2x128xf32>
    %2097 = vector.broadcast %1964 : f32 to vector<2x128xf32>
    %2098 = arith.mulf %2097, %2090 : vector<2x128xf32>
    %2099 = vector.broadcast %1913 : f32 to vector<32x128xf32>
    %2100 = arith.mulf %2099, %1968 : vector<32x128xf32>
    %2101 = vector.broadcast %1914 : f32 to vector<32x128xf32>
    %2102 = arith.mulf %2101, %1969 : vector<32x128xf32>
    %2103 = arith.addf %2100, %2102 : vector<32x128xf32>
    %2104 = vector.broadcast %1915 : f32 to vector<32x128xf32>
    %2105 = arith.mulf %2104, %1970 : vector<32x128xf32>
    %2106 = arith.addf %2103, %2105 : vector<32x128xf32>
    %2107 = vector.broadcast %1916 : f32 to vector<32x128xf32>
    %2108 = arith.mulf %2107, %1968 : vector<32x128xf32>
    %2109 = vector.broadcast %1917 : f32 to vector<32x128xf32>
    %2110 = arith.mulf %2109, %1969 : vector<32x128xf32>
    %2111 = arith.addf %2108, %2110 : vector<32x128xf32>
    %2112 = vector.broadcast %1918 : f32 to vector<32x128xf32>
    %2113 = arith.mulf %2112, %1970 : vector<32x128xf32>
    %2114 = arith.addf %2111, %2113 : vector<32x128xf32>
    %2115 = vector.broadcast %1921 : f32 to vector<32x128xf32>
    %2116 = arith.mulf %2115, %1973 : vector<32x128xf32>
    %2117 = vector.broadcast %1922 : f32 to vector<32x128xf32>
    %2118 = arith.mulf %2117, %1974 : vector<32x128xf32>
    %2119 = arith.addf %2116, %2118 : vector<32x128xf32>
    %2120 = vector.broadcast %1923 : f32 to vector<32x128xf32>
    %2121 = arith.mulf %2120, %1975 : vector<32x128xf32>
    %2122 = arith.addf %2119, %2121 : vector<32x128xf32>
    %2123 = vector.broadcast %1924 : f32 to vector<32x128xf32>
    %2124 = arith.mulf %2123, %1973 : vector<32x128xf32>
    %2125 = vector.broadcast %1925 : f32 to vector<32x128xf32>
    %2126 = arith.mulf %2125, %1974 : vector<32x128xf32>
    %2127 = arith.addf %2124, %2126 : vector<32x128xf32>
    %2128 = vector.broadcast %1926 : f32 to vector<32x128xf32>
    %2129 = arith.mulf %2128, %1975 : vector<32x128xf32>
    %2130 = arith.addf %2127, %2129 : vector<32x128xf32>
    %2131 = arith.addf %2106, %2122 : vector<32x128xf32>
    %2132 = arith.addf %2114, %2130 : vector<32x128xf32>
    %2133 = vector.broadcast %1929 : f32 to vector<32x128xf32>
    %2134 = arith.mulf %2133, %1978 : vector<32x128xf32>
    %2135 = vector.broadcast %1930 : f32 to vector<32x128xf32>
    %2136 = arith.mulf %2135, %1979 : vector<32x128xf32>
    %2137 = arith.addf %2134, %2136 : vector<32x128xf32>
    %2138 = vector.broadcast %1931 : f32 to vector<32x128xf32>
    %2139 = arith.mulf %2138, %1980 : vector<32x128xf32>
    %2140 = arith.addf %2137, %2139 : vector<32x128xf32>
    %2141 = vector.broadcast %1932 : f32 to vector<32x128xf32>
    %2142 = arith.mulf %2141, %1978 : vector<32x128xf32>
    %2143 = vector.broadcast %1933 : f32 to vector<32x128xf32>
    %2144 = arith.mulf %2143, %1979 : vector<32x128xf32>
    %2145 = arith.addf %2142, %2144 : vector<32x128xf32>
    %2146 = vector.broadcast %1934 : f32 to vector<32x128xf32>
    %2147 = arith.mulf %2146, %1980 : vector<32x128xf32>
    %2148 = arith.addf %2145, %2147 : vector<32x128xf32>
    %2149 = arith.addf %2131, %2140 : vector<32x128xf32>
    %2150 = arith.addf %2132, %2148 : vector<32x128xf32>
    %2151 = vector.broadcast %1962 : f32 to vector<32x128xf32>
    %2152 = arith.addf %2149, %2151 : vector<32x128xf32>
    %2153 = vector.broadcast %1962 : f32 to vector<32x128xf32>
    %2154 = arith.addf %2150, %2153 : vector<32x128xf32>
    %cst_540 = arith.constant 0.000000e+00 : f32
    %2155 = vector.broadcast %cst_540 : f32 to vector<32x128xf32>
    %2156 = arith.cmpf ogt, %2152, %2155 : vector<32x128xf32>
    %cst_541 = arith.constant 0.00999999977 : f32
    %2157 = vector.broadcast %cst_541 : f32 to vector<32x128xf32>
    %2158 = arith.mulf %2157, %2152 : vector<32x128xf32>
    %2159 = arith.select %2156, %2152, %2158 : vector<32x128xi1>, vector<32x128xf32>
    %cst_542 = arith.constant 0.000000e+00 : f32
    %2160 = vector.broadcast %cst_542 : f32 to vector<32x128xf32>
    %2161 = arith.cmpf ogt, %2154, %2160 : vector<32x128xf32>
    %cst_543 = arith.constant 0.00999999977 : f32
    %2162 = vector.broadcast %cst_543 : f32 to vector<32x128xf32>
    %2163 = arith.mulf %2162, %2154 : vector<32x128xf32>
    %2164 = arith.select %2161, %2154, %2163 : vector<32x128xi1>, vector<32x128xf32>
    %2165 = vector.broadcast %1919 : f32 to vector<2x128xf32>
    %2166 = arith.mulf %2165, %1971 : vector<2x128xf32>
    %2167 = vector.broadcast %1920 : f32 to vector<2x128xf32>
    %2168 = arith.mulf %2167, %1972 : vector<2x128xf32>
    %2169 = vector.broadcast %1927 : f32 to vector<2x128xf32>
    %2170 = arith.mulf %2169, %1976 : vector<2x128xf32>
    %2171 = vector.broadcast %1928 : f32 to vector<2x128xf32>
    %2172 = arith.mulf %2171, %1977 : vector<2x128xf32>
    %2173 = arith.addf %2166, %2170 : vector<2x128xf32>
    %2174 = arith.addf %2168, %2172 : vector<2x128xf32>
    %2175 = vector.broadcast %1935 : f32 to vector<2x128xf32>
    %2176 = arith.mulf %2175, %1981 : vector<2x128xf32>
    %2177 = vector.broadcast %1936 : f32 to vector<2x128xf32>
    %2178 = arith.mulf %2177, %1982 : vector<2x128xf32>
    %2179 = arith.addf %2173, %2176 : vector<2x128xf32>
    %2180 = arith.addf %2174, %2178 : vector<2x128xf32>
    %2181 = vector.extract_strided_slice %2152 {offsets = [0, 0], sizes = [2, 128], strides = [1, 1]} : vector<32x128xf32> to vector<2x128xf32>
    %2182 = vector.extract_strided_slice %2154 {offsets = [30, 0], sizes = [2, 128], strides = [1, 1]} : vector<32x128xf32> to vector<2x128xf32>
    %2183 = arith.subf %2181, %2179 : vector<2x128xf32>
    %cst_544 = arith.constant 0.000000e+00 : f32
    %2184 = vector.broadcast %cst_544 : f32 to vector<2x128xf32>
    %2185 = arith.cmpf ogt, %2183, %2184 : vector<2x128xf32>
    %cst_545 = arith.constant 0.00999999977 : f32
    %2186 = vector.broadcast %cst_545 : f32 to vector<2x128xf32>
    %2187 = arith.mulf %2186, %2183 : vector<2x128xf32>
    %2188 = arith.select %2185, %2183, %2187 : vector<2x128xi1>, vector<2x128xf32>
    %cst_546 = arith.constant 0.000000e+00 : f32
    %2189 = vector.broadcast %cst_546 : f32 to vector<2x128xf32>
    %2190 = arith.cmpf ogt, %2181, %2189 : vector<2x128xf32>
    %cst_547 = arith.constant 0.00999999977 : f32
    %2191 = vector.broadcast %cst_547 : f32 to vector<2x128xf32>
    %2192 = arith.mulf %2191, %2181 : vector<2x128xf32>
    %2193 = arith.select %2190, %2181, %2192 : vector<2x128xi1>, vector<2x128xf32>
    %2194 = arith.select %2, %2188, %2193 : vector<2x128xi1>, vector<2x128xf32>
    %2195 = arith.subf %2182, %2180 : vector<2x128xf32>
    %cst_548 = arith.constant 0.000000e+00 : f32
    %2196 = vector.broadcast %cst_548 : f32 to vector<2x128xf32>
    %2197 = arith.cmpf ogt, %2195, %2196 : vector<2x128xf32>
    %cst_549 = arith.constant 0.00999999977 : f32
    %2198 = vector.broadcast %cst_549 : f32 to vector<2x128xf32>
    %2199 = arith.mulf %2198, %2195 : vector<2x128xf32>
    %2200 = arith.select %2197, %2195, %2199 : vector<2x128xi1>, vector<2x128xf32>
    %cst_550 = arith.constant 0.000000e+00 : f32
    %2201 = vector.broadcast %cst_550 : f32 to vector<2x128xf32>
    %2202 = arith.cmpf ogt, %2182, %2201 : vector<2x128xf32>
    %cst_551 = arith.constant 0.00999999977 : f32
    %2203 = vector.broadcast %cst_551 : f32 to vector<2x128xf32>
    %2204 = arith.mulf %2203, %2182 : vector<2x128xf32>
    %2205 = arith.select %2202, %2182, %2204 : vector<2x128xi1>, vector<2x128xf32>
    %2206 = arith.select %4, %2200, %2205 : vector<2x128xi1>, vector<2x128xf32>
    %2207 = vector.broadcast %1965 : f32 to vector<32x128xf32>
    %2208 = arith.mulf %2207, %2159 : vector<32x128xf32>
    %2209 = vector.broadcast %1965 : f32 to vector<32x128xf32>
    %2210 = arith.mulf %2209, %2164 : vector<32x128xf32>
    %2211 = arith.addf %2092, %2208 : vector<32x128xf32>
    %2212 = arith.addf %2094, %2210 : vector<32x128xf32>
    %2213 = vector.broadcast %1965 : f32 to vector<2x128xf32>
    %2214 = arith.mulf %2213, %2194 : vector<2x128xf32>
    %2215 = vector.broadcast %1965 : f32 to vector<2x128xf32>
    %2216 = arith.mulf %2215, %2206 : vector<2x128xf32>
    %2217 = arith.addf %2096, %2214 : vector<2x128xf32>
    %2218 = arith.addf %2098, %2216 : vector<2x128xf32>
    %2219 = vector.broadcast %1937 : f32 to vector<32x128xf32>
    %2220 = arith.mulf %2219, %1968 : vector<32x128xf32>
    %2221 = vector.broadcast %1938 : f32 to vector<32x128xf32>
    %2222 = arith.mulf %2221, %1969 : vector<32x128xf32>
    %2223 = arith.addf %2220, %2222 : vector<32x128xf32>
    %2224 = vector.broadcast %1939 : f32 to vector<32x128xf32>
    %2225 = arith.mulf %2224, %1970 : vector<32x128xf32>
    %2226 = arith.addf %2223, %2225 : vector<32x128xf32>
    %2227 = vector.broadcast %1940 : f32 to vector<32x128xf32>
    %2228 = arith.mulf %2227, %1968 : vector<32x128xf32>
    %2229 = vector.broadcast %1941 : f32 to vector<32x128xf32>
    %2230 = arith.mulf %2229, %1969 : vector<32x128xf32>
    %2231 = arith.addf %2228, %2230 : vector<32x128xf32>
    %2232 = vector.broadcast %1942 : f32 to vector<32x128xf32>
    %2233 = arith.mulf %2232, %1970 : vector<32x128xf32>
    %2234 = arith.addf %2231, %2233 : vector<32x128xf32>
    %2235 = vector.broadcast %1945 : f32 to vector<32x128xf32>
    %2236 = arith.mulf %2235, %1973 : vector<32x128xf32>
    %2237 = vector.broadcast %1946 : f32 to vector<32x128xf32>
    %2238 = arith.mulf %2237, %1974 : vector<32x128xf32>
    %2239 = arith.addf %2236, %2238 : vector<32x128xf32>
    %2240 = vector.broadcast %1947 : f32 to vector<32x128xf32>
    %2241 = arith.mulf %2240, %1975 : vector<32x128xf32>
    %2242 = arith.addf %2239, %2241 : vector<32x128xf32>
    %2243 = vector.broadcast %1948 : f32 to vector<32x128xf32>
    %2244 = arith.mulf %2243, %1973 : vector<32x128xf32>
    %2245 = vector.broadcast %1949 : f32 to vector<32x128xf32>
    %2246 = arith.mulf %2245, %1974 : vector<32x128xf32>
    %2247 = arith.addf %2244, %2246 : vector<32x128xf32>
    %2248 = vector.broadcast %1950 : f32 to vector<32x128xf32>
    %2249 = arith.mulf %2248, %1975 : vector<32x128xf32>
    %2250 = arith.addf %2247, %2249 : vector<32x128xf32>
    %2251 = arith.addf %2226, %2242 : vector<32x128xf32>
    %2252 = arith.addf %2234, %2250 : vector<32x128xf32>
    %2253 = vector.broadcast %1953 : f32 to vector<32x128xf32>
    %2254 = arith.mulf %2253, %1978 : vector<32x128xf32>
    %2255 = vector.broadcast %1954 : f32 to vector<32x128xf32>
    %2256 = arith.mulf %2255, %1979 : vector<32x128xf32>
    %2257 = arith.addf %2254, %2256 : vector<32x128xf32>
    %2258 = vector.broadcast %1955 : f32 to vector<32x128xf32>
    %2259 = arith.mulf %2258, %1980 : vector<32x128xf32>
    %2260 = arith.addf %2257, %2259 : vector<32x128xf32>
    %2261 = vector.broadcast %1956 : f32 to vector<32x128xf32>
    %2262 = arith.mulf %2261, %1978 : vector<32x128xf32>
    %2263 = vector.broadcast %1957 : f32 to vector<32x128xf32>
    %2264 = arith.mulf %2263, %1979 : vector<32x128xf32>
    %2265 = arith.addf %2262, %2264 : vector<32x128xf32>
    %2266 = vector.broadcast %1958 : f32 to vector<32x128xf32>
    %2267 = arith.mulf %2266, %1980 : vector<32x128xf32>
    %2268 = arith.addf %2265, %2267 : vector<32x128xf32>
    %2269 = arith.addf %2251, %2260 : vector<32x128xf32>
    %2270 = arith.addf %2252, %2268 : vector<32x128xf32>
    %2271 = vector.broadcast %1963 : f32 to vector<32x128xf32>
    %2272 = arith.addf %2269, %2271 : vector<32x128xf32>
    %2273 = vector.broadcast %1963 : f32 to vector<32x128xf32>
    %2274 = arith.addf %2270, %2273 : vector<32x128xf32>
    %cst_552 = arith.constant 0.000000e+00 : f32
    %2275 = vector.broadcast %cst_552 : f32 to vector<32x128xf32>
    %2276 = arith.cmpf ogt, %2272, %2275 : vector<32x128xf32>
    %cst_553 = arith.constant 0.00999999977 : f32
    %2277 = vector.broadcast %cst_553 : f32 to vector<32x128xf32>
    %2278 = arith.mulf %2277, %2272 : vector<32x128xf32>
    %2279 = arith.select %2276, %2272, %2278 : vector<32x128xi1>, vector<32x128xf32>
    %cst_554 = arith.constant 0.000000e+00 : f32
    %2280 = vector.broadcast %cst_554 : f32 to vector<32x128xf32>
    %2281 = arith.cmpf ogt, %2274, %2280 : vector<32x128xf32>
    %cst_555 = arith.constant 0.00999999977 : f32
    %2282 = vector.broadcast %cst_555 : f32 to vector<32x128xf32>
    %2283 = arith.mulf %2282, %2274 : vector<32x128xf32>
    %2284 = arith.select %2281, %2274, %2283 : vector<32x128xi1>, vector<32x128xf32>
    %2285 = vector.broadcast %1943 : f32 to vector<2x128xf32>
    %2286 = arith.mulf %2285, %1971 : vector<2x128xf32>
    %2287 = vector.broadcast %1944 : f32 to vector<2x128xf32>
    %2288 = arith.mulf %2287, %1972 : vector<2x128xf32>
    %2289 = vector.broadcast %1951 : f32 to vector<2x128xf32>
    %2290 = arith.mulf %2289, %1976 : vector<2x128xf32>
    %2291 = vector.broadcast %1952 : f32 to vector<2x128xf32>
    %2292 = arith.mulf %2291, %1977 : vector<2x128xf32>
    %2293 = arith.addf %2286, %2290 : vector<2x128xf32>
    %2294 = arith.addf %2288, %2292 : vector<2x128xf32>
    %2295 = vector.broadcast %1959 : f32 to vector<2x128xf32>
    %2296 = arith.mulf %2295, %1981 : vector<2x128xf32>
    %2297 = vector.broadcast %1960 : f32 to vector<2x128xf32>
    %2298 = arith.mulf %2297, %1982 : vector<2x128xf32>
    %2299 = arith.addf %2293, %2296 : vector<2x128xf32>
    %2300 = arith.addf %2294, %2298 : vector<2x128xf32>
    %2301 = vector.extract_strided_slice %2272 {offsets = [0, 0], sizes = [2, 128], strides = [1, 1]} : vector<32x128xf32> to vector<2x128xf32>
    %2302 = vector.extract_strided_slice %2274 {offsets = [30, 0], sizes = [2, 128], strides = [1, 1]} : vector<32x128xf32> to vector<2x128xf32>
    %2303 = arith.subf %2301, %2299 : vector<2x128xf32>
    %cst_556 = arith.constant 0.000000e+00 : f32
    %2304 = vector.broadcast %cst_556 : f32 to vector<2x128xf32>
    %2305 = arith.cmpf ogt, %2303, %2304 : vector<2x128xf32>
    %cst_557 = arith.constant 0.00999999977 : f32
    %2306 = vector.broadcast %cst_557 : f32 to vector<2x128xf32>
    %2307 = arith.mulf %2306, %2303 : vector<2x128xf32>
    %2308 = arith.select %2305, %2303, %2307 : vector<2x128xi1>, vector<2x128xf32>
    %cst_558 = arith.constant 0.000000e+00 : f32
    %2309 = vector.broadcast %cst_558 : f32 to vector<2x128xf32>
    %2310 = arith.cmpf ogt, %2301, %2309 : vector<2x128xf32>
    %cst_559 = arith.constant 0.00999999977 : f32
    %2311 = vector.broadcast %cst_559 : f32 to vector<2x128xf32>
    %2312 = arith.mulf %2311, %2301 : vector<2x128xf32>
    %2313 = arith.select %2310, %2301, %2312 : vector<2x128xi1>, vector<2x128xf32>
    %2314 = arith.select %2, %2308, %2313 : vector<2x128xi1>, vector<2x128xf32>
    %2315 = arith.subf %2302, %2300 : vector<2x128xf32>
    %cst_560 = arith.constant 0.000000e+00 : f32
    %2316 = vector.broadcast %cst_560 : f32 to vector<2x128xf32>
    %2317 = arith.cmpf ogt, %2315, %2316 : vector<2x128xf32>
    %cst_561 = arith.constant 0.00999999977 : f32
    %2318 = vector.broadcast %cst_561 : f32 to vector<2x128xf32>
    %2319 = arith.mulf %2318, %2315 : vector<2x128xf32>
    %2320 = arith.select %2317, %2315, %2319 : vector<2x128xi1>, vector<2x128xf32>
    %cst_562 = arith.constant 0.000000e+00 : f32
    %2321 = vector.broadcast %cst_562 : f32 to vector<2x128xf32>
    %2322 = arith.cmpf ogt, %2302, %2321 : vector<2x128xf32>
    %cst_563 = arith.constant 0.00999999977 : f32
    %2323 = vector.broadcast %cst_563 : f32 to vector<2x128xf32>
    %2324 = arith.mulf %2323, %2302 : vector<2x128xf32>
    %2325 = arith.select %2322, %2302, %2324 : vector<2x128xi1>, vector<2x128xf32>
    %2326 = arith.select %4, %2320, %2325 : vector<2x128xi1>, vector<2x128xf32>
    %2327 = vector.broadcast %1966 : f32 to vector<32x128xf32>
    %2328 = arith.mulf %2327, %2279 : vector<32x128xf32>
    %2329 = vector.broadcast %1966 : f32 to vector<32x128xf32>
    %2330 = arith.mulf %2329, %2284 : vector<32x128xf32>
    %2331 = arith.addf %2211, %2328 : vector<32x128xf32>
    %2332 = arith.addf %2212, %2330 : vector<32x128xf32>
    %2333 = vector.broadcast %1966 : f32 to vector<2x128xf32>
    %2334 = arith.mulf %2333, %2314 : vector<2x128xf32>
    %2335 = vector.broadcast %1966 : f32 to vector<2x128xf32>
    %2336 = arith.mulf %2335, %2326 : vector<2x128xf32>
    %2337 = arith.addf %2217, %2334 : vector<2x128xf32>
    %2338 = arith.addf %2218, %2336 : vector<2x128xf32>
    %2339 = vector.broadcast %1967 : f32 to vector<32x128xf32>
    %2340 = arith.addf %2331, %2339 : vector<32x128xf32>
    %2341 = math.tanh %2340 : vector<32x128xf32>
    %c0_564 = arith.constant 0 : index
    %c0_565 = arith.constant 0 : index
    %2342 = vector.load %arg5[%c0_564, %c0_565] : memref<64x128xf32, #tpu.memory_space<vmem>>, vector<32x128xf32>
    tpu.vector_store %arg5[%c0_564, %c0_565], %2341 {strides = array<i32>} : memref<64x128xf32, #tpu.memory_space<vmem>>, vector<32x128xf32>,
    %2343 = vector.broadcast %1967 : f32 to vector<32x128xf32>
    %2344 = arith.addf %2332, %2343 : vector<32x128xf32>
    %2345 = math.tanh %2344 : vector<32x128xf32>
    %c32_566 = arith.constant 32 : index
    %c0_567 = arith.constant 0 : index
    %2346 = vector.load %arg5[%c32_566, %c0_567] : memref<64x128xf32, #tpu.memory_space<vmem>>, vector<32x128xf32>
    tpu.vector_store %arg5[%c32_566, %c0_567], %2345 {strides = array<i32>} : memref<64x128xf32, #tpu.memory_space<vmem>>, vector<32x128xf32>,
    %2347 = vector.broadcast %1967 : f32 to vector<2x128xf32>
    %2348 = arith.addf %2337, %2347 : vector<2x128xf32>
    %2349 = math.tanh %2348 : vector<2x128xf32>
    %c0_568 = arith.constant 0 : index
    %c0_569 = arith.constant 0 : index
    %2350 = vector.load %arg5[%c0_568, %c0_569] : memref<64x128xf32, #tpu.memory_space<vmem>>, vector<2x128xf32>
    tpu.vector_store %arg5[%c0_568, %c0_569], %2349 {strides = array<i32>} : memref<64x128xf32, #tpu.memory_space<vmem>>, vector<2x128xf32>,
    %2351 = vector.broadcast %1967 : f32 to vector<2x128xf32>
    %2352 = arith.addf %2338, %2351 : vector<2x128xf32>
    %2353 = math.tanh %2352 : vector<2x128xf32>
    %c62_570 = arith.constant 62 : index
    %c0_571 = arith.constant 0 : index
    %2354 = vector.load %arg5[%c62_570, %c0_571] : memref<64x128xf32, #tpu.memory_space<vmem>>, vector<2x128xf32>
    tpu.vector_store %arg5[%c62_570, %c0_571], %2353 {strides = array<i32>} : memref<64x128xf32, #tpu.memory_space<vmem>>, vector<2x128xf32>,
    return
  }
}

</mosaic_0001>

<bundles_post_ra>
// kernel: vae_decoder_forward.1
= control target key start
LH: loop header
LB: loop body
LE: loop exit
PB: predicated region body
PF: predicated region fallthrough
CT: control target
= control target key end

     0   :  { %s6725_s0 = inlined_call_operand.hbm [shape: f32[360], index: 0, kind: input, shape index: {}]   ;;  %s6726_s1 = inlined_call_operand.hbm [shape: f32[15], index: 1, kind: input, shape index: {}]   ;;  %s6727_s2 = inlined_call_operand.hbm [shape: f32[3], index: 2, kind: input, shape index: {}]   ;;  %s6728_s3 = inlined_call_operand.<no memory space> [shape: f32[1], index: 3, kind: input, shape index: {}]   ;;  %s6729_s4 = inlined_call_operand.vmem [shape: f32[18,128], index: 4, kind: input, shape index: {}]   ;;  %s6730_s5 = inlined_call_operand.vmem [shape: f32[64,128], index: 5, kind: output, shape index: {}]  }
   0x1   :  { %7046 = sst [smem:[#allocation183_spill]] %s6728_s3 }
   0x2   :  { %7047 = sst [smem:[#allocation184_spill]] %s6730_s5 }
   0x3   :  { %11 = vsyncpa [#allocation6], 0 }
   0x4   :  { %12 = vsyncpa [#allocation8], 0  ;;  %s3169_s18 = smov [#allocation7]   ;;  %s3170_s21 = smov [#allocation5]  }
   0x5   :  { %28 = dma.hbm_to_smem %s6726_s1, 16, %s3169_s18, [#allocation8]  }
   0x6   :  { %20 = dma.hbm_to_smem %s6725_s0, 48, %s3170_s21, [#allocation6]  }
   0x7   :  { %s3171_s24 = smov [#allocation9]  }
   0x8   :  { %36 = dma.hbm_to_smem %s6727_s2, 16, %s3171_s24, [#allocation8]  }
   0x9   :  { %3165 = dma.done.wait [#allocation6], 48  }
   0xa   :  { %3166 = vsyncadd [#allocation6], 4294967248 }
   0xb   :  { %3167 = dma.done.wait [#allocation8], 32  }
   0xc   :  { %3168 = vsyncadd [#allocation8], 4294967264 }
   0xd   :  { %50 = sfence }
   0xe   :  { %s2743_s27 = sld [smem:[#allocation5 + $0x3]]  ;;  %v3218_v0 = vld [vmem:[%s6729_s4] sm:$0x3]  ;;  %v3223_v1 = vld [vmem:[%s6729_s4 + $0x2] sm:$0x3]  ;;  %v51_v34 = vlaneseq  ;;  %s6731_s20 = smov 1  }
   0xf   :  { %s2744_s28 = sld [smem:[#allocation5 + $0x4]]  ;;  %v3230_v3 = vld [vmem:[%s6729_s4 + $0x4] sm:$0x3]  ;;  %v3236_v6 = vld [vmem:[%s6729_s4 + $0x6] sm:$0x3]  ;;  %vm232_vm14 = vcmask 7168  }
  0x10   :  { %s2745_s29 = sld [smem:[#allocation5 + $0x5]]  ;;  %v3242_v9 = vld [vmem:[%s6729_s4 + $0x8] sm:$0x3]  ;;  %v3249_v10 = vld [vmem:[%s6729_s4 + $0xa] sm:$0x3]  ;;  %v3293_v45 = vand.u32 127, %v51_v34 }
  0x11   :  { %s3213_s30 = sld [smem:[#allocation5 + $0x7]]  ;;  %v3261_v17 = vld [vmem:[%s6729_s4 + $0xc] sm:$0x3]  ;;  %v3267_v20 = vld [vmem:[%s6729_s4 + $0xe] sm:$0x3]  ;;  %vm238_vm15 = vcmask 769024  }
  0x12   :  { %s2751_s1 = sld [smem:[#allocation5 + $0xb]]  ;;  %v3275_v24 = vld [vmem:[%s6729_s4 + $0x10] sm:$0x3]  ;;  %7048 = vst [vmem:[#allocation12_spill] sm:$0xff] %v3293_v45  ;;  %vm54_vm0 = vcmp.eq.s32.totalorder %v3293_v45, 94  ;;  %vm53_vm4 = vcmp.eq.s32.totalorder %v3293_v45, 0 }
  0x13   :  { %s2752_s0 = sld [smem:[#allocation5 + $0xc]] }
  0x14   :  { %s2753_s2 = sld [smem:[#allocation5 + $0xd]]  ;;  %v147_v2 = vstv %s2743_s27 }
  0x15   :  { %s3225_s10 = sld [smem:[#allocation5 + $0xf]]  ;;  %v148_v4 = vmul.f32 %v147_v2, %v3218_v0  ;;  %v149_v5 = vstv %s2744_s28 }
  0x16   :  { %s2759_s13 = sld [smem:[#allocation5 + $0x13]]  ;;  %v150_v7 = vmul.f32 %v149_v5, %v3223_v1  ;;  %v152_v8 = vstv %s2745_s29 }
  0x17   :  { %s2760_s16 = sld [smem:[#allocation5 + $0x14]]  ;;  %v153_v12 = vmul.f32 %v152_v8, %v3230_v3  ;;  %v196_v14 = vstv %s3213_s30 }
  0x18   :  { %s3244_s19 = sld [smem:[#allocation5 + $0x15]]  ;;  %v151_v11 = vadd.f32 %v150_v7, %v148_v4  ;;  %v163_v13 = vstv %s2751_s1  ;;  %v197_v22 = vmul.f32 %v196_v14, %v3223_v1 }
  0x19   :  { %s3253_s22 = sld [smem:[#allocation5 + $0x17]]  ;;  %v164_v15 = vmul.f32 %v163_v13, %v3236_v6  ;;  %v165_v16 = vstv %s2752_s0 }
  0x1a   :  { %s3256_s23 = sld [smem:[#allocation7]]  ;;  %v166_v18 = vmul.f32 %v165_v16, %v3242_v9  ;;  %v168_v19 = vstv %s2753_s2  ;;  %v154_v25 = vadd.f32 %v153_v12, %v151_v11 }
  0x1b   :  { %v169_v21 = vmul.f32 %v168_v19, %v3249_v10  ;;  %v200_v23 = vstv %s3225_s10  ;;  %s55_s28 = sld [smem:[#allocation5]] }
  0x1c   :  { %v167_v26 = vadd.f32 %v166_v18, %v164_v15  ;;  %v181_v27 = vstv %s2759_s13  ;;  %v201_v28 = vmul.f32 %v200_v23, %v3242_v9  ;;  %s2741_s1 = sld [smem:[#allocation5 + $0x1]] }
  0x1d   :  { %v182_v29 = vmul.f32 %v181_v27, %v3261_v17  ;;  %v183_v30 = vstv %s2760_s16  ;;  %s3279_s6 = sld [smem:[#allocation5 + $0x2]] }
  0x1e   :  { %v170_v31 = vadd.f32 %v169_v21, %v167_v26  ;;  %v184_v32 = vmul.f32 %v183_v30, %v3267_v20  ;;  %v186_v33 = vstv %s3244_s19  ;;  %s3283_s7 = sld [smem:[#allocation5 + $0x6]]  ;;  %v203_v39 = vadd.f32 %v201_v28, %v197_v22 }
  0x1f   :  { %v187_v35 = vmul.f32 %v186_v33, %v3275_v24  ;;  %v206_v36 = vstv %s3253_s22  ;;  %s2748_s4 = sld [smem:[#allocation5 + $0x8]] }
  0x20   :  { %v172_v37 = vadd.f32 %v170_v31, %v154_v25  ;;  %v185_v38 = vadd.f32 %v184_v32, %v182_v29  ;;  %v207_v40 = vmul.f32 %v206_v36, %v3267_v20  ;;  %s2749_s0 = sld [smem:[#allocation5 + $0x9]]  ;;  %v191_v46 = vstv %s3256_s23 }
  0x21   :  { %s3288_s8 = sld [smem:[#allocation5 + $0xa]]  ;;  %v139_v41 = vstv %s55_s28 }
  0x22   :  { %v188_v42 = vadd.f32 %v187_v35, %v185_v38  ;;  %s3290_s9 = sld [smem:[#allocation5 + $0xe]]  ;;  %v140_v43 = vmul.f32 %v139_v41, %v3218_v0  ;;  %v141_v44 = vstv %s2741_s1  ;;  %v209_v50 = vadd.f32 %v207_v40, %v203_v39 }
  0x23   :  { %s3296_s2 = sld [smem:[#allocation5 + $0x10]]  ;;  %v142_v47 = vmul.f32 %v141_v44, %v3223_v1  ;;  %v144_v48 = vstv %s3279_s6 }
  0x24   :  { %v190_v49 = vadd.f32 %v188_v42, %v172_v37  ;;  %s3300_s10 = sld [smem:[#allocation5 + $0x11]]  ;;  %v194_v51 = vstv %s3283_s7  ;;  %v145_v53 = vmul.f32 %v144_v48, %v3230_v3 }
  0x25   :  { %s3303_s11 = sld [smem:[#allocation5 + $0x12]]  ;;  %v143_v52 = vadd.f32 %v142_v47, %v140_v43  ;;  %v155_v54 = vstv %s2748_s4  ;;  %v195_v60 = vmul.f32 %v194_v51, %v3223_v1 }
  0x26   :  { %v193_v55 = vadd.f32 %v191_v46, %v190_v49  ;;  %s3308_s12 = sld [smem:[#allocation5 + $0x16]]  ;;  %v156_v56 = vmul.f32 %v155_v54, %v3236_v6  ;;  %v157_v57 = vstv %s2749_s0  ;;  %s6733_s0 = smov 127  }
  0x27   :  { %v158_v58 = vmul.f32 %v157_v57, %v3242_v9  ;;  %v160_v59 = vstv %s3288_s8  ;;  %s3315_s13 = sld [smem:[#allocation5 + $0x1b]]  ;;  %v146_v2 = vadd.f32 %v145_v53, %v143_v52 }
  0x28   :  { %v218_v61 = vsub.f32 %v193_v55, %v209_v50  ;;  %vm222_vm1 = vcmp.gt.f32.partialorder %v193_v55, 0.0  ;;  %v223_v62 = vmul.f32 0.01, %v193_v55  ;;  %v161_v63 = vmul.f32 %v160_v59, %v3249_v10  ;;  %s3318_s14 = sld [smem:[#allocation5 + $0x1c]] }
  0x29   :  { %v159_v4 = vadd.f32 %v158_v58, %v156_v56  ;;  %v173_v5 = vstv %s3296_s2  ;;  %v198_v7 = vstv %s3290_s9  ;;  %s3322_s15 = sld [smem:[#allocation5 + $0x1d]] }
  0x2a   :  { %vm219_vm2 = vcmp.gt.f32.partialorder %v218_v61, 0.0  ;;  %v220_v8 = vmul.f32 0.01, %v218_v61  ;;  %v224_v11 = vsel %vm222_vm1, %v193_v55, %v223_v62  ;;  %v174_v12 = vmul.f32 %v173_v5, %v3261_v17  ;;  %s3325_s16 = sld [smem:[#allocation5 + $0x1f]] }
  0x2b   :  { %v162_v13 = vadd.f32 %v161_v63, %v159_v4  ;;  %v175_v14 = vstv %s3300_s10  ;;  %v178_v15 = vstv %s3303_s11  ;;  %v199_v16 = vmul.f32 %v198_v7, %v3242_v9  ;;  %s3330_s17 = sld [smem:[#allocation5 + $0x23]] }
  0x2c   :  { %v221_v18 = vsel %vm219_vm2, %v218_v61, %v220_v8  ;;  %v176_v19 = vmul.f32 %v175_v14, %v3267_v20  ;;  %v179_v21 = vmul.f32 %v178_v15, %v3275_v24  ;;  %v204_v22 = vstv %s3308_s12  ;;  %s2776_s18 = sld [smem:[#allocation5 + $0x24]] }
  0x2d   :  { %v3337_v23 = vsel %vm54_vm0, %v221_v18, %v224_v11  ;;  %v171_v25 = vadd.f32 %v162_v13, %v146_v2  ;;  %v202_v26 = vadd.f32 %v199_v16, %v195_v60  ;;  %s2777_s19 = sld [smem:[#allocation5 + $0x25]]  ;;  %v205_v28 = vmul.f32 %v204_v22, %v3267_v20 }
  0x2e   :  { %229 = vrot.lane.b32.xlu0 %v3337_v23, %s6731_s20  ;;  %227 = vst [vmem:[#allocation2 + $0x4] sm:$0x3] %v3337_v23  ;;  %v177_v27 = vadd.f32 %v176_v19, %v174_v12  ;;  %s3343_s21 = sld [smem:[#allocation5 + $0x27]]  ;;  %v252_v29 = vstv %s3315_s13  ;;  %v254_v30 = vstv %s3318_s14  ;;  %vm240_vm1 = vcmask 777216  }
  0x2f   :  { %s3347_s22 = sld [smem:[#allocation5 + $0x2b]]  ;;  %v253_v31 = vmul.f32 %v252_v29, %v3218_v0  ;;  %v255_v32 = vmul.f32 %v254_v30, %v3223_v1  ;;  %v257_v33 = vstv %s3322_s15  ;;  %v208_v40 = vadd.f32 %v205_v28, %v202_v26 }
  0x30   :  { %v180_v34 = vadd.f32 %v179_v21, %v177_v27  ;;  %s3352_s24 = sld [smem:[#allocation5 + $0x2c]]  ;;  %v258_v36 = vmul.f32 %v257_v33, %v3230_v3  ;;  %v301_v38 = vstv %s3325_s16 }
  0x31   :  { %s3354_s25 = sld [smem:[#allocation5 + $0x2d]]  ;;  %v256_v35 = vadd.f32 %v255_v32, %v253_v31  ;;  %v268_v37 = vstv %s3330_s17  ;;  %v302_v49 = vmul.f32 %v301_v38, %v3223_v1 }
  0x32   :  { %v189_v39 = vadd.f32 %v180_v34, %v171_v25  ;;  %s3359_s26 = sld [smem:[#allocation5 + $0x2f]]  ;;  %v269_v41 = vmul.f32 %v268_v37, %v3236_v6  ;;  %v270_v42 = vstv %s2776_s18 }
  0x33   :  { %s3362_s27 = sld [smem:[#allocation7 + $0x1]]  ;;  %v271_v43 = vmul.f32 %v270_v42, %v3242_v9  ;;  %v273_v44 = vstv %s2777_s19  ;;  %v259_v51 = vadd.f32 %v258_v36, %v256_v35 }
  0x34   :  { %v192_v47 = vadd.f32 %v191_v46, %v189_v39  ;;  %v274_v48 = vmul.f32 %v273_v44, %v3249_v10  ;;  %v305_v50 = vstv %s3343_s21  ;;  %s3370_s28 = sld [smem:[#allocation5 + $0x18]] }
  0x35   :  { %v272_v52 = vadd.f32 %v271_v43, %v269_v41  ;;  %v286_v53 = vstv %s3347_s22  ;;  %v306_v54 = vmul.f32 %v305_v50, %v3242_v9  ;;  %s3374_s29 = sld [smem:[#allocation5 + $0x19]] }
  0x36   :  { %v210_v55 = vsub.f32 %v192_v47, %v208_v40  ;;  %vm214_vm3 = vcmp.gt.f32.partialorder %v192_v47, 0.0  ;;  %v215_v56 = vmul.f32 0.01, %v192_v47  ;;  %v287_v46 = vmul.f32 %v286_v53, %v3261_v17  ;;  %s3377_s23 = sld [smem:[#allocation5 + $0x1a]] }
  0x37   :  { %v275_v57 = vadd.f32 %v274_v48, %v272_v52  ;;  %v288_v58 = vstv %s3352_s24  ;;  %v291_v59 = vstv %s3354_s25  ;;  %s3382_s30 = sld [smem:[#allocation5 + $0x1e]]  ;;  %v308_v4 = vadd.f32 %v306_v54, %v302_v49 }
  0x38   :  { %vm211_vm5 = vcmp.gt.f32.partialorder %v210_v55, 0.0  ;;  %v212_v60 = vmul.f32 0.01, %v210_v55  ;;  %v216_v61 = vsel %vm214_vm3, %v192_v47, %v215_v56  ;;  %v289_v62 = vmul.f32 %v288_v58, %v3267_v20  ;;  %s3385_s1 = sld [smem:[#allocation5 + $0x20]] }
  0x39   :  { %v277_v63 = vadd.f32 %v275_v57, %v259_v51  ;;  %v292_v2 = vmul.f32 %v291_v59, %v3275_v24  ;;  %v311_v5 = vstv %s3359_s26  ;;  %s2773_s6 = sld [smem:[#allocation5 + $0x21]]  ;;  %v296_v21 = vstv %s3362_s27 }
  0x3a   :  { %v213_v7 = vsel %vm211_vm5, %v210_v55, %v212_v60  ;;  %v290_v8 = vadd.f32 %v289_v62, %v287_v46  ;;  %v312_v11 = vmul.f32 %v311_v5, %v3267_v20  ;;  %s2774_s7 = sld [smem:[#allocation5 + $0x22]]  ;;  %v244_v12 = vstv %s3370_s28 }
  0x3b   :  { %v3393_v13 = vsel %vm53_vm4, %v213_v7, %v216_v61  ;;  %s3395_s4 = sld [smem:[#allocation5 + $0x26]]  ;;  %v245_v14 = vmul.f32 %v244_v12, %v3218_v0  ;;  %v246_v15 = vstv %s3374_s29 }
  0x3c   :  { %235 = vrot.lane.b32.xlu1 %v3393_v13, %s6733_s0  ;;  %226 = vst [vmem:[#allocation2 + $0x2] sm:$0x3] %v3393_v13  ;;  %v293_v16 = vadd.f32 %v292_v2, %v290_v8  ;;  %s3402_s8 = sld [smem:[#allocation5 + $0x28]]  ;;  %v247_v18 = vmul.f32 %v246_v15, %v3223_v1  ;;  %v249_v19 = vstv %s3377_s23  ;;  %v314_v22 = vadd.f32 %v312_v11, %v308_v4 }
  0x3d   :  { %s3407_s9 = sld [smem:[#allocation5 + $0x29]]  ;;  %v250_v25 = vmul.f32 %v249_v19, %v3230_v3  ;;  %v299_v29 = vstv %s3382_s30 }
  0x3e   :  { %v295_v26 = vadd.f32 %v293_v16, %v277_v63  ;;  %s3410_s2 = sld [smem:[#allocation5 + $0x2a]]  ;;  %v248_v27 = vadd.f32 %v247_v18, %v245_v14  ;;  %v260_v28 = vstv %s3385_s1  ;;  %v300_v37 = vmul.f32 %v299_v29, %v3223_v1 }
  0x3f   :  { %s3414_s10 = sld [smem:[#allocation5 + $0x2e]]  ;;  %v261_v30 = vmul.f32 %v260_v28, %v3236_v6  ;;  %v262_v31 = vstv %s2773_s6 }
  0x40   :  { %v298_v32 = vadd.f32 %v296_v21, %v295_v26  ;;  %v263_v33 = vmul.f32 %v262_v31, %v3242_v9  ;;  %v265_v34 = vstv %s2774_s7  ;;  %s3420_s11 = sld [smem:[#allocation5 + $0x33]]  ;;  %v251_v35 = vadd.f32 %v250_v25, %v248_v27 }
  0x41   :  { %v266_v36 = vmul.f32 %v265_v34, %v3249_v10  ;;  %v303_v38 = vstv %s3395_s4  ;;  %s3425_s12 = sld [smem:[#allocation5 + $0x34]] }
  0x42   :  { %v323_v39 = vsub.f32 %v298_v32, %v314_v22  ;;  %vm327_vm6 = vcmp.gt.f32.partialorder %v298_v32, 0.0  ;;  %v328_v40 = vmul.f32 0.01, %v298_v32  ;;  %v264_v41 = vadd.f32 %v263_v33, %v261_v30  ;;  %s3427_s13 = sld [smem:[#allocation5 + $0x35]] }
  0x43   :  { %v278_v42 = vstv %s3402_s8  ;;  %v280_v43 = vstv %s3407_s9  ;;  %v304_v44 = vmul.f32 %v303_v38, %v3242_v9  ;;  %s3432_s14 = sld [smem:[#allocation5 + $0x37]] }
  0x44   :  { %vm324_vm7 = vcmp.gt.f32.partialorder %v323_v39, 0.0  ;;  %v325_v47 = vmul.f32 0.01, %v323_v39  ;;  %v329_v48 = vsel %vm327_vm6, %v298_v32, %v328_v40  ;;  %v267_v49 = vadd.f32 %v266_v36, %v264_v41  ;;  %s3434_s15 = sld [smem:[#allocation5 + $0x3b]] }
  0x45   :  { %v279_v50 = vmul.f32 %v278_v42, %v3261_v17  ;;  %v281_v51 = vmul.f32 %v280_v43, %v3267_v20  ;;  %v283_v52 = vstv %s3410_s2  ;;  %v307_v53 = vadd.f32 %v304_v44, %v300_v37  ;;  %s3439_s16 = sld [smem:[#allocation5 + $0x3c]] }
  0x46   :  { %v326_v54 = vsel %vm324_vm7, %v323_v39, %v325_v47  ;;  %v276_v55 = vadd.f32 %v267_v49, %v251_v35  ;;  %v284_v56 = vmul.f32 %v283_v52, %v3275_v24  ;;  %v309_v46 = vstv %s3414_s10  ;;  %s2801_s17 = sld [smem:[#allocation5 + $0x3d]] }
  0x47   :  { %v3445_v57 = vsel %vm54_vm0, %v326_v54, %v329_v48  ;;  %v282_v58 = vadd.f32 %v281_v51, %v279_v50  ;;  %v310_v59 = vmul.f32 %v309_v46, %v3267_v20  ;;  %s3448_s18 = sld [smem:[#allocation5 + $0x3f]]  ;;  %v354_v60 = vstv %s3420_s11 }
  0x48   :  { %332 = vst [vmem:[#allocation2 + $0xc] sm:$0x3] %v3445_v57  ;;  %334 = vrot.lane.b32.xlu0 %v3445_v57, %s6731_s20  ;;  %s3454_s19 = sld [smem:[#allocation5 + $0x43]]  ;;  %v355_v61 = vmul.f32 %v354_v60, %v3218_v0  ;;  %v356_v62 = vstv %s3425_s12  ;;  %v359_v63 = vstv %s3427_s13 }
  0x49   :  { %v285_v2 = vadd.f32 %v284_v56, %v282_v58  ;;  %s3459_s21 = sld [smem:[#allocation5 + $0x44]]  ;;  %v357_v4 = vmul.f32 %v356_v62, %v3223_v1  ;;  %v313_v5 = vadd.f32 %v310_v59, %v307_v53  ;;  %v360_v7 = vmul.f32 %v359_v63, %v3230_v3 }
  0x4a   :  { %s3462_s22 = sld [smem:[#allocation5 + $0x45]]  ;;  %v370_v8 = vstv %s3434_s15  ;;  %v403_v11 = vstv %s3432_s14 }
  0x4b   :  { %v294_v12 = vadd.f32 %v285_v2, %v276_v55  ;;  %s3467_s24 = sld [smem:[#allocation5 + $0x47]]  ;;  %v358_v14 = vadd.f32 %v357_v4, %v355_v61  ;;  %v371_v15 = vmul.f32 %v370_v8, %v3236_v6  ;;  %v372_v16 = vstv %s3439_s16 }
  0x4c   :  { %s3471_s25 = sld [smem:[#allocation7 + $0x2]]  ;;  %v373_v18 = vmul.f32 %v372_v16, %v3242_v9  ;;  %v375_v19 = vstv %s2801_s17  ;;  %v404_v26 = vmul.f32 %v403_v11, %v3223_v1 }
  0x4d   :  { %v297_v22 = vadd.f32 %v296_v21, %v294_v12  ;;  %v376_v25 = vmul.f32 %v375_v19, %v3249_v10  ;;  %v407_v27 = vstv %s3448_s18  ;;  %s3479_s26 = sld [smem:[#allocation5 + $0x30]]  ;;  %v361_v28 = vadd.f32 %v360_v7, %v358_v14 }
  0x4e   :  { %v374_v29 = vadd.f32 %v373_v18, %v371_v15  ;;  %v388_v30 = vstv %s3454_s19  ;;  %v408_v31 = vmul.f32 %v407_v27, %v3242_v9  ;;  %s3483_s28 = sld [smem:[#allocation5 + $0x31]] }
  0x4f   :  { %v315_v32 = vsub.f32 %v297_v22, %v313_v5  ;;  %vm319_vm8 = vcmp.gt.f32.partialorder %v297_v22, 0.0  ;;  %v320_v21 = vmul.f32 0.01, %v297_v22  ;;  %v389_v33 = vmul.f32 %v388_v30, %v3261_v17  ;;  %s3486_s27 = sld [smem:[#allocation5 + $0x32]] }
  0x50   :  { %v377_v34 = vadd.f32 %v376_v25, %v374_v29  ;;  %v390_v35 = vstv %s3459_s21  ;;  %v393_v36 = vstv %s3462_s22  ;;  %s3490_s29 = sld [smem:[#allocation5 + $0x36]]  ;;  %v410_v42 = vadd.f32 %v408_v31, %v404_v26 }
  0x51   :  { %vm316_vm9 = vcmp.gt.f32.partialorder %v315_v32, 0.0  ;;  %v317_v37 = vmul.f32 0.01, %v315_v32  ;;  %v321_v38 = vsel %vm319_vm8, %v297_v22, %v320_v21  ;;  %v391_v39 = vmul.f32 %v390_v35, %v3267_v20  ;;  %s2796_s23 = sld [smem:[#allocation5 + $0x38]] }
  0x52   :  { %v379_v40 = vadd.f32 %v377_v34, %v361_v28  ;;  %v394_v41 = vmul.f32 %v393_v36, %v3275_v24  ;;  %v413_v43 = vstv %s3467_s24  ;;  %s2797_s30 = sld [smem:[#allocation5 + $0x39]]  ;;  %v398_v56 = vstv %s3471_s25 }
  0x53   :  { %v318_v44 = vsel %vm316_vm9, %v315_v32, %v317_v37  ;;  %v392_v47 = vadd.f32 %v391_v39, %v389_v33  ;;  %v414_v48 = vmul.f32 %v413_v43, %v3267_v20  ;;  %s2798_s1 = sld [smem:[#allocation5 + $0x3a]]  ;;  %v346_v49 = vstv %s3479_s26 }
  0x54   :  { %v3499_v50 = vsel %vm53_vm4, %v318_v44, %v321_v38  ;;  %s3501_s6 = sld [smem:[#allocation5 + $0x3e]]  ;;  %v347_v51 = vmul.f32 %v346_v49, %v3218_v0  ;;  %v348_v52 = vstv %s3483_s28 }
  0x55   :  { %331 = vst [vmem:[#allocation2 + $0xa] sm:$0x3] %v3499_v50  ;;  %339 = vrot.lane.b32.xlu1 %v3499_v50, %s6733_s0  ;;  %v395_v53 = vadd.f32 %v394_v41, %v392_v47  ;;  %s3508_s7 = sld [smem:[#allocation5 + $0x40]]  ;;  %v349_v54 = vmul.f32 %v348_v52, %v3223_v1  ;;  %v351_v55 = vstv %s3486_s27  ;;  %v416_v0 = vadd.f32 %v414_v48, %v410_v42  ;;  %v3649_v47 = vld [vmem:[#allocation2 + $0x2] sm:$0x3] }
  0x56   :  { %s2805_s4 = sld [smem:[#allocation5 + $0x41]]  ;;  %v352_v46 = vmul.f32 %v351_v55, %v3230_v3  ;;  %v401_v63 = vstv %s3490_s29 }
  0x57   :  { %v397_v58 = vadd.f32 %v395_v53, %v379_v40  ;;  %s2806_s8 = sld [smem:[#allocation5 + $0x42]]  ;;  %v350_v59 = vadd.f32 %v349_v54, %v347_v51  ;;  %v362_v60 = vstv %s2796_s23  ;;  %v402_v18 = vmul.f32 %v401_v63, %v3223_v1 }
  0x58   :  { %s3514_s9 = sld [smem:[#allocation5 + $0x46]]  ;;  %v363_v61 = vmul.f32 %v362_v60, %v3236_v6  ;;  %v364_v62 = vstv %s2797_s30 }
  0x59   :  { %v400_v2 = vadd.f32 %v398_v56, %v397_v58  ;;  %v353_v4 = vadd.f32 %v352_v46, %v350_v59  ;;  %v365_v5 = vmul.f32 %v364_v62, %v3242_v9  ;;  %v367_v7 = vstv %s2798_s1  ;;  %s3543_s2 = sld [smem:[#allocation5 + $0x60]] }
  0x5a   :  { %v368_v8 = vmul.f32 %v367_v7, %v3249_v10  ;;  %v405_v3 = vstv %s3501_s6  ;;  %s3545_s10 = sld [smem:[#allocation5 + $0x61]] }
  0x5b   :  { %v425_v11 = vsub.f32 %v400_v2, %v416_v0  ;;  %vm429_vm10 = vcmp.gt.f32.partialorder %v400_v2, 0.0  ;;  %v430_v12 = vmul.f32 0.01, %v400_v2  ;;  %v366_v14 = vadd.f32 %v365_v5, %v363_v61  ;;  %s3547_s11 = sld [smem:[#allocation5 + $0x62]] }
  0x5c   :  { %v380_v15 = vstv %s3508_s7  ;;  %v382_v16 = vstv %s2805_s4  ;;  %v406_v6 = vmul.f32 %v405_v3, %v3242_v9  ;;  %s3549_s12 = sld [smem:[#allocation5 + $0x63]]  ;;  %v3651_v48 = vld [vmem:[#allocation2 + $0xa] sm:$0x3] }
  0x5d   :  { %vm426_vm11 = vcmp.gt.f32.partialorder %v425_v11, 0.0  ;;  %v427_v19 = vmul.f32 0.01, %v425_v11  ;;  %v431_v22 = vsel %vm429_vm10, %v400_v2, %v430_v12  ;;  %v369_v25 = vadd.f32 %v368_v8, %v366_v14  ;;  %s3551_s13 = sld [smem:[#allocation5 + $0x64]]  ;;  %v3662_v54 = vld [vmem:[#allocation2 + $0xa] sm:$0xf] }
  0x5e   :  { %v381_v26 = vmul.f32 %v380_v15, %v3261_v17  ;;  %v383_v10 = vmul.f32 %v382_v16, %v3267_v20  ;;  %v385_v27 = vstv %s2806_s8  ;;  %v411_v31 = vstv %s3514_s9  ;;  %s3553_s14 = sld [smem:[#allocation5 + $0x65]] }
  0x5f   :  { %v428_v28 = vsel %vm426_vm11, %v425_v11, %v427_v19  ;;  %v378_v29 = vadd.f32 %v369_v25, %v353_v4  ;;  %v386_v30 = vmul.f32 %v385_v27, %v3275_v24  ;;  %v409_v9 = vadd.f32 %v406_v6, %v402_v18  ;;  %s3555_s15 = sld [smem:[#allocation5 + $0x68]] }
  0x60   :  { %v3530_v32 = vsel %vm54_vm0, %v428_v28, %v431_v22  ;;  %v384_v1 = vadd.f32 %v383_v10, %v381_v26  ;;  %v412_v21 = vmul.f32 %v411_v31, %v3267_v20  ;;  %s3557_s16 = sld [smem:[#allocation5 + $0x69]]  ;;  %v649_v49 = vstv %s3545_s10 }
  0x61   :  { %434 = vst [vmem:[#allocation2 + $0x14] sm:$0x3] %v3530_v32  ;;  %436 = vrot.lane.b32.xlu0 %v3530_v32, %s6731_s20  ;;  %7049 = sst [smem:[#allocation13_spill]] %s3547_s11  ;;  %v647_v46 = vstv %s3543_s2  ;;  %v652_v60 = vstv %s3547_s11 }
  0x62   :  { %v387_v17 = vadd.f32 %v386_v30, %v384_v1  ;;  %v415_v34 = vadd.f32 %v412_v21, %v409_v9  ;;  %s3559_s17 = sld [smem:[#allocation5 + $0x6a]]  ;;  %v655_v61 = vstv %s3549_s12 }
  0x63   :  { %s3561_s18 = sld [smem:[#allocation5 + $0x66]]  ;;  %v657_v55 = vstv %s3551_s13 }
  0x64   :  { %v396_v33 = vadd.f32 %v387_v17, %v378_v29  ;;  %7050 = sst [smem:[#allocation14_spill]] %s3553_s14  ;;  %v660_v4 = vstv %s3553_s14 }
  0x65   :  { %7051 = sst [smem:[#allocation15_spill]] %s3555_s15  ;;  %v663_v5 = vstv %s3555_s15 }
  0x66   :  { %v399_v35 = vadd.f32 %v398_v56, %v396_v33  ;;  %s3563_s19 = sld [smem:[#allocation5 + $0x6b]]  ;;  %v665_v56 = vstv %s3557_s16  ;;  %v3736_v33 = vld [vmem:[#allocation2 + $0x4] sm:$0x3] }
  0x67   :  { %s3565_s21 = sld [smem:[#allocation5 + $0x6c]]  ;;  %v3690_v7 = vmul.f32 %v665_v56, %v3662_v54 }
  0x68   :  { %v417_v36 = vsub.f32 %v399_v35, %v415_v34  ;;  %vm421_vm12 = vcmp.gt.f32.partialorder %v399_v35, 0.0  ;;  %v422_v24 = vmul.f32 0.01, %v399_v35  ;;  %7052 = sst [smem:[#allocation16_spill]] %s3559_s17  ;;  %v3738_v34 = vld [vmem:[#allocation2 + $0xc] sm:$0x3] }
  0x69   :  { %s3567_s22 = sld [smem:[#allocation5 + $0x6d]]  ;;  %v708_v51 = vstv %s3561_s18 }
  0x6a   :  { %vm418_vm13 = vcmp.gt.f32.partialorder %v417_v36, 0.0  ;;  %v419_v37 = vmul.f32 0.01, %v417_v36  ;;  %v423_v38 = vsel %vm421_vm12, %v399_v35, %v422_v24  ;;  %s3569_s24 = sld [smem:[#allocation5 + $0x6e]]  ;;  %v709_v0 = vmul.f32 %v708_v51, %v3649_v47 }
  0x6b   :  { %s3571_s25 = sld [smem:[#allocation5 + $0x70]] }
  0x6c   :  { %v420_v39 = vsel %vm418_vm13, %v417_v36, %v419_v37  ;;  %7053 = sst [smem:[#allocation17_spill]] %s3563_s19  ;;  %v671_v11 = vstv %s3563_s19 }
  0x6d   :  { %v3538_v40 = vsel %vm53_vm4, %v420_v39, %v423_v38  ;;  %s3573_s26 = sld [smem:[#allocation5 + $0x71]]  ;;  %v673_v62 = vstv %s3565_s21 }
  0x6e   :  { %433 = vst [vmem:[#allocation2 + $0x12] sm:$0x3] %v3538_v40  ;;  %441 = vrot.lane.b32.xlu1 %v3538_v40, %s6733_s0  ;;  %s3575_s28 = sld [smem:[#allocation5 + $0x72]]  ;;  %v3703_v15 = vmul.f32 %v673_v62, %v3662_v54 }
  0x6f   :  { %7054 = sst [smem:[#allocation18_spill]] %s3567_s22 }
  0x70   :  { %s3577_s27 = sld [smem:[#allocation5 + $0x73]]  ;;  %v712_v52 = vstv %s3569_s24 }
  0x71   :  { %7055 = sst [smem:[#allocation19_spill]] %s3571_s25 }
  0x72   :  { %s3579_s29 = sld [smem:[#allocation5 + $0x74]] }
  0x73   :  { %s3581_s23 = sld [smem:[#allocation5 + $0x75]]  ;;  %v683_v12 = vstv %s3573_s26 }
  0x74   :  { %7056 = sst [smem:[#allocation20_spill]] %s3575_s28 }
  0x75   :  { %s3583_s30 = sld [smem:[#allocation5 + $0x76]]  ;;  %v3676_v59 = vld [vmem:[#allocation2 + $0x12] sm:$0x3] }
  0x76   :  { %7057 = sst [smem:[#allocation21_spill]] %s3577_s27  ;;  %v3694_v8 = vld [vmem:[#allocation2 + $0x12] sm:$0xf] }
  0x77   :  { %s3585_s1 = sld [smem:[#allocation7 + $0x4]]  ;;  %v3716_v10 = vmul.f32 %v683_v12, %v3694_v8 }
  0x78   :  { %s3587_s6 = sld [smem:[#allocation5 + $0x48]]  ;;  %v691_v14 = vstv %s3579_s29 }
  0x79   :  { %7058 = sst [smem:[#allocation22_spill]] %s3581_s23  ;;  %v3719_v27 = vmul.f32 %v691_v14, %v3694_v8 }
  0x7a   :  { %s3589_s7 = sld [smem:[#allocation5 + $0x49]] }
  0x7b   :  { %s3593_s4 = sld [smem:[#allocation5 + $0x4a]]  ;;  %v718_v63 = vstv %s3583_s30 }
  0x7c   :  { %s3595_s8 = sld [smem:[#allocation5 + $0x4b]]  ;;  %v719_v6 = vmul.f32 %v718_v63, %v3676_v59 }
  0x7d   :  { %7059 = sst [smem:[#allocation23_spill]] %s3585_s1 }
  0x7e   :  { %7060 = sst [smem:[#allocation24_spill]] %s3587_s6 }
  0x7f   :  { %s3597_s9 = sld [smem:[#allocation5 + $0x4c]] }
  0x80   :  { %s3599_s20 = sld [smem:[#allocation5 + $0x4d]]  ;;  %v540_v26 = vstv %s3589_s7 }
  0x81   :  { %7061 = sst [smem:[#allocation25_spill]] %s3593_s4 }
  0x82   :  { %7062 = sst [smem:[#allocation26_spill]] %s3595_s8 }
  0x83   :  { %s3601_s0 = sld [smem:[#allocation5 + $0x4e]] }
  0x84   :  { %s3603_s5 = sld [smem:[#allocation5 + $0x50]] }
  0x85   :  { %7063 = sst [smem:[#allocation27_spill]] %s3597_s9 }
  0x86   :  { %7064 = sst [smem:[#allocation28_spill]] %s3599_s20 }
  0x87   :  { %s3605_s3 = sld [smem:[#allocation5 + $0x51]] }
  0x88   :  { %s3607_s6 = sld [smem:[#allocation5 + $0x52]] }
  0x89   :  { %s3609_s1 = sld [smem:[#allocation5 + $0x53]]  ;;  %v599_v1 = vstv %s3601_s0 }
  0x8a   :  { %7065 = sst [smem:[#allocation29_spill]] %s3603_s5 }
  0x8b   :  { %s3611_s23 = sld [smem:[#allocation5 + $0x54]] }
  0x8c   :  { %s3613_s4 = sld [smem:[#allocation5 + $0x55]] }
  0x8d   :  { %7066 = sst [smem:[#allocation30_spill]] %s3605_s3 }
  0x8e   :  { %7067 = sst [smem:[#allocation31_spill]] %s3607_s6 }
  0x8f   :  { %7068 = sst [smem:[#allocation32_spill]] %s3609_s1 }
  0x90   :  { %s3615_s8 = sld [smem:[#allocation5 + $0x56]] }
  0x91   :  { %7069 = sst [smem:[#allocation33_spill]] %s3611_s23 }
  0x92   :  { %7070 = sst [smem:[#allocation34_spill]] %s3613_s4 }
  0x93   :  { %s3617_s9 = sld [smem:[#allocation5 + $0x58]] }
  0x94   :  { %s3619_s20 = sld [smem:[#allocation5 + $0x59]] }
  0x95   :  { %s3623_s5 = sld [smem:[#allocation5 + $0x5a]] }
  0x96   :  { %s3627_s1 = sld [smem:[#allocation5 + $0x5b]]  ;;  %v603_v9 = vstv %s3615_s8 }
  0x97   :  { %s3629_s4 = sld [smem:[#allocation5 + $0x5c]] }
  0x98   :  { %s3633_s6 = sld [smem:[#allocation5 + $0x5e]] }
  0x99   :  { %7071 = sst [smem:[#allocation35_spill]] %s3617_s9 }
  0x9a   :  { %7072 = sst [smem:[#allocation36_spill]] %s3619_s20 }
  0x9b   :  { %7073 = sst [smem:[#allocation37_spill]] %s3623_s5 }
  0x9c   :  { %7074 = sst [smem:[#allocation38_spill]] %s3627_s1 }
  0x9d   :  { %7075 = sst [smem:[#allocation39_spill]] %s3629_s4 }
  0x9e   :  { %s3631_s9 = sld [smem:[#allocation5 + $0x5d]] }
  0x9f   :  { %s3635_s20 = sld [smem:[#allocation7 + $0x3]] }
  0xa0   :  { %v230_v20 = vpop.permute.xlu0 %229  ;;  %s3637_s23 = sld [smem:[#allocation5 + $0x67]] }
  0xa1   :  { %v233_v41 = vsel %vm232_vm14, %v3393_v13, %v230_v20  ;;  %s3639_s5 = sld [smem:[#allocation5 + $0x6f]] }
  0xa2   :  { %242 = vst [vmem:[#allocation2] sm:$0x3] %v233_v41  ;;  %s3641_s3 = sld [smem:[#allocation5 + $0x77]] }
  0xa3   :  { %s3643_s1 = sld [smem:[#allocation5 + $0x4f]] }
  0xa4   :  { %7076 = sst [smem:[#allocation40_spill]] %s3631_s9 }
  0xa5   :  { %7077 = sst [smem:[#allocation41_spill]] %s3635_s20 }
  0xa6   :  { %s3647_s4 = sld [smem:[#allocation5 + $0x57]]  ;;  %v710_v35 = vstv %s3637_s23 }
  0xa7   :  { %s3656_s20 = sld [smem:[#allocation5 + $0x5f]]  ;;  %v714_v36 = vstv %s3639_s5  ;;  %v711_v51 = vmul.f32 %v710_v35, %v3736_v33 }
  0xa8   :  { %s3660_s9 = sld [smem:[#allocation5 + $0x78]]  ;;  %v720_v56 = vstv %s3641_s3 }
  0xa9   :  { %s3666_s10 = sld [smem:[#allocation5 + $0x79]]  ;;  %v601_v38 = vstv %s3643_s1 }
  0xaa   :  { %s3674_s18 = sld [smem:[#allocation5 + $0x7a]] }
  0xab   :  { %s3682_s13 = sld [smem:[#allocation5 + $0x7b]] }
  0xac   :  { %s3692_s16 = sld [smem:[#allocation5 + $0x7c]]  ;;  %v605_v39 = vstv %s3647_s4 }
  0xad   :  { %s3700_s30 = sld [smem:[#allocation5 + $0x7d]]  ;;  %v611_v14 = vstv %s3656_s20 }
  0xae   :  { %v236_v13 = vpop.permute.xlu1 %235  ;;  %s7080_s14 = sld [smem:[#allocation24_spill]] }
  0xaf   :  { %v239_v42 = vsel %vm238_vm15, %v236_v13, %v3337_v23  ;;  %s7081_s15 = sld [smem:[#allocation27_spill]] }
  0xb0   :  { %v241_v43 = vsel %vm240_vm1, %v239_v42, %v3337_v23  ;;  %v3645_v23 = vld [vmem:[#allocation2 + $0x2] sm:$0xf]  ;;  %s3707_s11 = sld [smem:[#allocation5 + $0x7e]]  ;;  %v600_v42 = vmul.f32 %v599_v1, %v3649_v47 }
  0xb1   :  { %243 = vst [vmem:[#allocation2 + $0x6] sm:$0x3] %v241_v43  ;;  %v3670_v58 = vmul.f32 %v649_v49, %v3645_v23  ;;  %v3685_v2 = vmul.f32 %v657_v55, %v3645_v23  ;;  %s3713_s26 = sld [smem:[#allocation5 + $0x80]]  ;;  %v3734_v17 = vmul.f32 %v540_v26, %v3645_v23  ;;  %v604_v43 = vmul.f32 %v603_v9, %v3651_v48  ;;  %v3767_v55 = vld [vmem:[#allocation2 + $0x14] sm:$0x3] }
  0xb2   :  { %s7082_s29 = sld [smem:[#allocation25_spill]]  ;;  %v609_v49 = vstv %s3633_s6  ;;  %v721_v35 = vmul.f32 %v720_v56, %v3767_v55 }
  0xb3   :  { %s7083_s22 = sld [smem:[#allocation26_spill]]  ;;  %v607_v26 = vadd.f32 %v604_v43, %v600_v42  ;;  %v610_v1 = vmul.f32 %v609_v49, %v3676_v59  ;;  %v769_v28 = vstv %s3700_s30  ;;  %v523_v42 = vld [vmem:[#allocation2] sm:$0xf] }
  0xb4   :  { %s3723_s17 = sld [smem:[#allocation5 + $0x81]]  ;;  %v538_v30 = vstv %s7080_s14  ;;  %v648_v3 = vmul.f32 %v647_v46, %v523_v42 }
  0xb5   :  { %v548_v31 = vstv %s7081_s15  ;;  %s7084_s7 = sld [smem:[#allocation30_spill]] }
  0xb6   :  { %s3729_s28 = sld [smem:[#allocation5 + $0x82]]  ;;  %v3751_v41 = vmul.f32 %v548_v31, %v3645_v23 }
  0xb7   :  { %s3742_s24 = sld [smem:[#allocation5 + $0x83]]  ;;  %v772_v22 = vstv %s3713_s26 }
  0xb8   :  { %v543_v24 = vstv %s7082_s29  ;;  %s3748_s0 = sld [smem:[#allocation5 + $0x84]] }
  0xb9   :  { %v546_v37 = vstv %s7083_s22  ;;  %s7085_s15 = sld [smem:[#allocation28_spill]] }
  0xba   :  { %v335_v44 = vpop.permute.xlu0 %334  ;;  %s7086_s23 = sld [smem:[#allocation29_spill]] }
  0xbb   :  { %v337_v53 = vsel %vm232_vm14, %v3499_v50, %v335_v44  ;;  %v713_v50 = vmul.f32 %v712_v52, %v3651_v48  ;;  %v556_v13 = vstv %s7084_s7  ;;  %s7087_s5 = sld [smem:[#allocation33_spill]]  ;;  %v715_v52 = vmul.f32 %v714_v36, %v3738_v34 }
  0xbc   :  { %344 = vst [vmem:[#allocation2 + $0x8] sm:$0x3] %v337_v53  ;;  %s3756_s8 = sld [smem:[#allocation5 + $0x85]] }
  0xbd   :  { %v716_v18 = vadd.f32 %v713_v50, %v709_v0  ;;  %s7088_s1 = sld [smem:[#allocation31_spill]]  ;;  %v602_v0 = vmul.f32 %v601_v38, %v3736_v33  ;;  %v606_v50 = vmul.f32 %v605_v39, %v3738_v34  ;;  %v717_v9 = vadd.f32 %v715_v52, %v711_v51 }
  0xbe   :  { %s7089_s4 = sld [smem:[#allocation36_spill]] }
  0xbf   :  { %v3731_v21 = vadd.f32 %v719_v6, %v716_v18  ;;  %s3763_s7 = sld [smem:[#allocation5 + $0x86]]  ;;  %v551_v62 = vstv %s7085_s15  ;;  %v608_v39 = vadd.f32 %v606_v50, %v602_v0  ;;  %v3816_v0 = vadd.f32 %v610_v1, %v607_v26 }
  0xc0   :  { %s7090_s21 = sld [smem:[#allocation39_spill]]  ;;  %v554_v63 = vstv %s7086_s23  ;;  %v3818_v50 = vadd.f32 %v721_v35, %v717_v9  ;;  %v764_v1 = vstv %s3682_s13  ;;  %v774_v9 = vstv %s3723_s17 }
  0xc1   :  { %s3772_s6 = sld [smem:[#allocation5 + $0x88]]  ;;  %v564_v12 = vstv %s7087_s5  ;;  %v817_v35 = vstv %s3707_s11  ;;  %v765_v46 = vmul.f32 %v764_v1, %v523_v42 }
  0xc2   :  { %s7091_s27 = sld [smem:[#allocation32_spill]]  ;;  %v3794_v38 = vmul.f32 %v564_v12, %v3662_v54  ;;  %v766_v12 = vstv %s3692_s16  ;;  %v818_v25 = vmul.f32 %v817_v35, %v3649_v47  ;;  %v656_v47 = vmul.f32 %v655_v61, %v523_v42 }
  0xc3   :  { %s3778_s25 = sld [smem:[#allocation5 + $0x7f]] }
  0xc4   :  { %v574_v6 = vstv %s7089_s4  ;;  %s3785_s3 = sld [smem:[#allocation5 + $0x87]] }
  0xc5   :  { %s7094_s22 = sld [smem:[#allocation37_spill]]  ;;  %v3802_v43 = vmul.f32 %v574_v6, %v3694_v8  ;;  %v756_v6 = vstv %s3660_s9  ;;  %v821_v56 = vstv %s3763_s7 }
  0xc6   :  { %v582_v31 = vstv %s7090_s21  ;;  %s7095_s15 = sld [smem:[#allocation38_spill]]  ;;  %v757_v35 = vmul.f32 %v756_v6, %v523_v42 }
  0xc7   :  { %v340_v20 = vpop.permute.xlu1 %339  ;;  %s7096_s20 = sld [smem:[#allocation40_spill]]  ;;  %v3810_v52 = vmul.f32 %v582_v31, %v3694_v8 }
  0xc8   :  { %v342_v44 = vsel %vm238_vm15, %v340_v20, %v3445_v57  ;;  %s3790_s5 = sld [smem:[#allocation5 + $0x89]]  ;;  %v562_v36 = vstv %s7091_s27  ;;  %v612_v20 = vmul.f32 %v611_v14, %v3767_v55 }
  0xc9   :  { %v343_v53 = vsel %vm240_vm1, %v342_v44, %v3445_v57  ;;  %v3781_v57 = vmul.f32 %v556_v13, %v3662_v54  ;;  %s3797_s4 = sld [smem:[#allocation5 + $0x8a]]  ;;  %v758_v44 = vstv %s3666_s10 }
  0xca   :  { %345 = vst [vmem:[#allocation2 + $0xe] sm:$0x3] %v343_v53  ;;  %s3804_s21 = sld [smem:[#allocation5 + $0x8b]]  ;;  %v3823_v14 = vadd.f32 %v612_v20, %v608_v39  ;;  %v759_v31 = vmul.f32 %v758_v44, %v3645_v23  ;;  %v767_v39 = vmul.f32 %v766_v12, %v3645_v23  ;;  %v782_v20 = vstv %s3748_s0 }
  0xcb   :  { %s3813_s29 = sld [smem:[#allocation5 + $0x8f]]  ;;  %v819_v53 = vstv %s3778_s25  ;;  %v823_v49 = vstv %s3785_s3  ;;  %v3848_v23 = vmul.f32 %v774_v9, %v3662_v54  ;;  %v783_v19 = vmul.f32 %v782_v20, %v3662_v54 }
  0xcc   :  { %s3820_s19 = sld [smem:[#allocation5 + $0x8c]]  ;;  %v820_v13 = vmul.f32 %v819_v53, %v3736_v33  ;;  %v824_v18 = vmul.f32 %v823_v49, %v3738_v34  ;;  %v547_v33 = vmul.f32 %v546_v37, %v523_v42  ;;  %v659_v53 = vadd.f32 %v3685_v2, %v656_v47 }
  0xcd   :  { %s3825_s10 = sld [smem:[#allocation5 + $0x8e]]  ;;  %v768_v2 = vadd.f32 %v767_v39, %v765_v46  ;;  %v7108_v47 = vstv %s3674_s18 }
  0xce   :  { %s3830_s23 = sld [smem:[#allocation5 + $0x8d]]  ;;  %v792_v51 = vstv %s3790_s5  ;;  %v826_v20 = vadd.f32 %v824_v18, %v820_v13  ;;  %v550_v13 = vadd.f32 %v3751_v41, %v547_v33 }
  0xcf   :  { %s3836_s16 = sld [smem:[#allocation7 + $0x5]]  ;;  %v3860_v9 = vmul.f32 %v792_v51, %v3694_v8  ;;  %v528_v51 = vld [vmem:[#allocation2 + $0x8] sm:$0xf] }
  0xd0   :  { %v798_v16 = vstv %s3804_s21  ;;  %v664_v18 = vmul.f32 %v663_v5, %v528_v51  ;;  %s7106_s13 = sld [smem:[#allocation16_spill]]  ;;  %v563_v1 = vmul.f32 %v562_v36, %v528_v51 }
  0xd1   :  { %v829_v12 = vstv %s3813_s29  ;;  %s7109_s30 = sld [smem:[#allocation34_spill]] }
  0xd2   :  { %v800_v54 = vstv %s3820_s19  ;;  %v830_v61 = vmul.f32 %v829_v12, %v3767_v55  ;;  %s7110_s27 = sld [smem:[#allocation19_spill]] }
  0xd3   :  { %v437_v29 = vpop.permute.xlu0 %436  ;;  %v827_v49 = vstv %s3825_s10  ;;  %s7111_s26 = sld [smem:[#allocation21_spill]] }
  0xd4   :  { %v439_v44 = vsel %vm232_vm14, %v3538_v40, %v437_v29  ;;  %v822_v40 = vmul.f32 %v821_v56, %v3651_v48  ;;  %v780_v29 = vstv %s3742_s24  ;;  %v539_v48 = vmul.f32 %v538_v30, %v523_v42  ;;  %v525_v56 = vld [vmem:[#allocation2 + $0x4] sm:$0xf]  ;;  %s7107_s24 = sld [smem:[#allocation18_spill]] }
  0xd5   :  { %446 = vst [vmem:[#allocation2 + $0x10] sm:$0x3] %v439_v44  ;;  %v785_v44 = vstv %s3756_s8  ;;  %v3879_v30 = vmul.f32 %v800_v54, %v3694_v8  ;;  %v803_v37 = vstv %s3830_s23  ;;  %v3887_v42 = vmul.f32 %v827_v49, %v3676_v59  ;;  %s7112_s29 = sld [smem:[#allocation35_spill]]  ;;  %s7137_s23 = smov 1  }
  0xd6   :  { %v3873_v34 = vadd.f32 %v822_v40, %v818_v25  ;;  %v808_v25 = vstv %s3836_s16  ;;  %v651_v40 = vadd.f32 %v3670_v58, %v648_v3  ;;  %v542_v26 = vadd.f32 %v3734_v17, %v539_v48  ;;  %v530_v17 = vld [vmem:[#allocation2 + $0xc] sm:$0xf]  ;;  %s7123_s18 = sld [smem:[#allocation20_spill]] }
  0xd7   :  { %v653_v55 = vmul.f32 %v652_v60, %v525_v56  ;;  %v661_v8 = vmul.f32 %v660_v4, %v525_v56  ;;  %v672_v58 = vmul.f32 %v671_v11, %v528_v51  ;;  %v760_v3 = vadd.f32 %v759_v31, %v757_v35  ;;  %s7130_s0 = sld [smem:[#allocation23_spill]] }
  0xd8   :  { %v3898_v6 = vadd.f32 %v830_v61, %v826_v20  ;;  %v555_v59 = vmul.f32 %v554_v63, %v528_v51  ;;  %v773_v60 = vmul.f32 %v772_v22, %v528_v51  ;;  %v781_v12 = vmul.f32 %v780_v29, %v528_v51  ;;  %s4015_s8 = sld [smem:[#allocation5 + $0xa9]] }
  0xd9   :  { %v544_v5 = vmul.f32 %v543_v24, %v525_v56  ;;  %v552_v41 = vmul.f32 %v551_v62, %v525_v56  ;;  %v762_v11 = vmul.f32 %v7108_v47, %v525_v56  ;;  %v770_v31 = vmul.f32 %v769_v28, %v525_v56  ;;  %s4019_s7 = sld [smem:[#allocation5 + $0xae]] }
  0xda   :  { %v654_v63 = vadd.f32 %v653_v55, %v651_v40  ;;  %v662_v48 = vadd.f32 %v661_v8, %v659_v53  ;;  %v667_v22 = vadd.f32 %v3690_v7, %v664_v18  ;;  %v7113_v62 = vstv %s7106_s13  ;;  %s4023_s3 = sld [smem:[#allocation5 + $0xb4]] }
  0xdb   :  { %v669_v29 = vmul.f32 %v7113_v62, %v530_v17  ;;  %v675_v28 = vadd.f32 %v3703_v15, %v672_v58  ;;  %v7114_v54 = vstv %s7107_s24  ;;  %v558_v53 = vadd.f32 %v3781_v57, %v555_v59  ;;  %s4027_s5 = sld [smem:[#allocation5 + $0xb9]] }
  0xdc   :  { %v533_v36 = vld [vmem:[#allocation2 + $0x10] sm:$0xf]  ;;  %v677_v33 = vmul.f32 %v7114_v54, %v530_v17  ;;  %v566_v49 = vadd.f32 %v3794_v38, %v563_v1  ;;  %v776_v7 = vadd.f32 %v3848_v23, %v773_v60  ;;  %v784_v51 = vadd.f32 %v783_v19, %v781_v12  ;;  %s4031_s21 = sld [smem:[#allocation5 + $0xbe]] }
  0xdd   :  { %v7115_v56 = vstv %s7088_s1  ;;  %v7116_v46 = vstv %s7109_s30  ;;  %v7117_v20 = vstv %s3729_s28  ;;  %v786_v40 = vmul.f32 %v785_v44, %v530_v17  ;;  %s7124_s28 = sld [smem:[#allocation22_spill]] }
  0xde   :  { %v560_v35 = vmul.f32 %v7115_v56, %v530_v17  ;;  %v778_v61 = vmul.f32 %v7117_v20, %v530_v17  ;;  %v7118_v55 = vstv %s7110_s27  ;;  %v7119_v8 = vstv %s7111_s26  ;;  %s4017_s1 = sld [smem:[#allocation5 + $0xac]] }
  0xdf   :  { %v682_v15 = vmul.f32 %v7118_v55, %v533_v36  ;;  %v690_v18 = vmul.f32 %v7119_v8, %v533_v36  ;;  %v7120_v58 = vstv %s7112_s29  ;;  %v7121_v47 = vstv %s7095_s15  ;;  %s7131_s15 = sld [smem:[#allocation41_spill]] }
  0xe0   :  { %v442_v4 = vpop.permute.xlu1 %441  ;;  %v581_v57 = vmul.f32 %v7121_v47, %v533_v36  ;;  %v670_v59 = vadd.f32 %v669_v29, %v667_v22  ;;  %v678_v38 = vadd.f32 %v677_v33, %v675_v28  ;;  %v7122_v1 = vstv %s3772_s6  ;;  %s4021_s6 = sld [smem:[#allocation5 + $0xb1]] }
  0xe1   :  { %v444_v39 = vsel %vm238_vm15, %v442_v4, %v3530_v32  ;;  %v573_v4 = vmul.f32 %v7120_v58, %v533_v36  ;;  %v791_v23 = vmul.f32 %v7122_v1, %v533_v36  ;;  %v799_v19 = vmul.f32 %v798_v16, %v533_v36  ;;  %7138 = sst [smem:[#allocation24_spill]] %s4027_s5 }
  0xe2   :  { %v445_v24 = vsel %vm240_vm1, %v444_v39, %v3530_v32  ;;  %v568_v32 = vmul.f32 %v7116_v46, %v530_v17  ;;  %v545_v60 = vadd.f32 %v544_v5, %v542_v26  ;;  %v553_v12 = vadd.f32 %v552_v41, %v550_v13  ;;  %s4033_s10 = sld [smem:[#allocation5 + $0x91]] }
  0xe3   :  { %447 = vst [vmem:[#allocation2 + $0x16] sm:$0x3] %v445_v24  ;;  %v763_v39 = vadd.f32 %v762_v11, %v760_v3  ;;  %v771_v24 = vadd.f32 %v770_v31, %v768_v2  ;;  %v561_v44 = vadd.f32 %v560_v35, %v558_v53  ;;  %v779_v62 = vadd.f32 %v778_v61, %v776_v7  ;;  %s4035_s16 = sld [smem:[#allocation5 + $0x94]] }
  0xe4   :  { %v569_v17 = vadd.f32 %v568_v32, %v566_v49  ;;  %v787_v54 = vadd.f32 %v786_v40, %v784_v51  ;;  %v685_v56 = vadd.f32 %v3716_v10, %v682_v15  ;;  %v693_v22 = vadd.f32 %v3719_v27, %v690_v18  ;;  %s4037_s11 = sld [smem:[#allocation5 + $0x96]] }
  0xe5   :  { %v576_v16 = vadd.f32 %v3802_v43, %v573_v4  ;;  %v584_v26 = vadd.f32 %v3810_v52, %v581_v57  ;;  %v679_v3 = vadd.f32 %v670_v59, %v654_v63  ;;  %v680_v5 = vadd.f32 %v678_v38, %v662_v48  ;;  %s4039_s17 = sld [smem:[#allocation5 + $0x99]] }
  0xe6   :  { %v794_v2 = vadd.f32 %v3860_v9, %v791_v23  ;;  %v802_v41 = vadd.f32 %v3879_v30, %v799_v19  ;;  %v7125_v11 = vstv %s7123_s18  ;;  %v7126_v36 = vstv %s7124_s28  ;;  %s4041_s25 = sld [smem:[#allocation5 + $0x9c]] }
  0xe7   :  { %v7127_v28 = vstv %s7094_s22  ;;  %v7128_v33 = vstv %s7096_s20  ;;  %v570_v27 = vadd.f32 %v561_v44, %v545_v60  ;;  %v571_v49 = vadd.f32 %v569_v17, %v553_v12  ;;  %s7136_s22 = smov 127   ;;  %s4025_s20 = sld [smem:[#allocation5 + $0xb6]] }
  0xe8   :  { %v7129_v43 = vstv %s3797_s4  ;;  %v788_v51 = vadd.f32 %v779_v62, %v763_v39  ;;  %v789_v35 = vadd.f32 %v787_v54, %v771_v24  ;;  %v621_v15 = vrot.slane %v3823_v14, 6  ;;  %s4029_s4 = sld [smem:[#allocation5 + $0xbc]] }
  0xe9   :  { %v7132_v58 = vstv %s7130_s0  ;;  %v7134_v59 = vstv %s7131_s15  ;;  %v831_v1 = vadd.f32 %v3887_v42, %v3873_v34  ;;  %s4043_s9 = sld [smem:[#allocation5 + $0x9e]] }
  0xea   :  { %v535_v13 = vld [vmem:[#allocation2 + $0x14] sm:$0xf]  ;;  %v7133_v47 = vmov %v7132_v58  ;;  %v7135_v23 = vmov %v7134_v59  ;;  %s4045_s2 = sld [smem:[#allocation5 + $0xa1]] }
  0xeb   :  { %v687_v31 = vmul.f32 %v7125_v11, %v535_v13  ;;  %v695_v29 = vmul.f32 %v7126_v36, %v535_v13  ;;  %v578_v10 = vmul.f32 %v7127_v28, %v535_v13  ;;  %v586_v53 = vmul.f32 %v7128_v33, %v535_v13  ;;  %s4047_s12 = sld [smem:[#allocation5 + $0xa4]] }
  0xec   :  { %v796_v7 = vmul.f32 %v7129_v43, %v535_v13  ;;  %v804_v52 = vmul.f32 %v803_v37, %v535_v13  ;;  %v730_v37 = vrot.slane %v3818_v50, 6  ;;  %v839_v50 = vrot.slane %v3898_v6, 6  ;;  %s4049_s14 = sld [smem:[#allocation5 + $0xa6]] }
  0xed   :  { %v688_v63 = vadd.f32 %v687_v31, %v685_v56  ;;  %v696_v48 = vadd.f32 %v695_v29, %v693_v22  ;;  %v579_v9 = vadd.f32 %v578_v10, %v576_v16  ;;  %v587_v30 = vadd.f32 %v586_v53, %v584_v26  ;;  %s4051_s19 = sld [smem:[#allocation5 + $0xaf]] }
  0xee   :  { %v797_v46 = vadd.f32 %v796_v7, %v794_v2  ;;  %v805_v32 = vadd.f32 %v804_v52, %v802_v41  ;;  %7139 = sst [smem:[#allocation27_spill]] %s4029_s4 }
  0xef   :  { %v697_v20 = vadd.f32 %v688_v63, %v679_v3  ;;  %v698_v61 = vadd.f32 %v696_v48, %v680_v5  ;;  %v588_v40 = vadd.f32 %v579_v9, %v570_v27  ;;  %v589_v55 = vadd.f32 %v587_v30, %v571_v49  ;;  %s4053_s13 = sld [smem:[#allocation5 + $0xb7]] }
  0xf0   :  { %v806_v8 = vadd.f32 %v797_v46, %v788_v51  ;;  %v807_v18 = vadd.f32 %v805_v32, %v789_v35  ;;  %7140 = sst [smem:[#allocation30_spill]] %s4045_s2  ;;  %v1070_v51 = vstv %s4015_s8  ;;  %v1078_v35 = vstv %s4017_s1 }
  0xf1   :  { %v700_v4 = vadd.f32 %v7132_v58, %v697_v20  ;;  %v701_v57 = vadd.f32 %v7133_v47, %v698_v61  ;;  %v591_v38 = vadd.f32 %v7134_v59, %v588_v40  ;;  %v592_v19 = vadd.f32 %v7135_v23, %v589_v55  ;;  %7141 = sst [smem:[#allocation33_spill]] %s4047_s12 }
  0xf2   :  { %v809_v60 = vadd.f32 %v808_v25, %v806_v8  ;;  %v810_v12 = vadd.f32 %v808_v25, %v807_v18  ;;  %s4055_s24 = sld [smem:[#allocation5 + $0xbf]]  ;;  %v1086_v46 = vstv %s4021_s6  ;;  %v1129_v32 = vstv %s4019_s7 }
  0xf3   :  { %vm702_vm2 = vcmp.gt.f32.partialorder %v700_v4, 0.0  ;;  %v703_v14 = vmul.f32 0.01, %v700_v4  ;;  %v724_v39 = vsub.f32 %v700_v4, %v3731_v21  ;;  %vm593_vm3 = vcmp.gt.f32.partialorder %v591_v38, 0.0  ;;  %s4057_s30 = sld [smem:[#allocation5 + $0x97]] }
  0xf4   :  { %v594_v24 = vmul.f32 0.01, %v591_v38  ;;  %v615_v44 = vsub.f32 %v591_v38, %v3816_v0  ;;  %vm705_vm5 = vcmp.gt.f32.partialorder %v701_v57, 0.0  ;;  %v706_v17 = vmul.f32 0.01, %v701_v57  ;;  %s4059_s27 = sld [smem:[#allocation5 + $0x9f]] }
  0xf5   :  { %v704_v62 = vsel %vm702_vm2, %v700_v4, %v703_v14  ;;  %vm725_vm6 = vcmp.gt.f32.partialorder %v724_v39, 0.0  ;;  %v726_v34 = vmul.f32 0.01, %v724_v39  ;;  %v732_v42 = vsub.f32 %v701_v57, %v730_v37  ;;  %s4061_s26 = sld [smem:[#allocation5 + $0xa7]] }
  0xf6   :  { %739 = vst [vmem:[#allocation3 + $0x10] sm:$0xc] %v704_v62  ;;  %v595_v54 = vsel %vm593_vm3, %v591_v38, %v594_v24  ;;  %vm616_vm7 = vcmp.gt.f32.partialorder %v615_v44, 0.0  ;;  %v617_v25 = vmul.f32 0.01, %v615_v44  ;;  %v707_v56 = vsel %vm705_vm5, %v701_v57, %v706_v17  ;;  %s4063_s29 = sld [smem:[#allocation5 + $0xc4]] }
  0xf7   :  { %v727_v6 = vsel %vm725_vm6, %v724_v39, %v726_v34  ;;  %630 = vst [vmem:[#allocation3 + $0x4] sm:$0xc] %v595_v54  ;;  %vm733_vm8 = vcmp.gt.f32.partialorder %v732_v42, 0.0  ;;  %v734_v22 = vmul.f32 0.01, %v732_v42  ;;  %vm596_vm9 = vcmp.gt.f32.partialorder %v592_v19, 0.0 }
  0xf8   :  { %738 = vst [vmem:[#allocation3 + $0x10] sm:$0x3] %v707_v56  ;;  %v3978_v21 = vsel %vm53_vm4, %v727_v6, %v704_v62  ;;  %v618_v0 = vsel %vm616_vm7, %v615_v44, %v617_v25  ;;  %v597_v16 = vmul.f32 0.01, %v592_v19  ;;  %v623_v26 = vsub.f32 %v592_v19, %v621_v15  ;;  %7142 = sst [smem:[#allocation31_spill]] %s4055_s24 }
  0xf9   :  { %748 = vrot.lane.b32.xlu1 %v3978_v21, %s7136_s22  ;;  %737 = vst [vmem:[#allocation3 + $0xe] sm:$0x3] %v3978_v21  ;;  %v3985_v13 = vsel %vm53_vm4, %v618_v0, %v595_v54  ;;  %v735_v3 = vsel %vm733_vm8, %v732_v42, %v734_v22  ;;  %vm811_vm10 = vcmp.gt.f32.partialorder %v809_v60, 0.0  ;;  %v812_v5 = vmul.f32 0.01, %v809_v60  ;;  %7143 = sst [smem:[#allocation36_spill]] %s4057_s30 }
  0xfa   :  { %639 = vrot.lane.b32.xlu0 %v3985_v13, %s7136_s22  ;;  %628 = vst [vmem:[#allocation3 + $0x2] sm:$0x3] %v3985_v13  ;;  %v736_v2 = vsel %vm54_vm0, %v735_v3, %v707_v56  ;;  %v598_v41 = vsel %vm596_vm9, %v592_v19, %v597_v16  ;;  %vm624_vm11 = vcmp.gt.f32.partialorder %v623_v26, 0.0  ;;  %v625_v11 = vmul.f32 0.01, %v623_v26  ;;  %7144 = sst [smem:[#allocation39_spill]] %s4059_s27 }
  0xfb   :  { %740 = vst [vmem:[#allocation3 + $0x12] sm:$0xc] %v736_v2  ;;  %v3992_v31 = vrot.slane %v736_v2, 2  ;;  %629 = vst [vmem:[#allocation3 + $0x4] sm:$0x3] %v598_v41  ;;  %v813_v36 = vsel %vm811_vm10, %v809_v60, %v812_v5  ;;  %v833_v29 = vsub.f32 %v809_v60, %v831_v1  ;;  %vm814_vm12 = vcmp.gt.f32.partialorder %v810_v12, 0.0 }
  0xfc   :  { %v626_v28 = vsel %vm624_vm11, %v623_v26, %v625_v11  ;;  %848 = vst [vmem:[#allocation3 + $0x1c] sm:$0xc] %v813_v36  ;;  %v815_v10 = vmul.f32 0.01, %v810_v12  ;;  %v841_v33 = vsub.f32 %v810_v12, %v839_v50  ;;  %7145 = sst [smem:[#allocation32_spill]] %s4063_s29  ;;  %v1094_v20 = vstv %s4023_s3 }
  0xfd   :  { %743 = vrot.lane.b32.xlu1 %v3992_v31, %s7137_s23  ;;  %v627_v53 = vsel %vm54_vm0, %v626_v28, %v598_v41  ;;  %vm834_vm13 = vcmp.gt.f32.partialorder %v833_v29, 0.0  ;;  %v835_v27 = vmul.f32 0.01, %v833_v29  ;;  %s4065_s18 = sld [smem:[#allocation5 + $0xc7]]  ;;  %v1104_v61 = vstv %s4027_s5 }
  0xfe   :  { %631 = vst [vmem:[#allocation3 + $0x6] sm:$0xc] %v627_v53  ;;  %v3998_v49 = vrot.slane %v627_v53, 2  ;;  %v816_v43 = vsel %vm814_vm12, %v810_v12, %v815_v10  ;;  %vm842_vm2 = vcmp.gt.f32.partialorder %v841_v33, 0.0  ;;  %v843_v7 = vmul.f32 0.01, %v841_v33 }
  0xff   :  { %v836_v52 = vsel %vm834_vm13, %v833_v29, %v835_v27  ;;  %847 = vst [vmem:[#allocation3 + $0x1c] sm:$0x3] %v816_v43  ;;  %s4067_s28 = sld [smem:[#allocation5 + $0xcc]]  ;;  %v1112_v40 = vstv %s4029_s4  ;;  %v1133_v55 = vstv %s4025_s20  ;;  %v1139_v37 = vstv %s4031_s21 }
 0x100   :  { %634 = vrot.lane.b32.xlu0 %v3998_v49, %s7137_s23  ;;  %v4004_v63 = vsel %vm53_vm4, %v836_v52, %v813_v36  ;;  %v844_v48 = vsel %vm842_vm2, %v841_v33, %v843_v7  ;;  %s4069_s0 = sld [smem:[#allocation5 + $0xcf]]  ;;  %v957_v15 = vstv %s4033_s10  ;;  %v965_v8 = vstv %s4035_s16  ;;  %v4145_v60 = vld [vmem:[#allocation3 + $0xe] sm:$0x3] }
 0x101   :  { %846 = vst [vmem:[#allocation3 + $0x1a] sm:$0x3] %v4004_v63  ;;  %857 = vrot.lane.b32.xlu1 %v4004_v63, %s7136_s22  ;;  %v845_v9 = vsel %vm54_vm0, %v844_v48, %v816_v43  ;;  %s4071_s15 = sld [smem:[#allocation5 + $0xd4]]  ;;  %v1016_v18 = vstv %s4037_s11  ;;  %v973_v58 = vstv %s4039_s17  ;;  %v981_v4 = vstv %s4041_s25  ;;  %v4143_v19 = vld [vmem:[#allocation3 + $0x2] sm:$0x3] }
 0x102   :  { %849 = vst [vmem:[#allocation3 + $0x1e] sm:$0xc] %v845_v9  ;;  %v4011_v30 = vrot.slane %v845_v9, 2  ;;  %s4075_s22 = sld [smem:[#allocation5 + $0xc1]]  ;;  %v991_v47 = vstv %s4045_s2  ;;  %v1020_v57 = vstv %s4043_s9  ;;  %v999_v59 = vstv %s4047_s12  ;;  %v4165_v56 = vld [vmem:[#allocation3 + $0xe] sm:$0xff] }
 0x103   :  { %7146 = sst [smem:[#allocation37_spill]] %s4065_s18  ;;  %v1026_v38 = vstv %s4049_s14  ;;  %v1131_v1 = vstv %s4051_s19  ;;  %v1135_v23 = vstv %s4053_s13  ;;  %v1028_v39 = vstv %s4061_s26  ;;  %v949_v10 = vld [vmem:[#allocation3 + $0x14] sm:$0x3] }
 0x104   :  { %852 = vrot.lane.b32.xlu0 %v4011_v30, %s7137_s23  ;;  %s4073_s23 = sld [smem:[#allocation5 + $0xd7]]  ;;  %v1130_v6 = vmul.f32 %v1129_v32, %v4143_v19  ;;  %v1134_v22 = vmul.f32 %v1133_v55, %v4145_v60  ;;  %v1017_v0 = vmul.f32 %v1016_v18, %v4143_v19  ;;  %v1021_v16 = vmul.f32 %v1020_v57, %v4145_v60 }
 0x105   :  { %s4077_s24 = sld [smem:[#allocation5 + $0xc6]]  ;;  %v1207_v44 = vstv %s4067_s28  ;;  %v944_v28 = vld [vmem:[#allocation3 + $0x8] sm:$0x3]  ;;  %v4189_v27 = vmul.f32 %v1086_v46, %v4165_v56  ;;  %v4192_v43 = vmul.f32 %v1094_v20, %v4165_v56  ;;  %v4197_v7 = vmul.f32 %v973_v58, %v4165_v56 }
 0x106   :  { %7147 = sst [smem:[#allocation38_spill]] %s4069_s0  ;;  %v4185_v33 = vld [vmem:[#allocation3 + $0x2] sm:$0xff]  ;;  %v1137_v48 = vadd.f32 %v1134_v22, %v1130_v6  ;;  %v4201_v9 = vmul.f32 %v981_v4, %v4165_v56  ;;  %v1024_v32 = vadd.f32 %v1021_v16, %v1017_v0  ;;  %v1132_v46 = vmul.f32 %v1131_v1, %v944_v28 }
 0x107   :  { %7148 = sst [smem:[#allocation40_spill]] %s4071_s15  ;;  %v1136_v20 = vmul.f32 %v1135_v23, %v949_v10  ;;  %v4212_v57 = vmul.f32 %v1070_v51, %v4185_v33  ;;  %v4217_v4 = vmul.f32 %v1078_v35, %v4185_v33  ;;  %v4223_v1 = vmul.f32 %v1207_v44, %v4165_v56 }
 0x108   :  { %s4079_s30 = sld [smem:[#allocation5 + $0xc9]]  ;;  %v1183_v54 = vstv %s4075_s22  ;;  %v4207_v58 = vld [vmem:[#allocation3 + $0x1a] sm:$0x3]  ;;  %v4230_v51 = vmul.f32 %v957_v15, %v4185_v33  ;;  %v4235_v35 = vmul.f32 %v965_v8, %v4185_v33 }
 0x109   :  { %s4081_s27 = sld [smem:[#allocation5 + $0xce]]  ;;  %v951_v23 = vld [vmem:[#allocation3 + $0x1a] sm:$0xff]  ;;  %v1140_v8 = vmul.f32 %v1139_v37, %v4207_v58 }
 0x10a   :  { %7149 = sst [smem:[#allocation26_spill]] %s4073_s23  ;;  %v954_v44 = vld [vmem:[#allocation3 + $0x20] sm:$0x3]  ;;  %v4253_v22 = vmul.f32 %v1104_v61, %v951_v23  ;;  %v4269_v37 = vmul.f32 %v991_v47, %v951_v23 }
 0x10b   :  { %7150 = sst [smem:[#allocation13_spill]] %s4077_s24  ;;  %v1029_v61 = vmul.f32 %v1028_v39, %v954_v44 }
 0x10c   :  { %s4083_s29 = sld [smem:[#allocation5 + $0xd1]] }
 0x10d   :  { %s4085_s18 = sld [smem:[#allocation5 + $0xaa]] }
 0x10e   :  { %7151 = sst [smem:[#allocation14_spill]] %s4079_s30 }
 0x10f   :  { %7152 = sst [smem:[#allocation15_spill]] %s4081_s27 }
 0x110   :  { %s4087_s0 = sld [smem:[#allocation5 + $0xad]] }
 0x111   :  { %s4089_s15 = sld [smem:[#allocation5 + $0xb2]] }
 0x112   :  { %7153 = sst [smem:[#allocation17_spill]] %s4083_s29 }
 0x113   :  { %7154 = sst [smem:[#allocation29_spill]] %s4085_s18 }
 0x114   :  { %s4091_s23 = sld [smem:[#allocation5 + $0xa8]] }
 0x115   :  { %s4093_s24 = sld [smem:[#allocation5 + $0xab]] }
 0x116   :  { %7155 = sst [smem:[#allocation25_spill]] %s4087_s0 }
 0x117   :  { %7156 = sst [smem:[#allocation28_spill]] %s4089_s15 }
 0x118   :  { %s4095_s30 = sld [smem:[#allocation5 + $0xb0]] }
 0x119   :  { %s4097_s27 = sld [smem:[#allocation5 + $0xb3]] }
 0x11a   :  { %7157 = sst [smem:[#allocation16_spill]] %s4091_s23 }
 0x11b   :  { %7158 = sst [smem:[#allocation18_spill]] %s4093_s24 }
 0x11c   :  { %s4099_s29 = sld [smem:[#allocation5 + $0xb5]] }
 0x11d   :  { %s4101_s18 = sld [smem:[#allocation5 + $0xb8]] }
 0x11e   :  { %7159 = sst [smem:[#allocation34_spill]] %s4095_s30 }
 0x11f   :  { %7160 = sst [smem:[#allocation19_spill]] %s4097_s27  ;;  %v1092_v52 = vstv %s4097_s27 }
 0x120   :  { %s4103_s0 = sld [smem:[#allocation5 + $0xba]] }
 0x121   :  { %s4105_s15 = sld [smem:[#allocation5 + $0xbb]] }
 0x122   :  { %7161 = sst [smem:[#allocation21_spill]] %s4099_s29  ;;  %v1097_v6 = vstv %s4099_s29 }
 0x123   :  { %7162 = sst [smem:[#allocation35_spill]] %s4101_s18 }
 0x124   :  { %s4107_s23 = sld [smem:[#allocation5 + $0xbd]] }
 0x125   :  { %s4109_s24 = sld [smem:[#allocation7 + $0x7]] }
 0x126   :  { %7163 = sst [smem:[#allocation20_spill]] %s4103_s0 }
 0x127   :  { %7164 = sst [smem:[#allocation22_spill]] %s4105_s15 }
 0x128   :  { %s4111_s30 = sld [smem:[#allocation5 + $0x90]] }
 0x129   :  { %s4117_s0 = sld [smem:[#allocation5 + $0x92]] }
 0x12a   :  { %7165 = sst [smem:[#allocation23_spill]] %s4107_s23 }
 0x12b   :  { %7166 = sst [smem:[#allocation41_spill]] %s4109_s24 }
 0x12c   :  { %s4123_s24 = sld [smem:[#allocation5 + $0x93]] }
 0x12d   :  { %s7171_s6 = sld [smem:[#allocation31_spill]] }
 0x12e   :  { %7167 = sst [smem:[#allocation42_spill]] %s4111_s30 }
 0x12f   :  { %7168 = sst [smem:[#allocation43_spill]] %s4117_s0 }
 0x130   :  { %s4126_s30 = sld [smem:[#allocation5 + $0x95]] }
 0x131   :  { %s7172_s7 = sld [smem:[#allocation36_spill]] }
 0x132   :  { %7169 = sst [smem:[#allocation44_spill]] %s4123_s24 }
 0x133   :  { %s7173_s23 = sld [smem:[#allocation39_spill]]  ;;  %v1141_v12 = vstv %s7171_s6 }
 0x134   :  { %s4131_s0 = sld [smem:[#allocation5 + $0x98]] }
 0x135   :  { %s7175_s3 = sld [smem:[#allocation32_spill]] }
 0x136   :  { %7170 = sst [smem:[#allocation45_spill]] %s4126_s30 }
 0x137   :  { %s7176_s20 = sld [smem:[#allocation40_spill]]  ;;  %v1018_v50 = vstv %s7172_s7 }
 0x138   :  { %s4137_s24 = sld [smem:[#allocation5 + $0x9a]]  ;;  %v1019_v55 = vmul.f32 %v1018_v50, %v944_v28 }
 0x139   :  { %s7178_s4 = sld [smem:[#allocation37_spill]]  ;;  %v1022_v14 = vstv %s7173_s23 }
 0x13a   :  { %7174 = sst [smem:[#allocation31_spill]] %s4131_s0  ;;  %v1023_v18 = vmul.f32 %v1022_v14, %v949_v10  ;;  %v1138_v14 = vadd.f32 %v1136_v20, %v1132_v46  ;;  %v4280_v46 = vmul.f32 %v999_v59, %v951_v23 }
 0x13b   :  { %s7179_s30 = sld [smem:[#allocation38_spill]]  ;;  %v1191_v24 = vstv %s7175_s3 }
 0x13c   :  { %s7180_s5 = sld [smem:[#allocation26_spill]]  ;;  %v4243_v0 = vmul.f32 %v1191_v24, %v4185_v33  ;;  %v1025_v11 = vadd.f32 %v1023_v18, %v1019_v55  ;;  %v4257_v24 = vmul.f32 %v1112_v40, %v951_v23 }
 0x13d   :  { %s7181_s11 = sld [smem:[#allocation13_spill]]  ;;  %v1225_v17 = vstv %s7176_s20 }
 0x13e   :  { %7177 = sst [smem:[#allocation36_spill]] %s4137_s24  ;;  %v4290_v39 = vadd.f32 %v1029_v61, %v1025_v11 }
 0x13f   :  { %s4147_s17 = sld [smem:[#allocation5 + $0x9b]]  ;;  %v1244_v62 = vstv %s7178_s4 }
 0x140   :  { %s4153_s25 = sld [smem:[#allocation5 + $0x9d]]  ;;  %v1245_v15 = vmul.f32 %v1244_v62, %v944_v28  ;;  %v4265_v28 = vadd.f32 %v1140_v8, %v1137_v48 }
 0x141   :  { %s7183_s9 = sld [smem:[#allocation29_spill]]  ;;  %v1248_v34 = vstv %s7179_s30 }
 0x142   :  { %s7184_s19 = sld [smem:[#allocation14_spill]]  ;;  %v1254_v42 = vstv %s7180_s5  ;;  %v1249_v16 = vmul.f32 %v1248_v34, %v949_v10  ;;  %v1027_v34 = vmul.f32 %v1026_v38, %v4207_v58  ;;  %v1142_v10 = vmul.f32 %v1141_v12, %v954_v44 }
 0x143   :  { %s7185_s13 = sld [smem:[#allocation17_spill]]  ;;  %v1242_v25 = vstv %s7181_s11 }
 0x144   :  { %s7186_s24 = sld [smem:[#allocation15_spill]]  ;;  %v4282_v38 = vadd.f32 %v1027_v34, %v1024_v32  ;;  %v1251_v48 = vadd.f32 %v1249_v16, %v1245_v15  ;;  %v4288_v55 = vadd.f32 %v1142_v10, %v1138_v14  ;;  %v4299_v15 = vmul.f32 %v1225_v17, %v951_v23 }
 0x145   :  { %7182 = sst [smem:[#allocation39_spill]] %s4147_s17  ;;  %v1255_v16 = vmul.f32 %v1254_v42, %v954_v44  ;;  %v4315_v17 = vmul.f32 %v1183_v54, %v4185_v33  ;;  %v4338_v61 = vmul.f32 %v1242_v25, %v4143_v19 }
 0x146   :  { %s4159_s0 = sld [smem:[#allocation5 + $0xa0]] }
 0x147   :  { %s7187_s12 = sld [smem:[#allocation16_spill]]  ;;  %v1073_v26 = vstv %s7183_s9 }
 0x148   :  { %s7189_s17 = sld [smem:[#allocation25_spill]]  ;;  %v1199_v3 = vstv %s7184_s19 }
 0x149   :  { %s7190_s23 = sld [smem:[#allocation28_spill]]  ;;  %v1217_v5 = vstv %s7185_s13  ;;  %v4326_v44 = vmul.f32 %v1199_v3, %v4165_v56 }
 0x14a   :  { %s4169_s28 = sld [smem:[#allocation5 + $0xa2]]  ;;  %v1246_v2 = vstv %s7186_s24  ;;  %v4330_v54 = vmul.f32 %v1217_v5, %v951_v23  ;;  %v984_v5 = vstv %s4153_s25 }
 0x14b   :  { %s7191_s4 = sld [smem:[#allocation34_spill]]  ;;  %v4347_v23 = vmul.f32 %v1246_v2, %v4145_v60 }
 0x14c   :  { %s4174_s30 = sld [smem:[#allocation5 + $0xa3]] }
 0x14d   :  { %v1068_v41 = vstv %s7187_s12  ;;  %s4183_s7 = sld [smem:[#allocation5 + $0xa5]] }
 0x14e   :  { %v1081_v36 = vstv %s7189_s17  ;;  %s4194_s3 = sld [smem:[#allocation7 + $0x6]] }
 0x14f   :  { %v1089_v29 = vstv %s7190_s23  ;;  %s4203_s12 = sld [smem:[#allocation5 + $0xc3]] }
 0x150   :  { %s7193_s27 = sld [smem:[#allocation23_spill]] }
 0x151   :  { %v1084_v53 = vstv %s7191_s4  ;;  %s4205_s4 = sld [smem:[#allocation5 + $0xc5]] }
 0x152   :  { %s4220_s17 = sld [smem:[#allocation5 + $0xcb]] }
 0x153   :  { %s4237_s29 = sld [smem:[#allocation5 + $0xcd]] }
 0x154   :  { %s7199_s10 = sld [smem:[#allocation42_spill]] }
 0x155   :  { %s4249_s15 = sld [smem:[#allocation5 + $0xd5]] }
 0x156   :  { %v1115_v50 = vstv %s7193_s27  ;;  %s7201_s18 = sld [smem:[#allocation43_spill]] }
 0x157   :  { %s7202_s2 = sld [smem:[#allocation44_spill]] }
 0x158   :  { %7194 = sst [smem:[#allocation32_spill]] %s4220_s17 }
 0x159   :  { %s4240_s17 = sld [smem:[#allocation5 + $0xd3]] }
 0x15a   :  { %s4263_s27 = sld [smem:[#allocation7 + $0x8]]  ;;  %v955_v40 = vstv %s7199_s10 }
 0x15b   :  { %s7203_s21 = sld [smem:[#allocation45_spill]] }
 0x15c   :  { %s4275_s9 = sld [smem:[#allocation5 + $0xc0]]  ;;  %v960_v12 = vstv %s7201_s18 }
 0x15d   :  { %s7204_s14 = sld [smem:[#allocation31_spill]]  ;;  %v963_v20 = vstv %s7202_s2 }
 0x15e   :  { %s4284_s23 = sld [smem:[#allocation5 + $0xc2]] }
 0x15f   :  { %s4292_s26 = sld [smem:[#allocation5 + $0xc8]] }
 0x160   :  { %s7205_s6 = sld [smem:[#allocation36_spill]] }
 0x161   :  { %v968_v18 = vstv %s7203_s21  ;;  %s4303_s8 = sld [smem:[#allocation5 + $0xca]] }
 0x162   :  { %s7206_s16 = sld [smem:[#allocation39_spill]] }
 0x163   :  { %v971_v8 = vstv %s7204_s14  ;;  %s4310_s1 = sld [smem:[#allocation5 + $0xd0]] }
 0x164   :  { %s4321_s5 = sld [smem:[#allocation5 + $0xd2]] }
 0x165   :  { %s7207_s22 = sld [smem:[#allocation32_spill]] }
 0x166   :  { %s7216_s18 = sld [smem:[#allocation20_spill]] }
 0x167   :  { %s7219_s14 = sld [smem:[#allocation35_spill]] }
 0x168   :  { %v979_v3 = vstv %s7206_s16  ;;  %s7228_s2 = sld [smem:[#allocation41_spill]] }
 0x169   :  { %s4550_s10 = sld [smem:[#allocation5 + $0xff]] }
 0x16a   :  { %s4560_s16 = sld [smem:[#allocation5 + $0xdb]] }
 0x16b   :  { %v749_v47 = vpop.permute.xlu1 %748  ;;  %s4566_s24 = sld [smem:[#allocation5 + $0xdf]] }
 0x16c   :  { %v752_v59 = vsel %vm238_vm15, %v749_v47, %v3992_v31  ;;  %v640_v32 = vpop.permute.xlu0 %639  ;;  %s4568_s20 = sld [smem:[#allocation5 + $0xe3]] }
 0x16d   :  { %v753_v11 = vsel %vm240_vm1, %v752_v59, %v3992_v31  ;;  %v643_v14 = vsel %vm238_vm15, %v640_v32, %v3998_v49  ;;  %v4319_v31 = vadd.f32 %v1255_v16, %v1251_v48  ;;  %v1194_v16 = vstv %s4205_s4  ;;  %s7215_s4 = sld [smem:[#allocation18_spill]] }
 0x16e   :  { %755 = vst [vmem:[#allocation3 + $0x16] sm:$0x3] %v753_v11  ;;  %v644_v42 = vsel %vm240_vm1, %v643_v14, %v3998_v49  ;;  %v976_v49 = vstv %s7205_s6  ;;  %v1205_v11 = vstv %s7207_s22  ;;  %v1210_v14 = vstv %s4237_s29  ;;  %s4556_s6 = sld [smem:[#allocation5 + $0x105]] }
 0x16f   :  { %646 = vst [vmem:[#allocation3 + $0xa] sm:$0x3] %v644_v42  ;;  %v744_v33 = vpop.permute.xlu1 %743  ;;  %v1186_v32 = vstv %s4284_s23  ;;  %v1220_v59 = vstv %s4321_s5  ;;  %s7220_s23 = sld [smem:[#allocation22_spill]] }
 0x170   :  { %v746_v56 = vsel %vm232_vm14, %v3978_v21, %v744_v33  ;;  %v1202_v21 = vstv %s4303_s8  ;;  %7251 = sst [smem:[#allocation15_spill]] %s4550_s10 }
 0x171   :  { %754 = vst [vmem:[#allocation3 + $0xc] sm:$0x3] %v746_v56  ;;  %s4558_s8 = sld [smem:[#allocation5 + $0x107]] }
 0x172   :  { %v635_v25 = vpop.permute.xlu0 %634  ;;  %7256 = sst [smem:[#allocation33_spill]] %s4560_s16 }
 0x173   :  { %v637_v60 = vsel %vm232_vm14, %v3985_v13, %v635_v25  ;;  %v858_v2 = vpop.permute.xlu1 %857  ;;  %v1197_v25 = vstv %s4292_s26  ;;  %s4554_s26 = sld [smem:[#allocation5 + $0x104]] }
 0x174   :  { %645 = vst [vmem:[#allocation3] sm:$0x3] %v637_v60  ;;  %v861_v56 = vsel %vm238_vm15, %v858_v2, %v4011_v30  ;;  %7254 = sst [smem:[#allocation30_spill]] %s4556_s6 }
 0x175   :  { %v947_v62 = vld [vmem:[#allocation3 + $0x10] sm:$0xff]  ;;  %v862_v13 = vsel %vm240_vm1, %v861_v56, %v4011_v30  ;;  %s4562_s5 = sld [smem:[#allocation5 + $0xdc]] }
 0x176   :  { %v942_v33 = vld [vmem:[#allocation3 + $0x4] sm:$0xff]  ;;  %864 = vst [vmem:[#allocation3 + $0x22] sm:$0x3] %v862_v13  ;;  %v853_v60 = vpop.permute.xlu0 %852  ;;  %v1090_v2 = vmul.f32 %v1089_v29, %v947_v62  ;;  %v1098_v10 = vmul.f32 %v1097_v6, %v947_v62  ;;  %v977_v34 = vmul.f32 %v976_v49, %v947_v62  ;;  %v985_v42 = vmul.f32 %v984_v5, %v947_v62  ;;  %s4564_s22 = sld [smem:[#allocation5 + $0xdd]] }
 0x177   :  { %v855_v30 = vsel %vm232_vm14, %v4004_v63, %v853_v60  ;;  %v1074_v56 = vmul.f32 %v1073_v26, %v942_v33  ;;  %v1082_v48 = vmul.f32 %v1081_v36, %v942_v33  ;;  %v961_v13 = vmul.f32 %v960_v12, %v942_v33  ;;  %7255 = sst [smem:[#allocation42_spill]] %s4558_s8 }
 0x178   :  { %v945_v19 = vld [vmem:[#allocation3 + $0xc] sm:$0xff]  ;;  %863 = vst [vmem:[#allocation3 + $0x18] sm:$0x3] %v855_v30  ;;  %v969_v47 = vmul.f32 %v968_v18, %v942_v33  ;;  %v4387_v29 = vmul.f32 %v1194_v16, %v942_v33  ;;  %v1211_v6 = vmul.f32 %v1210_v14, %v947_v62  ;;  %v4395_v60 = vmul.f32 %v1186_v32, %v942_v33  ;;  %7259 = sst [smem:[#allocation45_spill]] %s4566_s24 }
 0x179   :  { %v1085_v49 = vmul.f32 %v1084_v53, %v945_v19  ;;  %v1093_v63 = vmul.f32 %v1092_v52, %v945_v19  ;;  %v972_v26 = vmul.f32 %v971_v8, %v945_v19  ;;  %v980_v36 = vmul.f32 %v979_v3, %v945_v19  ;;  %7253 = sst [smem:[#allocation27_spill]] %s4554_s26 }
 0x17a   :  { %v1206_v5 = vmul.f32 %v1205_v11, %v945_v19  ;;  %v1198_v12 = vmul.f32 %v1197_v25, %v945_v19  ;;  %v4397_v30 = vmul.f32 %v1202_v21, %v947_v62  ;;  %v7218_v3 = vstv %s7215_s4  ;;  %7260 = sst [smem:[#allocation31_spill]] %s4568_s20 }
 0x17b   :  { %v940_v18 = vld [vmem:[#allocation3] sm:$0xff]  ;;  %v1088_v16 = vadd.f32 %v4189_v27, %v1085_v49  ;;  %v1096_v14 = vadd.f32 %v4192_v43, %v1093_v63  ;;  %v975_v53 = vadd.f32 %v4197_v7, %v972_v26  ;;  %v983_v52 = vadd.f32 %v4201_v9, %v980_v36  ;;  %7257 = sst [smem:[#allocation43_spill]] %s4562_s5 }
 0x17c   :  { %v1069_v8 = vmul.f32 %v1068_v41, %v940_v18  ;;  %v1077_v32 = vmul.f32 %v7218_v3, %v940_v18  ;;  %v956_v62 = vmul.f32 %v955_v40, %v940_v18  ;;  %v964_v19 = vmul.f32 %v963_v20, %v940_v18  ;;  %7258 = sst [smem:[#allocation44_spill]] %s4564_s22 }
 0x17d   :  { %v4411_v21 = vld [vmem:[#allocation3 + $0x1c] sm:$0xff]  ;;  %v1091_v27 = vadd.f32 %v1090_v2, %v1088_v16  ;;  %v1099_v43 = vadd.f32 %v1098_v10, %v1096_v14  ;;  %v978_v11 = vadd.f32 %v977_v34, %v975_v53  ;;  %v986_v7 = vadd.f32 %v985_v42, %v983_v52  ;;  %s4570_s11 = sld [smem:[#allocation5 + $0xe4]] }
 0x17e   :  { %v1072_v9 = vadd.f32 %v4212_v57, %v1069_v8  ;;  %v1080_v41 = vadd.f32 %v4217_v4, %v1077_v32  ;;  %v7221_v33 = vstv %s7216_s18  ;;  %v1116_v40 = vmul.f32 %v1115_v50, %v4411_v21  ;;  %s4572_s25 = sld [smem:[#allocation5 + $0xe5]] }
 0x17f   :  { %v1108_v25 = vmul.f32 %v7221_v33, %v4411_v21  ;;  %v4421_v20 = vld [vmem:[#allocation3 + $0x18] sm:$0xff]  ;;  %v959_v2 = vadd.f32 %v4230_v51, %v956_v62  ;;  %v967_v10 = vadd.f32 %v4235_v35, %v964_v19  ;;  %v7222_v34 = vstv %s4169_s28  ;;  %s4540_s28 = sld [smem:[#allocation5 + $0xfb]] }
 0x180   :  { %v995_v42 = vmul.f32 %v7222_v34, %v4411_v21  ;;  %v7223_v57 = vstv %s4183_s7  ;;  %v1075_v63 = vadd.f32 %v1074_v56, %v1072_v9  ;;  %v1083_v4 = vadd.f32 %v1082_v48, %v1080_v41  ;;  %s4544_s7 = sld [smem:[#allocation5 + $0xf7]] }
 0x181   :  { %v1003_v49 = vmul.f32 %v7223_v57, %v4411_v21  ;;  %v7224_v26 = vstv %s7219_s14  ;;  %v7225_v16 = vstv %s7220_s23  ;;  %v962_v14 = vadd.f32 %v961_v13, %v959_v2  ;;  %s4574_s29 = sld [smem:[#allocation5 + $0xe7]] }
 0x182   :  { %v1103_v36 = vmul.f32 %v7224_v26, %v4421_v20  ;;  %v1111_v50 = vmul.f32 %v7225_v16, %v4421_v20  ;;  %v970_v53 = vadd.f32 %v969_v47, %v967_v10  ;;  %v7226_v51 = vstv %s4159_s0  ;;  %s7239_s0 = smov 127   ;;  %s4576_s19 = sld [smem:[#allocation5 + $0xeb]] }
 0x183   :  { %v990_v35 = vmul.f32 %v7226_v51, %v4421_v20  ;;  %v7227_v52 = vstv %s4174_s30  ;;  %v1100_v3 = vadd.f32 %v1091_v27, %v1075_v63  ;;  %v1101_v56 = vadd.f32 %v1099_v43, %v1083_v4  ;;  %s4542_s30 = sld [smem:[#allocation5 + $0xf4]] }
 0x184   :  { %v998_v8 = vmul.f32 %v7227_v52, %v4421_v20  ;;  %v1106_v48 = vadd.f32 %v4253_v22, %v1103_v36  ;;  %v1114_v32 = vadd.f32 %v4257_v24, %v1111_v50  ;;  %v987_v62 = vadd.f32 %v978_v11, %v962_v14  ;;  %7261 = sst [smem:[#allocation36_spill]] %s4570_s11 }
 0x185   :  { %v988_v19 = vadd.f32 %v986_v7, %v970_v53  ;;  %v993_v9 = vadd.f32 %v4269_v37, %v990_v35  ;;  %v7229_v33 = vstv %s4203_s12  ;;  %v1209_v27 = vadd.f32 %v4223_v1, %v1206_v5  ;;  %s4472_s12 = sld [smem:[#allocation5 + $0xd6]] }
 0x186   :  { %v1001_v47 = vadd.f32 %v4280_v46, %v998_v8  ;;  %v1109_v13 = vadd.f32 %v1108_v25, %v1106_v48  ;;  %v1117_v41 = vadd.f32 %v1116_v40, %v1114_v32  ;;  %v1190_v2 = vmul.f32 %v7229_v33, %v940_v18  ;;  %7246 = sst [smem:[#allocation38_spill]] %s4540_s28 }
 0x187   :  { %v996_v43 = vadd.f32 %v995_v42, %v993_v9  ;;  %v7230_v24 = vstv %s4240_s17  ;;  %v7231_v37 = vstv %s4249_s15  ;;  %v1212_v40 = vadd.f32 %v1211_v6, %v1209_v27  ;;  %s7241_s15 = smov 1   ;;  %s4538_s17 = sld [smem:[#allocation5 + $0xf5]] }
 0x188   :  { %v1004_v22 = vadd.f32 %v1003_v49, %v1001_v47  ;;  %v1224_v11 = vmul.f32 %v7230_v24, %v4421_v20  ;;  %v1229_v7 = vmul.f32 %v7231_v37, %v4411_v21  ;;  %v1118_v46 = vadd.f32 %v1109_v13, %v1100_v3  ;;  %7248 = sst [smem:[#allocation13_spill]] %s4544_s7 }
 0x189   :  { %v1119_v10 = vadd.f32 %v1117_v41, %v1101_v56  ;;  %v1193_v25 = vadd.f32 %v4243_v0, %v1190_v2  ;;  %v1005_v34 = vadd.f32 %v996_v43, %v987_v62  ;;  %v7232_v1 = vstv %s4275_s9  ;;  %7247 = sst [smem:[#allocation26_spill]] %s4542_s30 }
 0x18a   :  { %v1006_v57 = vadd.f32 %v1004_v22, %v988_v19  ;;  %v1227_v63 = vadd.f32 %v4299_v15, %v1224_v11  ;;  %v1182_v5 = vmul.f32 %v7232_v1, %v940_v18  ;;  %v7233_v42 = vstv %s7228_s2  ;;  %s4552_s9 = sld [smem:[#allocation5 + $0x103]] }
 0x18b   :  { %v1121_v49 = vadd.f32 %v7233_v42, %v1118_v46  ;;  %v7234_v4 = vmov %v7233_v42  ;;  %v1196_v36 = vadd.f32 %v4387_v29, %v1193_v25  ;;  %v1201_v16 = vadd.f32 %v4326_v44, %v1198_v12  ;;  %7262 = sst [smem:[#allocation39_spill]] %s4572_s25 }
 0x18c   :  { %v1122_v26 = vadd.f32 %v7234_v4, %v1119_v10  ;;  %v7235_v50 = vstv %s4194_s3  ;;  %v1230_v0 = vadd.f32 %v1229_v7, %v1227_v63  ;;  %v1185_v6 = vadd.f32 %v4315_v17, %v1182_v5  ;;  %s4546_s3 = sld [smem:[#allocation5 + $0xfc]] }
 0x18d   :  { %v1008_v14 = vadd.f32 %v7235_v50, %v1005_v34  ;;  %v7236_v53 = vmov %v7235_v50  ;;  %vm1123_vm3 = vcmp.gt.f32.partialorder %v1121_v49, 0.0  ;;  %v1124_v35 = vmul.f32 0.01, %v1121_v49  ;;  %7245 = sst [smem:[#allocation37_spill]] %s4538_s17 }
 0x18e   :  { %v1009_v51 = vadd.f32 %v7236_v53, %v1006_v57  ;;  %v1145_v15 = vsub.f32 %v1121_v49, %v4265_v28  ;;  %vm1126_vm5 = vcmp.gt.f32.partialorder %v1122_v26, 0.0  ;;  %v1127_v52 = vmul.f32 0.01, %v1122_v26  ;;  %7263 = sst [smem:[#allocation32_spill]] %s4574_s29 }
 0x18f   :  { %vm1010_vm6 = vcmp.gt.f32.partialorder %v1008_v14, 0.0  ;;  %v1011_v18 = vmul.f32 0.01, %v1008_v14  ;;  %v1032_v29 = vsub.f32 %v1008_v14, %v4282_v38  ;;  %v1125_v44 = vsel %vm1123_vm3, %v1121_v49, %v1124_v35  ;;  %7264 = sst [smem:[#allocation28_spill]] %s4576_s19 }
 0x190   :  { %vm1146_vm7 = vcmp.gt.f32.partialorder %v1145_v15, 0.0  ;;  %v1147_v12 = vmul.f32 0.01, %v1145_v15  ;;  %v7237_v8 = vrot.slane %v4288_v55, 2  ;;  %1164 = vst [vmem:[#allocation2 + $0x1c] sm:$0xc0] %v1125_v44  ;;  %v1128_v28 = vsel %vm1126_vm5, %v1122_v26, %v1127_v52 }
 0x191   :  { %1160 = vst [vmem:[#allocation2 + $0x18] ss:$6 sps:$4 sm:$0x3c] %v1125_v44   ;;  %v1012_v17 = vsel %vm1010_vm6, %v1008_v14, %v1011_v18  ;;  %vm1033_vm8 = vcmp.gt.f32.partialorder %v1032_v29, 0.0  ;;  %v1034_v56 = vmul.f32 0.01, %v1032_v29  ;;  %v1214_v41 = vadd.f32 %v1212_v40, %v1196_v36 }
 0x192   :  { %v1153_v3 = vsub.f32 %v1122_v26, %v7237_v8  ;;  %v1148_v48 = vsel %vm1146_vm7, %v1145_v15, %v1147_v12  ;;  %1047 = vst [vmem:[#allocation2 + $0x4] ss:$6 sps:$4 sm:$0x3c] %v1012_v17   ;;  %1051 = vst [vmem:[#allocation2 + $0x8] sm:$0xc0] %v1012_v17  ;;  %vm1013_vm10 = vcmp.gt.f32.partialorder %v1009_v51, 0.0  ;;  %v1188_v33 = vadd.f32 %v4395_v60, %v1185_v6 }
 0x193   :  { %1159 = vst [vmem:[#allocation2 + $0x18] ss:$8 sps:$4 sm:$0x33] %v1128_v28   ;;  %1161 = vst [vmem:[#allocation2 + $0x1a] sm:$0xc] %v1128_v28  ;;  %v4479_v38 = vsel %vm53_vm4, %v1148_v48, %v1125_v44  ;;  %v1035_v55 = vsel %vm1033_vm8, %v1032_v29, %v1034_v56  ;;  %v7238_v19 = vrot.slane %v4290_v39, 2  ;;  %v1232_v22 = vadd.f32 %v1230_v0, %v1214_v41 }
 0x194   :  { %vm1154_vm9 = vcmp.gt.f32.partialorder %v1153_v3, 0.0  ;;  %v1155_v32 = vmul.f32 0.01, %v1153_v3  ;;  %v1014_v62 = vmul.f32 0.01, %v1009_v51  ;;  %1173 = vrot.lane.b32.xlu1 %v4479_v38, %s7239_s0  ;;  %v4488_v47 = vsel %vm53_vm4, %v1035_v55, %v1012_v17  ;;  %7249 = sst [smem:[#allocation14_spill]] %s4546_s3 }
 0x195   :  { %v1040_v9 = vsub.f32 %v1009_v51, %v7238_v19  ;;  %1158 = vst [vmem:[#allocation2 + $0x16] sm:$0x3] %v4479_v38  ;;  %1060 = vrot.lane.b32.xlu0 %v4488_v47, %s7239_s0  ;;  %1045 = vst [vmem:[#allocation2 + $0x2] sm:$0x3] %v4488_v47  ;;  %v1204_v60 = vadd.f32 %v4397_v30, %v1201_v16  ;;  %v7240_v24 = vstv %s4310_s1  ;;  %v1252_v46 = vstv %s4472_s12  ;;  %s4548_s1 = sld [smem:[#allocation5 + $0xfd]] }
 0x196   :  { %v1156_v13 = vsel %vm1154_vm9, %v1153_v3, %v1155_v32  ;;  %v1015_v2 = vsel %vm1013_vm10, %v1009_v51, %v1014_v62  ;;  %v1216_v11 = vmul.f32 %v7240_v24, %v4421_v20  ;;  %v1221_v7 = vmul.f32 %v1220_v59, %v4411_v21  ;;  %7252 = sst [smem:[#allocation24_spill]] %s4552_s9 }
 0x197   :  { %v1157_v39 = vsel %vm54_vm0, %v1156_v13, %v1128_v28  ;;  %vm1041_vm11 = vcmp.gt.f32.partialorder %v1040_v9, 0.0  ;;  %v1042_v27 = vmul.f32 0.01, %v1040_v9  ;;  %1046 = vst [vmem:[#allocation2 + $0x4] ss:$8 sps:$4 sm:$0x33] %v1015_v2   ;;  %v7242_v25 = vstv %s4263_s27 }
 0x198   :  { %1165 = vst [vmem:[#allocation2 + $0x1e] sm:$0xc0] %v1157_v39  ;;  %v4496_v43 = vrot.slane %v1157_v39, 6  ;;  %1048 = vst [vmem:[#allocation2 + $0x6] sm:$0xc] %v1015_v2  ;;  %v1235_v40 = vadd.f32 %v7242_v25, %v1232_v22  ;;  %v1264_v34 = vrot.slane %v4319_v31, 2  ;;  %v1219_v30 = vadd.f32 %v4330_v54, %v1216_v11 }
 0x199   :  { %v1043_v37 = vsel %vm1041_vm11, %v1040_v9, %v1042_v27  ;;  %v1213_v20 = vadd.f32 %v1204_v60, %v1188_v33  ;;  %v1250_v59 = vadd.f32 %v4347_v23, %v4338_v61  ;;  %v1253_v5 = vmul.f32 %v1252_v46, %v4207_v58  ;;  %s4536_s27 = sld [smem:[#allocation5 + $0xf3]] }
 0x19a   :  { %1168 = vrot.lane.b32.xlu1 %v4496_v43, %s7241_s15  ;;  %v1044_v10 = vsel %vm54_vm0, %v1043_v37, %v1015_v2  ;;  %vm1239_vm12 = vcmp.gt.f32.partialorder %v1235_v40, 0.0  ;;  %v1240_v21 = vmul.f32 0.01, %v1235_v40  ;;  %v1266_v63 = vsub.f32 %v1235_v40, %v1264_v34  ;;  %s4578_s13 = sld [smem:[#allocation5 + $0xec]] }
 0x19b   :  { %1052 = vst [vmem:[#allocation2 + $0xa] sm:$0xc0] %v1044_v10  ;;  %v4514_v57 = vrot.slane %v1044_v10, 6  ;;  %v1222_v1 = vadd.f32 %v1221_v7, %v1219_v30  ;;  %v7243_v4 = vmov %v7242_v25  ;;  %v1256_v36 = vadd.f32 %v1253_v5, %v1250_v59  ;;  %7250 = sst [smem:[#allocation17_spill]] %s4548_s1 }
 0x19c   :  { %v1241_v31 = vsel %vm1239_vm12, %v1235_v40, %v1240_v21  ;;  %vm1267_vm13 = vcmp.gt.f32.partialorder %v1266_v63, 0.0  ;;  %v1268_v54 = vmul.f32 0.01, %v1266_v63  ;;  %s4580_s4 = sld [smem:[#allocation5 + $0xed]]  ;;  %v1572_v6 = vstv %s4542_s30  ;;  %v4856_v33 = vld [vmem:[#allocation2 + $0x2] sm:$0x3] }
 0x19d   :  { %1055 = vrot.lane.b32.xlu0 %v4514_v57, %s7241_s15  ;;  %v1231_v42 = vadd.f32 %v1222_v1, %v1213_v20  ;;  %1272 = vst [vmem:[#allocation2 + $0x2c] ss:$8 sps:$4 sm:$0x33] %v1241_v31   ;;  %1274 = vst [vmem:[#allocation2 + $0x2e] sm:$0xc] %v1241_v31  ;;  %s4582_s18 = sld [smem:[#allocation5 + $0xef]]  ;;  %v6886_v35 = vstv %s4538_s17  ;;  %v6880_v15 = vstv %s4540_s28  ;;  %v1598_v18 = vstv %s4546_s3 }
 0x19e   :  { %v1269_v49 = vsel %vm1267_vm13, %v1266_v63, %v1268_v54  ;;  %s4584_s21 = sld [smem:[#allocation5 + $0xf0]]  ;;  %v6881_v29 = vstv %s4548_s1  ;;  %v1661_v52 = vstv %s4544_s7  ;;  %v1665_v44 = vstv %s4550_s10 }
 0x19f   :  { %v1234_v26 = vadd.f32 %v7243_v4, %v1231_v42  ;;  %v1270_v61 = vsel %vm54_vm0, %v1269_v49, %v1241_v31  ;;  %7244 = sst [smem:[#allocation40_spill]] %s4536_s27  ;;  %v6884_v0 = vstv %s4536_s27  ;;  %v6895_v12 = vstv %s4552_s9  ;;  %v4740_v4 = vld [vmem:[#allocation2 + $0x1c] sm:$0xff]  ;;  %v4754_v49 = vld [vmem:[#allocation2 + $0x24] sm:$0x3]  ;;  %v4766_v21 = vld [vmem:[#allocation2 + $0x8] sm:$0xff] }
 0x1a0   :  { %1278 = vst [vmem:[#allocation2 + $0x32] sm:$0xc0] %v1270_v61  ;;  %v4525_v23 = vrot.slane %v1270_v61, 6  ;;  %7265 = sst [smem:[#allocation21_spill]] %s4578_s13  ;;  %v6896_v8 = vstv %s4554_s26  ;;  %v6899_v3 = vstv %s4556_s6  ;;  %v1671_v17 = vstv %s4558_s8  ;;  %v4744_v61 = vld [vmem:[#allocation2 + $0x18] sm:$0xff]  ;;  %7364 = vst [vmem:[#allocation77_spill] sm:$0xff] %v4766_v21 }
 0x1a1   :  { %vm1236_vm2 = vcmp.gt.f32.partialorder %v1234_v26, 0.0  ;;  %v1237_v16 = vmul.f32 0.01, %v1234_v26  ;;  %v1258_v50 = vsub.f32 %v1234_v26, %v1256_v36  ;;  %s4586_s14 = sld [smem:[#allocation5 + $0xf1]]  ;;  %v6885_v56 = vstv %s4560_s16  ;;  %v4784_v54 = vld [vmem:[#allocation2 + $0x4] sm:$0xff] }
 0x1a2   :  { %1281 = vrot.lane.b32.xlu1 %v4525_v23, %s7241_s15  ;;  %7266 = sst [smem:[#allocation29_spill]] %s4580_s4  ;;  %v1409_v28 = vstv %s4562_s5  ;;  %v6890_v48 = vstv %s4564_s22  ;;  %v1498_v32 = vstv %s4566_s24  ;;  %v4750_v31 = vld [vmem:[#allocation2 + $0xa] sm:$0xff]  ;;  %v4795_v1 = vld [vmem:[#allocation2 + $0x2] sm:$0xff]  ;;  %v1408_v40 = vmul.f32 %v6885_v56, %v4766_v21 }
 0x1a3   :  { %v1238_v58 = vsel %vm1236_vm2, %v1234_v26, %v1237_v16  ;;  %vm1259_vm3 = vcmp.gt.f32.partialorder %v1258_v50, 0.0  ;;  %v1260_v14 = vmul.f32 0.01, %v1258_v50  ;;  %7267 = sst [smem:[#allocation25_spill]] %s4582_s18  ;;  %v6882_v55 = vstv %s4568_s20  ;;  %v4742_v26 = vld [vmem:[#allocation2 + $0x1e] sm:$0xff] }
 0x1a4   :  { %1273 = vst [vmem:[#allocation2 + $0x2c] ss:$6 sps:$4 sm:$0x3c] %v1238_v58   ;;  %1277 = vst [vmem:[#allocation2 + $0x30] sm:$0xc0] %v1238_v58  ;;  %7268 = sst [smem:[#allocation34_spill]] %s4584_s21  ;;  %v1435_v62 = vstv %s4570_s11  ;;  %v6883_v19 = vstv %s4572_s25  ;;  %v1502_v9 = vstv %s4574_s29  ;;  %v1434_v63 = vmul.f32 %v6882_v55, %v4740_v4 }
 0x1a5   :  { %v1261_v53 = vsel %vm1259_vm3, %v1258_v50, %v1260_v14  ;;  %s4588_s23 = sld [smem:[#allocation5 + $0xf2]]  ;;  %v4752_v42 = vld [vmem:[#allocation2 + $0x10] sm:$0x3]  ;;  %v4760_v50 = vld [vmem:[#allocation2 + $0x16] sm:$0xff]  ;;  %v4777_v14 = vmul.f32 %v6881_v29, %v4744_v61  ;;  %v1666_v29 = vmul.f32 %v1665_v44, %v4754_v49  ;;  %v1411_v55 = vmul.f32 %v1409_v28, %v4750_v31 }
 0x1a6   :  { %v4531_v51 = vsel %vm53_vm4, %v1261_v53, %v1238_v58  ;;  %s4590_s2 = sld [smem:[#allocation5 + $0xf6]]  ;;  %v1597_v53 = vmul.f32 %v6880_v15, %v4740_v4  ;;  %v1600_v58 = vmul.f32 %v1598_v18, %v4742_v26  ;;  %v1574_v15 = vmul.f32 %v1572_v6, %v4750_v31 }
 0x1a7   :  { %1271 = vst [vmem:[#allocation2 + $0x2a] sm:$0x3] %v4531_v51  ;;  %1286 = vrot.lane.b32.xlu0 %v4531_v51, %s7239_s0  ;;  %7269 = sst [smem:[#allocation19_spill]] %s4586_s14  ;;  %v1662_v16 = vmul.f32 %v1661_v52, %v4752_v42  ;;  %v4803_v36 = vmul.f32 %v1598_v18, %v4760_v50  ;;  %v4808_v5 = vmul.f32 %v6883_v19, %v4744_v61 }
 0x1a8   :  { %s4592_s12 = sld [smem:[#allocation5 + $0xf8]]  ;;  %v1499_v52 = vmul.f32 %v1498_v32, %v4752_v42  ;;  %v1503_v59 = vmul.f32 %v1502_v9, %v4754_v49  ;;  %v1571_v44 = vmul.f32 %v6884_v0, %v4766_v21  ;;  %v4825_v18 = vmul.f32 %v1435_v62, %v4760_v50  ;;  %v4830_v32 = vld [vmem:[#allocation2 + $0x38] sm:$0x3] }
 0x1a9   :  { %s4594_s0 = sld [smem:[#allocation5 + $0xf9]]  ;;  %v1437_v19 = vmul.f32 %v1435_v62, %v4742_v26  ;;  %7373 = vst [vmem:[#allocation78_spill] sm:$0xff] %v4830_v32  ;;  %v4835_v9 = vmul.f32 %v6886_v35, %v4784_v54  ;;  %v4840_v0 = vmul.f32 %v1572_v6, %v4795_v1  ;;  %v4852_v46 = vadd.f32 %v1600_v58, %v1597_v53 }
 0x1aa   :  { %s4596_s15 = sld [smem:[#allocation5 + $0xfa]]  ;;  %v4850_v62 = vadd.f32 %v1574_v15, %v1571_v44  ;;  %v1668_v35 = vadd.f32 %v1666_v29, %v1662_v16  ;;  %v4854_v6 = vadd.f32 %v1411_v55, %v1408_v40  ;;  %v4863_v13 = vmul.f32 %v6890_v48, %v4784_v54 }
 0x1ab   :  { %7270 = sst [smem:[#allocation16_spill]] %s4588_s23  ;;  %v1505_v15 = vadd.f32 %v1503_v59, %v1499_v52  ;;  %v4871_v55 = vld [vmem:[#allocation2 + $0x32] sm:$0xff]  ;;  %v1672_v40 = vmul.f32 %v1671_v17, %v4830_v32  ;;  %v4876_v16 = vadd.f32 %v1437_v19, %v1434_v63  ;;  %v4881_v53 = vmul.f32 %v1409_v28, %v4795_v1 }
 0x1ac   :  { %7271 = sst [smem:[#allocation18_spill]] %s4590_s2  ;;  %v4900_v19 = vld [vmem:[#allocation2 + $0x30] sm:$0xff] }
 0x1ad   :  { %s4598_s19 = sld [smem:[#allocation5 + $0xfe]]  ;;  %7383 = vst [vmem:[#allocation79_spill] sm:$0xff] %v4900_v19  ;;  %v4917_v44 = vld [vmem:[#allocation2 + $0x2c] sm:$0xff] }
 0x1ae   :  { %7272 = sst [smem:[#allocation20_spill]] %s4592_s12 }
 0x1af   :  { %7273 = sst [smem:[#allocation23_spill]] %s4594_s0 }
 0x1b0   :  { %7274 = sst [smem:[#allocation35_spill]] %s4596_s15 }
 0x1b1   :  { %s4600_s13 = sld [smem:[#allocation5 + $0x100]] }
 0x1b2   :  { %s4602_s4 = sld [smem:[#allocation5 + $0x101]] }
 0x1b3   :  { %7275 = sst [smem:[#allocation22_spill]] %s4598_s19 }
 0x1b4   :  { %s4604_s18 = sld [smem:[#allocation5 + $0x102]] }
 0x1b5   :  { %s4606_s21 = sld [smem:[#allocation5 + $0x106]] }
 0x1b6   :  { %s4608_s14 = sld [smem:[#allocation5 + $0xd8]] }
 0x1b7   :  { %7276 = sst [smem:[#allocation41_spill]] %s4600_s13 }
 0x1b8   :  { %7277 = sst [smem:[#allocation46_spill]] %s4602_s4 }
 0x1b9   :  { %s4610_s23 = sld [smem:[#allocation5 + $0xd9]] }
 0x1ba   :  { %7278 = sst [smem:[#allocation47_spill]] %s4604_s18 }
 0x1bb   :  { %7279 = sst [smem:[#allocation48_spill]] %s4606_s21 }
 0x1bc   :  { %7280 = sst [smem:[#allocation49_spill]] %s4608_s14  ;;  %v6892_v34 = vstv %s4608_s14 }
 0x1bd   :  { %s4612_s2 = sld [smem:[#allocation5 + $0xda]]  ;;  %v1395_v48 = vmul.f32 %v6892_v34, %v4766_v21  ;;  %v4960_v34 = vmul.f32 %v6899_v3, %v4917_v44 }
 0x1be   :  { %s4614_s12 = sld [smem:[#allocation5 + $0xde]] }
 0x1bf   :  { %7281 = sst [smem:[#allocation50_spill]] %s4610_s23  ;;  %7395 = vst [vmem:[#allocation83_spill] sm:$0xff] %v4960_v34 }
 0x1c0   :  { %s4616_s0 = sld [smem:[#allocation5 + $0xe0]] }
 0x1c1   :  { %s4618_s15 = sld [smem:[#allocation5 + $0xe1]] }
 0x1c2   :  { %s4620_s19 = sld [smem:[#allocation5 + $0xe2]] }
 0x1c3   :  { %7282 = sst [smem:[#allocation51_spill]] %s4612_s2 }
 0x1c4   :  { %7283 = sst [smem:[#allocation52_spill]] %s4614_s12 }
 0x1c5   :  { %s4622_s13 = sld [smem:[#allocation5 + $0xe6]] }
 0x1c6   :  { %7284 = sst [smem:[#allocation53_spill]] %s4616_s0 }
 0x1c7   :  { %7285 = sst [smem:[#allocation54_spill]] %s4618_s15 }
 0x1c8   :  { %7286 = sst [smem:[#allocation55_spill]] %s4620_s19 }
 0x1c9   :  { %s4624_s4 = sld [smem:[#allocation5 + $0xe8]] }
 0x1ca   :  { %s4626_s18 = sld [smem:[#allocation5 + $0xe9]] }
 0x1cb   :  { %s4628_s21 = sld [smem:[#allocation5 + $0xea]] }
 0x1cc   :  { %s4630_s23 = sld [smem:[#allocation5 + $0xee]] }
 0x1cd   :  { %s4632_s2 = sld [smem:[#allocation5 + $0x108]] }
 0x1ce   :  { %s4634_s0 = sld [smem:[#allocation5 + $0x109]] }
 0x1cf   :  { %7287 = sst [smem:[#allocation56_spill]] %s4624_s4 }
 0x1d0   :  { %7288 = sst [smem:[#allocation57_spill]] %s4626_s18 }
 0x1d1   :  { %7289 = sst [smem:[#allocation58_spill]] %s4628_s21 }
 0x1d2   :  { %7290 = sst [smem:[#allocation59_spill]] %s4630_s23 }
 0x1d3   :  { %7291 = sst [smem:[#allocation60_spill]] %s4632_s2 }
 0x1d4   :  { %7292 = sst [smem:[#allocation61_spill]] %s4634_s0 }
 0x1d5   :  { %s4636_s15 = sld [smem:[#allocation5 + $0x10a]] }
 0x1d6   :  { %s4638_s19 = sld [smem:[#allocation5 + $0x10b]] }
 0x1d7   :  { %s4640_s4 = sld [smem:[#allocation5 + $0x10c]] }
 0x1d8   :  { %s4642_s18 = sld [smem:[#allocation5 + $0x10d]] }
 0x1d9   :  { %s4644_s21 = sld [smem:[#allocation5 + $0x10e]] }
 0x1da   :  { %s4646_s23 = sld [smem:[#allocation5 + $0x110]] }
 0x1db   :  { %7293 = sst [smem:[#allocation62_spill]] %s4636_s15 }
 0x1dc   :  { %7294 = sst [smem:[#allocation63_spill]] %s4638_s19 }
 0x1dd   :  { %7295 = sst [smem:[#allocation64_spill]] %s4640_s4 }
 0x1de   :  { %7296 = sst [smem:[#allocation65_spill]] %s4642_s18 }
 0x1df   :  { %7297 = sst [smem:[#allocation66_spill]] %s4644_s21 }
 0x1e0   :  { %7298 = sst [smem:[#allocation67_spill]] %s4646_s23 }
 0x1e1   :  { %s4648_s2 = sld [smem:[#allocation5 + $0x111]] }
 0x1e2   :  { %s4650_s0 = sld [smem:[#allocation5 + $0x112]] }
 0x1e3   :  { %s4652_s15 = sld [smem:[#allocation5 + $0x113]] }
 0x1e4   :  { %s4654_s19 = sld [smem:[#allocation5 + $0x114]] }
 0x1e5   :  { %s4656_s4 = sld [smem:[#allocation5 + $0x115]] }
 0x1e6   :  { %s4658_s18 = sld [smem:[#allocation5 + $0x116]] }
 0x1e7   :  { %s7307_s27 = sld [smem:[#allocation21_spill]] }
 0x1e8   :  { %7299 = sst [smem:[#allocation68_spill]] %s4650_s0 }
 0x1e9   :  { %7300 = sst [smem:[#allocation69_spill]] %s4652_s15 }
 0x1ea   :  { %7301 = sst [smem:[#allocation70_spill]] %s4654_s19 }
 0x1eb   :  { %7302 = sst [smem:[#allocation71_spill]] %s4656_s4 }
 0x1ec   :  { %7303 = sst [smem:[#allocation72_spill]] %s4658_s18 }
 0x1ed   :  { %s4664_s0 = sld [smem:[#allocation5 + $0x118]]  ;;  %v6894_v41 = vstv %s7307_s27 }
 0x1ee   :  { %s4670_s4 = sld [smem:[#allocation5 + $0x119]] }
 0x1ef   :  { %s7309_s17 = sld [smem:[#allocation25_spill]] }
 0x1f0   :  { %s4676_s28 = sld [smem:[#allocation5 + $0x11a]] }
 0x1f1   :  { %s7312_s3 = sld [smem:[#allocation19_spill]] }
 0x1f2   :  { %s7313_s1 = sld [smem:[#allocation16_spill]] }
 0x1f3   :  { %7304 = sst [smem:[#allocation73_spill]] %s4664_s0 }
 0x1f4   :  { %7305 = sst [smem:[#allocation74_spill]] %s4670_s4 }
 0x1f5   :  { %s7311_s0 = sld [smem:[#allocation34_spill]]  ;;  %v1508_v39 = vstv %s7309_s17 }
 0x1f6   :  { %7310 = sst [smem:[#allocation75_spill]] %s4676_s28  ;;  %v1509_v52 = vmul.f32 %v1508_v39, %v4830_v32  ;;  %v4905_v39 = vadd.f32 %v1672_v40, %v1668_v35 }
 0x1f7   :  { %s7314_s7 = sld [smem:[#allocation18_spill]]  ;;  %v1559_v27 = vstv %s7312_s3 }
 0x1f8   :  { %s4682_s10 = sld [smem:[#allocation5 + $0x11b]]  ;;  %v6889_v22 = vstv %s7313_s1  ;;  %v1561_v58 = vmul.f32 %v1559_v27, %v4750_v31  ;;  %7386 = vst [vmem:[#allocation81_spill] sm:$0xff] %v4905_v39 }
 0x1f9   :  { %s7316_s4 = sld [smem:[#allocation20_spill]] }
 0x1fa   :  { %s7317_s9 = sld [smem:[#allocation23_spill]] }
 0x1fb   :  { %s7318_s26 = sld [smem:[#allocation35_spill]]  ;;  %v6888_v2 = vstv %s7311_s0 }
 0x1fc   :  { %s7319_s6 = sld [smem:[#allocation22_spill]]  ;;  %v1558_v59 = vmul.f32 %v6888_v2, %v4766_v21  ;;  %v4922_v2 = vadd.f32 %v1509_v52, %v1505_v15 }
 0x1fd   :  { %s4688_s8 = sld [smem:[#allocation5 + $0x11c]]  ;;  %v1659_v60 = vstv %s7314_s7 }
 0x1fe   :  { %7315 = sst [smem:[#allocation76_spill]] %s4682_s10  ;;  %v1660_v17 = vmul.f32 %v1659_v60, %v4856_v33  ;;  %7390 = vst [vmem:[#allocation82_spill] sm:$0xff] %v4922_v2  ;;  %v4924_v35 = vadd.f32 %v1561_v58, %v1558_v59  ;;  %v1627_v58 = vmul.f32 %v6895_v12, %v4900_v19 }
 0x1ff   :  { %s7321_s16 = sld [smem:[#allocation46_spill]]  ;;  %v6887_v24 = vstv %s7316_s4 }
 0x200   :  { %s4694_s24 = sld [smem:[#allocation5 + $0x11d]]  ;;  %v1585_v11 = vstv %s7317_s9  ;;  %v1584_v56 = vmul.f32 %v6887_v24, %v4740_v4  ;;  %v4858_v24 = vld [vmem:[#allocation2 + $0x16] sm:$0x3] }
 0x201   :  { %s7325_s20 = sld [smem:[#allocation50_spill]]  ;;  %v6891_v37 = vstv %s7318_s26  ;;  %v4848_v25 = vmul.f32 %v1585_v11, %v4760_v50  ;;  %v1587_v29 = vmul.f32 %v1585_v11, %v4742_v26  ;;  %v4892_v11 = vmul.f32 %v1559_v27, %v4795_v1 }
 0x202   :  { %s7326_s11 = sld [smem:[#allocation51_spill]]  ;;  %v1663_v7 = vstv %s7319_s6  ;;  %v4910_v27 = vmul.f32 %v6889_v22, %v4784_v54  ;;  %v4915_v60 = vmul.f32 %v6891_v37, %v4744_v61  ;;  %v1467_v22 = vmul.f32 %v6894_v41, %v4871_v55 }
 0x203   :  { %s4700_s29 = sld [smem:[#allocation5 + $0x11e]]  ;;  %v1664_v28 = vmul.f32 %v1663_v7, %v4858_v24  ;;  %v1630_v7 = vmul.f32 %v6896_v8, %v4871_v55  ;;  %v4926_v40 = vadd.f32 %v1587_v29, %v1584_v56  ;;  %v4944_v56 = vld [vmem:[#allocation2 + $0x2a] sm:$0xff] }
 0x204   :  { %s7328_s25 = sld [smem:[#allocation53_spill]] }
 0x205   :  { %s7330_s27 = sld [smem:[#allocation55_spill]]  ;;  %v6897_v10 = vstv %s7321_s16  ;;  %v1667_v59 = vadd.f32 %v1664_v28, %v1660_v17  ;;  %v4971_v17 = vld [vmem:[#allocation2 + $0x2a] sm:$0x3]  ;;  %v4973_v28 = vadd.f32 %v1630_v7, %v1627_v58  ;;  %v7408_v58 = vstv %s7321_s16 }
 0x206   :  { %7324 = sst [smem:[#allocation46_spill]] %s4694_s24  ;;  %v1617_v29 = vmul.f32 %v6897_v10, %v4871_v55 }
 0x207   :  { %s4706_s17 = sld [smem:[#allocation5 + $0x10f]]  ;;  %v1396_v30 = vstv %s7325_s20  ;;  %7400 = vst [vmem:[#allocation85_spill] sm:$0xff] %v4973_v28 }
 0x208   :  { %s7333_s0 = sld [smem:[#allocation57_spill]]  ;;  %v6898_v20 = vstv %s7326_s11  ;;  %v4939_v37 = vmul.f32 %v1396_v30, %v4795_v1  ;;  %v1398_v15 = vmul.f32 %v1396_v30, %v4750_v31 }
 0x209   :  { %7327 = sst [smem:[#allocation50_spill]] %s4700_s29  ;;  %v4955_v52 = vmul.f32 %v6898_v20, %v4784_v54  ;;  %v4999_v20 = vmul.f32 %v7408_v58, %v4944_v56  ;;  %v1061_v58 = vpop.permute.xlu0 %1060 }
 0x20a   :  { %s7334_s3 = sld [smem:[#allocation58_spill]] }
 0x20b   :  { %s7337_s29 = sld [smem:[#allocation61_spill]] }
 0x20c   :  { %s4712_s24 = sld [smem:[#allocation5 + $0x117]] }
 0x20d   :  { %7332 = sst [smem:[#allocation53_spill]] %s4706_s17 }
 0x20e   :  { %s7339_s4 = sld [smem:[#allocation62_spill]] }
 0x20f   :  { %s7341_s26 = sld [smem:[#allocation64_spill]] }
 0x210   :  { %s4718_s17 = sld [smem:[#allocation5 + $0x11f]] }
 0x211   :  { %s7349_s18 = sld [smem:[#allocation75_spill]]  ;;  %v7428_v34 = vstv %s7337_s29 }
 0x212   :  { %7338 = sst [smem:[#allocation55_spill]] %s4712_s24 }
 0x213   :  { %s7355_s5 = sld [smem:[#allocation17_spill]] }
 0x214   :  { %s7356_s15 = sld [smem:[#allocation31_spill]] }
 0x215   :  { %s7361_s11 = sld [smem:[#allocation39_spill]] }
 0x216   :  { %7343 = sst [smem:[#allocation57_spill]] %s4718_s17 }
 0x217   :  { %s4782_s17 = sld [smem:[#allocation7 + $0xa]] }
 0x218   :  { %s7368_s24 = sld [smem:[#allocation37_spill]] }
 0x219   :  { %s7375_s1 = sld [smem:[#allocation34_spill]] }
 0x21a   :  { %s7379_s30 = sld [smem:[#allocation16_spill]] }
 0x21b   :  { %s7380_s10 = sld [smem:[#allocation35_spill]] }
 0x21c   :  { %s7381_s9 = sld [smem:[#allocation27_spill]] }
 0x21d   :  { %s7382_s6 = sld [smem:[#allocation21_spill]]  ;;  %v4903_v63 = vstv %s4782_s17 }
 0x21e   :  { %s7384_s7 = sld [smem:[#allocation24_spill]]  ;;  %7385 = vst [vmem:[#allocation80_spill] sm:$0xff] %v4903_v63 }
 0x21f   :  { %s7387_s12 = sld [smem:[#allocation51_spill]] }
 0x220   :  { %s7389_s17 = sld [smem:[#allocation28_spill]] }
 0x221   :  { %s7391_s28 = sld [smem:[#allocation29_spill]] }
 0x222   :  { %s4928_s22 = sld [smem:[#allocation7 + $0x9]] }
 0x223   :  { %s7392_s23 = sld [smem:[#allocation41_spill]] }
 0x224   :  { %s7393_s19 = sld [smem:[#allocation47_spill]] }
 0x225   :  { %s7394_s20 = sld [smem:[#allocation48_spill]] }
 0x226   :  { %s7396_s14 = sld [smem:[#allocation52_spill]]  ;;  %v7397_v41 = vstv %s7389_s17 }
 0x227   :  { %v1464_v12 = vmul.f32 %v7397_v41, %v4900_v19  ;;  %v7398_v8 = vstv %s7391_s28  ;;  %s7403_s21 = sld [smem:[#allocation54_spill]]  ;;  %v7405_v41 = vstv %s7381_s9 }
 0x228   :  { %v4969_v10 = vmul.f32 %v7398_v8, %v4917_v44  ;;  %v4987_v39 = vmul.f32 %v7405_v41, %v4944_v56  ;;  %v7406_v8 = vstv %s7382_s6  ;;  %s7413_s9 = sld [smem:[#allocation56_spill]] }
 0x229   :  { %v7401_v3 = vstv %s7392_s23  ;;  %v4992_v63 = vmul.f32 %v7406_v8, %v4944_v56  ;;  %v4994_v7 = vadd.f32 %v1467_v22, %v1464_v12  ;;  %v7412_v8 = vstv %s4622_s13  ;;  %s5014_s16 = sld [smem:[#allocation5 + $0x12f]] }
 0x22a   :  { %7399 = vst [vmem:[#allocation84_spill] sm:$0xff] %v4969_v10  ;;  %v1614_v32 = vmul.f32 %v7401_v3, %v4900_v19  ;;  %v7402_v30 = vstv %s7393_s19  ;;  %v1174_v3 = vpop.permute.xlu1 %1173  ;;  %v1501_v12 = vmul.f32 %v7412_v8, %v4858_v24  ;;  %s5028_s13 = sld [smem:[#allocation5 + $0x147]] }
 0x22b   :  { %v4982_v45 = vmul.f32 %v7402_v30, %v4917_v44  ;;  %7407 = vst [vmem:[#allocation87_spill] sm:$0xff] %v4994_v7  ;;  %v7410_v30 = vstv %s7394_s20  ;;  %v1177_v22 = vsel %vm238_vm15, %v1174_v3, %v4496_v43  ;;  %v1064_v3 = vsel %vm238_vm15, %v1061_v58, %v4514_v57  ;;  %s7424_s6 = sld [smem:[#allocation59_spill]] }
 0x22c   :  { %v5001_v2 = vadd.f32 %v1617_v29, %v1614_v32  ;;  %v1670_v28 = vmul.f32 %v7410_v30, %v4971_v17  ;;  %v7411_v41 = vstv %s7396_s14  ;;  %v5016_v32 = vadd.f32 %v1398_v15, %v1395_v48  ;;  %s5040_s14 = sld [smem:[#allocation5 + $0x15f]] }
 0x22d   :  { %7404 = vst [vmem:[#allocation86_spill] sm:$0xff] %v4982_v45  ;;  %v1497_v45 = vmul.f32 %v7411_v41, %v4856_v33  ;;  %v7415_v29 = vstv %s7328_s25  ;;  %v1178_v8 = vsel %vm240_vm1, %v1177_v22, %v4496_v43  ;;  %v7419_v15 = vstv %s7333_s0  ;;  %s7430_s20 = sld [smem:[#allocation67_spill]] }
 0x22e   :  { %7409 = vst [vmem:[#allocation88_spill] sm:$0xff] %v5001_v2  ;;  %v1421_v30 = vmul.f32 %v7415_v29, %v4740_v4  ;;  %v7416_v2 = vstv %s7403_s21  ;;  %v1454_v29 = vmul.f32 %v7419_v15, %v4871_v55  ;;  %1180 = vst [vmem:[#allocation2 + $0x26] sm:$0x3] %v1178_v8  ;;  %v5043_v43 = vstv %s4928_s22  ;;  %s7425_s21 = sld [smem:[#allocation60_spill]]  ;;  %v1169_v8 = vpop.permute.xlu1 %1168 }
 0x22f   :  { %7414 = sst [smem:[#allocation61_spill]] %s5014_s16  ;;  %v1424_v41 = vmul.f32 %v7416_v2, %v4742_v26  ;;  %v7418_v7 = vmov %v7416_v2  ;;  %v1065_v2 = vsel %vm240_vm1, %v1064_v3, %v4514_v57  ;;  %7421 = vst [vmem:[#allocation89_spill] sm:$0xff] %v5043_v43  ;;  %v7422_v22 = vstv %s7330_s27 }
 0x230   :  { %7417 = sst [smem:[#allocation64_spill]] %s5028_s13  ;;  %v5033_v48 = vmul.f32 %v7418_v7, %v4760_v50  ;;  %v5048_v58 = vmul.f32 %v7422_v22, %v4744_v61  ;;  %v7423_v7 = vstv %s7413_s9  ;;  %1067 = vst [vmem:[#allocation2 + $0x12] sm:$0x3] %v1065_v2  ;;  %v5053_v15 = vadd.f32 %v1670_v28, %v1667_v59 }
 0x231   :  { %v1451_v10 = vmul.f32 %v7423_v7, %v4900_v19  ;;  %v7427_v57 = vstv %s7333_s0  ;;  %v1504_v43 = vadd.f32 %v1501_v12, %v1497_v45  ;;  %v1724_v22 = vmul.f32 %v7428_v34, %v4750_v31  ;;  %s7429_s22 = sld [smem:[#allocation65_spill]] }
 0x232   :  { %7420 = sst [smem:[#allocation14_spill]] %s5040_s14  ;;  %7426 = vst [vmem:[#allocation90_spill] sm:$0xff] %v5053_v15  ;;  %v5058_v3 = vmul.f32 %v7427_v57, %v4944_v56  ;;  %v1171_v7 = vsel %vm232_vm14, %v4479_v38, %v1169_v8  ;;  %v5065_v2 = vadd.f32 %v1424_v41, %v1421_v30  ;;  %v7431_v59 = vstv %s7334_s3  ;;  %v1056_v15 = vpop.permute.xlu0 %1055 }
 0x233   :  { %v5070_v28 = vmul.f32 %v7431_v59, %v4917_v44  ;;  %s5072_s0 = sld [smem:[#allocation7 + $0xb]]  ;;  %v7433_v57 = vstv %s4648_s2  ;;  %1179 = vst [vmem:[#allocation2 + $0x14] sm:$0x3] %v1171_v7  ;;  %v5079_v34 = vadd.f32 %v1454_v29, %v1451_v10  ;;  %v7435_v38 = vstv %s7424_s6 }
 0x234   :  { %v1750_v45 = vmul.f32 %v7433_v57, %v4742_v26  ;;  %s5077_s19 = sld [smem:[#allocation5 + $0x127]]  ;;  %v1507_v12 = vmul.f32 %v7435_v38, %v4971_v17  ;;  %v7436_v30 = vstv %s7425_s21  ;;  %v7437_v8 = vstv %s7337_s29 }
 0x235   :  { %v1721_v41 = vmul.f32 %v7436_v30, %v4766_v21  ;;  %v5090_v59 = vmul.f32 %v7437_v8, %v4795_v1  ;;  %s7440_s3 = sld [smem:[#allocation70_spill]]  ;;  %v7442_v7 = vstv %s7339_s4  ;;  %v7444_v29 = vstv %s7341_s26 }
 0x236   :  { %s5092_s28 = sld [smem:[#allocation5 + $0x13f]]  ;;  %v5097_v10 = vmul.f32 %v7442_v7, %v4784_v54  ;;  %v5102_v57 = vmul.f32 %v7444_v29, %v4795_v1  ;;  %v7448_v8 = vstv %s7430_s20  ;;  %v1058_v21 = vsel %vm232_vm14, %v4488_v47, %v1056_v15 }
 0x237   :  { %7438 = vst [vmem:[#allocation91_spill] sm:$0xff] %v5090_v59  ;;  %v7446_v38 = vstv %s7429_s22  ;;  %s7449_s29 = sld [smem:[#allocation71_spill]]  ;;  %v1747_v59 = vmul.f32 %v7448_v8, %v4740_v4  ;;  %v5116_v7 = vadd.f32 %v1507_v12, %v1504_v43  ;;  %v5118_v1 = vadd.f32 %v1724_v22, %v1721_v41  ;;  %1066 = vst [vmem:[#allocation2] sm:$0x3] %v1058_v21  ;;  %v5140_v41 = vld [vmem:[#allocation2 + $0x20] sm:$0xff] }
 0x238   :  { %7443 = vst [vmem:[#allocation92_spill] sm:$0xff] %v5097_v10  ;;  %7445 = vst [vmem:[#allocation93_spill] sm:$0xff] %v5102_v57  ;;  %v5107_v30 = vmul.f32 %v7446_v38, %v4784_v54  ;;  %s7450_s6 = sld [smem:[#allocation73_spill]]  ;;  %v7455_v29 = vstv %s4648_s2 }
 0x239   :  { %7432 = sst [smem:[#allocation17_spill]] %s5072_s0  ;;  %7453 = vst [vmem:[#allocation95_spill] sm:$0xff] %v5116_v7  ;;  %7454 = vst [vmem:[#allocation96_spill] sm:$0xff] %v5118_v1  ;;  %v5123_v54 = vmul.f32 %v7455_v29, %v4760_v50  ;;  %v5128_v47 = vadd.f32 %v1750_v45, %v1747_v59 }
 0x23a   :  { %7434 = sst [smem:[#allocation31_spill]] %s5077_s19  ;;  %7447 = vst [vmem:[#allocation94_spill] sm:$0xff] %v5107_v30  ;;  %7463 = vst [vmem:[#allocation101_spill] sm:$0xff] %v5140_v41 }
 0x23b   :  { %s7439_s0 = sld [smem:[#allocation68_spill]]  ;;  %7456 = vst [vmem:[#allocation97_spill] sm:$0xff] %v5123_v54  ;;  %7457 = vst [vmem:[#allocation98_spill] sm:$0xff] %v5128_v47  ;;  %v7460_v22 = vstv %s7440_s3 }
 0x23c   :  { %7441 = sst [smem:[#allocation26_spill]] %s5092_s28  ;;  %v5138_v12 = vmul.f32 %v7460_v22, %v4760_v50  ;;  %v7479_v22 = vstv %s7355_s5 }
 0x23d   :  { %s7451_s4 = sld [smem:[#allocation74_spill]]  ;;  %v7465_v8 = vstv %s7449_s29 }
 0x23e   :  { %s5114_s21 = sld [smem:[#allocation5 + $0x157]]  ;;  %7461 = vst [vmem:[#allocation100_spill] sm:$0xff] %v5138_v12  ;;  %v5148_v45 = vmul.f32 %v7465_v8, %v4744_v61  ;;  %v7467_v59 = vstv %s7450_s6  ;;  %v7480_v12 = vstv %s7361_s11 }
 0x23f   :  { %s5126_s22 = sld [smem:[#allocation5 + $0x129]]  ;;  %v5153_v29 = vmul.f32 %v7467_v59, %v4900_v19  ;;  %v7477_v59 = vstv %s4688_s8 }
 0x240   :  { %s7462_s2 = sld [smem:[#allocation66_spill]]  ;;  %7466 = vst [vmem:[#allocation102_spill] sm:$0xff] %v5148_v45  ;;  %v5176_v45 = vmul.f32 %v7477_v59, %v4944_v56 }
 0x241   :  { %v7458_v15 = vstv %s7439_s0  ;;  %s7464_s20 = sld [smem:[#allocation72_spill]] }
 0x242   :  { %v5133_v43 = vmul.f32 %v7458_v15, %v4744_v61  ;;  %s5143_s16 = sld [smem:[#allocation5 + $0x12c]]  ;;  %v7474_v61 = vstv %s7349_s18  ;;  %7478 = vst [vmem:[#allocation106_spill] sm:$0xff] %v5176_v45  ;;  %v5198_v45 = vld [vmem:[#allocation2 + $0x14] sm:$0xff] }
 0x243   :  { %v7468_v15 = vstv %s7451_s4  ;;  %s7470_s0 = sld [smem:[#allocation53_spill]]  ;;  %v5171_v8 = vmul.f32 %v7474_v61, %v4917_v44 }
 0x244   :  { %7452 = sst [smem:[#allocation13_spill]] %s5114_s21  ;;  %7459 = vst [vmem:[#allocation99_spill] sm:$0xff] %v5133_v43  ;;  %v5158_v50 = vmul.f32 %v7468_v15, %v4944_v56  ;;  %v7472_v21 = vmov %v7468_v15  ;;  %v5178_v15 = vld [vmem:[#allocation2 + $0xc] sm:$0xff] }
 0x245   :  { %s5161_s13 = sld [smem:[#allocation5 + $0x12e]]  ;;  %v5166_v38 = vmul.f32 %v7472_v21, %v4871_v55  ;;  %7476 = vst [vmem:[#allocation105_spill] sm:$0xff] %v5171_v8  ;;  %v1442_v21 = vmul.f32 %v7480_v12, %v5140_v41  ;;  %v7487_v12 = vstv %s7341_s26 }
 0x246   :  { %7469 = vst [vmem:[#allocation103_spill] sm:$0xff] %v5158_v50  ;;  %s7475_s29 = sld [smem:[#allocation38_spill]]  ;;  %v1605_v50 = vmul.f32 %v7479_v22, %v5140_v41  ;;  %v7482_v61 = vstv %s7462_s2  ;;  %v7486_v22 = vstv %s7380_s10  ;;  %v5208_v43 = vmul.f32 %v7487_v12, %v4750_v31 }
 0x247   :  { %7473 = vst [vmem:[#allocation104_spill] sm:$0xff] %v5166_v38  ;;  %s7481_s4 = sld [smem:[#allocation55_spill]]  ;;  %v5191_v8 = vmul.f32 %v7482_v61, %v4856_v33  ;;  %v7483_v56 = vstv %s7464_s20  ;;  %v1592_v30 = vmul.f32 %v7486_v22, %v5140_v41  ;;  %v7489_v33 = vstv %s7440_s3 }
 0x248   :  { %s5186_s14 = sld [smem:[#allocation5 + $0x141]]  ;;  %v5196_v59 = vmul.f32 %v7483_v56, %v4858_v24  ;;  %7488 = vst [vmem:[#allocation107_spill] sm:$0xff] %v5208_v43  ;;  %v5213_v61 = vmul.f32 %v7489_v33, %v4742_v26  ;;  %v1282_v56 = vpop.permute.xlu1 %1281  ;;  %v7493_v22 = vstv %s7356_s15  ;;  %v7496_v31 = vstv %s7330_s27 }
 0x249   :  { %s7484_s18 = sld [smem:[#allocation44_spill]]  ;;  %v7491_v10 = vstv %s7470_s0  ;;  %v1433_v54 = vmul.f32 %v7493_v22, %v5198_v45  ;;  %v1429_v26 = vmul.f32 %v7496_v31, %v5140_v41  ;;  %v5249_v31 = vld [vmem:[#allocation2] sm:$0xff] }
 0x24a   :  { %s7485_s6 = sld [smem:[#allocation20_spill]]  ;;  %7490 = vst [vmem:[#allocation108_spill] sm:$0xff] %v5213_v61  ;;  %v5218_v24 = vmul.f32 %v7491_v10, %v4752_v42  ;;  %v1284_v10 = vsel %vm232_vm14, %v4531_v51, %v1282_v56  ;;  %v7503_v51 = vstv %s7379_s30 }
 0x24b   :  { %7471 = sst [smem:[#allocation15_spill]] %s5161_s13  ;;  %1292 = vst [vmem:[#allocation2 + $0x28] sm:$0x3] %v1284_v10  ;;  %v1566_v56 = vmul.f32 %v7503_v51, %v5178_v15  ;;  %v7507_v10 = vstv %s7375_s1 }
 0x24c   :  { %s5203_s5 = sld [smem:[#allocation5 + $0x144]]  ;;  %v7492_v47 = vstv %s7475_s29  ;;  %v1557_v38 = vmul.f32 %v7507_v10, %v5249_v31 }
 0x24d   :  { %v1596_v57 = vmul.f32 %v7492_v47, %v5198_v45  ;;  %s7494_s10 = sld [smem:[#allocation40_spill]]  ;;  %v7498_v12 = vstv %s7481_s4  ;;  %v7499_v47 = vstv %s7368_s24 }
 0x24e   :  { %s5226_s26 = sld [smem:[#allocation5 + $0x146]]  ;;  %v5234_v42 = vmul.f32 %v7498_v12, %v4754_v49  ;;  %v1579_v33 = vmul.f32 %v7499_v47, %v5178_v15  ;;  %v1607_v49 = vadd.f32 %v1605_v50, %v4852_v46  ;;  %v1444_v12 = vadd.f32 %v1442_v21, %v4876_v16  ;;  %v1287_v16 = vpop.permute.xlu0 %1286 }
 0x24f   :  { %s7497_s3 = sld [smem:[#allocation33_spill]]  ;;  %v7500_v22 = vstv %s7484_s18  ;;  %v7504_v47 = vstv %s7387_s12  ;;  %v1594_v46 = vadd.f32 %v1592_v30, %v4926_v40  ;;  %v1601_v50 = vadd.f32 %v4803_v36, %v1596_v57 }
 0x250   :  { %v1416_v1 = vmul.f32 %v7500_v22, %v5178_v15  ;;  %v7501_v61 = vstv %s7485_s6  ;;  %s5247_s15 = sld [smem:[#allocation5 + $0x159]]  ;;  %v1403_v22 = vmul.f32 %v7504_v47, %v5178_v15  ;;  %v1438_v21 = vadd.f32 %v4825_v18, %v1433_v54 }
 0x251   :  { %v1583_v43 = vmul.f32 %v7501_v61, %v5198_v45  ;;  %s7502_s27 = sld [smem:[#allocation49_spill]]  ;;  %v1562_v30 = vadd.f32 %v4892_v11, %v1557_v38  ;;  %v7510_v18 = vstv %s7328_s25  ;;  %v1431_v54 = vadd.f32 %v1429_v26, %v5065_v2 }
 0x252   :  { %s5256_s24 = sld [smem:[#allocation5 + $0x15c]]  ;;  %v1420_v57 = vmul.f32 %v7510_v18, %v5198_v45  ;;  %v1568_v11 = vadd.f32 %v1566_v56, %v4924_v35 }
 0x253   :  { %v7505_v61 = vstv %s7494_s10  ;;  %s5271_s11 = sld [smem:[#allocation5 + $0x15e]]  ;;  %v1588_v51 = vadd.f32 %v4848_v25, %v1583_v43  ;;  %v7514_v43 = vstv %s7392_s23 }
 0x254   :  { %7495 = sst [smem:[#allocation43_spill]] %s5226_s26  ;;  %v1570_v41 = vmul.f32 %v7505_v61, %v5249_v31  ;;  %v1425_v38 = vadd.f32 %v5033_v48, %v1420_v57 }
 0x255   :  { %v7506_v7 = vstv %s7497_s3  ;;  %s5279_s30 = sld [smem:[#allocation5 + $0x121]]  ;;  %v1593_v2 = vadd.f32 %v4915_v60, %v1588_v51  ;;  %v7513_v60 = vstv %s7389_s17 }
 0x256   :  { %v1407_v19 = vmul.f32 %v7506_v7, %v5249_v31  ;;  %v1290_v7 = vsel %vm238_vm15, %v1287_v16, %v4525_v23  ;;  %v1575_v10 = vadd.f32 %v4840_v0, %v1570_v41  ;;  %s5286_s18 = sld [smem:[#allocation5 + $0x122]]  ;;  %v1581_v0 = vadd.f32 %v1579_v33, %v4850_v62  ;;  %v5309_v62 = vld [vmem:[#allocation2 + $0x28] sm:$0xff] }
 0x257   :  { %v7509_v47 = vstv %s7502_s27  ;;  %v1291_v36 = vsel %vm240_vm1, %v1290_v7, %v4525_v23  ;;  %s5295_s1 = sld [smem:[#allocation5 + $0x124]]  ;;  %v1405_v23 = vadd.f32 %v1403_v22, %v5016_v32  ;;  %v1567_v32 = vadd.f32 %v4910_v27, %v1562_v30 }
 0x258   :  { %v1394_v61 = vmul.f32 %v7509_v47, %v5249_v31  ;;  %v1412_v40 = vadd.f32 %v4881_v53, %v1407_v19  ;;  %1293 = vst [vmem:[#allocation2 + $0x3a] sm:$0x3] %v1291_v36  ;;  %v1418_v53 = vadd.f32 %v1416_v1, %v4854_v6  ;;  %s5301_s12 = sld [smem:[#allocation5 + $0x125]]  ;;  %v1443_v19 = vadd.f32 %v4808_v5, %v1438_v21 }
 0x259   :  { %7508 = sst [smem:[#allocation39_spill]] %s5271_s11  ;;  %v1580_v6 = vadd.f32 %v4835_v9, %v1575_v10  ;;  %v7512_v5 = vstv %s7384_s7  ;;  %v1463_v48 = vmul.f32 %v7513_v60, %v5309_v62  ;;  %v1613_v41 = vmul.f32 %v7514_v43, %v5309_v62 }
 0x25a   :  { %v1399_v25 = vadd.f32 %v4939_v37, %v1394_v61  ;;  %v1606_v37 = vadd.f32 %v4777_v14, %v1601_v50  ;;  %s5307_s25 = sld [smem:[#allocation5 + $0x126]]  ;;  %v1417_v35 = vadd.f32 %v4863_v13, %v1412_v40  ;;  %v1626_v14 = vmul.f32 %v7512_v5, %v5309_v62  ;;  %v7523_v61 = vld [vmem:[#allocation86_spill] sm:$0xff]  ;;  %v7536_v5 = vld [vmem:[#allocation89_spill] sm:$0xff] }
 0x25b   :  { %s5315_s20 = sld [smem:[#allocation5 + $0x139]]  ;;  %v1430_v26 = vadd.f32 %v5048_v58, %v1425_v38  ;;  %v1611_v13 = vadd.f32 %v1607_v49, %v1581_v0  ;;  %v1448_v9 = vadd.f32 %v1444_v12, %v1418_v53  ;;  %v1609_v27 = vadd.f32 %v1594_v46, %v1568_v11  ;;  %v7533_v38 = vld [vmem:[#allocation88_spill] sm:$0xff] }
 0x25c   :  { %v1404_v1 = vadd.f32 %v4955_v52, %v1399_v25  ;;  %s5327_s0 = sld [smem:[#allocation5 + $0x13a]]  ;;  %v7515_v52 = vstv %s7413_s9  ;;  %v1631_v56 = vadd.f32 %v4987_v39, %v1626_v14  ;;  %v1468_v22 = vadd.f32 %v4992_v63, %v1463_v48  ;;  %v7521_v39 = vld [vmem:[#allocation83_spill] sm:$0xff]  ;;  %v7522_v63 = vld [vmem:[#allocation84_spill] sm:$0xff] }
 0x25d   :  { %v1450_v33 = vmul.f32 %v7515_v52, %v5309_v62  ;;  %s5332_s29 = sld [smem:[#allocation5 + $0x13c]]  ;;  %v1618_v16 = vadd.f32 %v4999_v20, %v1613_v41  ;;  %v1446_v58 = vadd.f32 %v1431_v54, %v1405_v23  ;;  %v1610_v49 = vadd.f32 %v1606_v37, %v1580_v6  ;;  %v7531_v23 = vld [vmem:[#allocation85_spill] sm:$0xff] }
 0x25e   :  { %s7516_s7 = sld [smem:[#allocation30_spill]]  ;;  %v1447_v12 = vadd.f32 %v1443_v19, %v1417_v35  ;;  %v1608_v46 = vadd.f32 %v1593_v2, %v1567_v32  ;;  %v1636_v51 = vadd.f32 %v7521_v39, %v1631_v56  ;;  %v1473_v47 = vadd.f32 %v7522_v63, %v1468_v22  ;;  %v7532_v19 = vld [vmem:[#allocation87_spill] sm:$0xff]  ;;  %v7535_v32 = vld [vmem:[#allocation80_spill] sm:$0xff] }
 0x25f   :  { %s7517_s17 = sld [smem:[#allocation29_spill]]  ;;  %v1455_v50 = vadd.f32 %v5058_v3, %v1450_v33  ;;  %v5342_v21 = vld [vmem:[#allocation2 + $0x34] sm:$0xff]  ;;  %v1623_v20 = vadd.f32 %v7523_v61, %v1618_v16  ;;  %v1445_v7 = vadd.f32 %v1430_v26, %v1404_v1 }
 0x260   :  { %7511 = sst [smem:[#allocation45_spill]] %s5307_s25  ;;  %v1640_v54 = vadd.f32 %v1636_v51, %v1610_v49  ;;  %v1477_v0 = vadd.f32 %v1473_v47, %v1447_v12  ;;  %v7542_v12 = vld [vmem:[#allocation81_spill] sm:$0xff]  ;;  %v7545_v51 = vld [vmem:[#allocation82_spill] sm:$0xff] }
 0x261   :  { %s7518_s23 = sld [smem:[#allocation47_spill]]  ;;  %v1638_v53 = vadd.f32 %v1623_v20, %v1608_v46  ;;  %v1460_v11 = vadd.f32 %v5070_v28, %v1455_v50  ;;  %v7543_v46 = vrot.slane %v7542_v12, 2  ;;  %v7546_v63 = vrot.slane %v7545_v51, 2 }
 0x262   :  { %s7519_s6 = sld [smem:[#allocation58_spill]]  ;;  %v1645_v1 = vadd.f32 %v7535_v32, %v1640_v54  ;;  %v1482_v14 = vadd.f32 %v7536_v5, %v1477_v0  ;;  %v5488_v51 = vstv %s5126_s22 }
 0x263   :  { %s5337_s2 = sld [smem:[#allocation5 + $0x13d]]  ;;  %v1643_v60 = vadd.f32 %v7535_v32, %v1638_v53  ;;  %v1475_v48 = vadd.f32 %v1460_v11, %v1445_v7  ;;  %v1830_v11 = vadd.f32 %v5196_v59, %v5191_v8 }
 0x264   :  { %s5340_s9 = sld [smem:[#allocation5 + $0x13e]]  ;;  %v7525_v10 = vstv %s7516_s7  ;;  %vm1653_vm5 = vcmp.gt.f32.partialorder %v1645_v1, 0.0  ;;  %v1655_v52 = vmul.f32 0.01, %v1645_v1  ;;  %vm1490_vm6 = vcmp.gt.f32.partialorder %v1482_v14, 0.0 }
 0x265   :  { %s5347_s4 = sld [smem:[#allocation5 + $0x151]]  ;;  %v1635_v40 = vmul.f32 %v7525_v10, %v5342_v21  ;;  %v7526_v30 = vstv %s7517_s17  ;;  %vm1647_vm7 = vcmp.gt.f32.partialorder %v1643_v60, 0.0 }
 0x266   :  { %v1472_v36 = vmul.f32 %v7526_v30, %v5342_v21  ;;  %s5361_s10 = sld [smem:[#allocation5 + $0x152]]  ;;  %v1657_v16 = vsel %vm1653_vm5, %v1645_v1, %v1655_v52  ;;  %v7570_v52 = vld [vmem:[#allocation79_spill] sm:$0xff] }
 0x267   :  { %v7527_v3 = vstv %s7518_s23  ;;  %s5364_s3 = sld [smem:[#allocation5 + $0x154]]  ;;  %v1637_v37 = vadd.f32 %v1635_v40, %v7531_v23  ;;  %1689 = vst [vmem:[#allocation3 + $0x28] ss:$8 sps:$4 sm:$0x33] %v1657_v16  }
 0x268   :  { %v1622_v25 = vmul.f32 %v7527_v3, %v5342_v21  ;;  %v7528_v18 = vstv %s7519_s6  ;;  %v1474_v2 = vadd.f32 %v1472_v36, %v7532_v19  ;;  %s5370_s27 = sld [smem:[#allocation5 + $0x155]]  ;;  %1691 = vst [vmem:[#allocation3 + $0x2a] ss:$8 sps:$4 sm:$0xcc] %v1657_v16  }
 0x269   :  { %v1459_v57 = vmul.f32 %v7528_v18, %v5342_v21  ;;  %s5375_s7 = sld [smem:[#allocation5 + $0x156]]  ;;  %v1641_v28 = vadd.f32 %v1637_v37, %v1611_v13  ;;  %v1480_v18 = vadd.f32 %v7536_v5, %v1475_v48 }
 0x26a   :  { %7520 = sst [smem:[#allocation32_spill]] %s5340_s9  ;;  %v1624_v6 = vadd.f32 %v1622_v25, %v7533_v38  ;;  %v1478_v43 = vadd.f32 %v1474_v2, %v1448_v9  ;;  %v1649_v9 = vmul.f32 0.01, %v1643_v60 }
 0x26b   :  { %7524 = sst [smem:[#allocation36_spill]] %s5347_s4  ;;  %v1461_v35 = vadd.f32 %v1459_v57, %v5079_v34  ;;  %v1492_v34 = vmul.f32 0.01, %v1482_v14  ;;  %v1646_v33 = vadd.f32 %v7535_v32, %v1641_v28  ;;  %vm1484_vm2 = vcmp.gt.f32.partialorder %v1480_v18, 0.0  ;;  %v7566_v28 = vld [vmem:[#allocation77_spill] sm:$0xff] }
 0x26c   :  { %7529 = sst [smem:[#allocation37_spill]] %s5361_s10  ;;  %v1639_v41 = vadd.f32 %v1624_v6, %v1609_v27  ;;  %v1483_v56 = vadd.f32 %v7536_v5, %v1478_v43  ;;  %v7540_v27 = vld [vmem:[#allocation90_spill] sm:$0xff]  ;;  %v1651_v10 = vsel %vm1647_vm7, %v1643_v60, %v1649_v9  ;;  %v1486_v59 = vmul.f32 0.01, %v1480_v18  ;;  %s7560_s10 = smov 1  }
 0x26d   :  { %7530 = sst [smem:[#allocation23_spill]] %s5364_s3  ;;  %v1476_v26 = vadd.f32 %v1461_v35, %v1446_v58  ;;  %v1494_v13 = vsel %vm1490_vm6, %v1482_v14, %v1492_v34  ;;  %v1675_v58 = vsub.f32 %v1643_v60, %v7540_v27  ;;  %vm1654_vm8 = vcmp.gt.f32.partialorder %v1646_v33, 0.0  ;;  %1690 = vst [vmem:[#allocation3 + $0x28] ss:$6 sps:$4 sm:$0x3c] %v1651_v10   ;;  %v7576_v27 = vld [vmem:[#allocation108_spill] sm:$0xff] }
 0x26e   :  { %7534 = sst [smem:[#allocation19_spill]] %s5370_s27  ;;  %v1644_v22 = vadd.f32 %v7535_v32, %v1639_v41  ;;  %v1656_v49 = vmul.f32 0.01, %v1646_v33  ;;  %v1683_v50 = vsub.f32 %v1646_v33, %v7543_v46  ;;  %vm1491_vm9 = vcmp.gt.f32.partialorder %v1483_v56, 0.0  ;;  %1694 = vst [vmem:[#allocation3 + $0x2c] sm:$0xc0] %v1651_v10 }
 0x26f   :  { %7537 = sst [smem:[#allocation42_spill]] %s5375_s7  ;;  %1526 = vst [vmem:[#allocation3 + $0x4] ss:$8 sps:$4 sm:$0x33] %v1494_v13   ;;  %v1493_v39 = vmul.f32 0.01, %v1483_v56  ;;  %v1520_v47 = vsub.f32 %v1483_v56, %v7546_v63  ;;  %v1481_v53 = vadd.f32 %v7536_v5, %v1476_v26  ;;  %v7564_v32 = vstv %s4688_s8 }
 0x270   :  { %s5377_s17 = sld [smem:[#allocation5 + $0x131]]  ;;  %1528 = vst [vmem:[#allocation3 + $0x6] ss:$8 sps:$4 sm:$0xcc] %v1494_v13   ;;  %vm1648_vm10 = vcmp.gt.f32.partialorder %v1644_v22, 0.0  ;;  %v1658_v20 = vsel %vm1654_vm8, %v1646_v33, %v1656_v49  ;;  %vm1684_vm11 = vcmp.gt.f32.partialorder %v1683_v50, 0.0  ;;  %v1793_v1 = vmul.f32 %v7564_v32, %v4871_v55 }
 0x271   :  { %s5382_s23 = sld [smem:[#allocation5 + $0x134]]  ;;  %v1650_v61 = vmul.f32 0.01, %v1644_v22  ;;  %v1685_v7 = vmul.f32 0.01, %v1683_v50  ;;  %v1495_v40 = vsel %vm1491_vm9, %v1483_v56, %v1493_v39  ;;  %vm1521_vm12 = vcmp.gt.f32.partialorder %v1520_v47, 0.0 }
 0x272   :  { %s5385_s6 = sld [smem:[#allocation5 + $0x136]]  ;;  %1697 = vst [vmem:[#allocation3 + $0x38] ss:$8 sps:$4 sm:$0x33] %v1658_v20   ;;  %1699 = vst [vmem:[#allocation3 + $0x3a] sm:$0xc] %v1658_v20  ;;  %v1831_v5 = vadd.f32 %v5234_v42, %v5218_v24  ;;  %v1488_v14 = vsel %vm1484_vm2, %v1480_v18, %v1486_v59  ;;  %v5491_v63 = vstv %s5143_s16 }
 0x273   :  { %v1522_v30 = vmul.f32 0.01, %v1520_v47  ;;  %v1652_v36 = vsel %vm1648_vm10, %v1644_v22, %v1650_v61  ;;  %v1686_v3 = vsel %vm1684_vm11, %v1683_v50, %v1685_v7  ;;  %1534 = vst [vmem:[#allocation3 + $0x14] ss:$8 sps:$4 sm:$0x33] %v1495_v40   ;;  %vm1676_vm13 = vcmp.gt.f32.partialorder %v1675_v58, 0.0 }
 0x274   :  { %1536 = vst [vmem:[#allocation3 + $0x16] sm:$0xc] %v1495_v40  ;;  %v1677_v25 = vmul.f32 0.01, %v1675_v58  ;;  %v1687_v54 = vsel %vm54_vm0, %v1686_v3, %v1658_v20  ;;  %s7555_s7 = sld [smem:[#allocation50_spill]]  ;;  %vm1485_vm3 = vcmp.gt.f32.partialorder %v1481_v53, 0.0  ;;  %v5497_v61 = vstv %s5186_s14 }
 0x275   :  { %1696 = vst [vmem:[#allocation3 + $0x36] ss:$8 sps:$4 sm:$0x33] %v1652_v36   ;;  %1698 = vst [vmem:[#allocation3 + $0x38] ss:$8 sps:$4 sm:$0xcc] %v1652_v36   ;;  %v1523_v0 = vsel %vm1521_vm12, %v1520_v47, %v1522_v30  ;;  %v5500_v20 = vstv %s5203_s5  ;;  %v5513_v3 = vstv %s5279_s30 }
 0x276   :  { %7538 = sst [smem:[#allocation34_spill]] %s5377_s17  ;;  %v5409_v23 = vrot.slane %v1687_v54, 6  ;;  %1703 = vst [vmem:[#allocation3 + $0x3e] sm:$0xc0] %v1687_v54  ;;  %v1524_v37 = vsel %vm54_vm0, %v1523_v0, %v1495_v40  ;;  %v1678_v19 = vsel %vm1676_vm13, %v1675_v58, %v1677_v25  ;;  %v1487_v38 = vmul.f32 0.01, %v1481_v53 }
 0x277   :  { %7539 = sst [smem:[#allocation25_spill]] %s5382_s23  ;;  %v5415_v2 = vrot.slane %v1524_v37, 6  ;;  %1540 = vst [vmem:[#allocation3 + $0x1a] sm:$0xc0] %v1524_v37  ;;  %v5419_v8 = vsel %vm53_vm4, %v1678_v19, %v1651_v10  ;;  %1531 = vst [vmem:[#allocation3 + $0x8] sm:$0xc0] %v1488_v14  ;;  %v5504_v10 = vstv %s5247_s15  ;;  %v5509_v40 = vstv %s5256_s24 }
 0x278   :  { %7541 = sst [smem:[#allocation18_spill]] %s5385_s6  ;;  %7553 = vst [vmem:[#allocation83_spill] sm:$0xff] %v5409_v23  ;;  %7559 = vst [vmem:[#allocation86_spill] sm:$0xff] %v5419_v8  ;;  %1706 = vrot.lane.b32.xlu1 %v5409_v23, %s7560_s10  ;;  %v1489_v55 = vsel %vm1485_vm3, %v1481_v53, %v1487_v38  ;;  %v7569_v24 = vld [vmem:[#allocation104_spill] sm:$0xff]  ;;  %v7572_v33 = vld [vmem:[#allocation78_spill] sm:$0xff]  ;;  %v5518_v25 = vstv %s5286_s18  ;;  %v5529_v0 = vstv %s5301_s12  ;;  %v5536_v37 = vstv %s5327_s0 }
 0x279   :  { %s5389_s17 = sld [smem:[#allocation5 + $0x149]]  ;;  %7556 = vst [vmem:[#allocation84_spill] sm:$0xff] %v5415_v2  ;;  %1688 = vst [vmem:[#allocation3 + $0x26] sm:$0x3] %v5419_v8  ;;  %1543 = vrot.lane.b32.xlu0 %v5415_v2, %s7560_s10  ;;  %v5455_v42 = vadd.f32 %v7569_v24, %v5153_v29  ;;  %v7575_v29 = vld [vmem:[#allocation107_spill] sm:$0xff]  ;;  %s7577_s10 = smov 127   ;;  %v5541_v19 = vstv %s5332_s29 }
 0x27a   :  { %s5394_s6 = sld [smem:[#allocation5 + $0x14c]]  ;;  %v7565_v60 = vstv %s7555_s7  ;;  %1527 = vst [vmem:[#allocation3 + $0x4] ss:$6 sps:$4 sm:$0x3c] %v1488_v14   ;;  %7582 = vst [vmem:[#allocation85_spill] sm:$0xff] %v5513_v3  ;;  %v7639_v30 = vld [vmem:[#allocation100_spill] sm:$0xff] }
 0x27b   :  { %s7552_s23 = sld [smem:[#allocation46_spill]]  ;;  %v1833_v48 = vmul.f32 %v7565_v60, %v4971_v17  ;;  %1533 = vst [vmem:[#allocation3 + $0x12] ss:$8 sps:$4 sm:$0x33] %v1489_v55   ;;  %7583 = vst [vmem:[#allocation87_spill] sm:$0xff] %v5518_v25  ;;  %v7640_v39 = vld [vmem:[#allocation103_spill] sm:$0xff] }
 0x27c   :  { %s7557_s27 = sld [smem:[#allocation63_spill]]  ;;  %1535 = vst [vmem:[#allocation3 + $0x14] ss:$8 sps:$4 sm:$0xcc] %v1489_v55   ;;  %1711 = vrot.lane.b32.xlu1 %v5419_v8, %s7577_s10  ;;  %7586 = vst [vmem:[#allocation80_spill] sm:$0xff] %v5529_v0 }
 0x27d   :  { %s5421_s3 = sld [smem:[#allocation5 + $0x128]]  ;;  %v5466_v13 = vadd.f32 %v1833_v48, %v1830_v11  ;;  %v5533_v11 = vstv %s5315_s20  ;;  %7591 = vst [vmem:[#allocation90_spill] sm:$0xff] %v5536_v37  ;;  %7593 = vst [vmem:[#allocation81_spill] sm:$0xff] %v5541_v19  ;;  %v5555_v48 = vstv %s5337_s2  ;;  %v1988_v23 = vld [vmem:[#allocation3 + $0x44] sm:$0x3] }
 0x27e   :  { %s7563_s4 = sld [smem:[#allocation57_spill]]  ;;  %7589 = vst [vmem:[#allocation89_spill] sm:$0xff] %v5533_v11  ;;  %7599 = vst [vmem:[#allocation82_spill] sm:$0xff] %v5555_v48 }
 0x27f   :  { %7544 = sst [smem:[#allocation22_spill]] %s5389_s17 }
 0x280   :  { %7547 = sst [smem:[#allocation16_spill]] %s5394_s6 }
 0x281   :  { %s5396_s17 = sld [smem:[#allocation5 + $0x14e]]  ;;  %v7562_v6 = vstv %s7552_s23 }
 0x282   :  { %s5399_s6 = sld [smem:[#allocation5 + $0x161]]  ;;  %v5429_v35 = vmul.f32 %v7562_v6, %v4917_v44  ;;  %v7567_v43 = vstv %s7557_s27 }
 0x283   :  { %s5436_s9 = sld [smem:[#allocation5 + $0x12a]]  ;;  %v1734_v44 = vmul.f32 %v7567_v43, %v7566_v28  ;;  %v7600_v28 = vmov %v7567_v43  ;;  %v5637_v24 = vstv %s5421_s3 }
 0x284   :  { %s5450_s8 = sld [smem:[#allocation5 + $0x137]]  ;;  %v7573_v56 = vstv %s7563_s4  ;;  %v1733_v43 = vmul.f32 %v7600_v28, %v5249_v31 }
 0x285   :  { %v1835_v22 = vmul.f32 %v7573_v56, %v7572_v33  ;;  %s5463_s7 = sld [smem:[#allocation5 + $0x14f]]  ;;  %v5469_v9 = vadd.f32 %v7575_v29, %v1734_v44  ;;  %v7601_v44 = vld [vmem:[#allocation101_spill] sm:$0xff]  ;;  %v7614_v56 = vld [vmem:[#allocation91_spill] sm:$0xff] }
 0x286   :  { %s5474_s4 = sld [smem:[#allocation5 + $0x167]]  ;;  %v7618_v29 = vld [vmem:[#allocation97_spill] sm:$0xff] }
 0x287   :  { %7548 = sst [smem:[#allocation35_spill]] %s5396_s17  ;;  %v5482_v50 = vadd.f32 %v1835_v22, %v1831_v5 }
 0x288   :  { %7549 = sst [smem:[#allocation27_spill]] %s5399_s6 }
 0x289   :  { %s5407_s17 = sld [smem:[#allocation5 + $0x164]] }
 0x28a   :  { %s5413_s6 = sld [smem:[#allocation5 + $0x166]] }
 0x28b   :  { %s5484_s23 = sld [smem:[#allocation5 + $0x12b]] }
 0x28c   :  { %s7578_s19 = sld [smem:[#allocation17_spill]] }
 0x28d   :  { %s5494_s28 = sld [smem:[#allocation5 + $0x12d]] }
 0x28e   :  { %s5506_s22 = sld [smem:[#allocation5 + $0x140]] }
 0x28f   :  { %7551 = sst [smem:[#allocation21_spill]] %s5407_s17 }
 0x290   :  { %7554 = sst [smem:[#allocation24_spill]] %s5413_s6 }
 0x291   :  { %s7558_s17 = sld [smem:[#allocation69_spill]] }
 0x292   :  { %s7561_s6 = sld [smem:[#allocation76_spill]]  ;;  %v5524_v54 = vstv %s7578_s19 }
 0x293   :  { %s7579_s16 = sld [smem:[#allocation60_spill]] }
 0x294   :  { %s7580_s13 = sld [smem:[#allocation62_spill]] }
 0x295   :  { %s7581_s21 = sld [smem:[#allocation67_spill]] }
 0x296   :  { %s5515_s14 = sld [smem:[#allocation5 + $0x142]] }
 0x297   :  { %v7568_v41 = vstv %s7558_s17  ;;  %s7585_s5 = sld [smem:[#allocation68_spill]]  ;;  %v7624_v28 = vstv %s7558_s17 }
 0x298   :  { %v1760_v26 = vmul.f32 %v7568_v41, %v4740_v4  ;;  %v7571_v17 = vstv %s7561_s6  ;;  %v7574_v4 = vld [vmem:[#allocation95_spill] sm:$0xff]  ;;  %s5526_s15 = sld [smem:[#allocation5 + $0x143]] }
 0x299   :  { %v1790_v34 = vmul.f32 %v7571_v17, %v7570_v52  ;;  %v1512_v16 = vsub.f32 %v1480_v18, %v7574_v4  ;;  %v5521_v18 = vstv %s5295_s1  ;;  %s7588_s30 = sld [smem:[#allocation36_spill]]  ;;  %v7594_v59 = vstv %s7579_s16  ;;  %v7616_v4 = vld [vmem:[#allocation96_spill] sm:$0xff] }
 0x29a   :  { %v5472_v58 = vadd.f32 %v7576_v27, %v1760_v26  ;;  %7584 = vst [vmem:[#allocation88_spill] sm:$0xff] %v5521_v18  ;;  %s7590_s11 = sld [smem:[#allocation37_spill]]  ;;  %v1720_v38 = vmul.f32 %v7594_v59, %v5249_v31  ;;  %v7596_v6 = vstv %s7580_s13  ;;  %v7622_v59 = vld [vmem:[#allocation93_spill] sm:$0xff] }
 0x29b   :  { %v5480_v46 = vadd.f32 %v1793_v1, %v1790_v34  ;;  %v1514_v36 = vmul.f32 0.01, %v1512_v16  ;;  %vm1513_vm5 = vcmp.gt.f32.partialorder %v1512_v16, 0.0  ;;  %s5538_s18 = sld [smem:[#allocation5 + $0x145]]  ;;  %v1729_v32 = vmul.f32 %v7596_v6, %v5178_v15  ;;  %7637 = vst [vmem:[#allocation93_spill] sm:$0xff] %v5637_v24 }
 0x29c   :  { %s7592_s26 = sld [smem:[#allocation23_spill]]  ;;  %v7598_v1 = vstv %s7581_s21  ;;  %v1725_v22 = vadd.f32 %v7614_v56, %v1720_v38  ;;  %v1738_v6 = vadd.f32 %v7622_v59, %v1733_v43 }
 0x29d   :  { %s7595_s19 = sld [smem:[#allocation19_spill]]  ;;  %v1746_v5 = vmul.f32 %v7598_v1, %v5198_v45  ;;  %v1515_v60 = vsel %vm1513_vm5, %v1512_v16, %v1514_v36  ;;  %v7602_v41 = vstv %s7585_s5  ;;  %v1731_v16 = vadd.f32 %v1729_v32, %v7616_v4  ;;  %v7623_v1 = vld [vmem:[#allocation98_spill] sm:$0xff] }
 0x29e   :  { %s5552_s12 = sld [smem:[#allocation5 + $0x158]]  ;;  %v1755_v26 = vmul.f32 %v7602_v41, %v7601_v44  ;;  %v5567_v55 = vsel %vm53_vm4, %v1515_v60, %v1488_v14  ;;  %v1844_v14 = vrot.slane %v5482_v50, 2  ;;  %v1759_v41 = vmul.f32 %v7624_v28, %v5198_v45  ;;  %v7638_v45 = vld [vmem:[#allocation94_spill] sm:$0xff] }
 0x29f   :  { %s5563_s20 = sld [smem:[#allocation5 + $0x15a]]  ;;  %7604 = vst [vmem:[#allocation77_spill] sm:$0xff] %v5567_v55  ;;  %v5571_v52 = vstv %s7588_s30  ;;  %1548 = vrot.lane.b32.xlu0 %v5567_v55, %s7577_s10  ;;  %1525 = vst [vmem:[#allocation3 + $0x2] sm:$0x3] %v5567_v55  ;;  %v1751_v27 = vadd.f32 %v7618_v29, %v1746_v5  ;;  %v1743_v53 = vadd.f32 %v7638_v45, %v1738_v6 }
 0x2a0   :  { %s7603_s13 = sld [smem:[#allocation34_spill]]  ;;  %7605 = vst [vmem:[#allocation104_spill] sm:$0xff] %v5571_v52  ;;  %v5574_v17 = vstv %s7590_s11  ;;  %v1757_v60 = vadd.f32 %v1755_v26, %v7623_v1  ;;  %v7635_v1 = vld [vmem:[#allocation92_spill] sm:$0xff]  ;;  %v1764_v7 = vadd.f32 %v7639_v30, %v1759_v41  ;;  %v7644_v30 = vld [vmem:[#allocation102_spill] sm:$0xff]  ;;  %v5662_v41 = vstv %s5436_s9 }
 0x2a1   :  { %7606 = vst [vmem:[#allocation79_spill] sm:$0xff] %v5574_v17  ;;  %s5576_s21 = sld [smem:[#allocation5 + $0x15b]]  ;;  %v1730_v28 = vadd.f32 %v7635_v1, %v1725_v22  ;;  %7645 = vst [vmem:[#allocation98_spill] sm:$0xff] %v5662_v41 }
 0x2a2   :  { %s7607_s0 = sld [smem:[#allocation73_spill]]  ;;  %v5579_v31 = vstv %s7592_s26  ;;  %v1772_v47 = vadd.f32 %v1757_v60, %v1731_v16  ;;  %v1769_v16 = vadd.f32 %v7644_v30, %v1764_v7 }
 0x2a3   :  { %7608 = vst [vmem:[#allocation78_spill] sm:$0xff] %v5579_v31  ;;  %v5582_v34 = vstv %s7595_s19  ;;  %s7610_s29 = sld [smem:[#allocation75_spill]] }
 0x2a4   :  { %7609 = vst [vmem:[#allocation95_spill] sm:$0xff] %v5582_v34  ;;  %s7611_s2 = sld [smem:[#allocation25_spill]] }
 0x2a5   :  { %s7612_s27 = sld [smem:[#allocation18_spill]] }
 0x2a6   :  { %s7613_s11 = sld [smem:[#allocation22_spill]]  ;;  %v5595_v36 = vstv %s7603_s13 }
 0x2a7   :  { %s5589_s16 = sld [smem:[#allocation5 + $0x15d]]  ;;  %7621 = vst [vmem:[#allocation107_spill] sm:$0xff] %v5595_v36 }
 0x2a8   :  { %s7615_s5 = sld [smem:[#allocation16_spill]]  ;;  %v7626_v38 = vstv %s7607_s0 }
 0x2a9   :  { %s7617_s26 = sld [smem:[#allocation35_spill]]  ;;  %v1776_v32 = vmul.f32 %v7626_v38, %v5309_v62  ;;  %v7627_v5 = vstv %s7610_s29  ;;  %v7636_v38 = vld [vmem:[#allocation99_spill] sm:$0xff] }
 0x2aa   :  { %s7619_s30 = sld [smem:[#allocation27_spill]]  ;;  %v1785_v56 = vmul.f32 %v7627_v5, %v5342_v21  ;;  %v5613_v4 = vstv %s7611_s2  ;;  %v1756_v5 = vadd.f32 %v7636_v38, %v1751_v27  ;;  %v7641_v27 = vstv %s7561_s6 }
 0x2ab   :  { %s7620_s19 = sld [smem:[#allocation21_spill]]  ;;  %7628 = vst [vmem:[#allocation108_spill] sm:$0xff] %v5613_v4  ;;  %v1781_v12 = vadd.f32 %v7640_v39, %v1776_v32  ;;  %v1789_v1 = vmul.f32 %v7641_v27, %v5309_v62  ;;  %v5673_v27 = vstv %s5484_s23 }
 0x2ac   :  { %s5597_s1 = sld [smem:[#allocation5 + $0x120]]  ;;  %v5617_v33 = vstv %s7613_s11  ;;  %v1787_v22 = vadd.f32 %v1785_v56, %v5455_v42  ;;  %v1771_v62 = vadd.f32 %v1756_v5, %v1730_v28  ;;  %v7647_v42 = vld [vmem:[#allocation105_spill] sm:$0xff]  ;;  %7649 = vst [vmem:[#allocation92_spill] sm:$0xff] %v5673_v27 }
 0x2ad   :  { %s7625_s24 = sld [smem:[#allocation24_spill]]  ;;  %7629 = vst [vmem:[#allocation101_spill] sm:$0xff] %v5617_v33  ;;  %v1786_v32 = vadd.f32 %v7647_v42, %v1781_v12 }
 0x2ae   :  { %s5607_s25 = sld [smem:[#allocation5 + $0x123]]  ;;  %v5622_v43 = vstv %s7615_s5 }
 0x2af   :  { %s5619_s13 = sld [smem:[#allocation5 + $0x138]]  ;;  %7630 = vst [vmem:[#allocation91_spill] sm:$0xff] %v5622_v43  ;;  %v1801_v5 = vadd.f32 %v1786_v32, %v1771_v62 }
 0x2b0   :  { %s7631_s17 = sld [smem:[#allocation65_spill]]  ;;  %v5626_v26 = vstv %s7619_s30 }
 0x2b1   :  { %7632 = vst [vmem:[#allocation96_spill] sm:$0xff] %v5626_v26  ;;  %s7633_s0 = sld [smem:[#allocation71_spill]]  ;;  %v5629_v59 = vstv %s7620_s19 }
 0x2b2   :  { %7634 = vst [vmem:[#allocation97_spill] sm:$0xff] %v5629_v59  ;;  %s5631_s10 = sld [smem:[#allocation5 + $0x13b]] }
 0x2b3   :  { %s5639_s29 = sld [smem:[#allocation5 + $0x150]] }
 0x2b4   :  { %s5644_s2 = sld [smem:[#allocation5 + $0x153]] }
 0x2b5   :  { %s5656_s3 = sld [smem:[#allocation5 + $0x132]] }
 0x2b6   :  { %v7642_v38 = vstv %s7631_s17  ;;  %s5664_s11 = sld [smem:[#allocation5 + $0x135]] }
 0x2b7   :  { %v1742_v29 = vmul.f32 %v7642_v38, %v5178_v15  ;;  %v7643_v49 = vstv %s7633_s0  ;;  %s7646_s6 = sld [smem:[#allocation46_spill]]  ;;  %v7648_v15 = vld [vmem:[#allocation106_spill] sm:$0xff]  ;;  %v1806_v38 = vadd.f32 %v5524_v54, %v1801_v5 }
 0x2b8   :  { %v1768_v6 = vmul.f32 %v7643_v49, %v7601_v44  ;;  %v1794_v56 = vadd.f32 %v7648_v15, %v1789_v1  ;;  %v1802_v49 = vadd.f32 %v1787_v22, %v1772_v47  ;;  %s5668_s5 = sld [smem:[#allocation5 + $0x14a]]  ;;  %v1773_v44 = vadd.f32 %v1769_v16, %v1743_v53 }
 0x2b9   :  { %v1744_v7 = vadd.f32 %v1742_v29, %v5469_v9  ;;  %s5675_s9 = sld [smem:[#allocation5 + $0x14d]]  ;;  %v5686_v9 = vstv %s5494_s28  ;;  %v5689_v29 = vstv %s5506_s22  ;;  %v5692_v22 = vstv %s5515_s14 }
 0x2ba   :  { %v1799_v28 = vadd.f32 %v5429_v35, %v1794_v56  ;;  %v1807_v12 = vadd.f32 %v5524_v54, %v1802_v49  ;;  %v1770_v1 = vadd.f32 %v1768_v6, %v5472_v58  ;;  %s5680_s30 = sld [smem:[#allocation5 + $0x162]]  ;;  %7651 = vst [vmem:[#allocation99_spill] sm:$0xff] %v5686_v9  ;;  %7652 = vst [vmem:[#allocation94_spill] sm:$0xff] %v5689_v29  ;;  %v5701_v6 = vstv %s5526_s15 }
 0x2bb   :  { %7653 = vst [vmem:[#allocation100_spill] sm:$0xff] %v5692_v22  ;;  %s5694_s23 = sld [smem:[#allocation5 + $0x165]]  ;;  %7654 = vst [vmem:[#allocation103_spill] sm:$0xff] %v5701_v6  ;;  %v5704_v16 = vstv %s5538_s18  ;;  %vm1810_vm7 = vcmp.gt.f32.partialorder %v1806_v38, 0.0  ;;  %v1812_v42 = vmul.f32 0.01, %v1806_v38  ;;  %v1838_v15 = vsub.f32 %v1806_v38, %v5466_v13 }
 0x2bc   :  { %v1803_v35 = vadd.f32 %v1799_v28, %v1773_v44  ;;  %vm1811_vm6 = vcmp.gt.f32.partialorder %v1807_v12, 0.0  ;;  %v1813_v30 = vmul.f32 0.01, %v1807_v12  ;;  %s5697_s19 = sld [smem:[#allocation5 + $0x130]]  ;;  %v1774_v58 = vadd.f32 %v1770_v1, %v1744_v7  ;;  %7655 = vst [vmem:[#allocation102_spill] sm:$0xff] %v5704_v16 }
 0x2bd   :  { %v7650_v47 = vstv %s7646_s6  ;;  %s5706_s28 = sld [smem:[#allocation5 + $0x133]]  ;;  %v5713_v56 = vstv %s5552_s12  ;;  %v5716_v49 = vstv %s5563_s20  ;;  %v1814_v44 = vsel %vm1810_vm7, %v1806_v38, %v1812_v42 }
 0x2be   :  { %v1798_v53 = vmul.f32 %v7650_v47, %v5342_v21  ;;  %v1808_v62 = vadd.f32 %v5524_v54, %v1803_v35  ;;  %v1815_v32 = vsel %vm1811_vm6, %v1807_v12, %v1813_v30  ;;  %s5709_s22 = sld [smem:[#allocation5 + $0x148]]  ;;  %7656 = vst [vmem:[#allocation105_spill] sm:$0xff] %v5713_v56  ;;  %7657 = vst [vmem:[#allocation106_spill] sm:$0xff] %v5716_v49  ;;  %v5721_v28 = vstv %s5576_s21 }
 0x2bf   :  { %1859 = vst [vmem:[#allocation3 + $0x5a] ss:$8 sps:$4 sm:$0x33] %v1815_v32   ;;  %1861 = vst [vmem:[#allocation3 + $0x5c] ss:$8 sps:$4 sm:$0xcc] %v1815_v32   ;;  %v5727_v12 = vstv %s5589_s16  ;;  %v5732_v47 = vstv %s5597_s1  ;;  %v5738_v35 = vstv %s5619_s13  ;;  %v5753_v42 = vstv %s5644_s2 }
 0x2c0   :  { %v1800_v21 = vadd.f32 %v1798_v53, %v5480_v46  ;;  %s5718_s14 = sld [smem:[#allocation5 + $0x14b]]  ;;  %vm1816_vm8 = vcmp.gt.f32.partialorder %v1808_v62, 0.0  ;;  %v1818_v7 = vmul.f32 0.01, %v1808_v62  ;;  %7658 = vst [vmem:[#allocation109_spill] sm:$0xff] %v5721_v28  ;;  %vm1839_vm9 = vcmp.gt.f32.partialorder %v1838_v15, 0.0 }
 0x2c1   :  { %s5723_s15 = sld [smem:[#allocation7 + $0xc]]  ;;  %v1840_v13 = vmul.f32 0.01, %v1838_v15  ;;  %1853 = vst [vmem:[#allocation3 + $0x4c] ss:$6 sps:$4 sm:$0x3c] %v1814_v44   ;;  %v5735_v53 = vstv %s5607_s25  ;;  %v5759_v32 = vstv %s5656_s3 }
 0x2c2   :  { %v1804_v46 = vadd.f32 %v1800_v21, %v1774_v58  ;;  %1857 = vst [vmem:[#allocation3 + $0x50] sm:$0xc0] %v1814_v44  ;;  %7659 = vst [vmem:[#allocation110_spill] sm:$0xff] %v5727_v12  ;;  %s5729_s18 = sld [smem:[#allocation5 + $0x160]]  ;;  %v1820_v1 = vsel %vm1816_vm8, %v1808_v62, %v1818_v7  ;;  %v5747_v21 = vstv %s5631_s10  ;;  %v5750_v62 = vstv %s5639_s29  ;;  %s7667_s25 = smov 127  }
 0x2c3   :  { %7660 = vst [vmem:[#allocation111_spill] sm:$0xff] %v5732_v47  ;;  %7661 = vst [vmem:[#allocation112_spill] sm:$0xff] %v5735_v53  ;;  %v1841_v38 = vsel %vm1839_vm9, %v1838_v15, %v1840_v13  ;;  %v1980_v15 = vld [vmem:[#allocation3 + $0x2e] sm:$0xff]  ;;  %v5768_v7 = vstv %s5675_s9  ;;  %v5771_v13 = vstv %s5680_s30  ;;  %v5780_v45 = vstv %s5706_s28  ;;  %s7679_s10 = sld [smem:[#allocation61_spill]]  ;;  %s7689_s13 = smov 1  }
 0x2c4   :  { %v1809_v5 = vadd.f32 %v5524_v54, %v1804_v46  ;;  %7662 = vst [vmem:[#allocation113_spill] sm:$0xff] %v5738_v35  ;;  %1852 = vst [vmem:[#allocation3 + $0x4c] ss:$8 sps:$4 sm:$0x33] %v1820_v1   ;;  %v5744_v58 = vsel %vm53_vm4, %v1841_v38, %v1814_v44  ;;  %v5762_v46 = vstv %s5664_s11  ;;  %v5765_v44 = vstv %s5668_s5  ;;  %s7680_s1 = sld [smem:[#allocation64_spill]] }
 0x2c5   :  { %1854 = vst [vmem:[#allocation3 + $0x4e] ss:$8 sps:$4 sm:$0xcc] %v1820_v1   ;;  %7663 = vst [vmem:[#allocation114_spill] sm:$0xff] %v5744_v58  ;;  %1874 = vrot.lane.b32.xlu1 %v5744_v58, %s7667_s25  ;;  %v5774_v38 = vstv %s5694_s23  ;;  %v5794_v55 = vmul.f32 %v5488_v51, %v1980_v15  ;;  %s7683_s12 = sld [smem:[#allocation14_spill]] }
 0x2c6   :  { %vm1817_vm10 = vcmp.gt.f32.partialorder %v1809_v5, 0.0  ;;  %v1819_v30 = vmul.f32 0.01, %v1809_v5  ;;  %v1846_v54 = vsub.f32 %v1809_v5, %v1844_v14  ;;  %7664 = vst [vmem:[#allocation115_spill] sm:$0xff] %v5747_v21  ;;  %7665 = vst [vmem:[#allocation116_spill] sm:$0xff] %v5750_v62  ;;  %v5791_v2 = vstv %s5718_s14  ;;  %s7684_s20 = sld [smem:[#allocation31_spill]] }
 0x2c7   :  { %7666 = vst [vmem:[#allocation117_spill] sm:$0xff] %v5753_v42  ;;  %1851 = vst [vmem:[#allocation3 + $0x4a] sm:$0x3] %v5744_v58  ;;  %v5785_v39 = vstv %s5723_s15  ;;  %v5788_v58 = vstv %s5709_s22  ;;  %s7685_s21 = sld [smem:[#allocation26_spill]]  ;;  %v1979_v42 = vld [vmem:[#allocation3 + $0x26] sm:$0xff] }
 0x2c8   :  { %v1821_v50 = vsel %vm1817_vm10, %v1809_v5, %v1819_v30  ;;  %vm1847_vm11 = vcmp.gt.f32.partialorder %v1846_v54, 0.0  ;;  %v1848_v14 = vmul.f32 0.01, %v1846_v54  ;;  %7668 = vst [vmem:[#allocation118_spill] sm:$0xff] %v5759_v32  ;;  %7669 = vst [vmem:[#allocation119_spill] sm:$0xff] %v5762_v46  ;;  %v1981_v5 = vld [vmem:[#allocation3 + $0x36] sm:$0xff]  ;;  %v5777_v30 = vstv %s5697_s19 }
 0x2c9   :  { %1860 = vst [vmem:[#allocation3 + $0x5c] ss:$8 sps:$4 sm:$0x33] %v1821_v50   ;;  %1862 = vst [vmem:[#allocation3 + $0x5e] sm:$0xc] %v1821_v50  ;;  %v5802_v57 = vstv %s5729_s18  ;;  %v5805_v8 = vmul.f32 %v5488_v51, %v1981_v5  ;;  %s7686_s16 = sld [smem:[#allocation13_spill]] }
 0x2ca   :  { %7670 = vst [vmem:[#allocation120_spill] sm:$0xff] %v5765_v44  ;;  %7671 = vst [vmem:[#allocation121_spill] sm:$0xff] %v5768_v7  ;;  %v1849_v1 = vsel %vm1847_vm11, %v1846_v54, %v1848_v14  ;;  %v5797_v54 = vmul.f32 %v5491_v63, %v1980_v15  ;;  %v5826_v7 = vmul.f32 %v5504_v10, %v1981_v5  ;;  %v7690_v44 = vstv %s7679_s10  ;;  %s7697_s17 = sld [smem:[#allocation15_spill]] }
 0x2cb   :  { %7672 = vst [vmem:[#allocation122_spill] sm:$0xff] %v5771_v13  ;;  %7673 = vst [vmem:[#allocation123_spill] sm:$0xff] %v5774_v38  ;;  %v1850_v60 = vsel %vm54_vm0, %v1849_v1, %v1821_v50  ;;  %v1974_v50 = vld [vmem:[#allocation3 + $0x20] sm:$0x3]  ;;  %v5808_v38 = vmul.f32 %v5491_v63, %v1981_v5  ;;  %v5823_v13 = vmul.f32 %v5504_v10, %v1980_v15  ;;  %v7694_v62 = vstv %s7683_s12  ;;  %s7700_s0 = sld [smem:[#allocation43_spill]] }
 0x2cc   :  { %7674 = vst [vmem:[#allocation124_spill] sm:$0xff] %v5777_v30  ;;  %7675 = vst [vmem:[#allocation125_spill] sm:$0xff] %v5780_v45  ;;  %v5799_v14 = vrot.slane %v1850_v60, 6  ;;  %v1982_v1 = vld [vmem:[#allocation3 + $0x3e] sm:$0xff]  ;;  %v5832_v46 = vmul.f32 %v7690_v44, %v1988_v23  ;;  %v5839_v45 = vmul.f32 %v5509_v40, %v1980_v15  ;;  %v5842_v30 = vmul.f32 %v5509_v40, %v1981_v5  ;;  %v1987_v44 = vld [vmem:[#allocation3 + $0x26] sm:$0x3] }
 0x2cd   :  { %7676 = vst [vmem:[#allocation126_spill] sm:$0xff] %v5785_v39  ;;  %7677 = vst [vmem:[#allocation127_spill] sm:$0xff] %v5788_v58  ;;  %v5814_v39 = vmul.f32 %v5500_v20, %v1980_v15  ;;  %v7691_v58 = vstv %s7680_s1  ;;  %v5846_v21 = vmul.f32 %v7694_v62, %v1988_v23  ;;  %v7695_v12 = vstv %s7684_s20  ;;  %s7704_s29 = sld [smem:[#allocation39_spill]]  ;;  %v1966_v62 = vld [vmem:[#allocation3 + $0xa] sm:$0xff] }
 0x2ce   :  { %7678 = vst [vmem:[#allocation128_spill] sm:$0xff] %v5791_v2  ;;  %1866 = vst [vmem:[#allocation3 + $0x62] sm:$0xc0] %v1850_v60  ;;  %v5811_v2 = vmul.f32 %v5497_v61, %v1980_v15  ;;  %v5817_v60 = vmul.f32 %v5497_v61, %v1981_v5  ;;  %1869 = vrot.lane.b32.xlu0 %v5799_v14, %s7689_s13  ;;  %v5836_v32 = vmul.f32 %v7691_v58, %v1988_v23  ;;  %s7721_s2 = sld [smem:[#allocation45_spill]] }
 0x2cf   :  { %7681 = vst [vmem:[#allocation129_spill] sm:$0xff] %v5799_v14  ;;  %7682 = vst [vmem:[#allocation130_spill] sm:$0xff] %v5802_v57  ;;  %v5820_v57 = vmul.f32 %v5500_v20, %v1981_v5  ;;  %v5850_v35 = vmul.f32 %v7695_v12, %v1974_v50  ;;  %v7696_v14 = vstv %s7685_s21  ;;  %v5857_v58 = vmul.f32 %v5488_v51, %v1982_v1  ;;  %s7722_s3 = sld [smem:[#allocation32_spill]] }
 0x2d0   :  { %7687 = vst [vmem:[#allocation131_spill] sm:$0xff] %v5823_v13  ;;  %7688 = vst [vmem:[#allocation132_spill] sm:$0xff] %v5826_v7  ;;  %v5854_v53 = vmul.f32 %v7696_v14, %v1974_v50  ;;  %v7699_v15 = vstv %s7686_s16  ;;  %v5864_v5 = vmul.f32 %v5491_v63, %v1982_v1  ;;  %v5867_v23 = vmul.f32 %v5497_v61, %v1982_v1  ;;  %v1969_v14 = vld [vmem:[#allocation3 + $0x4] sm:$0xff]  ;;  %s7725_s11 = sld [smem:[#allocation42_spill]] }
 0x2d1   :  { %7692 = vst [vmem:[#allocation133_spill] sm:$0xff] %v5839_v45  ;;  %7693 = vst [vmem:[#allocation134_spill] sm:$0xff] %v5842_v30  ;;  %v5861_v47 = vmul.f32 %v7699_v15, %v1974_v50  ;;  %v5870_v12 = vmul.f32 %v5500_v20, %v1982_v1  ;;  %v5873_v30 = vmul.f32 %v5504_v10, %v1982_v1  ;;  %v1971_v45 = vld [vmem:[#allocation3 + $0x14] sm:$0xff]  ;;  %v7709_v49 = vstv %s7697_s17  ;;  %s6245_s6 = sld [smem:[#allocation7 + $0xd]] }
 0x2d2   :  { %7698 = vst [vmem:[#allocation135_spill] sm:$0xff] %v5857_v58  ;;  %7701 = vst [vmem:[#allocation136_spill] sm:$0xff] %v5864_v5  ;;  %v5876_v58 = vmul.f32 %v5509_v40, %v1982_v1  ;;  %v5879_v50 = vmul.f32 %v5488_v51, %v1979_v42  ;;  %v5882_v15 = vmul.f32 %v5491_v63, %v1979_v42  ;;  %v1967_v5 = vld [vmem:[#allocation3 + $0x12] sm:$0xff]  ;;  %s6268_s5 = sld [smem:[#allocation9]] }
 0x2d3   :  { %7702 = vst [vmem:[#allocation137_spill] sm:$0xff] %v5867_v23  ;;  %7703 = vst [vmem:[#allocation138_spill] sm:$0xff] %v5870_v12  ;;  %v1970_v23 = vld [vmem:[#allocation3 + $0xc] sm:$0xff]  ;;  %v2195_v12 = vmul.f32 %v7709_v49, %v1987_v44  ;;  %v5887_v7 = vmul.f32 %v5497_v61, %v1979_v42  ;;  %v5890_v13 = vmul.f32 %v5500_v20, %v1979_v42  ;;  %v7715_v63 = vstv %s7704_s29  ;;  %s6290_s9 = sld [smem:[#allocation9 + $0x1]] }
 0x2d4   :  { %7705 = vst [vmem:[#allocation139_spill] sm:$0xff] %v5873_v30  ;;  %7706 = vst [vmem:[#allocation140_spill] sm:$0xff] %v5876_v58  ;;  %v7712_v30 = vstv %s7700_s0  ;;  %v5895_v58 = vmul.f32 %v5504_v10, %v1979_v42  ;;  %v5898_v51 = vmul.f32 %v5509_v40, %v1979_v42  ;;  %v5906_v49 = vmul.f32 %v5513_v3, %v1967_v5  ;;  %s6293_s30 = sld [smem:[#allocation5 + $0x163]] }
 0x2d5   :  { %7707 = vst [vmem:[#allocation141_spill] sm:$0xff] %v5879_v50  ;;  %7708 = vst [vmem:[#allocation142_spill] sm:$0xff] %v5882_v15  ;;  %v2422_v1 = vmul.f32 %v7712_v30, %v1987_v44  ;;  %v2659_v15 = vmul.f32 %v7715_v63, %v1987_v44  ;;  %v5903_v50 = vmul.f32 %v5513_v3, %v1966_v62  ;;  %v5929_v63 = vld [vmem:[#allocation3 + $0x2c] sm:$0xff]  ;;  %s6303_s23 = sld [smem:[#allocation7 + $0xe]] }
 0x2d6   :  { %7710 = vst [vmem:[#allocation143_spill] sm:$0xff] %v5887_v7  ;;  %7711 = vst [vmem:[#allocation144_spill] sm:$0xff] %v5890_v13  ;;  %v5909_v61 = vmul.f32 %v5518_v25, %v1969_v14  ;;  %v5912_v20 = vmul.f32 %v5518_v25, %v1970_v23  ;;  %v5915_v10 = vmul.f32 %v5518_v25, %v1971_v45  ;;  %v1973_v13 = vld [vmem:[#allocation3 + $0x2] sm:$0x3]  ;;  %s6311_s19 = sld [smem:[#allocation9 + $0x2]] }
 0x2d7   :  { %7713 = vst [vmem:[#allocation145_spill] sm:$0xff] %v5895_v58  ;;  %7714 = vst [vmem:[#allocation146_spill] sm:$0xff] %v5898_v51  ;;  %v5918_v40 = vmul.f32 %v5521_v18, %v1966_v62  ;;  %v5921_v42 = vmul.f32 %v5521_v18, %v1967_v5  ;;  %v5924_v30 = vmul.f32 %v5529_v0, %v1969_v14  ;;  %s7805_s14 = sld [smem:[#allocation183_spill]] }
 0x2d8   :  { %7716 = vst [vmem:[#allocation147_spill] sm:$0xff] %v5909_v61  ;;  %7717 = vst [vmem:[#allocation148_spill] sm:$0xff] %v5912_v20  ;;  %v5927_v44 = vmul.f32 %v5529_v0, %v1970_v23  ;;  %v5931_v61 = vld [vmem:[#allocation3 + $0x34] sm:$0xff]  ;;  %v5934_v25 = vmul.f32 %v5529_v0, %v1971_v45  ;;  %v5937_v51 = vmul.f32 %v5533_v11, %v1966_v62 }
 0x2d9   :  { %7718 = vst [vmem:[#allocation149_spill] sm:$0xff] %v5915_v10  ;;  %7719 = vst [vmem:[#allocation150_spill] sm:$0xff] %v5924_v30  ;;  %v5940_v58 = vmul.f32 %v5533_v11, %v1967_v5  ;;  %v5943_v30 = vmul.f32 %v5536_v37, %v1969_v14  ;;  %v5946_v7 = vmul.f32 %v5536_v37, %v1970_v23 }
 0x2da   :  { %7720 = vst [vmem:[#allocation151_spill] sm:$0xff] %v5927_v44  ;;  %7723 = vst [vmem:[#allocation152_spill] sm:$0xff] %v5934_v25  ;;  %v5949_v18 = vmul.f32 %v5536_v37, %v1971_v45  ;;  %v5952_v0 = vmul.f32 %v5541_v19, %v1966_v62  ;;  %v5955_v3 = vmul.f32 %v5541_v19, %v1967_v5  ;;  %v7734_v37 = vstv %s7721_s2 }
 0x2db   :  { %7724 = vst [vmem:[#allocation153_spill] sm:$0xff] %v5943_v30  ;;  %7726 = vst [vmem:[#allocation154_spill] sm:$0xff] %v5946_v7  ;;  %v5958_v11 = vmul.f32 %v5555_v48, %v1969_v14  ;;  %v5961_v25 = vmul.f32 %v5555_v48, %v1970_v23  ;;  %v5964_v30 = vmul.f32 %v5555_v48, %v1971_v45  ;;  %v7735_v44 = vstv %s7722_s3 }
 0x2dc   :  { %7727 = vst [vmem:[#allocation155_spill] sm:$0xff] %v5949_v18  ;;  %7728 = vst [vmem:[#allocation156_spill] sm:$0xff] %v5952_v0  ;;  %v5967_v7 = vmul.f32 %v5571_v52, %v1966_v62  ;;  %v2191_v18 = vmul.f32 %v7734_v37, %v1973_v13  ;;  %v2418_v10 = vmul.f32 %v7735_v44, %v1973_v13  ;;  %v7738_v48 = vstv %s7725_s11  ;;  %v5987_v37 = vld [vmem:[#allocation3 + $0x30] sm:$0xff] }
 0x2dd   :  { %7729 = vst [vmem:[#allocation157_spill] sm:$0xff] %v5955_v3  ;;  %7730 = vst [vmem:[#allocation158_spill] sm:$0xff] %v5958_v11  ;;  %v2051_v19 = vmul.f32 %v5637_v24, %v5929_v63  ;;  %v2052_v3 = vmul.f32 %v5637_v24, %v5931_v61  ;;  %v5978_v11 = vmul.f32 %v5571_v52, %v1967_v5 }
 0x2de   :  { %7731 = vst [vmem:[#allocation159_spill] sm:$0xff] %v5961_v25  ;;  %7732 = vst [vmem:[#allocation160_spill] sm:$0xff] %v5964_v30  ;;  %v5981_v25 = vmul.f32 %v5574_v17, %v1969_v14  ;;  %v2655_v30 = vmul.f32 %v7738_v48, %v1973_v13  ;;  %v5990_v44 = vmul.f32 %v5574_v17, %v1970_v23 }
 0x2df   :  { %7733 = vst [vmem:[#allocation161_spill] sm:$0xff] %v5967_v7  ;;  %7736 = vst [vmem:[#allocation162_spill] sm:$0xff] %v5978_v11  ;;  %v2074_v7 = vmul.f32 %v5673_v27, %v5929_v63  ;;  %v5993_v20 = vmul.f32 %v5574_v17, %v1971_v45  ;;  %v5996_v0 = vmul.f32 %v5579_v31, %v1966_v62 }
 0x2e0   :  { %7737 = vst [vmem:[#allocation163_spill] sm:$0xff] %v5981_v25  ;;  %7739 = vst [vmem:[#allocation164_spill] sm:$0xff] %v5990_v44  ;;  %v2075_v52 = vmul.f32 %v5673_v27, %v5931_v61  ;;  %v6000_v25 = vld [vmem:[#allocation3 + $0x38] sm:$0xff]  ;;  %v6003_v48 = vmul.f32 %v5579_v31, %v1967_v5  ;;  %v6006_v13 = vmul.f32 %v5582_v34, %v1969_v14  ;;  %v6022_v31 = vld [vmem:[#allocation3 + $0x28] sm:$0xff] }
 0x2e1   :  { %7740 = vst [vmem:[#allocation165_spill] sm:$0xff] %v5993_v20  ;;  %7741 = vst [vmem:[#allocation166_spill] sm:$0xff] %v5996_v0  ;;  %v6009_v11 = vmul.f32 %v5582_v34, %v1970_v23  ;;  %v6012_v17 = vmul.f32 %v5582_v34, %v1971_v45  ;;  %v6014_v20 = vld [vmem:[#allocation3 + $0x3c] sm:$0xff]  ;;  %v6016_v62 = vadd.f32 %v2195_v12, %v2191_v18 }
 0x2e2   :  { %7742 = vst [vmem:[#allocation167_spill] sm:$0xff] %v6006_v13  ;;  %7743 = vst [vmem:[#allocation168_spill] sm:$0xff] %v6014_v20  ;;  %v6018_v44 = vadd.f32 %v2422_v1, %v2418_v10  ;;  %v2060_v0 = vadd.f32 %v5794_v55, %v2051_v19  ;;  %v2061_v5 = vadd.f32 %v5805_v8, %v2052_v3 }
 0x2e3   :  { %7744 = vst [vmem:[#allocation169_spill] sm:$0xff] %v6016_v62  ;;  %7746 = vst [vmem:[#allocation171_spill] sm:$0xff] %v6022_v31  ;;  %v6024_v14 = vadd.f32 %v2659_v15, %v2655_v30  ;;  %v6028_v23 = vadd.f32 %v5832_v46, %v5850_v35  ;;  %v2065_v45 = vmul.f32 %v5662_v41, %v5987_v37 }
 0x2e4   :  { %7745 = vst [vmem:[#allocation170_spill] sm:$0xff] %v6018_v44  ;;  %v2083_v18 = vadd.f32 %v5797_v54, %v2074_v7  ;;  %v2066_v12 = vmul.f32 %v5662_v41, %v6000_v25  ;;  %v2084_v19 = vadd.f32 %v5808_v38, %v2075_v52  ;;  %v2278_v8 = vmul.f32 %v5689_v29, %v5929_v63 }
 0x2e5   :  { %7747 = vst [vmem:[#allocation172_spill] sm:$0xff] %v6024_v14  ;;  %7748 = vst [vmem:[#allocation173_spill] sm:$0xff] %v6028_v23  ;;  %v2279_v3 = vmul.f32 %v5689_v29, %v5931_v61  ;;  %v6042_v55 = vadd.f32 %v5836_v32, %v5854_v53  ;;  %v6046_v35 = vadd.f32 %v5846_v21, %v5861_v47  ;;  %v1994_v47 = vld [vmem:[#allocation3 + $0x52] sm:$0xff]  ;;  %v7758_v23 = vld [vmem:[#allocation131_spill] sm:$0xff] }
 0x2e6   :  { %v6050_v46 = vmul.f32 %v5637_v24, %v6014_v20  ;;  %v2088_v52 = vmul.f32 %v5686_v9, %v5987_v37  ;;  %v6056_v7 = vmul.f32 %v5662_v41, %v6022_v31  ;;  %v6058_v38 = vadd.f32 %v2065_v45, %v2060_v0  ;;  %v1995_v45 = vld [vmem:[#allocation3 + $0x5a] sm:$0xff] }
 0x2e7   :  { %7749 = vst [vmem:[#allocation174_spill] sm:$0xff] %v6042_v55  ;;  %7750 = vst [vmem:[#allocation175_spill] sm:$0xff] %v6046_v35  ;;  %v6060_v54 = vadd.f32 %v2066_v12, %v2061_v5  ;;  %v2089_v53 = vmul.f32 %v5686_v9, %v6000_v25  ;;  %v6066_v21 = vmul.f32 %v5673_v27, %v6014_v20 }
 0x2e8   :  { %7751 = vst [vmem:[#allocation176_spill] sm:$0xff] %v6050_v46  ;;  %7752 = vst [vmem:[#allocation177_spill] sm:$0xff] %v6056_v7  ;;  %v6070_v32 = vmul.f32 %v5686_v9, %v6022_v31  ;;  %v6072_v15 = vadd.f32 %v2088_v52, %v2083_v18  ;;  %v6076_v0 = vmul.f32 %v5689_v29, %v6014_v20  ;;  %v1962_v46 = vld [vmem:[#allocation3 + $0x8] sm:$0xff]  ;;  %v1963_v20 = vld [vmem:[#allocation3 + $0x10] sm:$0xff] }
 0x2e9   :  { %7753 = vst [vmem:[#allocation178_spill] sm:$0xff] %v6066_v21  ;;  %v6078_v1 = vadd.f32 %v2089_v53, %v2084_v19  ;;  %v2287_v10 = vadd.f32 %v5811_v2, %v2278_v8  ;;  %v2288_v30 = vadd.f32 %v5817_v60, %v2279_v3  ;;  %v6084_v5 = vmul.f32 %v5692_v22, %v6022_v31  ;;  %v7761_v7 = vld [vmem:[#allocation133_spill] sm:$0xff]  ;;  %v6173_v31 = vld [vmem:[#allocation3 + $0x50] sm:$0xff] }
 0x2ea   :  { %7754 = vst [vmem:[#allocation179_spill] sm:$0xff] %v6070_v32  ;;  %7755 = vst [vmem:[#allocation180_spill] sm:$0xff] %v6076_v0  ;;  %v2292_v12 = vmul.f32 %v5692_v22, %v5987_v37  ;;  %v2293_v18 = vmul.f32 %v5692_v22, %v6000_v25  ;;  %v2301_v52 = vmul.f32 %v5701_v6, %v5929_v63  ;;  %v7764_v29 = vld [vmem:[#allocation113_spill] sm:$0xff] }
 0x2eb   :  { %7756 = vst [vmem:[#allocation181_spill] sm:$0xff] %v6084_v5  ;;  %v2302_v19 = vmul.f32 %v5701_v6, %v5931_v61  ;;  %v6095_v2 = vmul.f32 %v5595_v36, %v1994_v47  ;;  %v6098_v60 = vmul.f32 %v5613_v4, %v1994_v47  ;;  %v6101_v8 = vmul.f32 %v5617_v33, %v1994_v47  ;;  %v7759_v5 = vld [vmem:[#allocation132_spill] sm:$0xff] }
 0x2ec   :  { %v6104_v3 = vmul.f32 %v5622_v43, %v1994_v47  ;;  %v6107_v53 = vmul.f32 %v5626_v26, %v1994_v47  ;;  %v6110_v14 = vmul.f32 %v5629_v59, %v1994_v47  ;;  %v2515_v34 = vmul.f32 %v5713_v56, %v5929_v63 }
 0x2ed   :  { %v2516_v22 = vmul.f32 %v5713_v56, %v5931_v61  ;;  %v6117_v9 = vmul.f32 %v5595_v36, %v1995_v45  ;;  %v6119_v41 = vadd.f32 %v2292_v12, %v2287_v10  ;;  %v6121_v0 = vadd.f32 %v2293_v18, %v2288_v30 }
 0x2ee   :  { %v2538_v21 = vmul.f32 %v5721_v28, %v5929_v63  ;;  %v6126_v47 = vmul.f32 %v5613_v4, %v1995_v45  ;;  %v6129_v44 = vmul.f32 %v5617_v33, %v1995_v45  ;;  %v6132_v62 = vmul.f32 %v5622_v43, %v1995_v45  ;;  %v7782_v4 = vld [vmem:[#allocation162_spill] sm:$0xff] }
 0x2ef   :  { %v6135_v35 = vmul.f32 %v5626_v26, %v1995_v45  ;;  %v6138_v10 = vmul.f32 %v5629_v59, %v1995_v45  ;;  %v2310_v30 = vadd.f32 %v5814_v39, %v2301_v52  ;;  %v2311_v63 = vadd.f32 %v5820_v57, %v2302_v19  ;;  %v7760_v45 = vld [vmem:[#allocation106_spill] sm:$0xff]  ;;  %v7762_v52 = vld [vmem:[#allocation111_spill] sm:$0xff] }
 0x2f0   :  { %v2539_v12 = vmul.f32 %v5721_v28, %v5931_v61  ;;  %v2315_v18 = vmul.f32 %v5704_v16, %v5987_v37  ;;  %v2316_v55 = vmul.f32 %v5704_v16, %v6000_v25  ;;  %v2524_v13 = vadd.f32 %v7758_v23, %v2515_v34  ;;  %v7763_v28 = vld [vmem:[#allocation112_spill] sm:$0xff]  ;;  %v7765_v23 = vld [vmem:[#allocation134_spill] sm:$0xff] }
 0x2f1   :  { %7757 = vst [vmem:[#allocation182_spill] sm:$0xff] %v6138_v10  ;;  %v2525_v32 = vadd.f32 %v7759_v5, %v2516_v22  ;;  %v2529_v59 = vmul.f32 %v7760_v45, %v5987_v37  ;;  %v2547_v39 = vadd.f32 %v7761_v7, %v2538_v21  ;;  %v2005_v57 = vmul.f32 %v7762_v52, %v1962_v46  ;;  %v7766_v5 = vld [vmem:[#allocation110_spill] sm:$0xff]  ;;  %v7767_v21 = vld [vmem:[#allocation115_spill] sm:$0xff] }
 0x2f2   :  { %v2006_v19 = vmul.f32 %v7762_v52, %v1963_v20  ;;  %v2530_v61 = vmul.f32 %v7760_v45, %v6000_v25  ;;  %v2028_v56 = vmul.f32 %v7763_v28, %v1962_v46  ;;  %v2029_v6 = vmul.f32 %v7763_v28, %v1963_v20  ;;  %v7783_v10 = vld [vmem:[#allocation166_spill] sm:$0xff] }
 0x2f3   :  { %v2232_v34 = vmul.f32 %v7764_v29, %v1962_v46  ;;  %v2548_v22 = vadd.f32 %v7765_v23, %v2539_v12  ;;  %v2552_v27 = vmul.f32 %v7766_v5, %v5987_v37  ;;  %v2233_v7 = vmul.f32 %v7764_v29, %v1963_v20  ;;  %v6181_v29 = vld [vmem:[#allocation3 + $0x58] sm:$0xff] }
 0x2f4   :  { %v2255_v24 = vmul.f32 %v7767_v21, %v1962_v46  ;;  %v6165_v16 = vadd.f32 %v2315_v18, %v2310_v30  ;;  %v6167_v52 = vadd.f32 %v2316_v55, %v2311_v63  ;;  %v6169_v45 = vadd.f32 %v2529_v59, %v2524_v13  ;;  %v7769_v18 = vld [vmem:[#allocation116_spill] sm:$0xff] }
 0x2f5   :  { %v2553_v28 = vmul.f32 %v7766_v5, %v6000_v25  ;;  %v6175_v26 = vadd.f32 %v2530_v61, %v2525_v32  ;;  %v6177_v12 = vadd.f32 %v2552_v27, %v2547_v39  ;;  %v2014_v37 = vadd.f32 %v5903_v50, %v2005_v57  ;;  %v7768_v27 = vld [vmem:[#allocation156_spill] sm:$0xff]  ;;  %v7770_v39 = vld [vmem:[#allocation117_spill] sm:$0xff] }
 0x2f6   :  { %v2015_v23 = vadd.f32 %v5906_v49, %v2006_v19  ;;  %v2037_v55 = vadd.f32 %v5918_v40, %v2028_v56  ;;  %v2038_v59 = vadd.f32 %v5921_v42, %v2029_v6  ;;  %v2241_v13 = vadd.f32 %v5937_v51, %v2232_v34  ;;  %v7771_v6 = vld [vmem:[#allocation124_spill] sm:$0xff]  ;;  %v7773_v19 = vld [vmem:[#allocation149_spill] sm:$0xff] }
 0x2f7   :  { %v2256_v25 = vmul.f32 %v7767_v21, %v1963_v20  ;;  %v6187_v30 = vadd.f32 %v2553_v28, %v2548_v22  ;;  %v2242_v32 = vadd.f32 %v5940_v58, %v2233_v7  ;;  %v2264_v63 = vadd.f32 %v7768_v27, %v2255_v24  ;;  %v7772_v51 = vld [vmem:[#allocation148_spill] sm:$0xff]  ;;  %v7774_v24 = vld [vmem:[#allocation125_spill] sm:$0xff]  ;;  %v7775_v22 = vld [vmem:[#allocation151_spill] sm:$0xff] }
 0x2f8   :  { %v2469_v50 = vmul.f32 %v7769_v18, %v1962_v46  ;;  %v2470_v49 = vmul.f32 %v7769_v18, %v1963_v20  ;;  %v2492_v57 = vmul.f32 %v7770_v39, %v1962_v46  ;;  %v2493_v56 = vmul.f32 %v7770_v39, %v1963_v20  ;;  %v6203_v34 = vld [vmem:[#allocation3 + $0x54] sm:$0xff]  ;;  %v7777_v20 = vld [vmem:[#allocation154_spill] sm:$0xff] }
 0x2f9   :  { %v2105_v40 = vmul.f32 %v7771_v6, %v6173_v31  ;;  %v2023_v42 = vadd.f32 %v7772_v51, %v2014_v37  ;;  %v2024_v28 = vadd.f32 %v7773_v19, %v2015_v23  ;;  %v2106_v58 = vmul.f32 %v7771_v6, %v6181_v29  ;;  %v7776_v46 = vld [vmem:[#allocation152_spill] sm:$0xff]  ;;  %v7778_v18 = vld [vmem:[#allocation157_spill] sm:$0xff]  ;;  %v7779_v37 = vld [vmem:[#allocation155_spill] sm:$0xff] }
 0x2fa   :  { %v2128_v61 = vmul.f32 %v7774_v24, %v6173_v31  ;;  %v2046_v7 = vadd.f32 %v7775_v22, %v2037_v55  ;;  %v2047_v27 = vadd.f32 %v7776_v46, %v2038_v59  ;;  %v2250_v39 = vadd.f32 %v7777_v20, %v2241_v13  ;;  %v6209_v5 = vld [vmem:[#allocation3 + $0x5c] sm:$0xff]  ;;  %v7780_v51 = vld [vmem:[#allocation159_spill] sm:$0xff] }
 0x2fb   :  { %v2265_v21 = vadd.f32 %v7778_v18, %v2256_v25  ;;  %v2251_v23 = vadd.f32 %v7779_v37, %v2242_v32  ;;  %v2273_v19 = vadd.f32 %v7780_v51, %v2264_v63  ;;  %v7781_v6 = vld [vmem:[#allocation161_spill] sm:$0xff]  ;;  %v2114_v33 = vadd.f32 %v6095_v2, %v2105_v40  ;;  %v7784_v25 = vld [vmem:[#allocation118_spill] sm:$0xff] }
 0x2fc   :  { %v2478_v43 = vadd.f32 %v7781_v6, %v2469_v50  ;;  %v2479_v36 = vadd.f32 %v7782_v4, %v2470_v49  ;;  %v2501_v55 = vadd.f32 %v7783_v10, %v2492_v57  ;;  %v2502_v59 = vadd.f32 %v6003_v48, %v2493_v56  ;;  %v7785_v50 = vld [vmem:[#allocation160_spill] sm:$0xff]  ;;  %v7786_v48 = vld [vmem:[#allocation127_spill] sm:$0xff] }
 0x2fd   :  { %v2115_v13 = vadd.f32 %v6117_v9, %v2106_v58  ;;  %v2119_v18 = vmul.f32 %v7784_v25, %v6203_v34  ;;  %v2096_v22 = vadd.f32 %v6058_v38, %v2023_v42  ;;  %v2129_v32 = vmul.f32 %v7774_v24, %v6181_v29  ;;  %v7787_v49 = vld [vmem:[#allocation119_spill] sm:$0xff]  ;;  %v7855_v24 = vld [vmem:[#allocation181_spill] sm:$0xff] }
 0x2fe   :  { %v2137_v63 = vadd.f32 %v6098_v60, %v2128_v61  ;;  %v2274_v2 = vadd.f32 %v7785_v50, %v2265_v21  ;;  %v2120_v4 = vmul.f32 %v7784_v25, %v6209_v5  ;;  %v2097_v10 = vadd.f32 %v6060_v54, %v2024_v28  ;;  %v7788_v60 = vld [vmem:[#allocation164_spill] sm:$0xff]  ;;  %v7789_v21 = vld [vmem:[#allocation165_spill] sm:$0xff] }
 0x2ff   :  { %v2332_v9 = vmul.f32 %v7786_v48, %v6173_v31  ;;  %v2142_v57 = vmul.f32 %v7787_v49, %v6203_v34  ;;  %v2100_v38 = vadd.f32 %v6072_v15, %v2046_v7  ;;  %v2123_v56 = vadd.f32 %v2119_v18, %v2114_v33 }
 0x300   :  { %v2333_v6 = vmul.f32 %v7786_v48, %v6181_v29  ;;  %v6237_v40 = vadd.f32 %v7788_v60, %v2478_v43  ;;  %v6240_v42 = vadd.f32 %v7789_v21, %v2479_v36  ;;  %v6243_v54 = vadd.f32 %v6009_v11, %v2501_v55  ;;  %v7790_v11 = vld [vmem:[#allocation120_spill] sm:$0xff]  ;;  %v7796_v21 = vld [vmem:[#allocation123_spill] sm:$0xff] }
 0x301   :  { %v2124_v28 = vadd.f32 %v2120_v4, %v2115_v13  ;;  %v6248_v58 = vadd.f32 %v6012_v17, %v2502_v59  ;;  %v2138_v33 = vadd.f32 %v6126_v47, %v2129_v32  ;;  %v2146_v15 = vadd.f32 %v2142_v57, %v2137_v63  ;;  %v7791_v47 = vld [vmem:[#allocation121_spill] sm:$0xff]  ;;  %v7793_v32 = vld [vmem:[#allocation126_spill] sm:$0xff]  ;;  %v7853_v48 = vld [vmem:[#allocation147_spill] sm:$0xff] }
 0x302   :  { %v2150_v61 = vadd.f32 %v2123_v56, %v2096_v22  ;;  %v2143_v43 = vmul.f32 %v7787_v49, %v6209_v5  ;;  %v2341_v36 = vadd.f32 %v6101_v8, %v2332_v9  ;;  %v2342_v46 = vadd.f32 %v6129_v44, %v2333_v6  ;;  %v7792_v44 = vld [vmem:[#allocation122_spill] sm:$0xff] }
 0x303   :  { %v2151_v7 = vadd.f32 %v2124_v28, %v2097_v10  ;;  %v2346_v20 = vmul.f32 %v7790_v11, %v6203_v34  ;;  %v2347_v37 = vmul.f32 %v7790_v11, %v6209_v5  ;;  %v2101_v17 = vadd.f32 %v6078_v1, %v2047_v27  ;;  %v7794_v27 = vld [vmem:[#allocation128_spill] sm:$0xff] }
 0x304   :  { %v2154_v51 = vadd.f32 %v2146_v15, %v2100_v38  ;;  %v2369_v55 = vmul.f32 %v7791_v47, %v6203_v34  ;;  %v2370_v59 = vmul.f32 %v7791_v47, %v6209_v5  ;;  %v2323_v13 = vadd.f32 %v6119_v41, %v2250_v39 }
 0x305   :  { %v2324_v8 = vadd.f32 %v6121_v0, %v2251_v23  ;;  %v2583_v18 = vmul.f32 %v7792_v44, %v6203_v34  ;;  %v2147_v22 = vadd.f32 %v2143_v43, %v2138_v33  ;;  %v2159_v1 = vadd.f32 %v7793_v32, %v2150_v61 }
 0x306   :  { %v2355_v63 = vmul.f32 %v7794_v27, %v6173_v31  ;;  %v2160_v50 = vadd.f32 %v7793_v32, %v2151_v7  ;;  %v2350_v4 = vadd.f32 %v2346_v20, %v2341_v36  ;;  %v2351_v10 = vadd.f32 %v2347_v37, %v2342_v46 }
 0x307   :  { %v2356_v41 = vmul.f32 %v7794_v27, %v6181_v29  ;;  %v2155_v0 = vadd.f32 %v2147_v22, %v2101_v17  ;;  %v2163_v39 = vadd.f32 %v7793_v32, %v2154_v51  ;;  %v2327_v23 = vadd.f32 %v6165_v16, %v2273_v19  ;;  %v7845_v27 = vld [vmem:[#allocation145_spill] sm:$0xff] }
 0x308   :  { %v2364_v9 = vadd.f32 %v6104_v3, %v2355_v63  ;;  %v2377_v38 = vadd.f32 %v2350_v4, %v2323_v13  ;;  %v2378_v56 = vadd.f32 %v2351_v10, %v2324_v8  ;;  %v6281_v6 = vstv %s6245_s6 }
 0x309   :  { %v2365_v57 = vadd.f32 %v6132_v62, %v2356_v41  ;;  %7795 = vst [vmem:[#allocation131_spill] sm:$0xff] %v6281_v6  ;;  %v2584_v60 = vmul.f32 %v7792_v44, %v6209_v5  ;;  %v6287_v28 = vmul.f32 %v7796_v21, %v6203_v34  ;;  %v2171_v33 = vmul.f32 0.01, %v2159_v1  ;;  %v7797_v34 = vld [vmem:[#allocation130_spill] sm:$0xff] }
 0x30a   :  { %v2328_v15 = vadd.f32 %v6167_v52, %v2274_v2  ;;  %vm2167_vm12 = vcmp.gt.f32.partialorder %v2159_v1, 0.0  ;;  %v2172_v16 = vmul.f32 0.01, %v2160_v50  ;;  %v2373_v62 = vadd.f32 %v2369_v55, %v2364_v9  ;;  %v7842_v44 = vld [vmem:[#allocation78_spill] sm:$0xff] }
 0x30b   :  { %v2386_v3 = vadd.f32 %v6281_v6, %v2377_v38  ;;  %v6296_v19 = vadd.f32 %v7793_v32, %v2155_v0  ;;  %vm2168_vm13 = vcmp.gt.f32.partialorder %v2160_v50, 0.0  ;;  %v2183_v61 = vmul.f32 0.01, %v2163_v39 }
 0x30c   :  { %v2569_v43 = vmul.f32 %v7797_v34, %v6173_v31  ;;  %vm2179_vm2 = vcmp.gt.f32.partialorder %v2163_v39, 0.0  ;;  %v2374_v52 = vadd.f32 %v2370_v59, %v2365_v57  ;;  %v2381_v2 = vadd.f32 %v2373_v62, %v2327_v23 }
 0x30d   :  { %v2387_v7 = vadd.f32 %v6281_v6, %v2378_v56  ;;  %v2607_v36 = vmul.f32 %v7796_v21, %v6209_v5  ;;  %v2175_v46 = vsel %vm2167_vm12, %v2159_v1, %v2171_v33  ;;  %v6306_v20 = vstv %s6268_s5 }
 0x30e   :  { %7798 = vst [vmem:[#allocation132_spill] sm:$0xff] %v6306_v20  ;;  %v2570_v37 = vmul.f32 %v7797_v34, %v6181_v29  ;;  %v2176_v17 = vsel %vm2168_vm13, %v2160_v50, %v2172_v16  ;;  %v2382_v51 = vadd.f32 %v2374_v52, %v2328_v15  ;;  %v2398_v55 = vmul.f32 0.01, %v2386_v3 }
 0x30f   :  { %v2578_v13 = vadd.f32 %v6107_v53, %v2569_v43  ;;  %vm2180_vm3 = vcmp.gt.f32.partialorder %v6296_v19, 0.0  ;;  %v2184_v5 = vmul.f32 0.01, %v6296_v19  ;;  %v2187_v59 = vsel %vm2179_vm2, %v2163_v39, %v2183_v61 }
 0x310   :  { %vm2394_vm5 = vcmp.gt.f32.partialorder %v2386_v3, 0.0  ;;  %v2560_v8 = vadd.f32 %v6169_v45, %v6237_v40  ;;  %v2221_v22 = vmul.f32 %v6306_v20, %v2175_v46  ;;  %v2390_v1 = vadd.f32 %v6281_v6, %v2381_v2 }
 0x311   :  { %v2399_v63 = vmul.f32 0.01, %v2387_v7  ;;  %v2579_v53 = vadd.f32 %v6135_v35, %v2570_v37  ;;  %v2222_v50 = vmul.f32 %v6306_v20, %v2176_v17  ;;  %vm2395_vm6 = vcmp.gt.f32.partialorder %v2387_v7, 0.0  ;;  %v6356_v37 = vld [vmem:[#allocation3 + $0x4a] sm:$0xff] }
 0x312   :  { %v2561_v4 = vadd.f32 %v6175_v26, %v6240_v42  ;;  %v2587_v10 = vadd.f32 %v2583_v18, %v2578_v13  ;;  %v2391_v41 = vadd.f32 %v6281_v6, %v2382_v51  ;;  %v2402_v0 = vsel %vm2394_vm5, %v2386_v3, %v2398_v55  ;;  %v6360_v55 = vld [vmem:[#allocation3 + $0x4a] sm:$0x3]  ;;  %v1707_v13 = vpop.permute.xlu1 %1706 }
 0x313   :  { %v6326_v39 = vstv %s6290_s9  ;;  %v2564_v45 = vadd.f32 %v6177_v12, %v6243_v54  ;;  %v2565_v40 = vadd.f32 %v6187_v30, %v6248_v58  ;;  %v2588_v35 = vadd.f32 %v2584_v60, %v2579_v53  ;;  %v7802_v58 = vld [vmem:[#allocation182_spill] sm:$0xff]  ;;  %7804 = vst [vmem:[#allocation149_spill] sm:$0xff] %v6360_v55 }
 0x314   :  { %7799 = vst [vmem:[#allocation133_spill] sm:$0xff] %v6326_v39  ;;  %v6333_v23 = vstv %s6293_s30  ;;  %v2614_v9 = vadd.f32 %v2587_v10, %v2560_v8  ;;  %v2403_v57 = vsel %vm2395_vm6, %v2387_v7, %v2399_v63  ;;  %vm2406_vm7 = vcmp.gt.f32.partialorder %v2390_v1, 0.0  ;;  %v1544_v63 = vpop.permute.xlu0 %1543  ;;  %v7808_v10 = vld [vmem:[#allocation107_spill] sm:$0xff] }
 0x315   :  { %7800 = vst [vmem:[#allocation134_spill] sm:$0xff] %v6333_v23  ;;  %v2592_v26 = vmul.f32 %v6333_v23, %v6173_v31  ;;  %v2593_v42 = vmul.f32 %v6333_v23, %v6181_v29  ;;  %v2410_v18 = vmul.f32 0.01, %v2390_v1  ;;  %v2448_v38 = vmul.f32 %v6326_v39, %v2402_v0  ;;  %v7810_v0 = vld [vmem:[#allocation77_spill] sm:$0xff] }
 0x316   :  { %v2615_v12 = vadd.f32 %v2588_v35, %v2561_v4  ;;  %v6341_v54 = vstv %s6303_s23  ;;  %vm2407_vm8 = vcmp.gt.f32.partialorder %v2391_v41, 0.0  ;;  %v2411_v33 = vmul.f32 0.01, %v2391_v41  ;;  %v7811_v35 = vld [vmem:[#allocation108_spill] sm:$0xff] }
 0x317   :  { %7801 = vst [vmem:[#allocation156_spill] sm:$0xff] %v6341_v54  ;;  %v2601_v30 = vadd.f32 %v6110_v14, %v2592_v26  ;;  %v2602_v56 = vadd.f32 %v7802_v58, %v2593_v42  ;;  %v2623_v60 = vadd.f32 %v6341_v54, %v2614_v9  ;;  %v2449_v15 = vmul.f32 %v6326_v39, %v2403_v57 }
 0x318   :  { %v2624_v31 = vadd.f32 %v6341_v54, %v2615_v12  ;;  %v6349_v16 = vstv %s6311_s19  ;;  %v2414_v61 = vsel %vm2406_vm7, %v2390_v1, %v2410_v18  ;;  %v2456_v43 = vadd.f32 %v2448_v38, %v2221_v22  ;;  %v7814_v38 = vld [vmem:[#allocation101_spill] sm:$0xff] }
 0x319   :  { %7803 = vst [vmem:[#allocation148_spill] sm:$0xff] %v6349_v16  ;;  %v2610_v29 = vadd.f32 %v6287_v28, %v2601_v30  ;;  %v2611_v62 = vadd.f32 %v2607_v36, %v2602_v56  ;;  %vm2631_vm9 = vcmp.gt.f32.partialorder %v2623_v60, 0.0  ;;  %v2635_v3 = vmul.f32 0.01, %v2623_v60  ;;  %v1712_v30 = vpop.permute.xlu1 %1711 }
 0x31a   :  { %vm2632_vm10 = vcmp.gt.f32.partialorder %v2624_v31, 0.0  ;;  %v2636_v14 = vmul.f32 0.01, %v2624_v31  ;;  %v2188_v52 = vsel %vm2180_vm3, %v6296_v19, %v2184_v5  ;;  %v2225_v17 = vmul.f32 %v6306_v20, %v2187_v59  ;;  %v7807_v59 = vld [vmem:[#allocation86_spill] sm:$0xff] }
 0x31b   :  { %v2618_v2 = vadd.f32 %v2610_v29, %v2564_v45  ;;  %v2619_v7 = vadd.f32 %v2611_v62, %v2565_v40  ;;  %v2639_v46 = vsel %vm2631_vm9, %v2623_v60, %v2635_v3  ;;  %v2457_v28 = vadd.f32 %v2449_v15, %v2222_v50  ;;  %v6396_v15 = vld [vmem:[#allocation3 + $0x68] sm:$0x3] }
 0x31c   :  { %v2640_v36 = vsel %vm2632_vm10, %v2624_v31, %v2636_v14  ;;  %v2685_v51 = vmul.f32 %v6349_v16, %v2639_v46  ;;  %v2415_v8 = vsel %vm2407_vm8, %v2391_v41, %v2411_v33  ;;  %v2452_v22 = vmul.f32 %v6326_v39, %v2414_v61  ;;  %v1965_v33 = vld [vmem:[#allocation3 + $0x2] sm:$0xff]  ;;  %v7820_v46 = vld [vmem:[#allocation96_spill] sm:$0xff] }
 0x31d   :  { %v2627_v19 = vadd.f32 %v6341_v54, %v2618_v2  ;;  %v6368_v5 = vstv %s7805_s14  ;;  %v1709_v1 = vsel %vm232_vm14, %v7807_v59, %v1707_v13  ;;  %v2628_v53 = vadd.f32 %v6341_v54, %v2619_v7  ;;  %v7816_v31 = vld [vmem:[#allocation83_spill] sm:$0xff] }
 0x31e   :  { %7806 = vst [vmem:[#allocation151_spill] sm:$0xff] %v6368_v5  ;;  %v2686_v50 = vmul.f32 %v6349_v16, %v2640_v36  ;;  %v2693_v4 = vadd.f32 %v2685_v51, %v2456_v43  ;;  %v6376_v41 = vmul.f32 %v7808_v10, %v6356_v37  ;;  %1717 = vst [vmem:[#allocation3 + $0x24] sm:$0x3] %v1709_v1  ;;  %v7813_v57 = vstv %s7612_s27  ;;  %v7817_v43 = vld [vmem:[#allocation91_spill] sm:$0xff]  ;;  %v7826_v1 = vld [vmem:[#allocation85_spill] sm:$0xff] }
 0x31f   :  { %v1546_v45 = vsel %vm232_vm14, %v7810_v0, %v1544_v63  ;;  %vm2643_vm11 = vcmp.gt.f32.partialorder %v2627_v19, 0.0  ;;  %v2647_v40 = vmul.f32 0.01, %v2627_v19  ;;  %v6382_v9 = vmul.f32 %v7811_v35, %v6356_v37  ;;  %v7823_v13 = vld [vmem:[#allocation171_spill] sm:$0xff] }
 0x320   :  { %7809 = vst [vmem:[#allocation152_spill] sm:$0xff] %v6376_v41  ;;  %v6387_v26 = vmul.f32 %v7813_v57, %v6360_v55  ;;  %1554 = vst [vmem:[#allocation3] sm:$0x3] %v1546_v45  ;;  %v2694_v42 = vadd.f32 %v2686_v50, %v2457_v28  ;;  %v2706_v18 = vadd.f32 %v6368_v5, %v2693_v4  ;;  %v2648_v3 = vmul.f32 0.01, %v2628_v53  ;;  %v7827_v4 = vld [vmem:[#allocation88_spill] sm:$0xff] }
 0x321   :  { %7812 = vst [vmem:[#allocation154_spill] sm:$0xff] %v6382_v9  ;;  %v6392_v12 = vmul.f32 %v7814_v38, %v6356_v37  ;;  %v2226_v58 = vmul.f32 %v6306_v20, %v2188_v52  ;;  %v2453_v56 = vmul.f32 %v6326_v39, %v2415_v8  ;;  %v2651_v60 = vsel %vm2643_vm11, %v2627_v19, %v2647_v40  ;;  %v7824_v8 = vld [vmem:[#allocation102_spill] sm:$0xff]  ;;  %v7835_v20 = vld [vmem:[#allocation112_spill] sm:$0xff] }
 0x322   :  { %v1715_v29 = vsel %vm238_vm15, %v1712_v30, %v7816_v31  ;;  %v2460_v62 = vadd.f32 %v2452_v22, %v2225_v17  ;;  %v2707_v61 = vadd.f32 %v6368_v5, %v2694_v42  ;;  %v6403_v14 = vmul.f32 %v7817_v43, %v6356_v37  ;;  %v7825_v19 = vld [vmem:[#allocation106_spill] sm:$0xff]  ;;  %v7828_v42 = vld [vmem:[#allocation93_spill] sm:$0xff]  ;;  %v7829_v30 = vld [vmem:[#allocation92_spill] sm:$0xff] }
 0x323   :  { %7815 = vst [vmem:[#allocation157_spill] sm:$0xff] %v6392_v12  ;;  %v1716_v52 = vsel %vm240_vm1, %v1715_v29, %v7816_v31  ;;  %vm2644_vm12 = vcmp.gt.f32.partialorder %v2628_v53, 0.0  ;;  %3121 = vtanh.f32 %v2706_v18  ;;  %v7819_v2 = vstv %s7617_s26  ;;  %v7830_v31 = vld [vmem:[#allocation94_spill] sm:$0xff]  ;;  %v7834_v12 = vld [vmem:[#allocation111_spill] sm:$0xff]  ;;  %s7860_s26 = sld [smem:[#allocation184_spill]] }
 0x324   :  { %7818 = vst [vmem:[#allocation155_spill] sm:$0xff] %v6403_v14  ;;  %v6410_v7 = vmul.f32 %v7819_v2, %v6360_v55  ;;  %v6414_v28 = vmul.f32 %v7820_v46, %v6356_v37  ;;  %1718 = vst [vmem:[#allocation3 + $0x46] sm:$0x3] %v1716_v52  ;;  %v2689_v17 = vmul.f32 %v6349_v16, %v2651_v60  ;;  %3123 = vtanh.f32 %v2707_v61  ;;  %v7831_v61 = vld [vmem:[#allocation103_spill] sm:$0xff]  ;;  %v7840_v41 = vld [vmem:[#allocation142_spill] sm:$0xff] }
 0x325   :  { %v7822_v36 = vstv %s5450_s8  ;;  %v2314_v22 = vmul.f32 %v7824_v8, %v7823_v13  ;;  %v2528_v59 = vmul.f32 %v7825_v19, %v7823_v13  ;;  %v2009_v63 = vmul.f32 %v7826_v1, %v1965_v33  ;;  %v1975_v50 = vld [vmem:[#allocation3 + $0x24] sm:$0xff]  ;;  %v7844_v8 = vld [vmem:[#allocation144_spill] sm:$0xff] }
 0x326   :  { %7821 = vst [vmem:[#allocation159_spill] sm:$0xff] %v6414_v28  ;;  %v6420_v51 = vmul.f32 %v7822_v36, %v6396_v15  ;;  %v2032_v0 = vmul.f32 %v7827_v4, %v1965_v33  ;;  %v2461_v45 = vadd.f32 %v2453_v56, %v2226_v58  ;;  %v2652_v40 = vsel %vm2644_vm12, %v2628_v53, %v2648_v3  ;;  %v7832_v36 = vld [vmem:[#allocation105_spill] sm:$0xff]  ;;  %v7836_v53 = vld [vmem:[#allocation110_spill] sm:$0xff] }
 0x327   :  { %v2697_v57 = vadd.f32 %v2689_v17, %v2460_v62  ;;  %v2050_v18 = vmul.f32 %v7828_v42, %v1975_v50  ;;  %v2073_v60 = vmul.f32 %v7829_v30, %v1975_v50  ;;  %v2277_v29 = vmul.f32 %v7830_v31, %v1975_v50  ;;  %v1961_v2 = vld [vmem:[#allocation3] sm:$0xff]  ;;  %v7833_v28 = vld [vmem:[#allocation109_spill] sm:$0xff] }
 0x328   :  { %v2300_v52 = vmul.f32 %v7831_v61, %v1975_v50  ;;  %v2514_v55 = vmul.f32 %v7832_v36, %v1975_v50  ;;  %v2537_v14 = vmul.f32 %v7833_v28, %v1975_v50  ;;  %v2004_v39 = vmul.f32 %v7834_v12, %v1961_v2  ;;  %v7837_v56 = vld [vmem:[#allocation89_spill] sm:$0xff]  ;;  %v7841_v50 = vld [vmem:[#allocation104_spill] sm:$0xff] }
 0x329   :  { %v2027_v9 = vmul.f32 %v7835_v20, %v1961_v2  ;;  %v2551_v58 = vmul.f32 %v7836_v53, %v7823_v13  ;;  %v2236_v62 = vmul.f32 %v7837_v56, %v1965_v33  ;;  %v7838_v3 = vld [vmem:[#allocation81_spill] sm:$0xff]  ;;  %v2690_v42 = vmul.f32 %v6349_v16, %v2652_v40  ;;  %v7843_v13 = vld [vmem:[#allocation143_spill] sm:$0xff]  ;;  %v7846_v40 = vld [vmem:[#allocation146_spill] sm:$0xff] }
 0x32a   :  { %v2259_v17 = vmul.f32 %v7838_v3, %v1965_v33  ;;  %v7839_v30 = vld [vmem:[#allocation141_spill] sm:$0xff]  ;;  %v2082_v54 = vadd.f32 %v7840_v41, %v2073_v60  ;;  %v2013_v6 = vadd.f32 %v2009_v63, %v2004_v39  ;;  %v2473_v21 = vmul.f32 %v7841_v50, %v1965_v33  ;;  %v7848_v41 = vld [vmem:[#allocation115_spill] sm:$0xff] }
 0x32b   :  { %v2059_v31 = vadd.f32 %v7839_v30, %v2050_v18  ;;  %v2036_v32 = vadd.f32 %v2032_v0, %v2027_v9  ;;  %v2496_v23 = vmul.f32 %v7842_v44, %v1965_v33  ;;  %v2698_v34 = vadd.f32 %v2690_v42, %v2461_v45  ;;  %v7847_v18 = vld [vmem:[#allocation113_spill] sm:$0xff]  ;;  %v7849_v9 = vld [vmem:[#allocation116_spill] sm:$0xff]  ;;  %v7852_v42 = vld [vmem:[#allocation179_spill] sm:$0xff] }
 0x32c   :  { %v2718_v19 = vadd.f32 %v6368_v5, %v2697_v57  ;;  %v2286_v53 = vadd.f32 %v7843_v13, %v2277_v29  ;;  %v2309_v47 = vadd.f32 %v7844_v8, %v2300_v52  ;;  %v2523_v11 = vadd.f32 %v7845_v27, %v2514_v55  ;;  %v7850_v0 = vld [vmem:[#allocation117_spill] sm:$0xff]  ;;  %v7854_v13 = vld [vmem:[#allocation150_spill] sm:$0xff] }
 0x32d   :  { %v2546_v16 = vadd.f32 %v7846_v40, %v2537_v14  ;;  %v2231_v30 = vmul.f32 %v7847_v18, %v1961_v2  ;;  %v2254_v39 = vmul.f32 %v7848_v41, %v1961_v2  ;;  %v2468_v63 = vmul.f32 %v7849_v9, %v1961_v2  ;;  %v7851_v33 = vld [vmem:[#allocation177_spill] sm:$0xff]  ;;  %v1549_v40 = vpop.permute.xlu0 %1548 }
 0x32e   :  { %v2491_v60 = vmul.f32 %v7850_v0, %v1961_v2  ;;  %v2068_v45 = vadd.f32 %v7851_v33, %v2059_v31  ;;  %v2091_v57 = vadd.f32 %v7852_v42, %v2082_v54  ;;  %v2022_v29 = vadd.f32 %v7853_v48, %v2013_v6  ;;  %v7856_v33 = vld [vmem:[#allocation153_spill] sm:$0xff]  ;;  %v7857_v42 = vld [vmem:[#allocation158_spill] sm:$0xff]  ;;  %v7858_v6 = vld [vmem:[#allocation163_spill] sm:$0xff] }
 0x32f   :  { %v2045_v8 = vadd.f32 %v7854_v13, %v2036_v32  ;;  %v2240_v52 = vadd.f32 %v2236_v62, %v2231_v30  ;;  %v2263_v27 = vadd.f32 %v2259_v17, %v2254_v39  ;;  %v2477_v55 = vadd.f32 %v2473_v21, %v2468_v63  ;;  %v7859_v62 = vld [vmem:[#allocation167_spill] sm:$0xff]  ;;  %v7864_v17 = vld [vmem:[#allocation173_spill] sm:$0xff]  ;;  %v7865_v39 = vld [vmem:[#allocation174_spill] sm:$0xff] }
 0x330   :  { %v2500_v14 = vadd.f32 %v2496_v23, %v2491_v60  ;;  %v3122_v49 = vpop.eup %3121  ;;  %v2295_v25 = vadd.f32 %v7855_v24, %v2286_v53  ;;  %v2318_v9 = vadd.f32 %v2314_v22, %v2309_v47  ;;  %v2532_v2 = vadd.f32 %v2528_v59, %v2523_v11  ;;  %v7863_v47 = vld [vmem:[#allocation84_spill] sm:$0xff]  ;;  %v1996_v59 = vld [vmem:[#allocation3 + $0x62] sm:$0xff] }
 0x331   :  { %v2555_v0 = vadd.f32 %v2551_v58, %v2546_v16  ;;  %v3124_v31 = vpop.eup %3123  ;;  %v2249_v54 = vadd.f32 %v7856_v33, %v2240_v52  ;;  %v2272_v48 = vadd.f32 %v7857_v42, %v2263_v27  ;;  %v2486_v32 = vadd.f32 %v7858_v6, %v2477_v55  ;;  %2714 = vst [vmem:[%s7860_s26 + $0x8] sm:$0xff] %v3122_v49  ;;  %v7877_v33 = vld [vmem:[#allocation168_spill] sm:$0xff] }
 0x332   :  { %v2509_v30 = vadd.f32 %v7859_v62, %v2500_v14  ;;  %v7861_v21 = vstv %s5463_s7  ;;  %v7862_v24 = vstv %s5474_s4  ;;  %v1552_v16 = vsel %vm238_vm15, %v1549_v40, %v7863_v47  ;;  %2715 = vst [vmem:[%s7860_s26 + $0x10] sm:$0xff] %v3124_v31  ;;  %v1968_v14 = vld [vmem:[#allocation3 + $0x1a] sm:$0xff] }
 0x333   :  { %v2430_v23 = vmul.f32 %v7861_v21, %v6396_v15  ;;  %v2667_v11 = vmul.f32 %v7862_v24, %v6396_v15  ;;  %v2719_v22 = vadd.f32 %v6368_v5, %v2698_v34  ;;  %v1553_v53 = vsel %vm240_vm1, %v1552_v16, %v7863_v47  ;;  %v7867_v34 = vld [vmem:[#allocation175_spill] sm:$0xff]  ;;  %v7884_v47 = vld [vmem:[#allocation136_spill] sm:$0xff]  ;;  %v7908_v31 = vld [vmem:[#allocation82_spill] sm:$0xff] }
 0x334   :  { %3125 = vtanh.f32 %v2718_v19  ;;  %v6480_v49 = vadd.f32 %v2068_v45, %v2022_v29  ;;  %v6482_v58 = vadd.f32 %v2091_v57, %v2045_v8  ;;  %v6486_v15 = vadd.f32 %v6420_v51, %v7864_v17  ;;  %1555 = vst [vmem:[#allocation3 + $0x22] sm:$0x3] %v1553_v53  ;;  %v1964_v57 = vld [vmem:[#allocation3 + $0x18] sm:$0xff]  ;;  %v7881_v24 = vld [vmem:[#allocation135_spill] sm:$0xff]  ;;  %v7885_v16 = vld [vmem:[#allocation180_spill] sm:$0xff] }
 0x335   :  { %v6489_v63 = vadd.f32 %v2430_v23, %v7865_v39  ;;  %3127 = vtanh.f32 %v2719_v22  ;;  %v6491_v60 = vadd.f32 %v2295_v25, %v2249_v54  ;;  %v6494_v13 = vadd.f32 %v2667_v11, %v7867_v34  ;;  %v7871_v51 = vld [vmem:[#allocation97_spill] sm:$0xff]  ;;  %v7875_v25 = vld [vmem:[#allocation170_spill] sm:$0xff]  ;;  %v6549_v11 = vld [vmem:[#allocation3 + $0x4c] sm:$0xff] }
 0x336   :  { %v6496_v52 = vadd.f32 %v2318_v9, %v2272_v48  ;;  %v6498_v19 = vadd.f32 %v2532_v2, %v2486_v32  ;;  %v6500_v45 = vadd.f32 %v2555_v0, %v2509_v30  ;;  %v6504_v29 = vmul.f32 %v7871_v51, %v6356_v37  ;;  %v7873_v8 = vld [vmem:[#allocation169_spill] sm:$0xff]  ;;  %v1992_v32 = vld [vmem:[#allocation3 + $0x60] sm:$0xff]  ;;  %7882 = vst [vmem:[#allocation86_spill] sm:$0xff] %v6549_v11 }
 0x337   :  { %7866 = vst [vmem:[#allocation161_spill] sm:$0xff] %v6491_v60  ;;  %v6508_v27 = vadd.f32 %v6387_v26, %v7873_v8  ;;  %v6512_v55 = vadd.f32 %v6410_v7, %v7875_v25  ;;  %v2112_v9 = vmul.f32 %v7808_v10, %v1996_v59  ;;  %v2135_v40 = vmul.f32 %v7811_v35, %v1996_v59  ;;  %v1986_v39 = vld [vmem:[#allocation3 + $0x40] sm:$0xff] }
 0x338   :  { %7868 = vst [vmem:[#allocation162_spill] sm:$0xff] %v6496_v52  ;;  %7869 = vst [vmem:[#allocation166_spill] sm:$0xff] %v6498_v19  ;;  %v2339_v0 = vmul.f32 %v7814_v38, %v1996_v59  ;;  %v6518_v2 = vmul.f32 %v7817_v43, %v1996_v59  ;;  %v6521_v37 = vmul.f32 %v7820_v46, %v1996_v59  ;;  %v7911_v52 = vld [vmem:[#allocation79_spill] sm:$0xff] }
 0x339   :  { %7870 = vst [vmem:[#allocation160_spill] sm:$0xff] %v6500_v45  ;;  %7872 = vst [vmem:[#allocation164_spill] sm:$0xff] %v6504_v29  ;;  %v6526_v7 = vmul.f32 %v7871_v51, %v1996_v59  ;;  %v2303_v10 = vmul.f32 %v7831_v61, %v7877_v33  ;;  %v2517_v38 = vmul.f32 %v7832_v36, %v7877_v33  ;;  %v7890_v51 = vld [vmem:[#allocation124_spill] sm:$0xff]  ;;  %v7910_v45 = vld [vmem:[#allocation110_spill] sm:$0xff] }
 0x33a   :  { %7874 = vst [vmem:[#allocation165_spill] sm:$0xff] %v6508_v27  ;;  %7876 = vst [vmem:[#allocation182_spill] sm:$0xff] %v6512_v55  ;;  %v2540_v43 = vmul.f32 %v7833_v28, %v7877_v33  ;;  %v2007_v46 = vmul.f32 %v7834_v12, %v1964_v57  ;;  %v2030_v54 = vmul.f32 %v7835_v20, %v1964_v57  ;;  %v7878_v12 = vld [vmem:[#allocation116_spill] sm:$0xff]  ;;  %v7879_v20 = vld [vmem:[#allocation117_spill] sm:$0xff] }
 0x33b   :  { %v2234_v42 = vmul.f32 %v7847_v18, %v1964_v57  ;;  %v2012_v48 = vmul.f32 %v7826_v1, %v1968_v14  ;;  %v2035_v6 = vmul.f32 %v7827_v4, %v1968_v14  ;;  %v2239_v61 = vmul.f32 %v7837_v56, %v1968_v14  ;;  %v7880_v18 = vld [vmem:[#allocation176_spill] sm:$0xff]  ;;  %v7883_v4 = vld [vmem:[#allocation178_spill] sm:$0xff] }
 0x33c   :  { %v2262_v62 = vmul.f32 %v7838_v3, %v1968_v14  ;;  %v2476_v36 = vmul.f32 %v7841_v50, %v1968_v14  ;;  %v2499_v30 = vmul.f32 %v7842_v44, %v1968_v14  ;;  %v2257_v28 = vmul.f32 %v7848_v41, %v1964_v57  ;;  %v7886_v3 = vld [vmem:[#allocation137_spill] sm:$0xff]  ;;  %v7887_v50 = vld [vmem:[#allocation138_spill] sm:$0xff]  ;;  %v7888_v44 = vld [vmem:[#allocation139_spill] sm:$0xff] }
 0x33d   :  { %v2471_v21 = vmul.f32 %v7878_v12, %v1964_v57  ;;  %v2494_v23 = vmul.f32 %v7879_v20, %v1964_v57  ;;  %v2062_v1 = vadd.f32 %v7881_v24, %v7880_v18  ;;  %v2085_v56 = vadd.f32 %v7884_v47, %v7883_v4  ;;  %v7889_v41 = vld [vmem:[#allocation140_spill] sm:$0xff]  ;;  %v1972_v20 = vld [vmem:[#allocation3 + $0x1c] sm:$0xff]  ;;  %v1875_v24 = vpop.permute.xlu1 %1874 }
 0x33e   :  { %v2289_v22 = vadd.f32 %v7886_v3, %v7885_v16  ;;  %v2312_v59 = vadd.f32 %v7887_v50, %v2303_v10  ;;  %v2526_v53 = vadd.f32 %v7888_v44, %v2517_v38  ;;  %v2549_v17 = vadd.f32 %v7889_v41, %v2540_v43  ;;  %v7891_v47 = vld [vmem:[#allocation118_spill] sm:$0xff]  ;;  %v7892_v38 = vld [vmem:[#allocation125_spill] sm:$0xff]  ;;  %v7893_v43 = vld [vmem:[#allocation119_spill] sm:$0xff] }
 0x33f   :  { %v2016_v34 = vadd.f32 %v2012_v48, %v2007_v46  ;;  %v2039_v57 = vadd.f32 %v2035_v6, %v2030_v54  ;;  %v2107_v8 = vmul.f32 %v7890_v51, %v1992_v32  ;;  %v2243_v25 = vadd.f32 %v2239_v61, %v2234_v42  ;;  %v7894_v48 = vld [vmem:[#allocation98_spill] sm:$0xff]  ;;  %v7895_v6 = vld [vmem:[#allocation99_spill] sm:$0xff] }
 0x340   :  { %v2266_v14 = vadd.f32 %v2262_v62, %v2257_v28  ;;  %v2480_v33 = vadd.f32 %v2476_v36, %v2471_v21  ;;  %v2503_v12 = vadd.f32 %v2499_v30, %v2494_v23  ;;  %v6561_v10 = vmul.f32 %v7891_v47, %v6549_v11  ;;  %v7896_v62 = vld [vmem:[#allocation129_spill] sm:$0xff]  ;;  %v7897_v30 = vld [vmem:[#allocation127_spill] sm:$0xff]  ;;  %v7899_v23 = vld [vmem:[#allocation80_spill] sm:$0xff]  ;;  %v1870_v27 = vpop.permute.xlu0 %1869 }
 0x341   :  { %v3126_v18 = vpop.eup %3125  ;;  %v2116_v4 = vadd.f32 %v2112_v9, %v2107_v8  ;;  %v2130_v16 = vmul.f32 %v7892_v38, %v1992_v32  ;;  %v6566_v46 = vmul.f32 %v7893_v43, %v6549_v11  ;;  %v2067_v42 = vmul.f32 %v7894_v48, %v1986_v39  ;;  %v7898_v28 = vld [vmem:[#allocation87_spill] sm:$0xff]  ;;  %v7900_v8 = vld [vmem:[#allocation120_spill] sm:$0xff] }
 0x342   :  { %v3128_v54 = vpop.eup %3127  ;;  %v2090_v61 = vmul.f32 %v7895_v6, %v1986_v39  ;;  %v1878_v36 = vsel %vm238_vm15, %v1875_v24, %v7896_v62  ;;  %v2334_v9 = vmul.f32 %v7897_v30, %v1992_v32  ;;  %2726 = vst [vmem:[%s7860_s26 + $0x28] sm:$0xff] %v3126_v18  ;;  %v2021_v21 = vmul.f32 %v7898_v28, %v1972_v20  ;;  %v7902_v48 = vld [vmem:[#allocation128_spill] sm:$0xff]  ;;  %v7903_v6 = vld [vmem:[#allocation121_spill] sm:$0xff] }
 0x343   :  { %v2044_v3 = vmul.f32 %v7899_v23, %v1972_v20  ;;  %v1879_v50 = vsel %vm240_vm1, %v1878_v36, %v7896_v62  ;;  %v2139_v44 = vadd.f32 %v2135_v40, %v2130_v16  ;;  %2727 = vst [vmem:[%s7860_s26 + $0x30] sm:$0xff] %v3128_v54  ;;  %v6585_v24 = vmul.f32 %v7900_v8, %v6549_v11  ;;  %v7905_v23 = vld [vmem:[#allocation100_spill] sm:$0xff]  ;;  %v7906_v62 = vld [vmem:[#allocation102_spill] sm:$0xff] }
 0x344   :  { %1881 = vst [vmem:[#allocation3 + $0x6a] sm:$0x3] %v1879_v50  ;;  %v2343_v41 = vadd.f32 %v2339_v0, %v2334_v9  ;;  %v2357_v18 = vmul.f32 %v7902_v48, %v1992_v32  ;;  %v6590_v28 = vmul.f32 %v7903_v6, %v6549_v11  ;;  %v2294_v35 = vmul.f32 %v7905_v23, %v1986_v39  ;;  %v7907_v16 = vld [vmem:[#allocation90_spill] sm:$0xff]  ;;  %v7912_v11 = vld [vmem:[#allocation95_spill] sm:$0xff] }
 0x345   :  { %7901 = vst [vmem:[#allocation107_spill] sm:$0xff] %v6585_v24  ;;  %v2317_v40 = vmul.f32 %v7906_v62, %v1986_v39  ;;  %v2248_v36 = vmul.f32 %v7907_v16, %v1972_v20  ;;  %v2271_v54 = vmul.f32 %v7908_v31, %v1972_v20  ;;  %v2071_v50 = vadd.f32 %v2067_v42, %v2062_v1  ;;  %v7909_v9 = vld [vmem:[#allocation106_spill] sm:$0xff] }
 0x346   :  { %7904 = vst [vmem:[#allocation77_spill] sm:$0xff] %v6590_v28  ;;  %v2094_v0 = vadd.f32 %v2090_v61, %v2085_v56  ;;  %v2531_v26 = vmul.f32 %v7909_v9, %v1986_v39  ;;  %v2554_v19 = vmul.f32 %v7910_v45, %v1986_v39  ;;  %v2025_v29 = vadd.f32 %v2021_v21, %v2016_v34  ;;  %v7913_v62 = vld [vmem:[#allocation130_spill] sm:$0xff] }
 0x347   :  { %v2048_v55 = vadd.f32 %v2044_v3, %v2039_v57  ;;  %v2485_v60 = vmul.f32 %v7911_v52, %v1972_v20  ;;  %v2508_v28 = vmul.f32 %v7912_v11, %v1972_v20  ;;  %v2366_v23 = vadd.f32 %v6518_v2, %v2357_v18  ;;  %v7914_v16 = vld [vmem:[#allocation134_spill] sm:$0xff] }
 0x348   :  { %v2571_v24 = vmul.f32 %v7913_v62, %v1992_v32  ;;  %v2594_v5 = vmul.f32 %v7914_v16, %v1992_v32  ;;  %v7915_v31 = vld [vmem:[#allocation114_spill] sm:$0xff]  ;;  %v2298_v56 = vadd.f32 %v2294_v35, %v2289_v22  ;;  %v2321_v42 = vadd.f32 %v2317_v40, %v2312_v59 }
 0x349   :  { %v1872_v1 = vsel %vm232_vm14, %v7915_v31, %v1870_v27  ;;  %v2252_v61 = vadd.f32 %v2248_v36, %v2243_v25  ;;  %v2275_v45 = vadd.f32 %v2271_v54, %v2266_v14  ;;  %v2535_v39 = vadd.f32 %v2531_v26, %v2526_v53  ;;  %v7919_v36 = vld [vmem:[#allocation131_spill] sm:$0xff]  ;;  %v7921_v31 = vld [vmem:[#allocation152_spill] sm:$0xff] }
 0x34a   :  { %1880 = vst [vmem:[#allocation3 + $0x48] sm:$0x3] %v1872_v1  ;;  %v2558_v34 = vadd.f32 %v2554_v19, %v2549_v17  ;;  %v2580_v52 = vadd.f32 %v6521_v37, %v2571_v24  ;;  %v2603_v11 = vadd.f32 %v6526_v7, %v2594_v5  ;;  %v2098_v57 = vadd.f32 %v2071_v50, %v2025_v29  ;;  %v7916_v19 = vld [vmem:[#allocation122_spill] sm:$0xff]  ;;  %v7917_v37 = vld [vmem:[#allocation123_spill] sm:$0xff] }
 0x34b   :  { %v2102_v2 = vadd.f32 %v2094_v0, %v2048_v55  ;;  %v2489_v20 = vadd.f32 %v2485_v60, %v2480_v33  ;;  %v2512_v21 = vadd.f32 %v2508_v28, %v2503_v12  ;;  %v2000_v3 = vld [vmem:[#allocation3 + $0x64] sm:$0xff]  ;;  %v2325_v59 = vadd.f32 %v2298_v56, %v2252_v61  ;;  %v7920_v0 = vld [vmem:[#allocation156_spill] sm:$0xff] }
 0x34c   :  { %v2121_v32 = vmul.f32 %v7891_v47, %v2000_v3  ;;  %v2144_v27 = vmul.f32 %v7893_v43, %v2000_v3  ;;  %v2348_v35 = vmul.f32 %v7900_v8, %v2000_v3  ;;  %v2371_v22 = vmul.f32 %v7903_v6, %v2000_v3  ;;  %v7922_v56 = vld [vmem:[#allocation154_spill] sm:$0xff] }
 0x34d   :  { %v2329_v26 = vadd.f32 %v2321_v42, %v2275_v45  ;;  %v2585_v53 = vmul.f32 %v7916_v19, %v2000_v3  ;;  %v2608_v17 = vmul.f32 %v7917_v37, %v2000_v3  ;;  %v2562_v7 = vadd.f32 %v2535_v39, %v2489_v20 }
 0x34e   :  { %v2125_v5 = vadd.f32 %v2121_v32, %v2116_v4  ;;  %v2148_v29 = vadd.f32 %v2144_v27, %v2139_v44  ;;  %v2352_v55 = vadd.f32 %v2348_v35, %v2343_v41  ;;  %v2375_v60 = vadd.f32 %v2371_v22, %v2366_v23  ;;  %v7918_v44 = vld [vmem:[#allocation126_spill] sm:$0xff] }
 0x34f   :  { %v2566_v25 = vadd.f32 %v2558_v34, %v2512_v21  ;;  %v2589_v14 = vadd.f32 %v2585_v53, %v2580_v52  ;;  %v2612_v33 = vadd.f32 %v2608_v17, %v2603_v11  ;;  %v7923_v61 = vrot.slane %v6486_v15, 2  ;;  %v7925_v21 = vld [vmem:[#allocation132_spill] sm:$0xff] }
 0x350   :  { %v2152_v12 = vadd.f32 %v2125_v5, %v2098_v57  ;;  %v2156_v47 = vadd.f32 %v2148_v29, %v2102_v2  ;;  %v2379_v43 = vadd.f32 %v2352_v55, %v2325_v59  ;;  %v2383_v8 = vadd.f32 %v2375_v60, %v2329_v26  ;;  %v7926_v59 = vld [vmem:[#allocation133_spill] sm:$0xff] }
 0x351   :  { %v6613_v24 = vld [vmem:[#allocation3 + $0x48] sm:$0xff]  ;;  %v2616_v18 = vadd.f32 %v2589_v14, %v2562_v7  ;;  %v2620_v6 = vadd.f32 %v2612_v33, %v2566_v25  ;;  %v7924_v57 = vrot.slane %v6489_v63, 2 }
 0x352   :  { %v2104_v28 = vmul.f32 %v7890_v51, %v6613_v24  ;;  %v2127_v4 = vmul.f32 %v7892_v38, %v6613_v24  ;;  %v2161_v41 = vadd.f32 %v7918_v44, %v2152_v12  ;;  %v2165_v40 = vadd.f32 %v7918_v44, %v2156_v47 }
 0x353   :  { %v2388_v54 = vadd.f32 %v7919_v36, %v2379_v43  ;;  %v2392_v50 = vadd.f32 %v7919_v36, %v2383_v8  ;;  %v2625_v9 = vadd.f32 %v7920_v0, %v2616_v18  ;;  %v2629_v23 = vadd.f32 %v7920_v0, %v2620_v6  ;;  %v7929_v8 = vld [vmem:[#allocation148_spill] sm:$0xff] }
 0x354   :  { %v2113_v1 = vadd.f32 %v7921_v31, %v2104_v28  ;;  %v2136_v42 = vadd.f32 %v7922_v56, %v2127_v4  ;;  %vm2169_vm14 = vcmp.gt.f32.partialorder %v2161_v41, 0.0  ;;  %v2173_v51 = vmul.f32 0.01, %v2161_v41 }
 0x355   :  { %vm2181_vm15 = vcmp.gt.f32.partialorder %v2165_v40, 0.0  ;;  %v2185_v38 = vmul.f32 0.01, %v2165_v40  ;;  %v2214_v45 = vsub.f32 %v2165_v40, %v7923_v61  ;;  %vm2396_vm1 = vcmp.gt.f32.partialorder %v2388_v54, 0.0 }
 0x356   :  { %v2400_v39 = vmul.f32 0.01, %v2388_v54  ;;  %vm2408_vm13 = vcmp.gt.f32.partialorder %v2392_v50, 0.0  ;;  %v2177_v34 = vsel %vm2169_vm14, %v2161_v41, %v2173_v51  ;;  %v2412_v11 = vmul.f32 0.01, %v2392_v50  ;;  %v7930_v51 = vld [vmem:[#allocation157_spill] sm:$0xff] }
 0x357   :  { %v2189_v52 = vsel %vm2181_vm15, %v2165_v40, %v2185_v38  ;;  %v2441_v2 = vsub.f32 %v2392_v50, %v7924_v57  ;;  %vm2215_vm2 = vcmp.gt.f32.partialorder %v2214_v45, 0.0  ;;  %v2216_v20 = vmul.f32 0.01, %v2214_v45 }
 0x358   :  { %v2223_v3 = vmul.f32 %v7925_v21, %v2177_v34  ;;  %v2227_v32 = vmul.f32 %v7925_v21, %v2189_v52  ;;  %v2404_v27 = vsel %vm2396_vm1, %v2388_v54, %v2400_v39  ;;  %v2416_v35 = vsel %vm2408_vm13, %v2392_v50, %v2412_v11  ;;  %v7933_v34 = vld [vmem:[#allocation155_spill] sm:$0xff] }
 0x359   :  { %vm2442_vm3 = vcmp.gt.f32.partialorder %v2441_v2, 0.0  ;;  %v2443_v15 = vmul.f32 0.01, %v2441_v2  ;;  %v2217_v22 = vsel %vm2215_vm2, %v2214_v45, %v2216_v20  ;;  %v2450_v26 = vmul.f32 %v7926_v59, %v2404_v27  ;;  %v7932_v45 = vld [vmem:[#allocation107_spill] sm:$0xff]  ;;  %v7936_v27 = vld [vmem:[#allocation77_spill] sm:$0xff] }
 0x35a   :  { %v2454_v53 = vmul.f32 %v7926_v59, %v2416_v35  ;;  %vm2633_vm5 = vcmp.gt.f32.partialorder %v2625_v9, 0.0  ;;  %v2218_v63 = vsel %vm54_vm0, %v2217_v22, %v2189_v52  ;;  %v2637_v29 = vmul.f32 0.01, %v2625_v9 }
 0x35b   :  { %v2444_v5 = vsel %vm2442_vm3, %v2441_v2, %v2443_v15  ;;  %vm2645_vm6 = vcmp.gt.f32.partialorder %v2629_v23, 0.0  ;;  %v2229_v55 = vmul.f32 %v7925_v21, %v2218_v63  ;;  %v2458_v7 = vadd.f32 %v2450_v26, %v2223_v3  ;;  %v7934_v2 = vld [vmem:[#allocation165_spill] sm:$0xff]  ;;  %v7935_v3 = vld [vmem:[#allocation86_spill] sm:$0xff] }
 0x35c   :  { %v2445_v60 = vsel %vm54_vm0, %v2444_v5, %v2416_v35  ;;  %v2462_v25 = vadd.f32 %v2454_v53, %v2227_v32  ;;  %v2641_v33 = vsel %vm2633_vm5, %v2625_v9, %v2637_v29  ;;  %v2649_v12 = vmul.f32 0.01, %v2629_v23  ;;  %v7937_v35 = vld [vmem:[#allocation161_spill] sm:$0xff]  ;;  %v7938_v29 = vld [vmem:[#allocation162_spill] sm:$0xff] }
 0x35d   :  { %v2464_v14 = vmul.f32 %v7926_v59, %v2445_v60  ;;  %v7928_v47 = vrot.slane %v6494_v13, 2  ;;  %v2687_v18 = vmul.f32 %v7929_v8, %v2641_v33  ;;  %v2122_v6 = vadd.f32 %v6561_v10, %v2113_v1  ;;  %v7931_v1 = vld [vmem:[#allocation151_spill] sm:$0xff] }
 0x35e   :  { %v2145_v28 = vadd.f32 %v6566_v46, %v2136_v42  ;;  %v2331_v4 = vmul.f32 %v7897_v30, %v6613_v24  ;;  %v2653_v40 = vsel %vm2645_vm6, %v2629_v23, %v2649_v12  ;;  %v2354_v10 = vmul.f32 %v7902_v48, %v6613_v24 }
 0x35f   :  { %v2678_v43 = vsub.f32 %v2629_v23, %v7928_v47  ;;  %v2466_v41 = vadd.f32 %v2464_v14, %v2229_v55  ;;  %v2691_v50 = vmul.f32 %v7929_v8, %v2653_v40  ;;  %v2695_v9 = vadd.f32 %v2687_v18, %v2458_v7  ;;  %v7939_v7 = vld [vmem:[#allocation159_spill] sm:$0xff] }
 0x360   :  { %v2149_v31 = vadd.f32 %v2122_v6, %v6480_v49  ;;  %v2153_v13 = vadd.f32 %v2145_v28, %v6482_v58  ;;  %v2340_v38 = vadd.f32 %v7930_v51, %v2331_v4  ;;  %v2568_v46 = vmul.f32 %v7913_v62, %v6613_v24  ;;  %v7941_v28 = vld [vmem:[#allocation164_spill] sm:$0xff]  ;;  %v7944_v51 = vld [vmem:[#allocation166_spill] sm:$0xff] }
 0x361   :  { %vm2679_vm7 = vcmp.gt.f32.partialorder %v2678_v43, 0.0  ;;  %v2680_v54 = vmul.f32 0.01, %v2678_v43  ;;  %v2699_v23 = vadd.f32 %v2691_v50, %v2462_v25  ;;  %v2708_v42 = vadd.f32 %v7931_v1, %v2695_v9  ;;  %v7942_v50 = vld [vmem:[#allocation149_spill] sm:$0xff] }
 0x362   :  { %v2158_v61 = vadd.f32 %v7918_v44, %v2149_v31  ;;  %v2162_v58 = vadd.f32 %v7918_v44, %v2153_v13  ;;  %v2349_v39 = vadd.f32 %v7932_v45, %v2340_v38  ;;  %v2363_v52 = vadd.f32 %v7933_v34, %v2354_v10 }
 0x363   :  { %v2681_v56 = vsel %vm2679_vm7, %v2678_v43, %v2680_v54  ;;  %3129 = vtanh.f32 %v2708_v42  ;;  %v2720_v48 = vadd.f32 %v7931_v1, %v2699_v23  ;;  %v2582_v32 = vmul.f32 %v7916_v19, %v7935_v3  ;;  %v7940_v43 = vld [vmem:[#allocation182_spill] sm:$0xff]  ;;  %v7945_v23 = vld [vmem:[#allocation160_spill] sm:$0xff] }
 0x364   :  { %v2682_v30 = vsel %vm54_vm0, %v2681_v56, %v2653_v40  ;;  %vm2166_vm8 = vcmp.gt.f32.partialorder %v2158_v61, 0.0  ;;  %v2170_v62 = vmul.f32 0.01, %v2158_v61  ;;  %vm2178_vm0 = vcmp.gt.f32.partialorder %v2162_v58, 0.0 }
 0x365   :  { %v2701_v49 = vmul.f32 %v7929_v8, %v2682_v30  ;;  %v2182_v57 = vmul.f32 0.01, %v2162_v58  ;;  %v2206_v20 = vsub.f32 %v2158_v61, %v7934_v2  ;;  %3131 = vtanh.f32 %v2720_v48 }
 0x366   :  { %v2372_v44 = vadd.f32 %v7936_v27, %v2363_v52  ;;  %v2376_v15 = vadd.f32 %v2349_v39, %v7937_v35  ;;  %v2174_v26 = vsel %vm2166_vm8, %v2158_v61, %v2170_v62  ;;  %v2605_v63 = vmul.f32 %v7917_v37, %v7935_v3  ;;  %v7946_v61 = vld [vmem:[#allocation172_spill] sm:$0xff] }
 0x367   :  { %v2703_v11 = vadd.f32 %v2701_v49, %v2466_v41  ;;  %vm2207_vm9 = vcmp.gt.f32.partialorder %v2206_v20, 0.0  ;;  %v2208_v53 = vmul.f32 0.01, %v2206_v20  ;;  %v2186_v5 = vsel %vm2178_vm0, %v2162_v58, %v2182_v57 }
 0x368   :  { %v2380_v55 = vadd.f32 %v2372_v44, %v7938_v29  ;;  %v2385_v60 = vadd.f32 %v7919_v36, %v2376_v15  ;;  %v2577_v25 = vadd.f32 %v7939_v7, %v2568_v46  ;;  %v2591_v14 = vmul.f32 %v7914_v16, %v6613_v24 }
 0x369   :  { %v2732_v22 = vadd.f32 %v7931_v1, %v2703_v11  ;;  %v2209_v19 = vsel %vm2207_vm9, %v2206_v20, %v2208_v53  ;;  %v2220_v33 = vmul.f32 %v7925_v21, %v2174_v26  ;;  %v2224_v41 = vmul.f32 %v7925_v21, %v2186_v5 }
 0x36a   :  { %v2389_v12 = vadd.f32 %v7919_v36, %v2380_v55  ;;  %vm2393_vm10 = vcmp.gt.f32.partialorder %v2385_v60, 0.0  ;;  %v2397_v47 = vmul.f32 0.01, %v2385_v60  ;;  %v2210_v37 = vsel %vm53_vm4, %v2209_v19, %v2174_v26 }
 0x36b   :  { %3133 = vtanh.f32 %v2732_v22  ;;  %v2433_v18 = vsub.f32 %v2385_v60, %v7940_v43  ;;  %v2586_v6 = vadd.f32 %v2582_v32, %v2577_v25  ;;  %v2600_v4 = vadd.f32 %v7941_v28, %v2591_v14 }
 0x36c   :  { %v2401_v40 = vsel %vm2393_vm10, %v2385_v60, %v2397_v47  ;;  %vm2405_vm11 = vcmp.gt.f32.partialorder %v2389_v12, 0.0  ;;  %v2409_v16 = vmul.f32 0.01, %v2389_v12  ;;  %v7943_v9 = vstv %s7625_s24 }
 0x36d   :  { %vm2434_vm12 = vcmp.gt.f32.partialorder %v2433_v18, 0.0  ;;  %v2435_v24 = vmul.f32 0.01, %v2433_v18  ;;  %v2447_v54 = vmul.f32 %v7926_v59, %v2401_v40  ;;  %v2609_v36 = vadd.f32 %v2605_v63, %v2600_v4 }
 0x36e   :  { %v2665_v31 = vmul.f32 %v7943_v9, %v7942_v50  ;;  %v2228_v13 = vmul.f32 %v7925_v21, %v2210_v37  ;;  %v2413_v56 = vsel %vm2405_vm11, %v2389_v12, %v2409_v16  ;;  %v2613_v38 = vadd.f32 %v2586_v6, %v7944_v51 }
 0x36f   :  { %v2436_v10 = vsel %vm2434_vm12, %v2433_v18, %v2435_v24  ;;  %v2451_v46 = vmul.f32 %v7926_v59, %v2413_v56  ;;  %v2455_v30 = vadd.f32 %v2447_v54, %v2220_v33  ;;  %v2617_v42 = vadd.f32 %v2609_v36, %v7945_v23 }
 0x370   :  { %v2668_v49 = vadd.f32 %v2665_v31, %v7946_v61  ;;  %v2437_v58 = vsel %vm53_vm4, %v2436_v10, %v2401_v40  ;;  %v2622_v45 = vadd.f32 %v7920_v0, %v2613_v38  ;;  %v3130_v39 = vpop.eup %3129 }
 0x371   :  { %v2459_v34 = vadd.f32 %v2451_v46, %v2224_v41  ;;  %v2463_v21 = vmul.f32 %v7926_v59, %v2437_v58  ;;  %v2626_v52 = vadd.f32 %v7920_v0, %v2617_v42  ;;  %2716 = vst [vmem:[%s7860_s26 + $0x18] sm:$0xff] %v3130_v39 }
 0x372   :  { %vm2630_vm14 = vcmp.gt.f32.partialorder %v2622_v45, 0.0  ;;  %v2634_v48 = vmul.f32 0.01, %v2622_v45  ;;  %v2670_v62 = vsub.f32 %v2622_v45, %v2668_v49  ;;  %v3132_v11 = vpop.eup %3131 }
 0x373   :  { %v2465_v57 = vadd.f32 %v2463_v21, %v2228_v13  ;;  %vm2642_vm15 = vcmp.gt.f32.partialorder %v2626_v52, 0.0  ;;  %v2646_v2 = vmul.f32 0.01, %v2626_v52  ;;  %2728 = vst [vmem:[%s7860_s26 + $0x38] sm:$0xff] %v3132_v11 }
 0x374   :  { %v2638_v20 = vsel %vm2630_vm14, %v2622_v45, %v2634_v48  ;;  %vm2671_vm1 = vcmp.gt.f32.partialorder %v2670_v62, 0.0  ;;  %v2672_v59 = vmul.f32 0.01, %v2670_v62 }
 0x375   :  { %v2650_v3 = vsel %vm2642_vm15, %v2626_v52, %v2646_v2  ;;  %v2684_v0 = vmul.f32 %v7929_v8, %v2638_v20 }
 0x376   :  { %v2673_v27 = vsel %vm2671_vm1, %v2670_v62, %v2672_v59  ;;  %v2688_v44 = vmul.f32 %v7929_v8, %v2650_v3 }
 0x377   :  { %v2674_v35 = vsel %vm53_vm4, %v2673_v27, %v2638_v20  ;;  %v2692_v15 = vadd.f32 %v2684_v0, %v2455_v30 }
 0x378   :  { %v3134_v32 = vpop.eup %3133  ;;  %v2696_v22 = vadd.f32 %v2688_v44, %v2459_v34  ;;  %v2700_v26 = vmul.f32 %v7929_v8, %v2674_v35 }
 0x379   :  { %2734 = vst [vmem:[%s7860_s26 + $0x38] sm:$0xc0] %v3134_v32  ;;  %v2705_v53 = vadd.f32 %v7931_v1, %v2692_v15 }
 0x37a   :  { %v2702_v63 = vadd.f32 %v2700_v26, %v2465_v57  ;;  %v2717_v5 = vadd.f32 %v7931_v1, %v2696_v22 }
 0x37b   :  { %3135 = vtanh.f32 %v2705_v53 }
 0x37c   :  { %3137 = vtanh.f32 %v2717_v5  ;;  %v2729_v29 = vadd.f32 %v7931_v1, %v2702_v63 }
 0x37e   :  { %3139 = vtanh.f32 %v2729_v29 }
 0x388   :  { %v3136_v55 = vpop.eup %3135 }
 0x389   :  { %v3138_v60 = vpop.eup %3137  ;;  %2713 = vst [vmem:[%s7860_s26] sm:$0xff] %v3136_v55 }
 0x38a   :  { %2725 = vst [vmem:[%s7860_s26 + $0x20] sm:$0xff] %v3138_v60 }
 0x38b   :  { %v3140_v17 = vpop.eup %3139 }
 0x38c   :  { %2731 = vst [vmem:[%s7860_s26] sm:$0x3] %v3140_v17 }
 0x38d   :  { %2739 = vsyncpa [#allocation6], 1 }
 0x38e   :  { %2740 = vsyncpa [#allocation8], 1 }

</bundles_post_ra>
